<compile_context>
chip_gen: v5e
topology: v5e:2x2
jax: 0.10.0
libtpu: 0.0.40
codegen_flags: <defaults>
</compile_context>

<pallas_src>
import jax
import jax.numpy as jnp
from jax.experimental import pallas as pl
from jax.experimental.pallas import tpu as pltpu

BN_EPS = 1e-5


def _im2col_conv(pad_ref, col_ref, w_ref, H, W, C):
    """3x3 / stride-1 conv from a zero-padded (H+2, W+2, C) bf16 VMEM scratch.

    The 9 shifted (H*W, C) patches are staged into col_ref = (H*W, 9*C) and
    contracted against w_ref = (9*C, C_out) in a single dense-K MXU matmul
    (f32 accumulation).  Tap index k = dy*3 + dx matches the wrapper's weight
    reshape, so col[:, k*C + ci] pairs with w[(k*C + ci), co].
    """
    for dy in range(3):
        for dx in range(3):
            k = dy * 3 + dx
            patch = pad_ref[dy:dy + H, dx:dx + W, :]              # (H, W, C) bf16
            col_ref[:, k * C:(k + 1) * C] = patch.reshape(H * W, C)
    return jnp.dot(col_ref[...], w_ref[...], preferred_element_type=jnp.float32)


def basic_block_kernel(x_ref, w1_ref, t1_ref, w2_ref, t2_ref, o_ref,
                       pad_ref, col_ref):
    _, H, W, C = o_ref.shape

    # Zero only the 4 halo strips; the interior is fully overwritten before each
    # use.  NOT gated on program_id == 0: with a "parallel" batch axis each core
    # has its own scratch and may never execute step 0.
    pad_ref[0:1, :, :] = jnp.zeros((1, W + 2, C), pad_ref.dtype)
    pad_ref[H + 1:H + 2, :, :] = jnp.zeros((1, W + 2, C), pad_ref.dtype)
    pad_ref[1:H + 1, 0:1, :] = jnp.zeros((H, 1, C), pad_ref.dtype)
    pad_ref[1:H + 1, W + 1:W + 2, :] = jnp.zeros((H, 1, C), pad_ref.dtype)

    # conv1 (BN1 scale pre-folded into w1) -> + shift -> relu
    pad_ref[1:H + 1, 1:W + 1, :] = x_ref[0].astype(pad_ref.dtype)
    h = _im2col_conv(pad_ref, col_ref, w1_ref, H, W, C)           # (H*W, C) f32
    h = jnp.maximum(h + t1_ref[...], 0.0)

    # conv2 (BN2 scale pre-folded into w2) -> + shift
    pad_ref[1:H + 1, 1:W + 1, :] = h.reshape(H, W, C).astype(pad_ref.dtype)
    out = _im2col_conv(pad_ref, col_ref, w2_ref, H, W, C)         # (H*W, C) f32
    out = out + t2_ref[...]

    # Residual add + relu.  Re-read x from its VMEM input buffer instead of
    # keeping an f32 copy live across both convolutions.
    out = jnp.maximum(out + x_ref[0].astype(jnp.float32).reshape(H * W, C), 0.0)
    # Note: for C < 128 this store is a masked vst (half-empty lanes); a
    # lane-dense output slab was evaluated but skipped per review ("measure first").
    o_ref[0] = out.reshape(H, W, C).astype(o_ref.dtype)


def _fold_bn(gamma, beta, mean, var):
    scale = gamma * jax.lax.rsqrt(var + BN_EPS)
    shift = beta - mean * scale
    return scale.astype(jnp.float32), shift.reshape(1, -1).astype(jnp.float32)


def _conv_bn_weight(w, scale):
    # (C_out, C_in, 3, 3) -> (9*C_in, C_out), row index (dy*3 + dx)*C_in + c_in,
    # with the BN output-channel scale folded in (exact: conv has no bias).
    # bf16 for the MXU; accumulation is f32 inside the kernel.
    c_out, c_in = w.shape[0], w.shape[1]
    taps = jnp.transpose(w, (2, 3, 1, 0)).reshape(9 * c_in, c_out)
    return (taps * scale[None, :]).astype(jnp.bfloat16)


def basic_block(x_nchw, params):
    B, C, H, W = x_nchw.shape
    # stride=1, downsample=None  =>  inplanes == planes
    assert params["conv1_w"].shape == (C, C, 3, 3)
    assert params["conv2_w"].shape == (C, C, 3, 3)

    # NHWC inside the kernel: channels on the lane axis for the channel-contraction
    # matmuls.  TODO(synk): if the surrounding model runs NHWC, drop these two
    # boundary transposes (each is a full HBM read+write of the activations).
    x = jnp.transpose(x_nchw, (0, 2, 3, 1))

    s1, t1 = _fold_bn(params["bn1_gamma"], params["bn1_beta"],
                      params["bn1_mean"], params["bn1_var"])
    s2, t2 = _fold_bn(params["bn2_gamma"], params["bn2_beta"],
                      params["bn2_mean"], params["bn2_var"])
    w1 = _conv_bn_weight(params["conv1_w"], s1)
    w2 = _conv_bn_weight(params["conv2_w"], s2)

    # Constant-index (grid-resident) weights: single-buffer them — double
    # buffering only wastes VMEM since the block never changes.
    resident = dict(pipeline_mode=pl.Buffered(1))

    out = pl.pallas_call(
        basic_block_kernel,
        out_shape=jax.ShapeDtypeStruct((B, H, W, C), x_nchw.dtype),
        grid_spec=pltpu.PrefetchScalarGridSpec(
            num_scalar_prefetch=0,
            grid=(B,),
            in_specs=[
                pl.BlockSpec((1, H, W, C), lambda b: (b, 0, 0, 0)),      # x tile
                pl.BlockSpec((9 * C, C), lambda b: (0, 0), **resident),  # conv1+bn1 taps
                pl.BlockSpec((1, C), lambda b: (0, 0)),                  # bn1 shift
                pl.BlockSpec((9 * C, C), lambda b: (0, 0), **resident),  # conv2+bn2 taps
                pl.BlockSpec((1, C), lambda b: (0, 0)),                  # bn2 shift
            ],
            out_specs=pl.BlockSpec((1, H, W, C), lambda b: (b, 0, 0, 0)),
            scratch_shapes=[
                pltpu.VMEM((H + 2, W + 2, C), jnp.bfloat16),   # zero-padded activations
                pltpu.VMEM((H * W, 9 * C), jnp.bfloat16),      # im2col staging buffer
            ],
        ),
        compiler_params=pltpu.CompilerParams(
            dimension_semantics=("parallel",)),
    )(x, w1, t1, w2, t2)

    return jnp.transpose(out, (0, 3, 1, 2))


def init_params(key, planes):
    keys = jax.random.split(key, 10)
    fan_in = planes * 9
    bound = 1.0 / jnp.sqrt(jnp.float32(fan_in))
    conv1_w = jax.random.uniform(keys[0], (planes, planes, 3, 3), jnp.float32, -bound, bound)
    conv2_w = jax.random.uniform(keys[1], (planes, planes, 3, 3), jnp.float32, -bound, bound)
    return {
        "conv1_w": conv1_w,
        "conv2_w": conv2_w,
        # BatchNorm2d parameters / running stats (randomized so the fold is exercised).
        "bn1_gamma": 1.0 + 0.1 * jax.random.normal(keys[2], (planes,), jnp.float32),
        "bn1_beta": 0.1 * jax.random.normal(keys[3], (planes,), jnp.float32),
        "bn1_mean": 0.1 * jax.random.normal(keys[4], (planes,), jnp.float32),
        "bn1_var": 1.0 + 0.1 * jax.random.uniform(keys[5], (planes,), jnp.float32),
        "bn2_gamma": 1.0 + 0.1 * jax.random.normal(keys[6], (planes,), jnp.float32),
        "bn2_beta": 0.1 * jax.random.normal(keys[7], (planes,), jnp.float32),
        "bn2_mean": 0.1 * jax.random.normal(keys[8], (planes,), jnp.float32),
        "bn2_var": 1.0 + 0.1 * jax.random.uniform(keys[9], (planes,), jnp.float32),
    }


def basic_block_ref(x, params):
    """Pure-JAX reference (inference-mode BN), NCHW, f32."""
    def conv(v, w):
        return jax.lax.conv_general_dilated(
            v, w, window_strides=(1, 1), padding=((1, 1), (1, 1)),
            dimension_numbers=("NCHW", "OIHW", "NCHW"))

    def bn(v, g, b, m, var):
        g = g[None, :, None, None]; b = b[None, :, None, None]
        m = m[None, :, None, None]; var = var[None, :, None, None]
        return (v - m) * jax.lax.rsqrt(var + BN_EPS) * g + b

    out = conv(x, params["conv1_w"])
    out = jnp.maximum(bn(out, params["bn1_gamma"], params["bn1_beta"],
                         params["bn1_mean"], params["bn1_var"]), 0.0)
    out = bn(conv(out, params["conv2_w"]),
             params["bn2_gamma"], params["bn2_beta"],
             params["bn2_mean"], params["bn2_var"])
    return jnp.maximum(out + x, 0.0)


if __name__ == "__main__":
    B, C, H, W = 2, 64, 16, 16          # inplanes = planes = 64
    key = jax.random.PRNGKey(0)
    kx, kp = jax.random.split(key)

    x = jax.random.normal(kx, (B, C, H, W), jnp.float32)
    params = init_params(kp, planes=C)

    out = basic_block(x, params)
    jax.block_until_ready(out)
    assert out.shape == (B, C, H, W)

    ref = basic_block_ref(x, params)
    err = float(jnp.max(jnp.abs(out - ref)))
    assert err < 5e-2, f"max |out - ref| = {err}"
    print("KERNEL_OK")
</pallas_src>

<mosaic_0001>
module attributes {stable_mosaic.version = 11 : i64} {
  func.func @basic_block_kernel(%arg0: i32, %arg1: memref<1x16x16x64xf32, #tpu.memory_space<vmem>>, %arg2: memref<576x64xbf16, #tpu.memory_space<vmem>>, %arg3: memref<1x64xf32, #tpu.memory_space<vmem>>, %arg4: memref<576x64xbf16, #tpu.memory_space<vmem>>, %arg5: memref<1x64xf32, #tpu.memory_space<vmem>>, %arg6: memref<1x16x16x64xf32, #tpu.memory_space<vmem>>, %arg7: memref<18x18x64xbf16, #tpu.memory_space<vmem>>, %arg8: memref<256x576xbf16, #tpu.memory_space<vmem>>) attributes {dimension_semantics = [#tpu.dimension_semantics<parallel>], iteration_bounds = array<i64: 2>, scalar_prefetch = 0 : i64, scratch_operands = 2 : i64, tpu.core_type = #tpu.core_type<tc>, window_params = [{transform_indices = @transform_0, window_bounds = array<i64: 1, 16, 16, 64>}, {pipeline_mode = #tpu.pipeline_mode<synchronous>, transform_indices = @transform_1, window_bounds = array<i64: 576, 64>}, {pipeline_mode = #tpu.pipeline_mode<synchronous>, transform_indices = @transform_2, window_bounds = array<i64: 1, 64>}, {pipeline_mode = #tpu.pipeline_mode<synchronous>, transform_indices = @transform_3, window_bounds = array<i64: 576, 64>}, {pipeline_mode = #tpu.pipeline_mode<synchronous>, transform_indices = @transform_4, window_bounds = array<i64: 1, 64>}, {transform_indices = @transform_5, window_bounds = array<i64: 1, 16, 16, 64>}]} {
    %cst = arith.constant 0.000000e+00 : bf16
    %0 = vector.broadcast %cst : bf16 to vector<1x18x64xbf16>
    %c0 = arith.constant 0 : index
    %c0_0 = arith.constant 0 : index
    %c0_1 = arith.constant 0 : index
    %1 = vector.load %arg7[%c0, %c0_0, %c0_1] : memref<18x18x64xbf16, #tpu.memory_space<vmem>>, vector<1x18x64xbf16>
    tpu.vector_store %arg7[%c0, %c0_0, %c0_1], %0 {strides = array<i32>} : memref<18x18x64xbf16, #tpu.memory_space<vmem>>, vector<1x18x64xbf16>,
    %cst_2 = arith.constant 0.000000e+00 : bf16
    %2 = vector.broadcast %cst_2 : bf16 to vector<1x18x64xbf16>
    %c17 = arith.constant 17 : index
    %c0_3 = arith.constant 0 : index
    %c0_4 = arith.constant 0 : index
    %3 = vector.load %arg7[%c17, %c0_3, %c0_4] : memref<18x18x64xbf16, #tpu.memory_space<vmem>>, vector<1x18x64xbf16>
    tpu.vector_store %arg7[%c17, %c0_3, %c0_4], %2 {strides = array<i32>} : memref<18x18x64xbf16, #tpu.memory_space<vmem>>, vector<1x18x64xbf16>,
    %cst_5 = arith.constant 0.000000e+00 : bf16
    %4 = vector.broadcast %cst_5 : bf16 to vector<16x1x64xbf16>
    %c1 = arith.constant 1 : index
    %c0_6 = arith.constant 0 : index
    %c0_7 = arith.constant 0 : index
    %5 = vector.load %arg7[%c1, %c0_6, %c0_7] : memref<18x18x64xbf16, #tpu.memory_space<vmem>>, vector<16x1x64xbf16>
    tpu.vector_store %arg7[%c1, %c0_6, %c0_7], %4 {strides = array<i32>} : memref<18x18x64xbf16, #tpu.memory_space<vmem>>, vector<16x1x64xbf16>,
    %cst_8 = arith.constant 0.000000e+00 : bf16
    %6 = vector.broadcast %cst_8 : bf16 to vector<16x1x64xbf16>
    %c1_9 = arith.constant 1 : index
    %c17_10 = arith.constant 17 : index
    %c0_11 = arith.constant 0 : index
    %7 = vector.load %arg7[%c1_9, %c17_10, %c0_11] : memref<18x18x64xbf16, #tpu.memory_space<vmem>>, vector<16x1x64xbf16>
    tpu.vector_store %arg7[%c1_9, %c17_10, %c0_11], %6 {strides = array<i32>} : memref<18x18x64xbf16, #tpu.memory_space<vmem>>, vector<16x1x64xbf16>,
    %c0_12 = arith.constant 0 : index
    %c0_13 = arith.constant 0 : index
    %c0_14 = arith.constant 0 : index
    %c0_15 = arith.constant 0 : index
    %8 = vector.load %arg1[%c0_12, %c0_13, %c0_14, %c0_15] : memref<1x16x16x64xf32, #tpu.memory_space<vmem>>, vector<1x16x16x64xf32>
    %9 = vector.shape_cast %8 : vector<1x16x16x64xf32> to vector<16x16x64xf32>
    %10 = arith.truncf %9 : vector<16x16x64xf32> to vector<16x16x64xbf16>
    %c1_16 = arith.constant 1 : index
    %c1_17 = arith.constant 1 : index
    %c0_18 = arith.constant 0 : index
    %11 = vector.load %arg7[%c1_16, %c1_17, %c0_18] : memref<18x18x64xbf16, #tpu.memory_space<vmem>>, vector<16x16x64xbf16>
    tpu.vector_store %arg7[%c1_16, %c1_17, %c0_18], %10 {strides = array<i32>} : memref<18x18x64xbf16, #tpu.memory_space<vmem>>, vector<16x16x64xbf16>,
    %c0_19 = arith.constant 0 : index
    %c0_20 = arith.constant 0 : index
    %c0_21 = arith.constant 0 : index
    %12 = vector.load %arg7[%c0_19, %c0_20, %c0_21] : memref<18x18x64xbf16, #tpu.memory_space<vmem>>, vector<16x16x64xbf16>
    %13 = vector.shape_cast %12 : vector<16x16x64xbf16> to vector<256x64xbf16>
    %c0_22 = arith.constant 0 : index
    %c0_23 = arith.constant 0 : index
    %14 = vector.load %arg8[%c0_22, %c0_23] : memref<256x576xbf16, #tpu.memory_space<vmem>>, vector<256x64xbf16>
    tpu.vector_store %arg8[%c0_22, %c0_23], %13 {strides = array<i32>} : memref<256x576xbf16, #tpu.memory_space<vmem>>, vector<256x64xbf16>,
    %c0_24 = arith.constant 0 : index
    %c1_25 = arith.constant 1 : index
    %c0_26 = arith.constant 0 : index
    %15 = vector.load %arg7[%c0_24, %c1_25, %c0_26] : memref<18x18x64xbf16, #tpu.memory_space<vmem>>, vector<16x16x64xbf16>
    %16 = vector.shape_cast %15 : vector<16x16x64xbf16> to vector<256x64xbf16>
    %c0_27 = arith.constant 0 : index
    %c64 = arith.constant 64 : index
    %17 = vector.load %arg8[%c0_27, %c64] : memref<256x576xbf16, #tpu.memory_space<vmem>>, vector<256x64xbf16>
    tpu.vector_store %arg8[%c0_27, %c64], %16 {strides = array<i32>} : memref<256x576xbf16, #tpu.memory_space<vmem>>, vector<256x64xbf16>,
    %c0_28 = arith.constant 0 : index
    %c2 = arith.constant 2 : index
    %c0_29 = arith.constant 0 : index
    %18 = vector.load %arg7[%c0_28, %c2, %c0_29] : memref<18x18x64xbf16, #tpu.memory_space<vmem>>, vector<16x16x64xbf16>
    %19 = vector.shape_cast %18 : vector<16x16x64xbf16> to vector<256x64xbf16>
    %c0_30 = arith.constant 0 : index
    %c128 = arith.constant 128 : index
    %20 = vector.load %arg8[%c0_30, %c128] : memref<256x576xbf16, #tpu.memory_space<vmem>>, vector<256x64xbf16>
    tpu.vector_store %arg8[%c0_30, %c128], %19 {strides = array<i32>} : memref<256x576xbf16, #tpu.memory_space<vmem>>, vector<256x64xbf16>,
    %c1_31 = arith.constant 1 : index
    %c0_32 = arith.constant 0 : index
    %c0_33 = arith.constant 0 : index
    %21 = vector.load %arg7[%c1_31, %c0_32, %c0_33] : memref<18x18x64xbf16, #tpu.memory_space<vmem>>, vector<16x16x64xbf16>
    %22 = vector.shape_cast %21 : vector<16x16x64xbf16> to vector<256x64xbf16>
    %c0_34 = arith.constant 0 : index
    %c192 = arith.constant 192 : index
    %23 = vector.load %arg8[%c0_34, %c192] : memref<256x576xbf16, #tpu.memory_space<vmem>>, vector<256x64xbf16>
    tpu.vector_store %arg8[%c0_34, %c192], %22 {strides = array<i32>} : memref<256x576xbf16, #tpu.memory_space<vmem>>, vector<256x64xbf16>,
    %c1_35 = arith.constant 1 : index
    %c1_36 = arith.constant 1 : index
    %c0_37 = arith.constant 0 : index
    %24 = vector.load %arg7[%c1_35, %c1_36, %c0_37] : memref<18x18x64xbf16, #tpu.memory_space<vmem>>, vector<16x16x64xbf16>
    %25 = vector.shape_cast %24 : vector<16x16x64xbf16> to vector<256x64xbf16>
    %c0_38 = arith.constant 0 : index
    %c256 = arith.constant 256 : index
    %26 = vector.load %arg8[%c0_38, %c256] : memref<256x576xbf16, #tpu.memory_space<vmem>>, vector<256x64xbf16>
    tpu.vector_store %arg8[%c0_38, %c256], %25 {strides = array<i32>} : memref<256x576xbf16, #tpu.memory_space<vmem>>, vector<256x64xbf16>,
    %c1_39 = arith.constant 1 : index
    %c2_40 = arith.constant 2 : index
    %c0_41 = arith.constant 0 : index
    %27 = vector.load %arg7[%c1_39, %c2_40, %c0_41] : memref<18x18x64xbf16, #tpu.memory_space<vmem>>, vector<16x16x64xbf16>
    %28 = vector.shape_cast %27 : vector<16x16x64xbf16> to vector<256x64xbf16>
    %c0_42 = arith.constant 0 : index
    %c320 = arith.constant 320 : index
    %29 = vector.load %arg8[%c0_42, %c320] : memref<256x576xbf16, #tpu.memory_space<vmem>>, vector<256x64xbf16>
    tpu.vector_store %arg8[%c0_42, %c320], %28 {strides = array<i32>} : memref<256x576xbf16, #tpu.memory_space<vmem>>, vector<256x64xbf16>,
    %c2_43 = arith.constant 2 : index
    %c0_44 = arith.constant 0 : index
    %c0_45 = arith.constant 0 : index
    %30 = vector.load %arg7[%c2_43, %c0_44, %c0_45] : memref<18x18x64xbf16, #tpu.memory_space<vmem>>, vector<16x16x64xbf16>
    %31 = vector.shape_cast %30 : vector<16x16x64xbf16> to vector<256x64xbf16>
    %c0_46 = arith.constant 0 : index
    %c384 = arith.constant 384 : index
    %32 = vector.load %arg8[%c0_46, %c384] : memref<256x576xbf16, #tpu.memory_space<vmem>>, vector<256x64xbf16>
    tpu.vector_store %arg8[%c0_46, %c384], %31 {strides = array<i32>} : memref<256x576xbf16, #tpu.memory_space<vmem>>, vector<256x64xbf16>,
    %c2_47 = arith.constant 2 : index
    %c1_48 = arith.constant 1 : index
    %c0_49 = arith.constant 0 : index
    %33 = vector.load %arg7[%c2_47, %c1_48, %c0_49] : memref<18x18x64xbf16, #tpu.memory_space<vmem>>, vector<16x16x64xbf16>
    %34 = vector.shape_cast %33 : vector<16x16x64xbf16> to vector<256x64xbf16>
    %c0_50 = arith.constant 0 : index
    %c448 = arith.constant 448 : index
    %35 = vector.load %arg8[%c0_50, %c448] : memref<256x576xbf16, #tpu.memory_space<vmem>>, vector<256x64xbf16>
    tpu.vector_store %arg8[%c0_50, %c448], %34 {strides = array<i32>} : memref<256x576xbf16, #tpu.memory_space<vmem>>, vector<256x64xbf16>,
    %c2_51 = arith.constant 2 : index
    %c2_52 = arith.constant 2 : index
    %c0_53 = arith.constant 0 : index
    %36 = vector.load %arg7[%c2_51, %c2_52, %c0_53] : memref<18x18x64xbf16, #tpu.memory_space<vmem>>, vector<16x16x64xbf16>
    %37 = vector.shape_cast %36 : vector<16x16x64xbf16> to vector<256x64xbf16>
    %c0_54 = arith.constant 0 : index
    %c512 = arith.constant 512 : index
    %38 = vector.load %arg8[%c0_54, %c512] : memref<256x576xbf16, #tpu.memory_space<vmem>>, vector<256x64xbf16>
    tpu.vector_store %arg8[%c0_54, %c512], %37 {strides = array<i32>} : memref<256x576xbf16, #tpu.memory_space<vmem>>, vector<256x64xbf16>,
    %c0_55 = arith.constant 0 : index
    %c0_56 = arith.constant 0 : index
    %39 = vector.load %arg8[%c0_55, %c0_56] : memref<256x576xbf16, #tpu.memory_space<vmem>>, vector<256x576xbf16>
    %c0_57 = arith.constant 0 : index
    %c0_58 = arith.constant 0 : index
    %40 = vector.load %arg2[%c0_57, %c0_58] : memref<576x64xbf16, #tpu.memory_space<vmem>>, vector<576x64xbf16>
    %cst_59 = arith.constant dense<0.000000e+00> : vector<256x64xf32>
    %41 = tpu.matmul %39, %40, %cst_59 {dimension_numbers = #tpu.dot_dimension_numbers<[1], [0], [0], [1], [0, 0, 1, 1], [], []>} : vector<256x576xbf16>, vector<576x64xbf16>, vector<256x64xf32> -> vector<256x64xf32>
    %c0_60 = arith.constant 0 : index
    %c0_61 = arith.constant 0 : index
    %42 = vector.load %arg3[%c0_60, %c0_61] : memref<1x64xf32, #tpu.memory_space<vmem>>, vector<1x64xf32>
    %43 = vector.broadcast %42 : vector<1x64xf32> to vector<256x64xf32>
    %44 = arith.addf %41, %43 : vector<256x64xf32>
    %cst_62 = arith.constant 0.000000e+00 : f32
    %45 = vector.broadcast %cst_62 : f32 to vector<256x64xf32>
    %46 = arith.maximumf %44, %45 : vector<256x64xf32>
    %47 = vector.shape_cast %46 : vector<256x64xf32> to vector<16x16x64xf32>
    %48 = arith.truncf %47 : vector<16x16x64xf32> to vector<16x16x64xbf16>
    %c1_63 = arith.constant 1 : index
    %c1_64 = arith.constant 1 : index
    %c0_65 = arith.constant 0 : index
    %49 = vector.load %arg7[%c1_63, %c1_64, %c0_65] : memref<18x18x64xbf16, #tpu.memory_space<vmem>>, vector<16x16x64xbf16>
    tpu.vector_store %arg7[%c1_63, %c1_64, %c0_65], %48 {strides = array<i32>} : memref<18x18x64xbf16, #tpu.memory_space<vmem>>, vector<16x16x64xbf16>,
    %c0_66 = arith.constant 0 : index
    %c0_67 = arith.constant 0 : index
    %c0_68 = arith.constant 0 : index
    %50 = vector.load %arg7[%c0_66, %c0_67, %c0_68] : memref<18x18x64xbf16, #tpu.memory_space<vmem>>, vector<16x16x64xbf16>
    %51 = vector.shape_cast %50 : vector<16x16x64xbf16> to vector<256x64xbf16>
    %c0_69 = arith.constant 0 : index
    %c0_70 = arith.constant 0 : index
    %52 = vector.load %arg8[%c0_69, %c0_70] : memref<256x576xbf16, #tpu.memory_space<vmem>>, vector<256x64xbf16>
    tpu.vector_store %arg8[%c0_69, %c0_70], %51 {strides = array<i32>} : memref<256x576xbf16, #tpu.memory_space<vmem>>, vector<256x64xbf16>,
    %c0_71 = arith.constant 0 : index
    %c1_72 = arith.constant 1 : index
    %c0_73 = arith.constant 0 : index
    %53 = vector.load %arg7[%c0_71, %c1_72, %c0_73] : memref<18x18x64xbf16, #tpu.memory_space<vmem>>, vector<16x16x64xbf16>
    %54 = vector.shape_cast %53 : vector<16x16x64xbf16> to vector<256x64xbf16>
    %c0_74 = arith.constant 0 : index
    %c64_75 = arith.constant 64 : index
    %55 = vector.load %arg8[%c0_74, %c64_75] : memref<256x576xbf16, #tpu.memory_space<vmem>>, vector<256x64xbf16>
    tpu.vector_store %arg8[%c0_74, %c64_75], %54 {strides = array<i32>} : memref<256x576xbf16, #tpu.memory_space<vmem>>, vector<256x64xbf16>,
    %c0_76 = arith.constant 0 : index
    %c2_77 = arith.constant 2 : index
    %c0_78 = arith.constant 0 : index
    %56 = vector.load %arg7[%c0_76, %c2_77, %c0_78] : memref<18x18x64xbf16, #tpu.memory_space<vmem>>, vector<16x16x64xbf16>
    %57 = vector.shape_cast %56 : vector<16x16x64xbf16> to vector<256x64xbf16>
    %c0_79 = arith.constant 0 : index
    %c128_80 = arith.constant 128 : index
    %58 = vector.load %arg8[%c0_79, %c128_80] : memref<256x576xbf16, #tpu.memory_space<vmem>>, vector<256x64xbf16>
    tpu.vector_store %arg8[%c0_79, %c128_80], %57 {strides = array<i32>} : memref<256x576xbf16, #tpu.memory_space<vmem>>, vector<256x64xbf16>,
    %c1_81 = arith.constant 1 : index
    %c0_82 = arith.constant 0 : index
    %c0_83 = arith.constant 0 : index
    %59 = vector.load %arg7[%c1_81, %c0_82, %c0_83] : memref<18x18x64xbf16, #tpu.memory_space<vmem>>, vector<16x16x64xbf16>
    %60 = vector.shape_cast %59 : vector<16x16x64xbf16> to vector<256x64xbf16>
    %c0_84 = arith.constant 0 : index
    %c192_85 = arith.constant 192 : index
    %61 = vector.load %arg8[%c0_84, %c192_85] : memref<256x576xbf16, #tpu.memory_space<vmem>>, vector<256x64xbf16>
    tpu.vector_store %arg8[%c0_84, %c192_85], %60 {strides = array<i32>} : memref<256x576xbf16, #tpu.memory_space<vmem>>, vector<256x64xbf16>,
    %c1_86 = arith.constant 1 : index
    %c1_87 = arith.constant 1 : index
    %c0_88 = arith.constant 0 : index
    %62 = vector.load %arg7[%c1_86, %c1_87, %c0_88] : memref<18x18x64xbf16, #tpu.memory_space<vmem>>, vector<16x16x64xbf16>
    %63 = vector.shape_cast %62 : vector<16x16x64xbf16> to vector<256x64xbf16>
    %c0_89 = arith.constant 0 : index
    %c256_90 = arith.constant 256 : index
    %64 = vector.load %arg8[%c0_89, %c256_90] : memref<256x576xbf16, #tpu.memory_space<vmem>>, vector<256x64xbf16>
    tpu.vector_store %arg8[%c0_89, %c256_90], %63 {strides = array<i32>} : memref<256x576xbf16, #tpu.memory_space<vmem>>, vector<256x64xbf16>,
    %c1_91 = arith.constant 1 : index
    %c2_92 = arith.constant 2 : index
    %c0_93 = arith.constant 0 : index
    %65 = vector.load %arg7[%c1_91, %c2_92, %c0_93] : memref<18x18x64xbf16, #tpu.memory_space<vmem>>, vector<16x16x64xbf16>
    %66 = vector.shape_cast %65 : vector<16x16x64xbf16> to vector<256x64xbf16>
    %c0_94 = arith.constant 0 : index
    %c320_95 = arith.constant 320 : index
    %67 = vector.load %arg8[%c0_94, %c320_95] : memref<256x576xbf16, #tpu.memory_space<vmem>>, vector<256x64xbf16>
    tpu.vector_store %arg8[%c0_94, %c320_95], %66 {strides = array<i32>} : memref<256x576xbf16, #tpu.memory_space<vmem>>, vector<256x64xbf16>,
    %c2_96 = arith.constant 2 : index
    %c0_97 = arith.constant 0 : index
    %c0_98 = arith.constant 0 : index
    %68 = vector.load %arg7[%c2_96, %c0_97, %c0_98] : memref<18x18x64xbf16, #tpu.memory_space<vmem>>, vector<16x16x64xbf16>
    %69 = vector.shape_cast %68 : vector<16x16x64xbf16> to vector<256x64xbf16>
    %c0_99 = arith.constant 0 : index
    %c384_100 = arith.constant 384 : index
    %70 = vector.load %arg8[%c0_99, %c384_100] : memref<256x576xbf16, #tpu.memory_space<vmem>>, vector<256x64xbf16>
    tpu.vector_store %arg8[%c0_99, %c384_100], %69 {strides = array<i32>} : memref<256x576xbf16, #tpu.memory_space<vmem>>, vector<256x64xbf16>,
    %c2_101 = arith.constant 2 : index
    %c1_102 = arith.constant 1 : index
    %c0_103 = arith.constant 0 : index
    %71 = vector.load %arg7[%c2_101, %c1_102, %c0_103] : memref<18x18x64xbf16, #tpu.memory_space<vmem>>, vector<16x16x64xbf16>
    %72 = vector.shape_cast %71 : vector<16x16x64xbf16> to vector<256x64xbf16>
    %c0_104 = arith.constant 0 : index
    %c448_105 = arith.constant 448 : index
    %73 = vector.load %arg8[%c0_104, %c448_105] : memref<256x576xbf16, #tpu.memory_space<vmem>>, vector<256x64xbf16>
    tpu.vector_store %arg8[%c0_104, %c448_105], %72 {strides = array<i32>} : memref<256x576xbf16, #tpu.memory_space<vmem>>, vector<256x64xbf16>,
    %c2_106 = arith.constant 2 : index
    %c2_107 = arith.constant 2 : index
    %c0_108 = arith.constant 0 : index
    %74 = vector.load %arg7[%c2_106, %c2_107, %c0_108] : memref<18x18x64xbf16, #tpu.memory_space<vmem>>, vector<16x16x64xbf16>
    %75 = vector.shape_cast %74 : vector<16x16x64xbf16> to vector<256x64xbf16>
    %c0_109 = arith.constant 0 : index
    %c512_110 = arith.constant 512 : index
    %76 = vector.load %arg8[%c0_109, %c512_110] : memref<256x576xbf16, #tpu.memory_space<vmem>>, vector<256x64xbf16>
    tpu.vector_store %arg8[%c0_109, %c512_110], %75 {strides = array<i32>} : memref<256x576xbf16, #tpu.memory_space<vmem>>, vector<256x64xbf16>,
    %c0_111 = arith.constant 0 : index
    %c0_112 = arith.constant 0 : index
    %77 = vector.load %arg8[%c0_111, %c0_112] : memref<256x576xbf16, #tpu.memory_space<vmem>>, vector<256x576xbf16>
    %c0_113 = arith.constant 0 : index
    %c0_114 = arith.constant 0 : index
    %78 = vector.load %arg4[%c0_113, %c0_114] : memref<576x64xbf16, #tpu.memory_space<vmem>>, vector<576x64xbf16>
    %cst_115 = arith.constant dense<0.000000e+00> : vector<256x64xf32>
    %79 = tpu.matmul %77, %78, %cst_115 {dimension_numbers = #tpu.dot_dimension_numbers<[1], [0], [0], [1], [0, 0, 1, 1], [], []>} : vector<256x576xbf16>, vector<576x64xbf16>, vector<256x64xf32> -> vector<256x64xf32>
    %c0_116 = arith.constant 0 : index
    %c0_117 = arith.constant 0 : index
    %80 = vector.load %arg5[%c0_116, %c0_117] : memref<1x64xf32, #tpu.memory_space<vmem>>, vector<1x64xf32>
    %81 = vector.broadcast %80 : vector<1x64xf32> to vector<256x64xf32>
    %82 = arith.addf %79, %81 : vector<256x64xf32>
    %c0_118 = arith.constant 0 : index
    %c0_119 = arith.constant 0 : index
    %c0_120 = arith.constant 0 : index
    %c0_121 = arith.constant 0 : index
    %83 = vector.load %arg1[%c0_118, %c0_119, %c0_120, %c0_121] : memref<1x16x16x64xf32, #tpu.memory_space<vmem>>, vector<1x16x16x64xf32>
    %84 = vector.shape_cast %83 : vector<1x16x16x64xf32> to vector<16x16x64xf32>
    %85 = vector.shape_cast %84 : vector<16x16x64xf32> to vector<256x64xf32>
    %86 = arith.addf %82, %85 : vector<256x64xf32>
    %cst_122 = arith.constant 0.000000e+00 : f32
    %87 = vector.broadcast %cst_122 : f32 to vector<256x64xf32>
    %88 = arith.maximumf %86, %87 : vector<256x64xf32>
    %89 = vector.shape_cast %88 : vector<256x64xf32> to vector<16x16x64xf32>
    %c0_123 = arith.constant 0 : index
    %c0_124 = arith.constant 0 : index
    %c0_125 = arith.constant 0 : index
    %c0_126 = arith.constant 0 : index
    %90 = vector.load %arg6[%c0_123, %c0_124, %c0_125, %c0_126] : memref<1x16x16x64xf32, #tpu.memory_space<vmem>>, vector<1x16x16x64xf32>
    %91 = vector.shape_cast %90 : vector<1x16x16x64xf32> to vector<16x16x64xf32>
    %92 = vector.shape_cast %89 : vector<16x16x64xf32> to vector<1x16x16x64xf32>
    tpu.vector_store %arg6[%c0_123, %c0_124, %c0_125, %c0_126], %92 {strides = array<i32>} : memref<1x16x16x64xf32, #tpu.memory_space<vmem>>, vector<1x16x16x64xf32>,
    return
  }
  func.func @transform_0(%arg0: i32) -> (i32, i32, i32, i32) {
    %c0_i32 = arith.constant 0 : i32
    %c0_i32_0 = arith.constant 0 : i32
    %c0_i32_1 = arith.constant 0 : i32
    %c0_i32_2 = arith.constant 0 : i32
    return %arg0, %c0_i32, %c0_i32_0, %c0_i32_1 : i32, i32, i32, i32
  }
  func.func @transform_1(%arg0: i32) -> (i32, i32) {
    %c0_i32 = arith.constant 0 : i32
    %c0_i32_0 = arith.constant 0 : i32
    %c0_i32_1 = arith.constant 0 : i32
    return %c0_i32, %c0_i32_0 : i32, i32
  }
  func.func @transform_2(%arg0: i32) -> (i32, i32) {
    %c0_i32 = arith.constant 0 : i32
    %c0_i32_0 = arith.constant 0 : i32
    %c0_i32_1 = arith.constant 0 : i32
    return %c0_i32, %c0_i32_0 : i32, i32
  }
  func.func @transform_3(%arg0: i32) -> (i32, i32) {
    %c0_i32 = arith.constant 0 : i32
    %c0_i32_0 = arith.constant 0 : i32
    %c0_i32_1 = arith.constant 0 : i32
    return %c0_i32, %c0_i32_0 : i32, i32
  }
  func.func @transform_4(%arg0: i32) -> (i32, i32) {
    %c0_i32 = arith.constant 0 : i32
    %c0_i32_0 = arith.constant 0 : i32
    %c0_i32_1 = arith.constant 0 : i32
    return %c0_i32, %c0_i32_0 : i32, i32
  }
  func.func @transform_5(%arg0: i32) -> (i32, i32, i32, i32) {
    %c0_i32 = arith.constant 0 : i32
    %c0_i32_0 = arith.constant 0 : i32
    %c0_i32_1 = arith.constant 0 : i32
    %c0_i32_2 = arith.constant 0 : i32
    return %arg0, %c0_i32, %c0_i32_0, %c0_i32_1 : i32, i32, i32, i32
  }
}

</mosaic_0001>

<bundles_post_ra>
// kernel: tpu_custom_call.1
= control target key start
LH: loop header
LB: loop body
LE: loop exit
PB: predicated region body
PF: predicated region fallthrough
CT: control target
= control target key end

     0   :  { %10 = vsyncpa [#allocation5], 0  ;;  %s15077_s0 = inlined_call_operand.vmem [shape: f32[2,16,16,64], index: 0, kind: input, shape index: {}]   ;;  %s15078_s1 = inlined_call_operand.vmem [shape: bf16[576,64], index: 1, kind: input, shape index: {}]   ;;  %s15079_s2 = inlined_call_operand.vmem [shape: f32[1,64], index: 2, kind: input, shape index: {}]   ;;  %s15080_s3 = inlined_call_operand.vmem [shape: bf16[576,64], index: 3, kind: input, shape index: {}]   ;;  %s15081_s4 = inlined_call_operand.vmem [shape: f32[1,64], index: 4, kind: input, shape index: {}]   ;;  %s15082_s5 = inlined_call_operand.hbm [shape: f32[2,16,16,64], index: 5, kind: output, shape index: {}]  }
   0x1   :  { %12 = vsyncpa [#allocation5 + $0x1], 0  ;;  %s11207_s18 = smov 0   ;;  %s11209_s19 = smov 0  }
   0x2   :  { %s11211_s20 = smov 0   ;;  %s11213_s21 = smov 0  }
   0x3 LB: > { %s11228_s22 = sadd.s32 4294967295, %s11171_s21   ;;  %s9740_s23 = sadd.s32 4294967294, %s11171_s21   ;;  %s11171_s21 = sphi %s11213_s21, %s15152_s21   ;;  %s11167_s20 = sphi %s11211_s20, %s15151_s20   ;;  %s11163_s19 = sphi %s11209_s19, %s15150_s19   ;;  %s11159_s18 = sphi %s11207_s18, %s15149_s18  }
   0x4   : > { %s11232_s24 = sadd.s32 1, %s11171_s21   ;;  %s135_s25 = sadd.s32 1, %s11167_s20 }
   0x5   : > { %s132_s26 = ssub.s32 %s11171_s21, %s11232_s24  ;;  %p145_p0 = scmp.ne.s32.totalorder %s11167_s20, %s11163_s19 }
   0x6   : > { %p133_p1 = scmp.eq.s32.totalorder %s132_s26, 0  ;;  %p146_p2 = scmp.eq.s32.totalorder %s11228_s22, 1 }
   0x7   : > { %p151_p3 = scmp.ne.s32.totalorder %s11163_s19, %s11159_s18  ;;  %p152_p4 = scmp.eq.s32.totalorder %s9740_s23, 1 }
   0x8   : > { %s11243_s27 = scalar_select %p133_p1, %s11167_s20, %s135_s25  }
   0x9   : > { %p11245_p5 = por %p146_p2, %p145_p0  ;;  %p11249_p6 = por %p152_p4, %p151_p3 }
   0xa   : > { %p9743_p7 = scmp.ge.s32.totalorder %s11171_s21, 1  ;;  %p190_p8 = scmp.lt.s32.totalorder %s11171_s21, 3 }
   0xc   : > { %p191_p9 = pnand %p9743_p7, %p190_p8 }
   0xe   : > { %194 = sbr.rel (%p191_p9) target bundleno = 1343 (0x53f), region = 40 }
  0x13   : > { %p218_p10 = scmp.lt.s32.totalorder %s11228_s22, 1  ;;  %vm227_vm0 = vcmask 516096   ;;  %vm235_vm1 = vsmask.f32 256  ;;  %v261_v1 = vld [vmem:[#allocation2 + $0x6c] sm:$0x1] }
  0x14   : > { %vm11258_vm2 = vmand %vm227_vm0, %vm235_vm1  ;;  %v258_v3 = vld [vmem:[#allocation2 + $0x60] sm:$0x1]  ;;  %vm285_vm3 = vsmask.f32 7938  ;;  %vm224_vm4 = vcmask 519168   ;;  %v11173_v8 = vmov 0  }
  0x15   : > { %s219_s30 = scalar_select %p218_p10, %s11228_s22, 1  ;;  %v262_v2 = vsel %vm11258_vm2, 0, %v261_v1  ;;  %v259_v4 = vsel %vm11258_vm2, 0, %v258_v3  ;;  %v311_v5 = vld [vmem:[#allocation2 + $0x74] sm:$0x1]  ;;  %vm11274_vm5 = vmand %vm227_vm0, %vm285_vm3  ;;  %vm1430_vm12 = vcmask 1043968  }
  0x16   : > { %263 = vst [vmem:[#allocation2 + $0x6c] sm:$0x1] %v262_v2  ;;  %v308_v7 = vld [vmem:[#allocation2 + $0x68] sm:$0x1]  ;;  %v237_v9 = vld [vmem:[#allocation2 + $0xc] sm:$0x1]  ;;  %vm11296_vm7 = vmand %vm224_vm4, %vm285_vm3 }
  0x17   : > { %s10808_s6 = sshll.u32 %s219_s30, 8  ;;  %260 = vst [vmem:[#allocation2 + $0x60] sm:$0x1] %v259_v4  ;;  %v312_v13 = vsel %vm11274_vm5, 0, %v311_v5  ;;  %v309_v14 = vsel %vm11274_vm5, 0, %v308_v7  ;;  %v238_v20 = vsel %vm11258_vm2, 0, %v237_v9 }
  0x18   : > { %s11270_s9 = scalar_lea.vmem %s15077_s0, %s10808_s6  ;;  %225 = vst.msk [vmem:[#allocation2] sm:$0xf] %vm224_vm4, %v11173_v8  ;;  %vm399_vm6 = vsmask.f32 4368  ;;  %vm947_vm8 = vsmask.f32 3328 }
  0x19   : > { %v351_v10 = vld [vmem:[%s11270_s9 + $0x80] sm:$0xff]  ;;  %v352_v11 = vld [vmem:[%s11270_s9 + $0x88] sm:$0xff]  ;;  %v349_v12 = vld [vmem:[%s11270_s9 + $0x70] sm:$0xff]  ;;  %313 = vst [vmem:[#allocation2 + $0x74] sm:$0x1] %v312_v13  ;;  %s11174_s10 = smov 64  }
  0x1a   : > { %v383_v15 = vpack.c.bf16 %v351_v10, %v351_v10  ;;  %v384_v16 = vpack.c.bf16 %v352_v11, %v352_v11  ;;  %v350_v17 = vld [vmem:[%s11270_s9 + $0x78] sm:$0xff]  ;;  %v381_v18 = vpack.c.bf16 %v349_v12, %v349_v12  ;;  %310 = vst [vmem:[#allocation2 + $0x68] sm:$0x1] %v309_v14  ;;  %v335_v21 = vld [vmem:[%s11270_s9] sm:$0xff]  ;;  %v336_v22 = vld [vmem:[%s11270_s9 + $0x8] sm:$0xff]  ;;  %vm1559_vm13 = vcmask 1042432  }
  0x1b   : > { %v382_v19 = vpack.c.bf16 %v350_v17, %v350_v17  ;;  %v353_v23 = vld [vmem:[%s11270_s9 + $0x90] sm:$0xff]  ;;  %226 = vst.msk [vmem:[#allocation2 + $0x4] sm:$0xf] %vm224_vm4, %v11173_v8  ;;  %v367_v35 = vpack.c.bf16 %v335_v21, %v335_v21  ;;  %vm948_vm9 = vsmask.f32 7440  ;;  %v368_v40 = vpack.c.bf16 %v336_v22, %v336_v22  ;;  %vm11305_vm10 = vmor %vm235_vm1, %vm399_vm6  ;;  %v354_v22 = vld [vmem:[%s11270_s9 + $0x98] sm:$0xff] }
  0x1c   : > { %v538_v24 = vshrl.u32 %v383_v15, 16  ;;  %v541_v25 = vshll.u32 %v383_v15, 16  ;;  %v546_v26 = vshrl.u32 %v384_v16, 16  ;;  %v549_v27 = vshll.u32 %v384_v16, 16  ;;  %228 = vst.msk [vmem:[#allocation2 + $0x8] sm:$0x1] %vm227_vm0, %v11173_v8  ;;  %vm11335_vm11 = vmor %vm947_vm8, %vm948_vm9 }
  0x1d   : > { %v521_v28 = vshrl.u32 %v381_v18, 16  ;;  %v524_v29 = vshll.u32 %v381_v18, 16  ;;  %v529_v30 = vshrl.u32 %v382_v19, 16  ;;  %v532_v31 = vshll.u32 %v382_v19, 16  ;;  %v779_v33 = vld [vmem:[#allocation2 + $0x6c] sm:$0xf] }
  0x1e   : > { %v540_v32 = vrot.slane %v538_v24, 7  ;;  %v548_v34 = vrot.slane %v546_v26, 7  ;;  %230 = vst.msk [vmem:[#allocation2 + $0xcc] sm:$0xf] %vm224_vm4, %v11173_v8  ;;  %v11301_v41 = vpack.c.bf16 %v353_v23, %v353_v23  ;;  %v772_v47 = vld [vmem:[#allocation2 + $0x60] sm:$0xf] }
  0x1f   : > { %v523_v37 = vrot.slane %v521_v28, 7  ;;  %v531_v38 = vrot.slane %v529_v30, 7  ;;  %v899_v39 = vld [vmem:[#allocation2] sm:$0xf]  ;;  %231 = vst.msk [vmem:[#allocation2 + $0xd0] sm:$0xf] %vm224_vm4, %v11173_v8 }
  0x20   : > { %v543_v42 = vor.u32 %v541_v25, %v540_v32  ;;  %v544_v44 = vrot.slane %v540_v32, 4  ;;  %v551_v45 = vor.u32 %v549_v27, %v548_v34  ;;  %v553_v46 = vrot.slane %v548_v34, 4  ;;  %v783_v51 = vld [vmem:[#allocation2 + $0x74] sm:$0x1]  ;;  %232 = vst.msk [vmem:[#allocation2 + $0xd4] sm:$0x1] %vm227_vm0, %v11173_v8 }
  0x21   : > { %v526_v48 = vor.u32 %v524_v29, %v523_v37  ;;  %v527_v49 = vrot.slane %v523_v37, 4  ;;  %v534_v50 = vor.u32 %v532_v31, %v531_v38  ;;  %v536_v52 = vrot.slane %v531_v38, 4  ;;  %v314_v53 = vld [vmem:[#allocation2 + $0x80] sm:$0x1]  ;;  %v776_v57 = vld [vmem:[#allocation2 + $0x68] sm:$0x1] }
  0x22   : > { %v780_v54 = vsel %vm11296_vm7, %v543_v42, %v779_v33  ;;  %v552_v55 = vsel %vm11305_vm10, %v544_v44, %v551_v45  ;;  %v784_v56 = vsel %vm11258_vm2, %v553_v46, %v783_v51  ;;  %v951_v58 = vshrl.u32 %v899_v39, 16  ;;  %239 = vst [vmem:[#allocation2 + $0xc] sm:$0x1] %v238_v20  ;;  %v900_v62 = vld [vmem:[#allocation2 + $0x4] sm:$0xf]  ;;  %v337_v26 = vld [vmem:[%s11270_s9 + $0x10] sm:$0xff] }
  0x23   : > { %781 = vst [vmem:[#allocation2 + $0x6c] sm:$0xf] %v780_v54  ;;  %v535_v59 = vsel %vm11305_vm10, %v527_v49, %v534_v50  ;;  %v773_v60 = vsel %vm11296_vm7, %v526_v48, %v772_v47  ;;  %v777_v61 = vsel %vm11258_vm2, %v536_v52, %v776_v57  ;;  %v954_v63 = vshll.u32 %v899_v39, 16  ;;  %v901_v16 = vld [vmem:[#allocation2 + $0x8] sm:$0x1]  ;;  %s215_s15 = sand.u32 1, %s11163_s19  }
  0x24   : > { %782 = vst.msk [vmem:[#allocation2 + $0x70] sm:$0xf] %vm224_vm4, %v552_v55  ;;  %v953_v1 = vrot.slane %v951_v58, 4  ;;  %v960_v2 = vshll.u32 %v900_v62, 16  ;;  %v964_v3 = vshrl.u32 %v900_v62, 16  ;;  %v402_v4 = vshrl.u32 %v367_v35, 16 }
  0x25   : > { %774 = vst [vmem:[#allocation2 + $0x60] sm:$0xf] %v773_v60  ;;  %v956_v5 = vrot.slane %v954_v63, 5  ;;  %v405_v7 = vshll.u32 %v367_v35, 16  ;;  %v410_v8 = vshrl.u32 %v368_v40, 16  ;;  %v413_v9 = vshll.u32 %v368_v40, 16 }
  0x26   : > { %775 = vst.msk [vmem:[#allocation2 + $0x64] sm:$0xf] %vm224_vm4, %v535_v59  ;;  %v962_v10 = vrot.slane %v960_v2, 5  ;;  %v966_v11 = vrot.slane %v964_v3, 4  ;;  %v404_v12 = vrot.slane %v402_v4, 7  ;;  %v315_v13 = vsel %vm11274_vm5, 0, %v314_v53 }
  0x27   : > { %785 = vst [vmem:[#allocation2 + $0x74] sm:$0x1] %v784_v56  ;;  %v957_v14 = vor.u32 %v956_v5, %v953_v1  ;;  %v11327_v15 = vrot.slane %v410_v8, 7  ;;  %v555_v17 = vshrl.u32 %v11301_v41, 16  ;;  %v970_v21 = vshll.u32 %v901_v16, 16  ;;  %s11041_s25 = sshll.u32 %s11228_s22, 8 }
  0x28   : > { %778 = vst [vmem:[#allocation2 + $0x68] sm:$0x1] %v777_v61  ;;  %v407_v18 = vor.u32 %v405_v7, %v404_v12  ;;  %v408_v19 = vrot.slane %v404_v12, 4  ;;  %v967_v20 = vor.u32 %v966_v11, %v962_v10  ;;  %v11350_v42 = vpack.c.bf16 %v354_v22, %v354_v22  ;;  %v338_v7 = vld [vmem:[%s11270_s9 + $0x18] sm:$0xff]  ;;  %s9674_s6 = scalar_lea.hbm %s15082_s5, %s11041_s25  ;;  %s9663_s22 = scalar_lea.sflag [#allocation5], %s215_s15 }
  0x29   : > { %v958_v23 = vrot.slane %v957_v14, 4  ;;  %v415_v24 = vor.u32 %v413_v9, %v11327_v15  ;;  %v723_v25 = vld [vmem:[#allocation2 + $0xc] sm:$0xf]  ;;  %316 = vst [vmem:[#allocation2 + $0x80] sm:$0x1] %v315_v13  ;;  %v11341_v31 = vrot.slane %v555_v17, 7  ;;  %v11352_v44 = vpack.c.bf16 %v337_v26, %v337_v26 }
  0x2a   : > { %v1754_v27 = vld [vmem:[#allocation2 + $0x6c] sm:$0xf]  ;;  %v724_v29 = vsel %vm11296_vm7, %v407_v18, %v723_v25  ;;  %v968_v35 = vrot.slane %v967_v20, 4  ;;  %v972_v37 = vrot.slane %v970_v21, 5  ;;  %v563_v12 = vshrl.u32 %v11350_v42, 16  ;;  %s9677_s8 = sshll.u32 %s9674_s6, 4  ;;  %s9678_s8 = int_to_ptr.hbm [resolvable:$true] %s9677_s8 }
  0x2b   : > { %v926_v30 = vld [vmem:[#allocation2 + $0x6c] sm:$0xf]  ;;  %1834 = vrot.lane.b32.xlu1 %v1754_v27, %s11174_s10  ;;  %v927_v32 = vld [vmem:[#allocation2 + $0x70] sm:$0xf]  ;;  %v963_v33 = vsel %vm11335_vm11, %v958_v23, %v962_v10  ;;  %v416_v34 = vsel %vm11305_vm10, %v408_v19, %v415_v24  ;;  %725 = vst [vmem:[#allocation2 + $0xc] sm:$0xf] %v724_v29  ;;  %v370_v24 = vpack.c.bf16 %v338_v7, %v338_v7 }
  0x2c   : > { %v923_v38 = vld [vmem:[#allocation2 + $0x60] sm:$0xf]  ;;  %v1176_v39 = vshll.u32 %v927_v32, 16  ;;  %v1180_v40 = vshrl.u32 %v927_v32, 16  ;;  %1334 = vrot.lane.b32.xlu2 %v963_v33, %s11174_s10  ;;  %726 = vst.msk [vmem:[#allocation2 + $0x10] sm:$0xf] %vm224_vm4, %v416_v34  ;;  %v973_v5 = vsel %vm11335_vm11, %v968_v35, %v972_v37 }
  0x2d   : > { %v924_v45 = vld [vmem:[#allocation2 + $0x64] sm:$0xf]  ;;  %v1143_v46 = vshrl.u32 %v923_v38, 16  ;;  %v1146_v47 = vshll.u32 %v923_v38, 16  ;;  %v1167_v48 = vshrl.u32 %v926_v30, 16  ;;  %v1170_v49 = vshll.u32 %v926_v30, 16 }
  0x2e   : > { %v1152_v50 = vshll.u32 %v924_v45, 16  ;;  %v928_v51 = vld [vmem:[#allocation2 + $0x74] sm:$0x1]  ;;  %v11354_v52 = vrot.slane %v1176_v39, 5  ;;  %v1182_v53 = vrot.slane %v1180_v40, 4  ;;  %v1156_v54 = vshrl.u32 %v924_v45, 16 }
  0x2f   : > { %v1145_v55 = vrot.slane %v1143_v46, 4  ;;  %v1148_v56 = vrot.slane %v1146_v47, 5  ;;  %v1186_v57 = vshll.u32 %v928_v51, 16  ;;  %v925_v58 = vld [vmem:[#allocation2 + $0x68] sm:$0x1]  ;;  %v1169_v59 = vrot.slane %v1167_v48, 4 }
  0x30   : > { %v1755_v60 = vld [vmem:[#allocation2 + $0x70] sm:$0xf]  ;;  %v1154_v61 = vrot.slane %v1152_v50, 5  ;;  %v1183_v62 = vor.u32 %v1182_v53, %v11354_v52  ;;  %v1158_v63 = vrot.slane %v1156_v54, 4  ;;  %v1162_v1 = vshll.u32 %v925_v58, 16  ;;  %v355_v47 = vld [vmem:[%s11270_s9 + $0xa0] sm:$0xff] }
  0x31   : > { %v1149_v2 = vor.u32 %v1148_v56, %v1145_v55  ;;  %v1188_v3 = vrot.slane %v1186_v57, 5  ;;  %v1172_v4 = vrot.slane %v1170_v49, 5  ;;  %v264_v13 = vld [vmem:[#allocation2 + $0x78] sm:$0x1]  ;;  %v561_v21 = vrot.slane %v11341_v31, 4  ;;  %s11123_s11 = sshra.s32 %s9678_s8, 4  ;;  %s11124_s11 = int_to_ptr.hbm [resolvable:$true] %s11123_s11 }
  0x32   : > { %v1184_v8 = vrot.slane %v1183_v62, 4  ;;  %v1159_v9 = vor.u32 %v1158_v63, %v1154_v61  ;;  %v11360_v10 = vrot.slane %v1162_v1, 5  ;;  %v902_v11 = vld [vmem:[#allocation2 + $0xc] sm:$0xf]  ;;  %v565_v22 = vrot.slane %v563_v12, 7  ;;  %s11125_s12 = scalar_lea.hbm %s11124_s11, 256  ;;  %p11130_p0 = scmp.lt.s32.totalorder %s11124_s11, %s15082_s5 }
  0x33   : > { %1836 = vrot.lane.b32.xlu1 %v1755_v60, %s11174_s10  ;;  %v1150_v14 = vrot.slane %v1149_v2, 4  ;;  %v903_v16 = vld [vmem:[#allocation2 + $0x10] sm:$0xf]  ;;  %v975_v17 = vshrl.u32 %v902_v11, 16  ;;  %v978_v18 = vshll.u32 %v902_v11, 16  ;;  %v1173_v19 = vor.u32 %v1172_v4, %v1169_v59  ;;  %v339_v2 = vld [vmem:[%s11270_s9 + $0x20] sm:$0xff]  ;;  %p11126_p11 = scmp.ne.s32.totalorder %s11124_s11, %s11125_s12 }
  0x34   : > { %v1160_v20 = vrot.slane %v1159_v9, 4  ;;  %1336 = vrot.lane.b32.xlu2 %v973_v5, %s11174_s10  ;;  %v240_v23 = vld [vmem:[#allocation2 + $0x18] sm:$0x1]  ;;  %v984_v29 = vshll.u32 %v903_v16, 16  ;;  %v790_v30 = vld [vmem:[#allocation2 + $0x80] sm:$0x1]  ;;  %v1189_v32 = vsel %vm11335_vm11, %v1184_v8, %v1188_v3  ;;  %v387_v7 = vpack.c.bf16 %v355_v47, %v355_v47 }
  0x35   : > { %v1155_v25 = vsel %vm11335_vm11, %v1150_v14, %v1154_v61  ;;  %v977_v26 = vrot.slane %v975_v17, 4  ;;  %v980_v27 = vrot.slane %v978_v18, 5  ;;  %v11371_v33 = vrot.slane %v1173_v19, 4  ;;  %v287_v45 = vld [vmem:[#allocation2 + $0x14] sm:$0x1]  ;;  %v356_v61 = vld [vmem:[%s11270_s9 + $0xa8] sm:$0xff]  ;;  %p11127_p12 = pnand %p11126_p11, %p11245_p5 }
  0x36   : > { %1366 = vrot.lane.b32.xlu0 %v1155_v25, %s11174_s10  ;;  %v566_v34 = vshll.u32 %v11350_v42, 16  ;;  %v570_v35 = vrot.slane %v565_v22, 4  ;;  %v1165_v37 = vsel %vm11335_vm11, %v1160_v20, %v11360_v10  ;;  %v265_v39 = vsel %vm11258_vm2, 0, %v264_v13  ;;  %v317_v46 = vld [vmem:[#allocation2 + $0x8c] sm:$0x1]  ;;  %v357_v47 = vld [vmem:[%s11270_s9 + $0xb0] sm:$0xff] }
  0x37   : > { %v981_v38 = vor.u32 %v980_v27, %v977_v26  ;;  %v558_v40 = vshll.u32 %v11301_v41, 16  ;;  %266 = vst [vmem:[#allocation2 + $0x78] sm:$0x1] %v265_v39  ;;  %v241_v42 = vsel %vm11258_vm2, 0, %v240_v23  ;;  %v419_v50 = vshrl.u32 %v11352_v44, 16  ;;  %v340_v13 = vld [vmem:[%s11270_s9 + $0x28] sm:$0xff]  ;;  %p11128_p13 = pneg %p11127_p12 }
  0x38   : > { %v568_v48 = vor.u32 %v566_v34, %v565_v22  ;;  %v791_v49 = vsel %vm11258_vm2, %v570_v35, %v790_v30  ;;  %v267_v51 = vld [vmem:[#allocation2 + $0x84] sm:$0x1]  ;;  %v986_v54 = vrot.slane %v984_v29, 5  ;;  %v422_v41 = vshll.u32 %v11352_v44, 16  ;;  %242 = vst [vmem:[#allocation2 + $0x18] sm:$0x1] %v241_v42 }
  0x39   : > { %v982_v53 = vrot.slane %v981_v38, 4  ;;  %792 = vst [vmem:[#allocation2 + $0x80] sm:$0x1] %v791_v49  ;;  %v427_v55 = vshrl.u32 %v370_v24, 16  ;;  %v243_v56 = vld [vmem:[#allocation2 + $0x24] sm:$0x1]  ;;  %v560_v62 = vor.u32 %v558_v40, %v11341_v31  ;;  %v388_v10 = vpack.c.bf16 %v356_v61, %v356_v61 }
  0x3a   : > { %v569_v57 = vsel %vm11305_vm10, %v561_v21, %v568_v48  ;;  %v421_v58 = vrot.slane %v419_v50, 7  ;;  %v430_v59 = vshll.u32 %v370_v24, 16  ;;  %v288_v60 = vsel %vm11274_vm5, 0, %v287_v45  ;;  %v11423_v40 = vld [vmem:[#allocation2 + $0x20] sm:$0x1]  ;;  %s11129_s14 = scalar_lea.hbm %s15082_s5, 512 }
  0x3b   : > { %1372 = vrot.lane.b32.xlu1 %v1189_v32, %s11174_s10  ;;  %789 = vst.msk [vmem:[#allocation2 + $0x7c] sm:$0xf] %vm224_vm4, %v569_v57  ;;  %v11395_v63 = vrot.slane %v427_v55, 7  ;;  %v417_v44 = vrot.slane %v11327_v15, 4  ;;  %v988_v1 = vshrl.u32 %v903_v16, 16  ;;  %v318_v5 = vsel %vm11274_vm5, 0, %v317_v46  ;;  %p11131_p1 = scmp.lt.s32.totalorder %s11129_s14, %s11125_s12 }
  0x3c   : > { %v424_v3 = vor.u32 %v422_v41, %v421_v58  ;;  %v425_v4 = vrot.slane %v421_v58, 4  ;;  %289 = vst [vmem:[#allocation2 + $0x14] sm:$0x1] %v288_v60  ;;  %v268_v31 = vsel %vm11258_vm2, 0, %v267_v51  ;;  %v572_v15 = vshrl.u32 %v387_v7, 16  ;;  %v358_v57 = vld [vmem:[%s11270_s9 + $0xb8] sm:$0xff] }
  0x3d   : > { %v432_v8 = vor.u32 %v430_v59, %v11395_v63  ;;  %v990_v9 = vrot.slane %v988_v1, 4  ;;  %319 = vst [vmem:[#allocation2 + $0x8c] sm:$0x1] %v318_v5  ;;  %v575_v11 = vshll.u32 %v387_v7, 16  ;;  %v244_v12 = vsel %vm11258_vm2, 0, %v243_v56  ;;  %v341_v1 = vld [vmem:[%s11270_s9 + $0x30] sm:$0xff]  ;;  %p11132_p2 = por %p11131_p1, %p11130_p0 }
  0x3e   : > { %1368 = vrot.lane.b32.xlu0 %v1165_v37, %s11174_s10  ;;  %269 = vst [vmem:[#allocation2 + $0x84] sm:$0x1] %v268_v31  ;;  %v371_v14 = vpack.c.bf16 %v339_v2, %v339_v2  ;;  %v786_v16 = vld [vmem:[#allocation2 + $0x78] sm:$0xf]  ;;  %v580_v19 = vshrl.u32 %v388_v10, 16  ;;  %v583_v20 = vshll.u32 %v388_v10, 16  ;;  %v987_v21 = vsel %vm11335_vm11, %v982_v53, %v986_v54 }
  0x3f   : > { %v433_v17 = vsel %vm11305_vm10, %v425_v4, %v432_v8  ;;  %v991_v18 = vor.u32 %v990_v9, %v986_v54  ;;  %245 = vst [vmem:[#allocation2 + $0x24] sm:$0x1] %v244_v12  ;;  %v787_v23 = vsel %vm11296_vm7, %v560_v62, %v786_v16  ;;  %v574_v24 = vrot.slane %v572_v15, 7  ;;  %v730_v29 = vld [vmem:[#allocation2 + $0x18] sm:$0xf]  ;;  %p11133_p3 = pnand %p11132_p2, %p11128_p13 }
  0x40   : > { %v931_v22 = vld [vmem:[#allocation2 + $0x80] sm:$0x1]  ;;  %733 = vst.msk [vmem:[#allocation2 + $0x1c] sm:$0xf] %vm224_vm4, %v433_v17  ;;  %v436_v25 = vshrl.u32 %v371_v14, 16  ;;  %v1179_v26 = vsel %vm11335_vm11, %v11371_v33, %v11354_v52  ;;  %v372_v32 = vpack.c.bf16 %v340_v13, %v340_v13  ;;  %v731_v35 = vsel %vm11296_vm7, %v424_v3, %v730_v29  ;;  %v342_v17 = vld [vmem:[%s11270_s9 + $0x38] sm:$0xff] }
  0x41   : > { %v1210_v27 = vshll.u32 %v931_v22, 16  ;;  %788 = vst [vmem:[#allocation2 + $0x78] sm:$0xf] %v787_v23  ;;  %v11419_v30 = vrot.slane %v991_v18, 4  ;;  %v578_v37 = vrot.slane %v574_v24, 4  ;;  %v582_v38 = vrot.slane %v580_v19, 7 }
  0x42   : > { %v930_v34 = vld [vmem:[#allocation2 + $0x7c] sm:$0xf]  ;;  %v577_v39 = vor.u32 %v575_v11, %v574_v24  ;;  %732 = vst [vmem:[#allocation2 + $0x18] sm:$0xf] %v731_v35  ;;  %v438_v46 = vrot.slane %v436_v25, 7  ;;  %v439_v51 = vshll.u32 %v371_v14, 16  ;;  %v11447_v15 = vpack.c.bf16 %v357_v47, %v357_v47 }
  0x43   : > { %1338 = vrot.lane.b32.xlu1 %v987_v21, %s11174_s10  ;;  %v1200_v45 = vshll.u32 %v930_v34, 16  ;;  %v1204_v52 = vshrl.u32 %v930_v34, 16  ;;  %v1212_v33 = vrot.slane %v1210_v27, 5  ;;  %v727_v48 = vld [vmem:[#allocation2 + $0x14] sm:$0x1]  ;;  %v585_v49 = vor.u32 %v583_v20, %v582_v38  ;;  %v359_v23 = vld [vmem:[%s11270_s9 + $0xc0] sm:$0xff] }
  0x44   : > { %v587_v42 = vrot.slane %v582_v38, 4  ;;  %v797_v50 = vld [vmem:[#allocation2 + $0x8c] sm:$0x1]  ;;  %v728_v41 = vsel %vm11258_vm2, %v417_v44, %v727_v48  ;;  %v442_v56 = vrot.slane %v438_v46, 4  ;;  %v444_v61 = vshrl.u32 %v372_v32, 16 }
  0x45   : > { %v11427_v53 = vrot.slane %v1200_v45, 5  ;;  %v1206_v54 = vrot.slane %v1204_v52, 4  ;;  %v793_v55 = vld [vmem:[#allocation2 + $0x84] sm:$0xf]  ;;  %729 = vst [vmem:[#allocation2 + $0x14] sm:$0x1] %v728_v41  ;;  %v586_v58 = vsel %vm11305_vm10, %v578_v37, %v585_v49  ;;  %v441_v3 = vor.u32 %v439_v51, %v438_v46 }
  0x46   : > { %1370 = vrot.lane.b32.xlu0 %v1179_v26, %s11174_s10  ;;  %v798_v59 = vsel %vm11258_vm2, %v587_v42, %v797_v50  ;;  %v794_v60 = vsel %vm11296_vm7, %v577_v39, %v793_v55  ;;  %v737_v62 = vld [vmem:[#allocation2 + $0x24] sm:$0xf]  ;;  %796 = vst.msk [vmem:[#allocation2 + $0x88] sm:$0xf] %vm224_vm4, %v586_v58  ;;  %v447_v4 = vshll.u32 %v372_v32, 16  ;;  %v291_v5 = vsel %vm11274_vm5, 0, %v11423_v40 }
  0x47   : > { %v1207_v44 = vor.u32 %v1206_v54, %v11427_v53  ;;  %v906_v2 = vld [vmem:[#allocation2 + $0x1c] sm:$0xf]  ;;  %v320_v7 = vld [vmem:[#allocation2 + $0x98] sm:$0x1]  ;;  %v11445_v31 = vrot.slane %v444_v61, 7  ;;  %v738_v16 = vsel %vm11296_vm7, %v441_v3, %v737_v62  ;;  %v11456_v21 = vpack.c.bf16 %v358_v57, %v358_v57  ;;  %v360_v37 = vld [vmem:[%s11270_s9 + $0xc8] sm:$0xff] }
  0x48   : > { %v1756_v8 = vld [vmem:[#allocation2 + $0x78] sm:$0xf]  ;;  %v1008_v9 = vshll.u32 %v906_v2, 16  ;;  %v1757_v12 = vld [vmem:[#allocation2 + $0x7c] sm:$0xf]  ;;  %v11458_v22 = vpack.c.bf16 %v341_v1, %v341_v1  ;;  %v1012_v34 = vshrl.u32 %v906_v2, 16  ;;  %v11470_v45 = vpack.c.bf16 %v342_v17, %v342_v17 }
  0x49   : > { %v929_v10 = vld [vmem:[#allocation2 + $0x78] sm:$0xf]  ;;  %v1208_v11 = vrot.slane %v1207_v44, 4  ;;  %1838 = vrot.lane.b32.xlu2 %v1756_v8, %s11174_s10  ;;  %799 = vst [vmem:[#allocation2 + $0x8c] sm:$0x1] %v798_v59  ;;  %v449_v20 = vor.u32 %v447_v4, %v11445_v31  ;;  %v321_v35 = vsel %vm11274_vm5, 0, %v320_v7  ;;  %v11472_v52 = vpack.c.bf16 %v359_v23, %v359_v23 }
  0x4a   : > { %v1191_v13 = vshrl.u32 %v929_v10, 16  ;;  %v1194_v14 = vshll.u32 %v929_v10, 16  ;;  %v905_v18 = vld [vmem:[#allocation2 + $0x18] sm:$0xf]  ;;  %v11453_v19 = vrot.slane %v1008_v9, 5  ;;  %v434_v48 = vrot.slane %v11395_v63, 4 }
  0x4b   : > { %795 = vst [vmem:[#allocation2 + $0x84] sm:$0xf] %v794_v60  ;;  %v1213_v24 = vsel %vm11335_vm11, %v1208_v11, %v1212_v33  ;;  %v999_v25 = vshrl.u32 %v905_v18, 16  ;;  %v1002_v26 = vshll.u32 %v905_v18, 16  ;;  %v450_v32 = vsel %vm11305_vm10, %v442_v56, %v449_v20  ;;  %v270_v10 = vld [vmem:[#allocation2 + $0x90] sm:$0x1] }
  0x4c   : > { %v1193_v27 = vrot.slane %v1191_v13, 4  ;;  %739 = vst [vmem:[#allocation2 + $0x24] sm:$0xf] %v738_v16  ;;  %1376 = vrot.lane.b32.xlu1 %v1213_v24, %s11174_s10  ;;  %v1196_v29 = vrot.slane %v1194_v14, 5  ;;  %v904_v40 = vld [vmem:[#allocation2 + $0x14] sm:$0x1]  ;;  %v11481_v58 = vpack.c.bf16 %v360_v37, %v360_v37 }
  0x4d   : > { %292 = vst [vmem:[#allocation2 + $0x20] sm:$0x1] %v291_v5  ;;  %v1001_v38 = vrot.slane %v999_v25, 4  ;;  %v1004_v39 = vrot.slane %v1002_v26, 5  ;;  %v994_v46 = vshll.u32 %v904_v40, 16  ;;  %v11476_v49 = vrot.slane %v1012_v34, 4 }
  0x4e   : > { %740 = vst.msk [vmem:[#allocation2 + $0x28] sm:$0xf] %vm224_vm4, %v450_v32  ;;  %1840 = vrot.lane.b32.xlu0 %v1757_v12, %s11174_s10  ;;  %v1197_v33 = vor.u32 %v1196_v29, %v1193_v27  ;;  %v933_v47 = vld [vmem:[#allocation2 + $0x88] sm:$0xf]  ;;  %v589_v54 = vshrl.u32 %v11447_v15, 16  ;;  %v597_v4 = vshrl.u32 %v11456_v21, 16 }
  0x4f   : > { %v1005_v42 = vor.u32 %v1004_v39, %v1001_v38  ;;  %v1224_v50 = vshll.u32 %v933_v47, 16  ;;  %v1228_v51 = vshrl.u32 %v933_v47, 16  ;;  %322 = vst [vmem:[#allocation2 + $0x98] sm:$0x1] %v321_v35  ;;  %v996_v55 = vrot.slane %v994_v46, 5  ;;  %v343_v38 = vld [vmem:[%s11270_s9 + $0x40] sm:$0xff] }
  0x50   : > { %v1198_v41 = vrot.slane %v1197_v33, 4  ;;  %v934_v56 = vld [vmem:[#allocation2 + $0x8c] sm:$0x1]  ;;  %v1015_v57 = vor.u32 %v11476_v49, %v11453_v19  ;;  %v591_v3 = vrot.slane %v589_v54, 7  ;;  %v599_v26 = vrot.slane %v597_v4, 7 }
  0x51   : > { %v1006_v59 = vrot.slane %v1005_v42, 4  ;;  %v11483_v60 = vrot.slane %v1224_v50, 5  ;;  %v1230_v63 = vrot.slane %v1228_v51, 4  ;;  %v1234_v61 = vshll.u32 %v934_v56, 16  ;;  %v246_v27 = vld [vmem:[#allocation2 + $0x30] sm:$0x1] }
  0x52   : > { %v1203_v62 = vsel %vm11335_vm11, %v1198_v41, %v11427_v53  ;;  %v997_v1 = vsel %vm11335_vm11, %v11419_v30, %v996_v55  ;;  %v932_v2 = vld [vmem:[#allocation2 + $0x84] sm:$0xf]  ;;  %v595_v20 = vrot.slane %v591_v3, 4  ;;  %v600_v34 = vshll.u32 %v11456_v21, 16  ;;  %v293_v54 = vld [vmem:[#allocation2 + $0x2c] sm:$0x1] }
  0x53   : > { %v908_v44 = vld [vmem:[#allocation2 + $0x24] sm:$0xf]  ;;  %v1011_v5 = vsel %vm11335_vm11, %v1006_v59, %v11453_v19  ;;  %1340 = vrot.lane.b32.xlu2 %v997_v1, %s11174_s10  ;;  %v1231_v7 = vor.u32 %v1230_v63, %v11483_v60  ;;  %v1236_v8 = vrot.slane %v1234_v61, 5  ;;  %v1215_v12 = vshrl.u32 %v932_v2, 16 }
  0x54   : > { %v1023_v9 = vshrl.u32 %v908_v44, 16  ;;  %v734_v53 = vld [vmem:[#allocation2 + $0x20] sm:$0x1]  ;;  %1342 = vrot.lane.b32.xlu1 %v1011_v5, %s11174_s10  ;;  %v1026_v11 = vshll.u32 %v908_v44, 16  ;;  %v1218_v13 = vshll.u32 %v932_v2, 16  ;;  %v271_v37 = vsel %vm11258_vm2, 0, %v270_v10 }
  0x55   : > { %v11498_v30 = vld [vmem:[#allocation2 + $0x28] sm:$0xf]  ;;  %v735_v14 = vsel %vm11258_vm2, %v434_v48, %v734_v53  ;;  %v1232_v16 = vrot.slane %v1231_v7, 4  ;;  %v1217_v24 = vrot.slane %v1215_v12, 4  ;;  %v1758_v39 = vld [vmem:[#allocation2 + $0x84] sm:$0xf]  ;;  %v602_v42 = vor.u32 %v600_v34, %v599_v26 }
  0x56   : > { %v1025_v17 = vrot.slane %v1023_v9, 4  ;;  %v1032_v18 = vshll.u32 %v11498_v30, 16  ;;  %736 = vst [vmem:[#allocation2 + $0x20] sm:$0x1] %v735_v14  ;;  %1374 = vrot.lane.b32.xlu0 %v1203_v62, %s11174_s10  ;;  %v1028_v23 = vrot.slane %v1026_v11, 5  ;;  %v1220_v25 = vrot.slane %v1218_v13, 5 }
  0x57   : > { %v1237_v29 = vsel %vm11335_vm11, %v1232_v16, %v1236_v8  ;;  %v804_v35 = vld [vmem:[#allocation2 + $0x98] sm:$0x1]  ;;  %v604_v46 = vrot.slane %v599_v26, 4  ;;  %272 = vst [vmem:[#allocation2 + $0x90] sm:$0x1] %v271_v37  ;;  %v592_v47 = vshll.u32 %v11447_v15, 16  ;;  %v11521_v63 = vpack.c.bf16 %v343_v38, %v343_v38 }
  0x58   : > { %v11506_v32 = vrot.slane %v1032_v18, 5  ;;  %v1029_v40 = vor.u32 %v1028_v23, %v1025_v17  ;;  %v1221_v33 = vor.u32 %v1220_v25, %v1217_v24  ;;  %v1759_v48 = vld [vmem:[#allocation2 + $0x88] sm:$0xf]  ;;  %v247_v50 = vsel %vm11258_vm2, 0, %v246_v27  ;;  %v323_v59 = vld [vmem:[#allocation2 + $0xa4] sm:$0x1] }
  0x59   : > { %v453_v51 = vshrl.u32 %v11458_v22, 16  ;;  %v456_v21 = vshll.u32 %v11458_v22, 16  ;;  %v805_v56 = vsel %vm11258_vm2, %v604_v46, %v804_v35  ;;  %248 = vst [vmem:[#allocation2 + $0x30] sm:$0x1] %v247_v50  ;;  %v603_v15 = vsel %vm11305_vm10, %v595_v20, %v602_v42  ;;  %v344_v53 = vld [vmem:[%s11270_s9 + $0x48] sm:$0xff]  ;;  %v361_v46 = vld [vmem:[%s11270_s9 + $0xd0] sm:$0xff] }
  0x5a   : > { %v1030_v41 = vrot.slane %v1029_v40, 4  ;;  %v11517_v55 = vrot.slane %v1221_v33, 4  ;;  %806 = vst [vmem:[#allocation2 + $0x98] sm:$0x1] %v805_v56  ;;  %v461_v22 = vshrl.u32 %v11470_v45, 16  ;;  %v464_v62 = vshll.u32 %v11470_v45, 16 }
  0x5b   : > { %1842 = vrot.lane.b32.xlu2 %v1758_v39, %s11174_s10  ;;  %v455_v61 = vrot.slane %v453_v51, 7  ;;  %v1016_v2 = vrot.slane %v1015_v57, 4  ;;  %803 = vst.msk [vmem:[#allocation2 + $0x94] sm:$0xf] %vm224_vm4, %v603_v15  ;;  %v594_v4 = vor.u32 %v592_v47, %v591_v3  ;;  %v294_v5 = vsel %vm11274_vm5, 0, %v293_v54  ;;  %v362_v47 = vld [vmem:[%s11270_s9 + $0xd8] sm:$0xff] }
  0x5c   : > { %1380 = vrot.lane.b32.xlu1 %v1237_v29, %s11174_s10  ;;  %v1035_v1 = vsel %vm11335_vm11, %v1030_v41, %v11506_v32  ;;  %v11538_v9 = vrot.slane %v461_v22, 7  ;;  %295 = vst [vmem:[#allocation2 + $0x2c] sm:$0x1] %v294_v5  ;;  %v1036_v10 = vshrl.u32 %v11498_v30, 16  ;;  %v324_v19 = vsel %vm11274_vm5, 0, %v323_v59  ;;  %v345_v51 = vld [vmem:[%s11270_s9 + $0x50] sm:$0xff] }
  0x5d   : > { %v907_v44 = vld [vmem:[#allocation2 + $0x20] sm:$0x1]  ;;  %v458_v8 = vor.u32 %v456_v21, %v455_v61  ;;  %v459_v45 = vrot.slane %v455_v61, 4  ;;  %v606_v49 = vshrl.u32 %v11472_v52, 16  ;;  %v614_v57 = vshrl.u32 %v11481_v58, 16 }
  0x5e   : > { %v1018_v7 = vshll.u32 %v907_v44, 16  ;;  %1844 = vrot.lane.b32.xlu0 %v1759_v48, %s11174_s10  ;;  %v273_v3 = vld [vmem:[#allocation2 + $0x9c] sm:$0x1]  ;;  %v1227_v11 = vsel %vm11335_vm11, %v11517_v55, %v11483_v60  ;;  %v800_v13 = vld [vmem:[#allocation2 + $0x90] sm:$0xf]  ;;  %v466_v14 = vor.u32 %v464_v62, %v11538_v9  ;;  %v617_v30 = vshll.u32 %v11481_v58, 16 }
  0x5f   : > { %325 = vst [vmem:[#allocation2 + $0xa4] sm:$0x1] %v324_v19  ;;  %v801_v16 = vsel %vm11296_vm7, %v594_v4, %v800_v13  ;;  %v1038_v17 = vrot.slane %v1036_v10, 4  ;;  %v608_v18 = vrot.slane %v606_v49, 7  ;;  %v616_v20 = vrot.slane %v614_v57, 7  ;;  %v346_v55 = vld [vmem:[%s11270_s9 + $0x58] sm:$0xff] }
  0x60   : > { %v1020_v12 = vrot.slane %v1018_v7, 5  ;;  %v249_v23 = vld [vmem:[#allocation2 + $0x3c] sm:$0x1]  ;;  %802 = vst [vmem:[#allocation2 + $0x90] sm:$0xf] %v801_v16  ;;  %v467_v60 = vsel %vm11305_vm10, %v459_v45, %v466_v14  ;;  %v451_v26 = vrot.slane %v11445_v31, 4  ;;  %v11560_v58 = vpack.c.bf16 %v344_v53, %v344_v53 }
  0x61   : > { %v744_v25 = vld [vmem:[#allocation2 + $0x30] sm:$0xf]  ;;  %v937_v27 = vld [vmem:[#allocation2 + $0x98] sm:$0x1]  ;;  %747 = vst.msk [vmem:[#allocation2 + $0x34] sm:$0xf] %vm224_vm4, %v467_v60  ;;  %v1039_v34 = vor.u32 %v1038_v17, %v11506_v32  ;;  %v619_v37 = vor.u32 %v617_v30, %v616_v20  ;;  %v11597_v45 = vpack.c.bf16 %v362_v47, %v362_v47  ;;  %v11601_v49 = vpack.c.bf16 %v345_v51, %v345_v51 }
  0x62   : > { %v1021_v24 = vsel %vm11335_vm11, %v1016_v2, %v1020_v12  ;;  %v745_v29 = vsel %vm11296_vm7, %v458_v8, %v744_v25  ;;  %v612_v35 = vrot.slane %v608_v18, 4  ;;  %v936_v38 = vld [vmem:[#allocation2 + $0x94] sm:$0xf]  ;;  %v1258_v39 = vshll.u32 %v937_v27, 16  ;;  %v11587_v61 = vld [vmem:[#allocation2 + $0x38] sm:$0x1] }
  0x63   : > { %1344 = vrot.lane.b32.xlu2 %v1021_v24, %s11174_s10  ;;  %v621_v40 = vrot.slane %v616_v20, 4  ;;  %v274_v31 = vsel %vm11258_vm2, 0, %v273_v3  ;;  %v609_v33 = vshll.u32 %v11472_v52, 16  ;;  %v1248_v48 = vshll.u32 %v936_v38, 16  ;;  %746 = vst [vmem:[#allocation2 + $0x30] sm:$0xf] %v745_v29 }
  0x64   : > { %1346 = vrot.lane.b32.xlu1 %v1035_v1, %s11174_s10  ;;  %v1252_v32 = vshrl.u32 %v936_v38, 16  ;;  %v741_v42 = vld [vmem:[#allocation2 + $0x2c] sm:$0x1]  ;;  %v620_v50 = vsel %vm11305_vm10, %v612_v35, %v619_v37  ;;  %v1260_v21 = vrot.slane %v1258_v39, 5  ;;  %v11578_v41 = vrot.slane %v1039_v34, 4 }
  0x65   : > { %v742_v54 = vsel %vm11258_vm2, %v451_v26, %v741_v42  ;;  %810 = vst.msk [vmem:[#allocation2 + $0xa0] sm:$0xf] %vm224_vm4, %v620_v50  ;;  %v250_v52 = vsel %vm11258_vm2, 0, %v249_v23  ;;  %v11585_v56 = vrot.slane %v1248_v48, 5  ;;  %v470_v62 = vshrl.u32 %v11521_v63, 16  ;;  %v10896_v42 = vld [vmem:[%s15078_s1 + $0x38] sm:$0xff] }
  0x66   : > { %1378 = vrot.lane.b32.xlu0 %v1227_v11, %s11174_s10  ;;  %v1254_v59 = vrot.slane %v1252_v32, 4  ;;  %743 = vst [vmem:[#allocation2 + $0x2c] sm:$0x1] %v742_v54  ;;  %v811_v15 = vld [vmem:[#allocation2 + $0xa4] sm:$0x1]  ;;  %v473_v1 = vshll.u32 %v11521_v63, 16  ;;  %v611_v7 = vor.u32 %v609_v33, %v608_v18  ;;  %v11595_v8 = vpack.c.bf16 %v361_v46, %v361_v46  ;;  %4496 = vmatpush.bf16.msra.mxu0 %v10896_v42 }
  0x67   : > { %v812_v22 = vsel %vm11258_vm2, %v621_v40, %v811_v15  ;;  %275 = vst [vmem:[#allocation2 + $0x9c] sm:$0x1] %v274_v31  ;;  %v478_v44 = vshrl.u32 %v11560_v58, 16  ;;  %v1760_v4 = vld [vmem:[#allocation2 + $0x90] sm:$0xf]  ;;  %v11603_v63 = vpack.c.bf16 %v346_v55, %v346_v55  ;;  %v472_v12 = vrot.slane %v470_v62, 7  ;;  %11042 = vmatpush.bf16.msra.mxu2 %v10896_v42 }
  0x68   : > { %v1255_v2 = vor.u32 %v1254_v59, %v11585_v56  ;;  %v935_v5 = vld [vmem:[#allocation2 + $0x90] sm:$0xf]  ;;  %813 = vst [vmem:[#allocation2 + $0xa4] sm:$0x1] %v812_v22  ;;  %v11599_v53 = vld [vmem:[#allocation2 + $0x34] sm:$0xf] }
  0x69   : > { %v1239_v10 = vshrl.u32 %v935_v5, 16  ;;  %v1242_v19 = vshll.u32 %v935_v5, 16  ;;  %251 = vst [vmem:[#allocation2 + $0x3c] sm:$0x1] %v250_v52  ;;  %v1761_v3 = vld [vmem:[#allocation2 + $0x94] sm:$0xf]  ;;  %v475_v35 = vor.u32 %v473_v1, %v472_v12 }
  0x6a   : > { %v1256_v57 = vrot.slane %v1255_v2, 4  ;;  %v1056_v11 = vshll.u32 %v11599_v53, 16  ;;  %v11606_v13 = vrot.slane %v478_v44, 7  ;;  %v911_v14 = vld [vmem:[#allocation2 + $0x30] sm:$0xf]  ;;  %v481_v17 = vshll.u32 %v11560_v58, 16 }
  0x6b   : > { %1846 = vrot.lane.b32.xlu2 %v1760_v4, %s11174_s10  ;;  %v1241_v30 = vrot.slane %v1239_v10, 4  ;;  %v1244_v16 = vrot.slane %v1242_v19, 5  ;;  %v297_v18 = vsel %vm11274_vm5, 0, %v11587_v61  ;;  %v1047_v23 = vshrl.u32 %v911_v14, 16  ;;  %v326_v31 = vld [vmem:[#allocation2 + $0xb0] sm:$0x1] }
  0x6c   : > { %v1261_v20 = vsel %vm11335_vm11, %v1256_v57, %v1260_v21  ;;  %v1050_v24 = vshll.u32 %v911_v14, 16  ;;  %v11615_v60 = vrot.slane %v1056_v11, 5  ;;  %v939_v25 = vld [vmem:[#allocation2 + $0xa0] sm:$0xf]  ;;  %v476_v40 = vrot.slane %v472_v12, 4  ;;  %v10904_v62 = vld [vmem:[%s15078_s1 + $0x78] sm:$0xff] }
  0x6d   : > { %1384 = vrot.lane.b32.xlu1 %v1261_v20, %s11174_s10  ;;  %v1245_v26 = vor.u32 %v1244_v16, %v1241_v30  ;;  %v910_v27 = vld [vmem:[#allocation2 + $0x2c] sm:$0x1]  ;;  %v1272_v29 = vshll.u32 %v939_v25, 16  ;;  %v1276_v34 = vshrl.u32 %v939_v25, 16  ;;  %v1049_v58 = vrot.slane %v1047_v23, 4  ;;  %v10895_v1 = vld [vmem:[%s15078_s1 + $0x30] sm:$0xff]  ;;  %11050 = vmatpush.bf16.msra.mxu3 %v10904_v62 }
  0x6e   : > { %1848 = vrot.lane.b32.xlu0 %v1761_v3, %s11174_s10  ;;  %v1052_v37 = vrot.slane %v1050_v24, 5  ;;  %v1042_v38 = vshll.u32 %v910_v27, 16  ;;  %v807_v39 = vld [vmem:[#allocation2 + $0x9c] sm:$0xf]  ;;  %v276_v50 = vld [vmem:[#allocation2 + $0xa8] sm:$0x1]  ;;  %v483_v52 = vor.u32 %v481_v17, %v11606_v13  ;;  %4585 = vmatpush.bf16.msra.mxu1 %v10904_v62 }
  0x6f   : > { %v1246_v33 = vrot.slane %v1245_v26, 4  ;;  %v940_v46 = vld [vmem:[#allocation2 + $0xa4] sm:$0x1]  ;;  %v11619_v47 = vrot.slane %v1272_v29, 5  ;;  %v1278_v48 = vrot.slane %v1276_v34, 4  ;;  %v808_v32 = vsel %vm11296_vm7, %v611_v7, %v807_v39  ;;  %v364_v14 = vld [vmem:[%s11270_s9 + $0xe8] sm:$0xff]  ;;  %4497 = vmatpush.bf16.msra.mxu0 %v10895_v1  ;;  %11043 = vmatpush.bf16.msra.mxu2 %v10895_v1 }
  0x70   : > { %v1053_v51 = vor.u32 %v1052_v37, %v1049_v58  ;;  %v1044_v21 = vrot.slane %v1042_v38, 5  ;;  %v1282_v54 = vshll.u32 %v940_v46, 16  ;;  %809 = vst [vmem:[#allocation2 + $0x9c] sm:$0xf] %v808_v32  ;;  %v751_v55 = vld [vmem:[#allocation2 + $0x3c] sm:$0xf] }
  0x71   : > { %v1251_v59 = vsel %vm11335_vm11, %v1246_v33, %v11585_v56  ;;  %v1279_v15 = vor.u32 %v1278_v48, %v11619_v47  ;;  %v752_v61 = vsel %vm11296_vm7, %v475_v35, %v751_v55  ;;  %298 = vst [vmem:[#allocation2 + $0x38] sm:$0x1] %v297_v18  ;;  %v468_v22 = vrot.slane %v11538_v9, 4  ;;  %v363_v44 = vld [vmem:[%s11270_s9 + $0xe0] sm:$0xff]  ;;  %v252_v5 = vld [vmem:[#allocation2 + $0x48] sm:$0x1] }
  0x72   : > { %v1054_v2 = vrot.slane %v1053_v51, 4  ;;  %v1045_v56 = vsel %vm11335_vm11, %v11578_v41, %v1044_v21  ;;  %v11644_v4 = vrot.slane %v1282_v54, 5  ;;  %v484_v9 = vsel %vm11305_vm10, %v476_v40, %v483_v52  ;;  %753 = vst [vmem:[#allocation2 + $0x3c] sm:$0xf] %v752_v61  ;;  %v10903_v17 = vld [vmem:[%s15078_s1 + $0x70] sm:$0xff]  ;;  %v10902_v25 = vld [vmem:[%s15078_s1 + $0x68] sm:$0xff] }
  0x73   : > { %1348 = vrot.lane.b32.xlu2 %v1045_v56, %s11174_s10  ;;  %v11649_v7 = vrot.slane %v1279_v15, 4  ;;  %754 = vst.msk [vmem:[#allocation2 + $0x40] sm:$0xf] %vm224_vm4, %v484_v9  ;;  %v1060_v10 = vshrl.u32 %v11599_v53, 16  ;;  %v327_v41 = vsel %vm11274_vm5, 0, %v326_v31  ;;  %v623_v19 = vshrl.u32 %v11595_v8, 16  ;;  %11051 = vmatpush.bf16.msra.mxu3 %v10903_v17 }
  0x74   : > { %v1059_v57 = vsel %vm11335_vm11, %v1054_v2, %v11615_v60  ;;  %328 = vst [vmem:[#allocation2 + $0xb0] sm:$0x1] %v327_v41  ;;  %v631_v3 = vshrl.u32 %v11597_v45, 16  ;;  %v634_v11 = vshll.u32 %v11597_v45, 16  ;;  %v277_v12 = vsel %vm11258_vm2, 0, %v276_v50  ;;  %4586 = vmatpush.bf16.msra.mxu1 %v10903_v17  ;;  %v10893_v50 = vld [vmem:[%s15078_s1 + $0x20] sm:$0xff] }
  0x75   : > { %1350 = vrot.lane.b32.xlu1 %v1059_v57, %s11174_s10  ;;  %v11665_v53 = vrot.slane %v1060_v10, 4  ;;  %v625_v30 = vrot.slane %v623_v19, 7  ;;  %278 = vst [vmem:[#allocation2 + $0xa8] sm:$0x1] %v277_v12  ;;  %v626_v16 = vshll.u32 %v11595_v8, 16  ;;  %v11671_v18 = vpack.c.bf16 %v363_v44, %v363_v44  ;;  %v10894_v8 = vld [vmem:[%s15078_s1 + $0x28] sm:$0xff] }
  0x76   : > { %1382 = vrot.lane.b32.xlu0 %v1251_v59, %s11174_s10  ;;  %v633_v45 = vrot.slane %v631_v3, 7  ;;  %v253_v20 = vsel %vm11258_vm2, 0, %v252_v5  ;;  %v487_v23 = vshrl.u32 %v11601_v49, 16  ;;  %v490_v24 = vshll.u32 %v11601_v49, 16  ;;  %v1763_v31 = vld [vmem:[#allocation2 + $0xa0] sm:$0xf]  ;;  %4498 = vmatpush.bf16.msra.mxu0 %v10894_v8 }
  0x77   : > { %v1285_v26 = vsel %vm11335_vm11, %v11649_v7, %v11644_v4  ;;  %v1762_v27 = vld [vmem:[#allocation2 + $0x9c] sm:$0xf]  ;;  %v629_v34 = vrot.slane %v625_v30, 4  ;;  %v495_v35 = vshrl.u32 %v11603_v63, 16  ;;  %v11689_v49 = vpack.c.bf16 %v364_v14, %v364_v14  ;;  %254 = vst [vmem:[#allocation2 + $0x48] sm:$0x1] %v253_v20  ;;  %11044 = vmatpush.bf16.msra.mxu2 %v10894_v8  ;;  %11052 = vmatpush.bf16.msra.mxu3 %v10902_v25 }
  0x78   : > { %v938_v29 = vld [vmem:[#allocation2 + $0x9c] sm:$0xf]  ;;  %v748_v38 = vld [vmem:[#allocation2 + $0x38] sm:$0x1]  ;;  %v636_v39 = vor.u32 %v634_v11, %v633_v45  ;;  %v638_v40 = vrot.slane %v633_v45, 4  ;;  %v1063_v48 = vor.u32 %v11665_v53, %v11615_v60  ;;  %v628_v32 = vor.u32 %v626_v16, %v625_v30  ;;  %4587 = vmatpush.bf16.msra.mxu1 %v10902_v25 }
  0x79   : > { %v1263_v58 = vshrl.u32 %v938_v29, 16  ;;  %v1266_v37 = vshll.u32 %v938_v29, 16  ;;  %v914_v33 = vld [vmem:[#allocation2 + $0x3c] sm:$0xf]  ;;  %v749_v46 = vsel %vm11258_vm2, %v468_v22, %v748_v38  ;;  %v489_v42 = vrot.slane %v487_v23, 7 }
  0x7a   : > { %v915_v51 = vld [vmem:[#allocation2 + $0x40] sm:$0xf]  ;;  %v1071_v21 = vshrl.u32 %v914_v33, 16  ;;  %v1074_v54 = vshll.u32 %v914_v33, 16  ;;  %v299_v59 = vld [vmem:[#allocation2 + $0x44] sm:$0x1]  ;;  %v637_v60 = vsel %vm11305_vm10, %v629_v34, %v636_v39  ;;  %4499 = vmatpush.bf16.msra.mxu0 %v10893_v50 }
  0x7b   : > { %v1265_v52 = vrot.slane %v1263_v58, 4  ;;  %v1268_v55 = vrot.slane %v1266_v37, 5  ;;  %1850 = vrot.lane.b32.xlu2 %v1762_v27, %s11174_s10  ;;  %v1080_v15 = vshll.u32 %v915_v51, 16  ;;  %750 = vst [vmem:[#allocation2 + $0x38] sm:$0x1] %v749_v46  ;;  %v492_v22 = vor.u32 %v490_v24, %v489_v42  ;;  %11045 = vmatpush.bf16.msra.mxu2 %v10893_v50 }
  0x7c   : > { %v818_v61 = vld [vmem:[#allocation2 + $0xb0] sm:$0x1]  ;;  %v1073_v62 = vrot.slane %v1071_v21, 4  ;;  %v1076_v1 = vrot.slane %v1074_v54, 5  ;;  %817 = vst.msk [vmem:[#allocation2 + $0xac] sm:$0xf] %vm224_vm4, %v637_v60 }
  0x7d   : > { %v1269_v44 = vor.u32 %v1268_v55, %v1265_v52  ;;  %v819_v2 = vsel %vm11258_vm2, %v638_v40, %v818_v61  ;;  %v814_v56 = vld [vmem:[#allocation2 + $0xa8] sm:$0xf]  ;;  %1388 = vrot.lane.b32.xlu1 %v1285_v26, %s11174_s10  ;;  %v493_v9 = vrot.slane %v489_v42, 4  ;;  %v11707_v5 = vrot.slane %v495_v35, 7  ;;  %v835_v57 = vld [vmem:[#allocation2] sm:$0xf] }
  0x7e   : > { %820 = vst [vmem:[#allocation2 + $0xb0] sm:$0x1] %v819_v2  ;;  %v815_v4 = vsel %vm11296_vm7, %v628_v32, %v814_v56  ;;  %v498_v7 = vshll.u32 %v11603_v63, 16  ;;  %1852 = vrot.lane.b32.xlu0 %v1763_v31, %s11174_s10  ;;  %v1077_v10 = vor.u32 %v1076_v1, %v1073_v62  ;;  %v1082_v41 = vrot.slane %v1080_v15, 5  ;;  %v10901_v63 = vld [vmem:[%s15078_s1 + $0x60] sm:$0xff]  ;;  %v348_v31 = vld [vmem:[%s11270_s9 + $0x68] sm:$0xff] }
  0x7f   : > { %v1064_v19 = vrot.slane %v1063_v48, 4  ;;  %816 = vst [vmem:[#allocation2 + $0xa8] sm:$0xf] %v815_v4  ;;  %v1270_v3 = vrot.slane %v1269_v44, 4  ;;  %v300_v12 = vsel %vm11274_vm5, 0, %v299_v59  ;;  %v1084_v14 = vshrl.u32 %v915_v51, 16  ;;  %11053 = vmatpush.bf16.msra.mxu3 %v10901_v63  ;;  %4588 = vmatpush.bf16.msra.mxu1 %v10901_v63 }
  0x80   : > { %v500_v11 = vor.u32 %v498_v7, %v11707_v5  ;;  %867 = vst.msk [vmem:[#allocation3] sm:$0xf] %vm224_vm4, %v835_v57  ;;  %v1078_v53 = vrot.slane %v1077_v10, 4  ;;  %v758_v30 = vld [vmem:[#allocation2 + $0x48] sm:$0xf]  ;;  %v640_v16 = vshrl.u32 %v11671_v18, 16 }
  0x81   : > { %301 = vst [vmem:[#allocation2 + $0x44] sm:$0x1] %v300_v12  ;;  %v759_v45 = vsel %vm11296_vm7, %v492_v22, %v758_v30  ;;  %v1086_v20 = vrot.slane %v1084_v14, 4  ;;  %v329_v23 = vld [vmem:[#allocation2 + $0xbc] sm:$0x1]  ;;  %v648_v24 = vshrl.u32 %v11689_v49, 16  ;;  %v1275_v27 = vsel %vm11335_vm11, %v1270_v3, %v11619_v47 }
  0x82   : > { %v501_v17 = vsel %vm11305_vm10, %v493_v9, %v500_v11  ;;  %v1083_v8 = vsel %vm11335_vm11, %v1078_v53, %v1082_v41  ;;  %v913_v25 = vld [vmem:[#allocation2 + $0x38] sm:$0x1]  ;;  %760 = vst [vmem:[#allocation2 + $0x48] sm:$0xf] %v759_v45  ;;  %v485_v26 = vrot.slane %v11606_v13, 4  ;;  %v330_v58 = vsel %vm11274_vm5, 0, %v329_v23 }
  0x83   : > { %v1066_v29 = vshll.u32 %v913_v25, 16  ;;  %v942_v34 = vld [vmem:[#allocation2 + $0xac] sm:$0xf]  ;;  %v1087_v35 = vor.u32 %v1086_v20, %v1082_v41  ;;  %761 = vst.msk [vmem:[#allocation2 + $0x4c] sm:$0xf] %vm224_vm4, %v501_v17  ;;  %v347_v40 = vld [vmem:[%s11270_s9 + $0x60] sm:$0xff]  ;;  %v11764_v41 = vpack.c.bf16 %v348_v31, %v348_v31 }
  0x84   : > { %v1296_v38 = vshll.u32 %v942_v34, 16  ;;  %v1300_v39 = vshrl.u32 %v942_v34, 16  ;;  %v11736_v48 = vrot.slane %v640_v16, 7  ;;  %v11738_v47 = vrot.slane %v648_v24, 7  ;;  %331 = vst [vmem:[#allocation2 + $0xbc] sm:$0x1] %v330_v58 }
  0x85   : > { %v943_v37 = vld [vmem:[#allocation2 + $0xb0] sm:$0x1]  ;;  %1354 = vrot.lane.b32.xlu1 %v1083_v8, %s11174_s10  ;;  %v1068_v13 = vrot.slane %v1066_v29, 5  ;;  %v11746_v59 = vrot.slane %v1087_v35, 4  ;;  %v1487_v62 = vld [vmem:[#allocation2 + $0x60] sm:$0xe]  ;;  %v11762_v10 = vpack.c.bf16 %v347_v40, %v347_v40 }
  0x86   : > { %v1306_v33 = vshll.u32 %v943_v37, 16  ;;  %v941_v46 = vld [vmem:[#allocation2 + $0xa8] sm:$0xf]  ;;  %1386 = vrot.lane.b32.xlu0 %v1275_v27, %s11174_s10  ;;  %v11741_v32 = vrot.slane %v1296_v38, 5  ;;  %v1302_v42 = vrot.slane %v1300_v39, 4  ;;  %v1335_v21 = vpop.permute.xlu2 %1334  ;;  %v10892_v44 = vld [vmem:[%s15078_s1 + $0x18] sm:$0xff] }
  0x87   : > { %v1287_v50 = vshrl.u32 %v941_v46, 16  ;;  %v1290_v51 = vshll.u32 %v941_v46, 16  ;;  %v1069_v54 = vsel %vm11335_vm11, %v1064_v19, %v1068_v13  ;;  %1431 = vst.msk [vmem:[#allocation3] sm:$0xf] %vm1430_vm12, %v1335_v21  ;;  %v11752_v1 = vld [vmem:[#allocation2 + $0x64] sm:$0xf]  ;;  %4500 = vmatpush.bf16.msra.mxu0 %v10892_v44  ;;  %11046 = vmatpush.bf16.msra.mxu2 %v10892_v44 }
  0x88   : > { %v1308_v52 = vrot.slane %v1306_v33, 5  ;;  %v755_v55 = vld [vmem:[#allocation2 + $0x44] sm:$0x1]  ;;  %1352 = vrot.lane.b32.xlu2 %v1069_v54, %s11174_s10  ;;  %v1303_v15 = vor.u32 %v1302_v42, %v11741_v32  ;;  %v10900_v2 = vld [vmem:[%s15078_s1 + $0x58] sm:$0xff]  ;;  %v1765_v56 = vld [vmem:[#allocation2 + $0xac] sm:$0xf] }
  0x89   : > { %v1289_v60 = vrot.slane %v1287_v50, 4  ;;  %v1292_v61 = vrot.slane %v1290_v51, 5  ;;  %v756_v22 = vsel %vm11258_vm2, %v485_v26, %v755_v55  ;;  %v917_v4 = vld [vmem:[#allocation2 + $0x48] sm:$0xf]  ;;  %v646_v9 = vrot.slane %v11736_v48, 4  ;;  %11054 = vmatpush.bf16.msra.mxu3 %v10900_v2  ;;  %v10891_v12 = vld [vmem:[%s15078_s1 + $0x10] sm:$0xff]  ;;  %4589 = vmatpush.bf16.msra.mxu1 %v10900_v2 }
  0x8a   : > { %757 = vst [vmem:[#allocation2 + $0x44] sm:$0x1] %v756_v22  ;;  %v651_v7 = vshll.u32 %v11689_v49, 16  ;;  %v1304_v19 = vrot.slane %v1303_v15, 4  ;;  %v1095_v57 = vshrl.u32 %v917_v4, 16  ;;  %v1098_v3 = vshll.u32 %v917_v4, 16 }
  0x8b   : > { %v1293_v11 = vor.u32 %v1292_v61, %v1289_v60  ;;  %v836_v14 = vld [vmem:[#allocation2 + $0x4] sm:$0xf]  ;;  %v1764_v63 = vld [vmem:[#allocation2 + $0xa8] sm:$0xf]  ;;  %v11769_v53 = vld [vmem:[#allocation2 + $0x4c] sm:$0xf]  ;;  %4501 = vmatpush.bf16.msra.mxu0 %v10891_v12  ;;  %11047 = vmatpush.bf16.msra.mxu2 %v10891_v12 }
  0x8c   : > { %v653_v49 = vor.u32 %v651_v7, %v11738_v47  ;;  %v655_v30 = vrot.slane %v11738_v47, 4  ;;  %vm1560_vm14 = vcmask 1046532   ;;  %v1309_v16 = vsel %vm11335_vm11, %v1304_v19, %v1308_v52  ;;  %868 = vst.msk [vmem:[#allocation3 + $0x14] sm:$0xf] %vm224_vm4, %v836_v14  ;;  %v825_v25 = vld [vmem:[#allocation2 + $0xbc] sm:$0x1] }
  0x8d   : > { %v1097_v17 = vrot.slane %v1095_v57, 4  ;;  %v1100_v45 = vrot.slane %v1098_v3, 5  ;;  %v1104_v20 = vshll.u32 %v11769_v53, 16  ;;  %vm11776_vm15 = vmor %vm1559_vm13, %vm1560_vm14  ;;  %1392 = vrot.lane.b32.xlu1 %v1309_v16, %s11174_s10  ;;  %v1294_v24 = vrot.slane %v1293_v11, 4  ;;  %v10899_v29 = vld [vmem:[%s15078_s1 + $0x50] sm:$0xff]  ;;  %v366_v52 = vld [vmem:[%s11270_s9 + $0xf8] sm:$0xff] }
  0x8e   : > { %v654_v8 = vsel %vm11305_vm10, %v646_v9, %v653_v49  ;;  %v9755_v26 = vrot.slane %v1487_v62, 9  ;;  %v1620_v27 = vrot.slane %v11752_v1, 5  ;;  %1856 = vrot.lane.b32.xlu0 %v1765_v56, %s11174_s10  ;;  %v826_v58 = vsel %vm11258_vm2, %v655_v30, %v825_v25  ;;  %v1337_v37 = vpop.permute.xlu2 %1336  ;;  %v279_v38 = vld [vmem:[#allocation2 + $0xb4] sm:$0x1]  ;;  %11055 = vmatpush.bf16.msra.mxu3 %v10899_v29  ;;  %v1489_v60 = vld [vmem:[#allocation2 + $0x68] sm:$0x1] }
  0x8f   : > { %v1101_v34 = vor.u32 %v1100_v45, %v1097_v17  ;;  %v11789_v35 = vrot.slane %v1104_v20, 5  ;;  %824 = vst.msk [vmem:[#allocation2 + $0xb8] sm:$0xf] %vm224_vm4, %v654_v8  ;;  %v643_v39 = vshll.u32 %v11671_v18, 16  ;;  %v280_v31 = vsel %vm11258_vm2, 0, %v279_v38  ;;  %v365_v42 = vld [vmem:[%s11270_s9 + $0xf0] sm:$0xff]  ;;  %4590 = vmatpush.bf16.msra.mxu1 %v10899_v29 }
  0x90   : > { %827 = vst [vmem:[#allocation2 + $0xbc] sm:$0x1] %v826_v58  ;;  %v1621_v40 = vsel %vm11776_vm15, %v9755_v26, %v1620_v27  ;;  %v255_v13 = vld [vmem:[#allocation2 + $0x54] sm:$0x1]  ;;  %v504_v33 = vshrl.u32 %v11762_v10, 16  ;;  %1854 = vrot.lane.b32.xlu2 %v1764_v63, %s11174_s10  ;;  %v507_v21 = vshll.u32 %v11762_v10, 16  ;;  %v1299_v22 = vsel %vm11335_vm11, %v1294_v24, %v11741_v32 }
  0x91   : > { %v1102_v46 = vrot.slane %v1101_v34, 4  ;;  %v916_v47 = vld [vmem:[#allocation2 + $0x44] sm:$0x1]  ;;  %1722 = vst.msk [vmem:[#allocation3 + $0x144] sm:$0xf] %vm224_vm4, %v1621_v40  ;;  %v256_v18 = vsel %vm11258_vm2, 0, %v255_v13  ;;  %v645_v56 = vor.u32 %v643_v39, %v11736_v48  ;;  %v11834_v19 = vpack.c.bf16 %v365_v42, %v365_v42 }
  0x92   : > { %v1090_v50 = vshll.u32 %v916_v47, 16  ;;  %1432 = vst.msk [vmem:[#allocation3 + $0x14] sm:$0xf] %vm1430_vm12, %v1337_v37  ;;  %v506_v51 = vrot.slane %v504_v33, 7  ;;  %v512_v54 = vshrl.u32 %v11764_v41, 16  ;;  %v515_v15 = vshll.u32 %v11764_v41, 16 }
  0x93   : > { %v1107_v55 = vsel %vm11335_vm11, %v1102_v46, %v11789_v35  ;;  %281 = vst [vmem:[#allocation2 + $0xb4] sm:$0x1] %v280_v31  ;;  %v1622_v61 = vrot.slane %v1620_v27, 4  ;;  %v10890_v2 = vld [vmem:[%s15078_s1 + $0x8] sm:$0xff]  ;;  %v1623_v4 = vrot.slane %v1489_v60, 5  ;;  %v10889_v48 = vld [vmem:[%s15078_s1] sm:$0xff]  ;;  %v398_v14 = vpack.c.bf16 %v366_v52, %v366_v52 }
  0x94   : > { %v1092_v62 = vrot.slane %v1090_v50, 5  ;;  %257 = vst [vmem:[#allocation2 + $0x54] sm:$0x1] %v256_v18  ;;  %v510_v1 = vrot.slane %v506_v51, 4  ;;  %v11816_v44 = vrot.slane %v512_v54, 7  ;;  %v10898_v7 = vld [vmem:[%s15078_s1 + $0x48] sm:$0xff]  ;;  %4502 = vmatpush.bf16.msra.mxu0 %v10890_v2  ;;  %v509_v49 = vor.u32 %v507_v21, %v506_v51  ;;  %11048 = vmatpush.bf16.msra.mxu2 %v10890_v2 }
  0x95   : > { %v851_v9 = vld [vmem:[#allocation2 + $0x60] sm:$0xf]  ;;  %1358 = vrot.lane.b32.xlu1 %v1107_v55, %s11174_s10  ;;  %11056 = vmatpush.bf16.msra.mxu3 %v10898_v7  ;;  %v302_v12 = vld [vmem:[#allocation2 + $0x50] sm:$0x1]  ;;  %v657_v34 = vshrl.u32 %v11834_v19, 16  ;;  %v665_v37 = vshrl.u32 %v398_v14, 16 }
  0x96   : > { %v1093_v32 = vsel %vm11335_vm11, %v11746_v59, %v1092_v62  ;;  %v945_v10 = vld [vmem:[#allocation2 + $0xb8] sm:$0xf]  ;;  %v517_v41 = vor.u32 %v515_v15, %v11816_v44  ;;  %883 = vst.msk [vmem:[#allocation3 + $0x140] sm:$0xf] %vm224_vm4, %v851_v9  ;;  %1390 = vrot.lane.b32.xlu0 %v1299_v22, %s11174_s10  ;;  %v1624_v59 = vsel %vm11776_vm15, %v1622_v61, %v1623_v4  ;;  %v303_v16 = vsel %vm11274_vm5, 0, %v302_v12  ;;  %v10897_v17 = vld [vmem:[%s15078_s1 + $0x40] sm:$0xff] }
  0x97   : > { %v946_v57 = vld [vmem:[#allocation2 + $0xbc] sm:$0x1]  ;;  %v1320_v3 = vshll.u32 %v945_v10, 16  ;;  %v1324_v11 = vshrl.u32 %v945_v10, 16  ;;  %1723 = vst.msk [vmem:[#allocation3 + $0x158] sm:$0xf] %vm224_vm4, %v1624_v59  ;;  %4591 = vmatpush.bf16.msra.mxu1 %v10898_v7 }
  0x98   : > { %v1330_v63 = vshll.u32 %v946_v57, 16  ;;  %v518_v30 = vsel %vm11305_vm10, %v510_v1, %v517_v41  ;;  %1356 = vrot.lane.b32.xlu2 %v1093_v32, %s11174_s10  ;;  %4503 = vmatpush.bf16.msra.mxu0 %v10889_v48  ;;  %304 = vst [vmem:[#allocation2 + $0x50] sm:$0x1] %v303_v16  ;;  %v1767_v26 = vld [vmem:[#allocation2 + $0xb8] sm:$0xf]  ;;  %v502_v40 = vrot.slane %v11707_v5, 4 }
  0x99   : > { %v11848_v45 = vrot.slane %v1320_v3, 5  ;;  %v1326_v20 = vrot.slane %v1324_v11, 4  ;;  %768 = vst.msk [vmem:[#allocation2 + $0x58] sm:$0xf] %vm224_vm4, %v518_v30  ;;  %11057 = vmatpush.bf16.msra.mxu3 %v10897_v17  ;;  %v9797_v38 = vld [vmem:[#allocation3] sm:$0xf]  ;;  %11049 = vmatpush.bf16.msra.mxu2 %v10889_v48 }
  0x9a   : > { %v821_v24 = vld [vmem:[#allocation2 + $0xb4] sm:$0xf]  ;;  %v1332_v25 = vrot.slane %v1330_v63, 5  ;;  %v11858_v31 = vrot.slane %v657_v34, 7  ;;  %v668_v13 = vshll.u32 %v398_v14, 16  ;;  %v1108_v46 = vshrl.u32 %v11769_v53, 16 }
  0x9b   : > { %v1327_v8 = vor.u32 %v1326_v20, %v11848_v45  ;;  %v822_v27 = vsel %vm11296_vm7, %v645_v56, %v821_v24  ;;  %v765_v29 = vld [vmem:[#allocation2 + $0x54] sm:$0xf]  ;;  %4592 = vmatpush.bf16.msra.mxu1 %v10897_v17  ;;  %v11861_v47 = vrot.slane %v665_v37, 7  ;;  %v10811_v18 = vld [vmem:[#allocation3 + $0x10] sm:$0xf0]  ;;  %v10912_v53 = vld [vmem:[%s15078_s1 + $0xb8] sm:$0xff] }
  0x9c   : > { %823 = vst [vmem:[#allocation2 + $0xb4] sm:$0xf] %v822_v27  ;;  %v766_v58 = vsel %vm11296_vm7, %v509_v49, %v765_v29  ;;  %v1490_v42 = vld [vmem:[#allocation2 + $0x6c] sm:$0xe]  ;;  %v663_v51 = vrot.slane %v11858_v31, 4  ;;  %v9798_v5 = vor.u32 %v10811_v18, %v9797_v38  ;;  %v10920_v60 = vld [vmem:[%s15078_s1 + $0xf8] sm:$0xff] }
  0x9d   : > { %v1328_v39 = vrot.slane %v1327_v8, 4  ;;  %767 = vst [vmem:[#allocation2 + $0x54] sm:$0xf] %v766_v58  ;;  %v1835_v33 = vpop.permute.xlu1 %1834  ;;  %v11868_v21 = vld [vmem:[#allocation2 + $0x70] sm:$0xf]  ;;  %v670_v52 = vor.u32 %v668_v13, %v11861_v47  ;;  %v9756_v55 = vrot.slane %v1490_v42, 9  ;;  %4674 = vmatpush.bf16.msrb.mxu2 %v10912_v53  ;;  %4763 = vmatpush.bf16.msrb.mxu3 %v10920_v60 }
  0x9e   : > { %1860 = vrot.lane.b32.xlu0 %v1767_v26, %s11174_s10  ;;  %1914 = vst.msk [vmem:[#allocation3 + $0x144] sm:$0xf] %vm1430_vm12, %v1835_v33  ;;  %v1627_v15 = vrot.slane %v11868_v21, 5  ;;  %4504 = vmatmul.bf16.vlgmr.msra.gmra.mxu0 %v9798_v5  ;;  %v854_v22 = vld [vmem:[#allocation2 + $0x70] sm:$0xf]  ;;  %v1110_v9 = vrot.slane %v1108_v46, 4 }
  0x9f   : > { %v1333_v50 = vsel %vm11335_vm11, %v1328_v39, %v1332_v25  ;;  %v762_v61 = vld [vmem:[#allocation2 + $0x50] sm:$0x1]  ;;  %v671_v1 = vsel %vm11305_vm10, %v663_v51, %v670_v52  ;;  %886 = vst.msk [vmem:[#allocation3 + $0x17c] sm:$0xf] %vm224_vm4, %v854_v22  ;;  %v282_v11 = vld [vmem:[#allocation2 + $0xc0] sm:$0x1] }
  0xa0   : > { %1396 = vrot.lane.b32.xlu1 %v1333_v50, %s11174_s10  ;;  %v11874_v54 = vld [vmem:[#allocation2 + $0x58] sm:$0xf]  ;;  %v763_v62 = vsel %vm11258_vm2, %v502_v40, %v762_v61  ;;  %v1628_v7 = vsel %vm11776_vm15, %v9756_v55, %v1627_v15  ;;  %831 = vst.msk [vmem:[#allocation2 + $0xc4] sm:$0xf] %vm224_vm4, %v671_v1  ;;  %v852_v63 = vld [vmem:[#allocation2 + $0x64] sm:$0xf]  ;;  %v1111_v24 = vor.u32 %v1110_v9, %v11789_v35 }
  0xa1   : > { %v1128_v56 = vshll.u32 %v11874_v54, 16  ;;  %764 = vst [vmem:[#allocation2 + $0x50] sm:$0x1] %v763_v62  ;;  %v11895_v16 = vld [vmem:[#allocation2 + $0x10] sm:$0xf]  ;;  %v283_v8 = vsel %vm11258_vm2, 0, %v282_v11 }
  0xa2   : > { %1724 = vst.msk [vmem:[#allocation3 + $0x16c] sm:$0xf] %vm224_vm4, %v1628_v7  ;;  %v838_v25 = vld [vmem:[#allocation2 + $0x10] sm:$0xf]  ;;  %v837_v29 = vld [vmem:[#allocation2 + $0xc] sm:$0xf] }
  0xa3   : > { %v1766_v2 = vld [vmem:[#allocation2 + $0xb4] sm:$0xf]  ;;  %v1839_v48 = vpop.permute.xlu2 %1838  ;;  %v11897_v17 = vrot.slane %v1128_v56, 5  ;;  %884 = vst.msk [vmem:[#allocation3 + $0x154] sm:$0xf] %vm224_vm4, %v852_v63  ;;  %v2524_v38 = vrot.slane %v11895_v16, 5 }
  0xa4   : > { %v944_v4 = vld [vmem:[#allocation2 + $0xb4] sm:$0xf]  ;;  %1858 = vrot.lane.b32.xlu2 %v1766_v2, %s11174_s10  ;;  %1916 = vst.msk [vmem:[#allocation3 + $0x16c] sm:$0xf] %vm1430_vm12, %v1839_v48  ;;  %v853_v34 = vld [vmem:[#allocation2 + $0x6c] sm:$0xf] }
  0xa5   : > { %v920_v32 = vld [vmem:[#allocation2 + $0x54] sm:$0xf]  ;;  %v1311_v10 = vshrl.u32 %v944_v4, 16  ;;  %v1314_v41 = vshll.u32 %v944_v4, 16  ;;  %v1837_v14 = vpop.permute.xlu1 %1836  ;;  %v305_v39 = vld [vmem:[#allocation2 + $0x5c] sm:$0x1] }
  0xa6   : > { %v1119_v57 = vshrl.u32 %v920_v32, 16  ;;  %v1122_v3 = vshll.u32 %v920_v32, 16  ;;  %1915 = vst.msk [vmem:[#allocation3 + $0x158] sm:$0xf] %vm1430_vm12, %v1837_v14  ;;  %v2428_v37 = vld [vmem:[#allocation2 + $0x14] sm:$0x1] }
  0xa7   : > { %v1313_v59 = vrot.slane %v1311_v10, 4  ;;  %v1316_v12 = vrot.slane %v1314_v41, 5  ;;  %284 = vst [vmem:[#allocation2 + $0xc0] sm:$0x1] %v283_v8  ;;  %v660_v13 = vshll.u32 %v11834_v19, 16  ;;  %v1112_v46 = vrot.slane %v1111_v24, 4 }
  0xa8   : > { %v1121_v49 = vrot.slane %v1119_v57, 4  ;;  %v1124_v30 = vrot.slane %v1122_v3, 5  ;;  %v1367_v27 = vpop.permute.xlu0 %1366  ;;  %v919_v40 = vld [vmem:[#allocation2 + $0x50] sm:$0x1]  ;;  %v10849_v42 = vld [vmem:[#allocation3 + $0x144] sm:$0xf] }
  0xa9   : > { %v1317_v20 = vor.u32 %v1316_v12, %v1313_v59  ;;  %1447 = vst.msk [vmem:[#allocation3 + $0x140] sm:$0xf] %vm1430_vm12, %v1367_v27  ;;  %v1114_v18 = vshll.u32 %v919_v40, 16  ;;  %v11915_v51 = vld [vmem:[#allocation2 + $0xc] sm:$0xe]  ;;  %v306_v52 = vsel %vm11274_vm5, 0, %v305_v39  ;;  %v662_v22 = vor.u32 %v660_v13, %v11858_v31 }
  0xaa   : > { %v1125_v26 = vor.u32 %v1124_v30, %v1121_v49  ;;  %870 = vst.msk [vmem:[#allocation3 + $0x3c] sm:$0xf] %vm224_vm4, %v838_v25  ;;  %v2526_v55 = vrot.slane %v2524_v38, 4  ;;  %v2527_v60 = vrot.slane %v2428_v37, 5  ;;  %v2828_v62 = vld [vmem:[#allocation2 + $0x1c] sm:$0xf] }
  0xab   : > { %v1318_v58 = vrot.slane %v1317_v20, 4  ;;  %869 = vst.msk [vmem:[#allocation3 + $0x28] sm:$0xf] %vm224_vm4, %v837_v29  ;;  %v1116_v19 = vrot.slane %v1114_v18, 5  ;;  %v9763_v2 = vrot.slane %v11915_v51, 9  ;;  %v519_v56 = vrot.slane %v11816_v44, 4 }
  0xac   : > { %v1126_v35 = vrot.slane %v1125_v26, 4  ;;  %885 = vst.msk [vmem:[#allocation3 + $0x168] sm:$0xf] %vm224_vm4, %v853_v34  ;;  %v1769_v4 = vld [vmem:[#allocation2 + $0xc4] sm:$0xf]  ;;  %v2885_v7 = vshll.u32 %v2828_v62, 16  ;;  %v2528_v44 = vsel %vm11776_vm15, %v2526_v55, %v2527_v60 }
  0xad   : > { %v1323_v33 = vsel %vm11335_vm11, %v1318_v58, %v11848_v45  ;;  %v1373_v5 = vpop.permute.xlu1 %1372  ;;  %v9959_v45 = vld [vmem:[#allocation3 + $0x154] sm:$0xf0]  ;;  %v1341_v53 = vpop.permute.xlu2 %1340  ;;  %v1117_v1 = vsel %vm11335_vm11, %v1112_v46, %v1116_v19  ;;  %307 = vst [vmem:[#allocation2 + $0x5c] sm:$0x1] %v306_v52  ;;  %v2889_v32 = vshrl.u32 %v2828_v62, 16  ;;  %v1132_v10 = vshrl.u32 %v11874_v54, 16 }
  0xae   : > { %v1131_v50 = vsel %vm11335_vm11, %v1126_v35, %v11897_v17  ;;  %1394 = vrot.lane.b32.xlu0 %v1323_v33, %s11174_s10  ;;  %1450 = vst.msk [vmem:[#allocation3 + $0x17c] sm:$0xf] %vm1430_vm12, %v1373_v5  ;;  %v9962_v61 = vor.u32 %v10849_v42, %v9959_v45  ;;  %1360 = vrot.lane.b32.xlu2 %v1117_v1, %s11174_s10  ;;  %v828_v31 = vld [vmem:[#allocation2 + $0xc0] sm:$0xf]  ;;  %v11934_v41 = vld [vmem:[#allocation2 + $0x1c] sm:$0xf] }
  0xaf   : > { %1362 = vrot.lane.b32.xlu1 %v1131_v50, %s11174_s10  ;;  %1434 = vst.msk [vmem:[#allocation3 + $0x3c] sm:$0xf] %vm1430_vm12, %v1341_v53  ;;  %v10924_v48 = vld [vmem:[%s15078_s1 + $0x118] sm:$0xff]  ;;  %v829_v57 = vsel %vm11296_vm7, %v662_v22, %v828_v31  ;;  %v11943_v3 = vrot.slane %v2885_v7, 5  ;;  %v1629_v54 = vrot.slane %v1627_v15, 4  ;;  %v2891_v14 = vrot.slane %v2889_v32, 4 }
  0xb0   : > { %v1369_v9 = vpop.permute.xlu0 %1368  ;;  %4633 = vmatmul.bf16.vlgmr.msra.gmra.mxu3 %v9962_v61  ;;  %v1493_v11 = vld [vmem:[#allocation2 + $0x78] sm:$0xe]  ;;  %v11945_v59 = vld [vmem:[#allocation2 + $0x7c] sm:$0xf]  ;;  %830 = vst [vmem:[#allocation2 + $0xc0] sm:$0xf] %v829_v57  ;;  %4856 = vmatpush.bf16.msrb.mxu0 %v10924_v48  ;;  %v2525_v51 = vsel %vm11776_vm15, %v9763_v2, %v2524_v38 }
  0xb1   : > { %1448 = vst.msk [vmem:[#allocation3 + $0x154] sm:$0xf] %vm1430_vm12, %v1369_v9  ;;  %v2829_v12 = vld [vmem:[#allocation2 + $0x20] sm:$0x1]  ;;  %v9757_v63 = vrot.slane %v1493_v11, 9  ;;  %v1634_v49 = vrot.slane %v11945_v59, 5  ;;  %v2892_v18 = vor.u32 %v2891_v14, %v11943_v3 }
  0xb2   : > { %v10911_v30 = vld [vmem:[%s15078_s1 + $0xb0] sm:$0xff]  ;;  %v856_v20 = vld [vmem:[#allocation2 + $0x7c] sm:$0xf]  ;;  %v2827_v8 = vld [vmem:[#allocation2 + $0x18] sm:$0xf]  ;;  %v1134_v58 = vrot.slane %v1132_v10, 4 }
  0xb3   : > { %v1492_v24 = vld [vmem:[#allocation2 + $0x74] sm:$0x1]  ;;  %v1635_v15 = vsel %vm11776_vm15, %v9757_v63, %v1634_v49  ;;  %888 = vst.msk [vmem:[#allocation3 + $0x1a4] sm:$0xf] %vm224_vm4, %v856_v20  ;;  %v2876_v27 = vshrl.u32 %v2827_v8, 16  ;;  %v2879_v29 = vshll.u32 %v2827_v8, 16  ;;  %4675 = vmatpush.bf16.msrb.mxu2 %v10911_v30 }
  0xb4   : > { %v1630_v26 = vrot.slane %v1492_v24, 5  ;;  %v10919_v34 = vld [vmem:[%s15078_s1 + $0xf0] sm:$0xff]  ;;  %v2531_v37 = vrot.slane %v11934_v41, 5  ;;  %v9957_v39 = vld [vmem:[#allocation3 + $0x140] sm:$0xf]  ;;  %v2895_v42 = vshll.u32 %v2829_v12, 16  ;;  %v1135_v16 = vor.u32 %v1134_v58, %v11897_v17 }
  0xb5   : > { %v1339_v21 = vpop.permute.xlu1 %1338  ;;  %v1843_v25 = vpop.permute.xlu2 %1842  ;;  %v769_v35 = vld [vmem:[#allocation2 + $0x5c] sm:$0x1]  ;;  %1726 = vst.msk [vmem:[#allocation3 + $0x194] sm:$0xf] %vm224_vm4, %v1635_v15  ;;  %4764 = vmatpush.bf16.msrb.mxu3 %v10919_v34  ;;  %v1738_v40 = vld [vmem:[#allocation2 + $0xc] sm:$0xf] }
  0xb6   : > { %1864 = vrot.lane.b32.xlu0 %v1769_v4, %s11174_s10  ;;  %1433 = vst.msk [vmem:[#allocation3 + $0x28] sm:$0xf] %vm1430_vm12, %v1339_v21  ;;  %v770_v46 = vsel %vm11258_vm2, %v519_v56, %v769_v35  ;;  %v1631_v50 = vsel %vm11776_vm15, %v1629_v54, %v1630_v26  ;;  %v2878_v5 = vrot.slane %v2876_v27, 4  ;;  %v2881_v45 = vrot.slane %v2879_v29, 5  ;;  %v840_v53 = vld [vmem:[#allocation2 + $0x1c] sm:$0xf] }
  0xb7   : > { %2636 = vrot.lane.b32.xlu1 %v2528_v44, %s11174_s10  ;;  %1918 = vst.msk [vmem:[#allocation3 + $0x194] sm:$0xf] %vm1430_vm12, %v1843_v25  ;;  %v1768_v52 = vld [vmem:[#allocation2 + $0xc0] sm:$0xf]  ;;  %v839_v55 = vld [vmem:[#allocation2 + $0x18] sm:$0xf] }
  0xb8   : > { %v1371_v13 = vpop.permute.xlu0 %1370  ;;  %v10851_v33 = vld [vmem:[#allocation3 + $0x150] sm:$0xf0]  ;;  %771 = vst [vmem:[#allocation2 + $0x5c] sm:$0x1] %v770_v46  ;;  %1862 = vrot.lane.b32.xlu2 %v1768_v52, %s11174_s10  ;;  %v2431_v60 = vld [vmem:[#allocation2 + $0x20] sm:$0x1]  ;;  %v2882_v62 = vor.u32 %v2881_v45, %v2878_v5 }
  0xb9   : > { %1449 = vst.msk [vmem:[#allocation3 + $0x168] sm:$0xf] %vm1430_vm12, %v1371_v13  ;;  %v9958_v19 = vor.u32 %v10851_v33, %v9957_v39  ;;  %v10816_v61 = vld [vmem:[#allocation3 + $0x38] sm:$0xf0]  ;;  %v2893_v38 = vrot.slane %v2892_v18, 4  ;;  %v2897_v22 = vrot.slane %v2895_v42, 5 }
  0xba   : > { %1725 = vst.msk [vmem:[#allocation3 + $0x180] sm:$0xf] %vm224_vm4, %v1631_v50  ;;  %v855_v56 = vld [vmem:[#allocation2 + $0x78] sm:$0xf]  ;;  %v2533_v4 = vrot.slane %v2531_v37, 4  ;;  %v2534_v9 = vrot.slane %v2431_v60, 5 }
  0xbb   : > { %4544 = vmatmul.bf16.vlgmr.msra.gmra.mxu2 %v9958_v19  ;;  %872 = vst.msk [vmem:[#allocation3 + $0x64] sm:$0xf] %vm224_vm4, %v840_v53  ;;  %v2429_v32 = vld [vmem:[#allocation2 + $0x18] sm:$0xe]  ;;  %v10910_v31 = vld [vmem:[%s15078_s1 + $0xa8] sm:$0xff]  ;;  %v1136_v10 = vrot.slane %v1135_v16, 4  ;;  %v2898_v11 = vsel %vm11335_vm11, %v2893_v38, %v2897_v22 }
  0xbc   : > { %871 = vst.msk [vmem:[#allocation3 + $0x50] sm:$0xf] %vm224_vm4, %v839_v55  ;;  %v10918_v44 = vld [vmem:[%s15078_s1 + $0xe8] sm:$0xff]  ;;  %v11998_v54 = vrot.slane %v2882_v62, 4  ;;  %v1636_v12 = vrot.slane %v1634_v49, 4  ;;  %4676 = vmatpush.bf16.msrb.mxu2 %v10910_v31  ;;  %v2535_v63 = vsel %vm11776_vm15, %v2533_v4, %v2534_v9  ;;  %v9764_v30 = vrot.slane %v2429_v32, 9 }
  0xbd   : > { %v1345_v1 = vpop.permute.xlu2 %1344  ;;  %v9817_v2 = vld [vmem:[#allocation3 + $0x28] sm:$0xf]  ;;  %887 = vst.msk [vmem:[#allocation3 + $0x190] sm:$0xf] %vm224_vm4, %v855_v56  ;;  %v1496_v20 = vld [vmem:[#allocation2 + $0x84] sm:$0xe]  ;;  %4765 = vmatpush.bf16.msrb.mxu3 %v10918_v44 }
  0xbe   : > { %2634 = vrot.lane.b32.xlu0 %v2525_v51, %s11174_s10  ;;  %v1377_v7 = vpop.permute.xlu1 %1376  ;;  %1436 = vst.msk [vmem:[#allocation3 + $0x64] sm:$0xf] %vm1430_vm12, %v1345_v1  ;;  %v9818_v17 = vor.u32 %v10816_v61, %v9817_v2  ;;  %v12004_v24 = vld [vmem:[#allocation2 + $0x88] sm:$0xf]  ;;  %v9758_v8 = vrot.slane %v1496_v20, 9  ;;  %v2532_v53 = vsel %vm11776_vm15, %v9764_v30, %v2531_v37  ;;  %v10923_v41 = vld [vmem:[%s15078_s1 + $0x110] sm:$0xff]  ;;  %v2888_v4 = vsel %vm11335_vm11, %v11998_v54, %v11943_v3 }
  0xbf   : > { %1802 = vrot.lane.b32.xlu1 %v1738_v40, %s11174_s10  ;;  %1452 = vst.msk [vmem:[#allocation3 + $0x1a4] sm:$0xf] %vm1430_vm12, %v1377_v7  ;;  %v922_v57 = vld [vmem:[#allocation2 + $0x5c] sm:$0x1]  ;;  %v1641_v21 = vrot.slane %v12004_v24, 5  ;;  %4857 = vmatpush.bf16.msrb.mxu0 %v10923_v41  ;;  %vm4447_vm0 = vcmask 523264  }
  0xc0   : > { %v1841_v48 = vpop.permute.xlu0 %1840  ;;  %4509 = vmatmul.bf16.gmra.mxu0 %v9818_v17  ;;  %v1138_v14 = vshll.u32 %v922_v57, 16  ;;  %v858_v15 = vld [vmem:[#allocation2 + $0x88] sm:$0xf]  ;;  %v1495_v25 = vld [vmem:[#allocation2 + $0x80] sm:$0x1] }
  0xc1   : > { %1917 = vst.msk [vmem:[#allocation3 + $0x180] sm:$0xf] %vm1430_vm12, %v1841_v48  ;;  %v10856_v59 = vld [vmem:[#allocation3 + $0x178] sm:$0xf0]  ;;  %v1637_v49 = vrot.slane %v1495_v25, 5  ;;  %v1642_v29 = vsel %vm11776_vm15, %v9758_v8, %v1641_v21  ;;  %v10909_v25 = vld [vmem:[%s15078_s1 + $0xa0] sm:$0xff] }
  0xc2   : > { %v1140_v26 = vrot.slane %v1138_v14, 5  ;;  %890 = vst.msk [vmem:[#allocation3 + $0x1cc] sm:$0xf] %vm224_vm4, %v858_v15  ;;  %v2831_v27 = vld [vmem:[#allocation2 + $0x28] sm:$0xf]  ;;  %4677 = vmatpush.bf16.msrb.mxu2 %v10909_v25 }
  0xc3   : > { %v2832_v58 = vld [vmem:[#allocation2 + $0x2c] sm:$0x1]  ;;  %v2909_v39 = vshll.u32 %v2831_v27, 16  ;;  %v2913_v35 = vshrl.u32 %v2831_v27, 16  ;;  %v2830_v40 = vld [vmem:[#allocation2 + $0x24] sm:$0xf]  ;;  %v1638_v50 = vsel %vm11776_vm15, %v1636_v12, %v1637_v49 }
  0xc4   : > { %v1141_v13 = vsel %vm11335_vm11, %v1136_v10, %v1140_v26  ;;  %v9977_v46 = vld [vmem:[#allocation3 + $0x168] sm:$0xf]  ;;  %v10854_v18 = vld [vmem:[#allocation3 + $0x16c] sm:$0xf]  ;;  %1728 = vst.msk [vmem:[#allocation3 + $0x1bc] sm:$0xf] %vm224_vm4, %v1642_v29 }
  0xc5   : > { %v1847_v34 = vpop.permute.xlu2 %1846  ;;  %1364 = vrot.lane.b32.xlu2 %v1141_v13, %s11174_s10  ;;  %v12019_v42 = vld [vmem:[#allocation2 + $0x28] sm:$0xf]  ;;  %v12023_v51 = vrot.slane %v2909_v39, 5  ;;  %v2915_v19 = vrot.slane %v2913_v35, 4  ;;  %v1740_v5 = vld [vmem:[#allocation2 + $0x18] sm:$0xf]  ;;  %v9978_v61 = vor.u32 %v10856_v59, %v9977_v46 }
  0xc6   : > { %3261 = vrot.lane.b32.xlu0 %v2898_v11, %s11174_s10  ;;  %v1343_v33 = vpop.permute.xlu1 %1342  ;;  %1920 = vst.msk [vmem:[#allocation3 + $0x1bc] sm:$0xf] %vm1430_vm12, %v1847_v34  ;;  %v2919_v55 = vshll.u32 %v2832_v58, 16  ;;  %v2900_v60 = vshrl.u32 %v2830_v40, 16  ;;  %v2903_v22 = vshll.u32 %v2830_v40, 16  ;;  %v2538_v1 = vrot.slane %v12019_v42, 5 }
  0xc7   : > { %2640 = vrot.lane.b32.xlu1 %v2535_v63, %s11174_s10  ;;  %1435 = vst.msk [vmem:[#allocation3 + $0x50] sm:$0xf] %vm1430_vm12, %v1343_v33  ;;  %v2916_v38 = vor.u32 %v2915_v19, %v12023_v51  ;;  %v842_v62 = vld [vmem:[#allocation2 + $0x28] sm:$0xf]  ;;  %v841_v37 = vld [vmem:[#allocation2 + $0x24] sm:$0xf] }
  0xc8   : > { %v1375_v45 = vpop.permute.xlu0 %1374  ;;  %v9979_v52 = vld [vmem:[#allocation3 + $0x17c] sm:$0xf0]  ;;  %1727 = vst.msk [vmem:[#allocation3 + $0x1a8] sm:$0xf] %vm224_vm4, %v1638_v50  ;;  %v2434_v2 = vld [vmem:[#allocation2 + $0x2c] sm:$0x1] }
  0xc9   : > { %1451 = vst.msk [vmem:[#allocation3 + $0x190] sm:$0xf] %vm1430_vm12, %v1375_v45  ;;  %v9982_v16 = vor.u32 %v10854_v18, %v9979_v52  ;;  %v857_v56 = vld [vmem:[#allocation2 + $0x84] sm:$0xf]  ;;  %v10821_v9 = vld [vmem:[#allocation3 + $0x60] sm:$0xf0] }
  0xca   : > { %874 = vst.msk [vmem:[#allocation3 + $0x8c] sm:$0xf] %vm224_vm4, %v842_v62  ;;  %v2917_v7 = vrot.slane %v2916_v38, 4  ;;  %v2921_v17 = vrot.slane %v2919_v55, 5  ;;  %v2902_v32 = vrot.slane %v2900_v60, 4  ;;  %v2905_v31 = vrot.slane %v2903_v22, 5 }
  0xcb   : > { %4549 = vmatmul.bf16.gmra.mxu2 %v9978_v61  ;;  %4638 = vmatmul.bf16.gmra.mxu3 %v9982_v16  ;;  %873 = vst.msk [vmem:[#allocation3 + $0x78] sm:$0xf] %vm224_vm4, %v841_v37  ;;  %v2540_v48 = vrot.slane %v2538_v1, 4  ;;  %v2541_v44 = vrot.slane %v2434_v2, 5  ;;  %v2432_v12 = vld [vmem:[#allocation2 + $0x24] sm:$0xe] }
  0xcc   : > { %889 = vst.msk [vmem:[#allocation3 + $0x1b8] sm:$0xf] %vm224_vm4, %v857_v56  ;;  %v1499_v14 = vld [vmem:[#allocation2 + $0x90] sm:$0xe]  ;;  %v1643_v63 = vrot.slane %v1641_v21, 4  ;;  %v2922_v30 = vsel %vm11335_vm11, %v2917_v7, %v2921_v17  ;;  %v2906_v20 = vor.u32 %v2905_v31, %v2902_v32  ;;  %v10917_v34 = vld [vmem:[%s15078_s1 + $0xe0] sm:$0xff] }
  0xcd   : > { %v1349_v10 = vpop.permute.xlu2 %1348  ;;  %3259 = vrot.lane.b32.xlu2 %v2888_v4, %s11174_s10  ;;  %v12056_v8 = vld [vmem:[#allocation2 + $0x94] sm:$0xf]  ;;  %v9759_v15 = vrot.slane %v1499_v14, 9  ;;  %v1739_v26 = vld [vmem:[#allocation2 + $0x10] sm:$0xf]  ;;  %v2542_v59 = vsel %vm11776_vm15, %v2540_v48, %v2541_v44  ;;  %v9765_v58 = vrot.slane %v2432_v12, 9  ;;  %4766 = vmatpush.bf16.msrb.mxu3 %v10917_v34 }
  0xce   : > { %2638 = vrot.lane.b32.xlu0 %v2532_v53, %s11174_s10  ;;  %v1381_v3 = vpop.permute.xlu1 %1380  ;;  %1438 = vst.msk [vmem:[#allocation3 + $0x8c] sm:$0xf] %vm1430_vm12, %v1349_v10  ;;  %v9837_v57 = vld [vmem:[#allocation3 + $0x50] sm:$0xf]  ;;  %v1648_v24 = vrot.slane %v12056_v8, 5  ;;  %v2907_v33 = vrot.slane %v2906_v20, 4 }
  0xcf   : > { %1806 = vrot.lane.b32.xlu1 %v1740_v5, %s11174_s10  ;;  %1454 = vst.msk [vmem:[#allocation3 + $0x1cc] sm:$0xf] %vm1430_vm12, %v1381_v3  ;;  %v9838_v11 = vor.u32 %v10821_v9, %v9837_v57  ;;  %v860_v21 = vld [vmem:[#allocation2 + $0x94] sm:$0xf]  ;;  %v1498_v49 = vld [vmem:[#allocation2 + $0x8c] sm:$0x1]  ;;  %v2539_v38 = vsel %vm11776_vm15, %v9765_v58, %v2538_v1 }
  0xd0   : > { %v1845_v54 = vpop.permute.xlu0 %1844  ;;  %892 = vst.msk [vmem:[#allocation3 + $0x1f4] sm:$0xf] %vm224_vm4, %v860_v21  ;;  %v1644_v27 = vrot.slane %v1498_v49, 5  ;;  %v2834_v29 = vld [vmem:[#allocation2 + $0x34] sm:$0xf]  ;;  %v1649_v35 = vsel %vm11776_vm15, %v9759_v15, %v1648_v24  ;;  %v2912_v32 = vsel %vm11335_vm11, %v2907_v33, %v12023_v51 }
  0xd1   : > { %1919 = vst.msk [vmem:[#allocation3 + $0x1a8] sm:$0xf] %vm1430_vm12, %v1845_v54  ;;  %4514 = vmatmul.bf16.gmra.mxu0 %v9838_v11  ;;  %v10861_v39 = vld [vmem:[#allocation3 + $0x1a0] sm:$0xf0]  ;;  %v2933_v40 = vshll.u32 %v2834_v29, 16  ;;  %v2937_v13 = vshrl.u32 %v2834_v29, 16 }
  0xd2   : > { %v9997_v46 = vld [vmem:[#allocation3 + $0x190] sm:$0xf]  ;;  %1730 = vst.msk [vmem:[#allocation3 + $0x1e4] sm:$0xf] %vm224_vm4, %v1649_v35  ;;  %v1645_v50 = vsel %vm11776_vm15, %v1643_v63, %v1644_v27  ;;  %v10859_v5 = vld [vmem:[#allocation3 + $0x194] sm:$0xf] }
  0xd3   : > { %v2835_v45 = vld [vmem:[#allocation2 + $0x38] sm:$0x1]  ;;  %v12078_v53 = vrot.slane %v2933_v40, 5  ;;  %v2939_v52 = vrot.slane %v2937_v13, 4  ;;  %v12082_v55 = vld [vmem:[#allocation2 + $0x34] sm:$0xf]  ;;  %v9998_v41 = vor.u32 %v10861_v39, %v9997_v46 }
  0xd4   : > { %v2833_v60 = vld [vmem:[#allocation2 + $0x30] sm:$0xf]  ;;  %v1742_v61 = vld [vmem:[#allocation2 + $0x24] sm:$0xf]  ;;  %1729 = vst.msk [vmem:[#allocation3 + $0x1d0] sm:$0xf] %vm224_vm4, %v1645_v50 }
  0xd5   : > { %v1851_v18 = vpop.permute.xlu2 %1850  ;;  %1804 = vrot.lane.b32.xlu2 %v1739_v26, %s11174_s10  ;;  %v844_v62 = vld [vmem:[#allocation2 + $0x34] sm:$0xf]  ;;  %v2940_v2 = vor.u32 %v2939_v52, %v12078_v53  ;;  %v2943_v56 = vshll.u32 %v2835_v45, 16  ;;  %v843_v4 = vld [vmem:[#allocation2 + $0x30] sm:$0xf]  ;;  %v2545_v9 = vrot.slane %v12082_v55, 5 }
  0xd6   : > { %3265 = vrot.lane.b32.xlu0 %v2922_v30, %s11174_s10  ;;  %v1347_v19 = vpop.permute.xlu1 %1346  ;;  %1922 = vst.msk [vmem:[#allocation3 + $0x1e4] sm:$0xf] %vm1430_vm12, %v1851_v18  ;;  %v2924_v7 = vshrl.u32 %v2833_v60, 16  ;;  %v859_v42 = vld [vmem:[#allocation2 + $0x90] sm:$0xf]  ;;  %v2927_v17 = vshll.u32 %v2833_v60, 16 }
  0xd7   : > { %2644 = vrot.lane.b32.xlu1 %v2542_v59, %s11174_s10  ;;  %1437 = vst.msk [vmem:[#allocation3 + $0x78] sm:$0xf] %vm1430_vm12, %v1347_v19  ;;  %v2437_v1 = vld [vmem:[#allocation2 + $0x38] sm:$0x1]  ;;  %v10826_v31 = vld [vmem:[#allocation3 + $0x88] sm:$0xf0] }
  0xd8   : > { %v1379_v16 = vpop.permute.xlu0 %1378  ;;  %v9999_v22 = vld [vmem:[#allocation3 + $0x1a4] sm:$0xf0]  ;;  %876 = vst.msk [vmem:[#allocation3 + $0xb4] sm:$0xf] %vm224_vm4, %v844_v62  ;;  %v2941_v10 = vrot.slane %v2940_v2, 4  ;;  %v2945_v48 = vrot.slane %v2943_v56, 5 }
  0xd9   : > { %1453 = vst.msk [vmem:[#allocation3 + $0x1b8] sm:$0xf] %vm1430_vm12, %v1379_v16  ;;  %v10002_v37 = vor.u32 %v10859_v5, %v9999_v22  ;;  %v2547_v44 = vrot.slane %v2545_v9, 4  ;;  %v2548_v3 = vrot.slane %v2437_v1, 5  ;;  %v2926_v57 = vrot.slane %v2924_v7, 4  ;;  %v10908_v30 = vld [vmem:[%s15078_s1 + $0x98] sm:$0xff] }
  0xda   : > { %875 = vst.msk [vmem:[#allocation3 + $0xa0] sm:$0xf] %vm224_vm4, %v843_v4  ;;  %v2929_v12 = vrot.slane %v2927_v17, 5  ;;  %v1502_v14 = vld [vmem:[#allocation2 + $0x9c] sm:$0xe]  ;;  %v1650_v26 = vrot.slane %v1648_v24, 4  ;;  %v2946_v59 = vsel %vm11335_vm11, %v2941_v10, %v2945_v48  ;;  %4678 = vmatpush.bf16.msrb.mxu2 %v10908_v30 }
  0xdb   : > { %4554 = vmatmul.bf16.gmra.mxu2 %v9998_v41  ;;  %4643 = vmatmul.bf16.gmra.mxu3 %v10002_v37  ;;  %891 = vst.msk [vmem:[#allocation3 + $0x1e0] sm:$0xf] %vm224_vm4, %v859_v42  ;;  %v12103_v63 = vld [vmem:[#allocation2 + $0xa0] sm:$0xf]  ;;  %v2435_v15 = vld [vmem:[#allocation2 + $0x30] sm:$0xe]  ;;  %v2549_v34 = vsel %vm11776_vm15, %v2547_v44, %v2548_v3 }
  0xdc   : > { %v9760_v25 = vrot.slane %v1502_v14, 9  ;;  %v1655_v21 = vrot.slane %v12103_v63, 5  ;;  %v862_v49 = vld [vmem:[#allocation2 + $0xa0] sm:$0xf]  ;;  %v10916_v27 = vld [vmem:[%s15078_s1 + $0xd8] sm:$0xff]  ;;  %v2930_v39 = vor.u32 %v2929_v12, %v2926_v57  ;;  %v9766_v19 = vrot.slane %v2435_v15, 9 }
  0xdd   : > { %3263 = vrot.lane.b32.xlu2 %v2912_v32, %s11174_s10  ;;  %v1741_v29 = vld [vmem:[#allocation2 + $0x1c] sm:$0xf]  ;;  %894 = vst.msk [vmem:[#allocation3 + $0x21c] sm:$0xf] %vm224_vm4, %v862_v49  ;;  %v1501_v24 = vld [vmem:[#allocation2 + $0x98] sm:$0x1]  ;;  %4767 = vmatpush.bf16.msrb.mxu3 %v10916_v27 }
  0xde   : > { %2642 = vrot.lane.b32.xlu0 %v2539_v38, %s11174_s10  ;;  %v9857_v11 = vld [vmem:[#allocation3 + $0x78] sm:$0xf]  ;;  %v2837_v58 = vld [vmem:[#allocation2 + $0x40] sm:$0xf]  ;;  %v1656_v40 = vsel %vm11776_vm15, %v9760_v25, %v1655_v21  ;;  %v1651_v13 = vrot.slane %v1501_v24, 5  ;;  %v2931_v22 = vrot.slane %v2930_v39, 4  ;;  %v2546_v42 = vsel %vm11776_vm15, %v9766_v19, %v2545_v9 }
  0xdf   : > { %1810 = vrot.lane.b32.xlu1 %v1742_v61, %s11174_s10  ;;  %v1385_v54 = vpop.permute.xlu1 %1384  ;;  %v9858_v51 = vor.u32 %v10826_v31, %v9857_v11  ;;  %v12122_v35 = vld [vmem:[#allocation2 + $0x40] sm:$0xf]  ;;  %v2957_v33 = vshll.u32 %v2837_v58, 16  ;;  %v10866_v18 = vld [vmem:[#allocation3 + $0x1c8] sm:$0xf0]  ;;  %v2961_v50 = vshrl.u32 %v2837_v58, 16 }
  0xe0   : > { %1456 = vst.msk [vmem:[#allocation3 + $0x1f4] sm:$0xf] %vm1430_vm12, %v1385_v54  ;;  %v1849_v20 = vpop.permute.xlu0 %1848  ;;  %v10017_v46 = vld [vmem:[#allocation3 + $0x1b8] sm:$0xf]  ;;  %v1652_v5 = vsel %vm11776_vm15, %v1650_v26, %v1651_v13  ;;  %v2838_v45 = vld [vmem:[#allocation2 + $0x44] sm:$0x1]  ;;  %v2936_v57 = vsel %vm11335_vm11, %v2931_v22, %v12078_v53 }
  0xe1   : > { %1921 = vst.msk [vmem:[#allocation3 + $0x1d0] sm:$0xf] %vm1430_vm12, %v1849_v20  ;;  %4519 = vmatmul.bf16.gmra.mxu0 %v9858_v51  ;;  %v12133_v52 = vrot.slane %v2957_v33, 5  ;;  %v2836_v60 = vld [vmem:[#allocation2 + $0x3c] sm:$0xf]  ;;  %v2963_v16 = vrot.slane %v2961_v50, 4  ;;  %v10018_v1 = vor.u32 %v10866_v18, %v10017_v46 }
  0xe2   : > { %v1353_v8 = vpop.permute.xlu2 %1352  ;;  %1732 = vst.msk [vmem:[#allocation3 + $0x20c] sm:$0xf] %vm224_vm4, %v1656_v40  ;;  %v10864_v61 = vld [vmem:[#allocation3 + $0x1bc] sm:$0xf]  ;;  %v846_v38 = vld [vmem:[#allocation2 + $0x40] sm:$0xf] }
  0xe3   : > { %1440 = vst.msk [vmem:[#allocation3 + $0xb4] sm:$0xf] %vm1430_vm12, %v1353_v8  ;;  %v2552_v41 = vrot.slane %v12122_v35, 5  ;;  %v845_v37 = vld [vmem:[#allocation2 + $0x3c] sm:$0xf]  ;;  %v2967_v4 = vshll.u32 %v2838_v45, 16  ;;  %v2964_v31 = vor.u32 %v2963_v16, %v12133_v52 }
  0xe4   : > { %1731 = vst.msk [vmem:[#allocation3 + $0x1f8] sm:$0xf] %vm224_vm4, %v1652_v5  ;;  %v2948_v7 = vshrl.u32 %v2836_v60, 16  ;;  %v2440_v32 = vld [vmem:[#allocation2 + $0x44] sm:$0x1]  ;;  %v2951_v3 = vshll.u32 %v2836_v60, 16 }
  0xe5   : > { %1808 = vrot.lane.b32.xlu2 %v1741_v29, %s11174_s10  ;;  %878 = vst.msk [vmem:[#allocation3 + $0xdc] sm:$0xf] %vm224_vm4, %v846_v38  ;;  %v861_v10 = vld [vmem:[#allocation2 + $0x9c] sm:$0xf]  ;;  %v1744_v48 = vld [vmem:[#allocation2 + $0x30] sm:$0xf] }
  0xe6   : > { %3269 = vrot.lane.b32.xlu0 %v2946_v59, %s11174_s10  ;;  %877 = vst.msk [vmem:[#allocation3 + $0xc8] sm:$0xf] %vm224_vm4, %v845_v37  ;;  %v2554_v55 = vrot.slane %v2552_v41, 4  ;;  %v2555_v9 = vrot.slane %v2440_v32, 5  ;;  %v2969_v11 = vrot.slane %v2967_v4, 5  ;;  %v2950_v54 = vrot.slane %v2948_v7, 4 }
  0xe7   : > { %2648 = vrot.lane.b32.xlu1 %v2549_v34, %s11174_s10  ;;  %v1351_v62 = vpop.permute.xlu1 %1350  ;;  %893 = vst.msk [vmem:[#allocation3 + $0x208] sm:$0xf] %vm224_vm4, %v861_v10  ;;  %v2965_v12 = vrot.slane %v2964_v31, 4  ;;  %v1505_v14 = vld [vmem:[#allocation2 + $0xa8] sm:$0xe]  ;;  %v2953_v30 = vrot.slane %v2951_v3, 5 }
  0xe8   : > { %1439 = vst.msk [vmem:[#allocation3 + $0xa0] sm:$0xf] %vm1430_vm12, %v1351_v62  ;;  %v1383_v2 = vpop.permute.xlu0 %1382  ;;  %v10019_v56 = vld [vmem:[#allocation3 + $0x1cc] sm:$0xf0]  ;;  %v12159_v20 = vld [vmem:[#allocation2 + $0xac] sm:$0xf] }
  0xe9   : > { %1455 = vst.msk [vmem:[#allocation3 + $0x1e0] sm:$0xf] %vm1430_vm12, %v1383_v2  ;;  %v10022_v17 = vor.u32 %v10864_v61, %v10019_v56  ;;  %v10922_v53 = vld [vmem:[%s15078_s1 + $0x108] sm:$0xff]  ;;  %v9761_v15 = vrot.slane %v1505_v14, 9  ;;  %v1662_v49 = vrot.slane %v12159_v20, 5  ;;  %v1657_v27 = vrot.slane %v1655_v21, 4 }
  0xea   : > { %v1855_v44 = vpop.permute.xlu2 %1854  ;;  %v10831_v51 = vld [vmem:[#allocation3 + $0xb0] sm:$0xf0]  ;;  %4858 = vmatpush.bf16.msrb.mxu0 %v10922_v53  ;;  %v1504_v8 = vld [vmem:[#allocation2 + $0xa4] sm:$0x1]  ;;  %v2970_v24 = vsel %vm11335_vm11, %v2965_v12, %v2969_v11  ;;  %v10907_v63 = vld [vmem:[%s15078_s1 + $0x90] sm:$0xff]  ;;  %v2556_v21 = vsel %vm11776_vm15, %v2554_v55, %v2555_v9  ;;  %v2954_v19 = vor.u32 %v2953_v30, %v2950_v54 }
  0xeb   : > { %4559 = vmatmul.bf16.gmra.mxu2 %v10018_v1  ;;  %4648 = vmatmul.bf16.gmra.mxu3 %v10022_v17  ;;  %1924 = vst.msk [vmem:[#allocation3 + $0x20c] sm:$0xf] %vm1430_vm12, %v1855_v44  ;;  %v864_v25 = vld [vmem:[#allocation2 + $0xac] sm:$0xf]  ;;  %v1663_v58 = vsel %vm11776_vm15, %v9761_v15, %v1662_v49  ;;  %v1658_v39 = vrot.slane %v1504_v8, 5  ;;  %v10915_v45 = vld [vmem:[%s15078_s1 + $0xd0] sm:$0xff] }
  0xec   : > { %896 = vst.msk [vmem:[#allocation3 + $0x244] sm:$0xf] %vm224_vm4, %v864_v25  ;;  %v2840_v40 = vld [vmem:[#allocation2 + $0x4c] sm:$0xf]  ;;  %v2438_v33 = vld [vmem:[#allocation2 + $0x3c] sm:$0xe]  ;;  %4679 = vmatpush.bf16.msrb.mxu2 %v10907_v63  ;;  %4768 = vmatpush.bf16.msrb.mxu3 %v10915_v45 }
  0xed   : > { %3267 = vrot.lane.b32.xlu2 %v2936_v57, %s11174_s10  ;;  %1734 = vst.msk [vmem:[#allocation3 + $0x234] sm:$0xf] %vm224_vm4, %v1663_v58  ;;  %v2981_v46 = vshll.u32 %v2840_v40, 16  ;;  %v2985_v18 = vshrl.u32 %v2840_v40, 16  ;;  %v1743_v50 = vld [vmem:[#allocation2 + $0x28] sm:$0xf]  ;;  %v1659_v5 = vsel %vm11776_vm15, %v1657_v27, %v1658_v39 }
  0xee   : > { %2646 = vrot.lane.b32.xlu0 %v2546_v42, %s11174_s10  ;;  %v10871_v60 = vld [vmem:[#allocation3 + $0x1f0] sm:$0xf0]  ;;  %1733 = vst.msk [vmem:[#allocation3 + $0x220] sm:$0xf] %vm224_vm4, %v1659_v5  ;;  %v2841_v61 = vld [vmem:[#allocation2 + $0x50] sm:$0x1] }
  0xef   : > { %1814 = vrot.lane.b32.xlu1 %v1744_v48, %s11174_s10  ;;  %v1389_v26 = vpop.permute.xlu1 %1388  ;;  %v9877_v59 = vld [vmem:[#allocation3 + $0xa0] sm:$0xf]  ;;  %v12188_v16 = vrot.slane %v2981_v46, 5  ;;  %v2987_v38 = vrot.slane %v2985_v18, 4  ;;  %v9767_v22 = vrot.slane %v2438_v33, 9  ;;  %v2955_v42 = vrot.slane %v2954_v19, 4 }
  0xf0   : > { %1458 = vst.msk [vmem:[#allocation3 + $0x21c] sm:$0xf] %vm1430_vm12, %v1389_v26  ;;  %v1853_v29 = vpop.permute.xlu0 %1852  ;;  %v9878_v34 = vor.u32 %v10831_v51, %v9877_v59  ;;  %v12191_v62 = vld [vmem:[#allocation2 + $0x4c] sm:$0xf]  ;;  %v10037_v2 = vld [vmem:[#allocation3 + $0x1e0] sm:$0xf] }
  0xf1   : > { %1923 = vst.msk [vmem:[#allocation3 + $0x1f8] sm:$0xf] %vm1430_vm12, %v1853_v29  ;;  %v848_v37 = vld [vmem:[#allocation2 + $0x4c] sm:$0xf]  ;;  %v10869_v56 = vld [vmem:[#allocation3 + $0x1e4] sm:$0xf]  ;;  %v2988_v48 = vor.u32 %v2987_v38, %v12188_v16  ;;  %v2553_v3 = vsel %vm11776_vm15, %v9767_v22, %v2552_v41  ;;  %v10038_v57 = vor.u32 %v10871_v60, %v10037_v2  ;;  %v2960_v35 = vsel %vm11335_vm11, %v2955_v42, %v12133_v52 }
  0xf2   : > { %v1357_v13 = vpop.permute.xlu2 %1356  ;;  %4524 = vmatmul.bf16.gmra.mxu0 %v9878_v34  ;;  %v12193_v4 = vld [vmem:[#allocation2 + $0x50] sm:$0x1]  ;;  %880 = vst.msk [vmem:[#allocation3 + $0x104] sm:$0xf] %vm224_vm4, %v848_v37  ;;  %v847_v7 = vld [vmem:[#allocation2 + $0x48] sm:$0xf] }
  0xf3   : > { %1442 = vst.msk [vmem:[#allocation3 + $0xdc] sm:$0xf] %vm1430_vm12, %v1357_v13  ;;  %v2991_v17 = vshll.u32 %v2841_v61, 16  ;;  %v863_v32 = vld [vmem:[#allocation2 + $0xa8] sm:$0xf]  ;;  %v2559_v11 = vrot.slane %v12191_v62, 5 }
  0xf4   : > { %879 = vst.msk [vmem:[#allocation3 + $0xf0] sm:$0xf] %vm224_vm4, %v847_v7  ;;  %v2839_v44 = vld [vmem:[#allocation2 + $0x48] sm:$0xf]  ;;  %v1746_v9 = vld [vmem:[#allocation2 + $0x3c] sm:$0xf] }
  0xf5   : > { %1812 = vrot.lane.b32.xlu2 %v1743_v50, %s11174_s10  ;;  %895 = vst.msk [vmem:[#allocation3 + $0x230] sm:$0xf] %vm224_vm4, %v863_v32  ;;  %v2562_v54 = vrot.slane %v12193_v4, 5  ;;  %v2993_v12 = vrot.slane %v2991_v17, 5  ;;  %v2972_v51 = vshrl.u32 %v2839_v44, 16  ;;  %v2975_v14 = vshll.u32 %v2839_v44, 16 }
  0xf6   : > { %3273 = vrot.lane.b32.xlu0 %v2970_v24, %s11174_s10  ;;  %v2989_v41 = vrot.slane %v2988_v48, 4  ;;  %v1508_v30 = vld [vmem:[#allocation2 + $0xb4] sm:$0xe]  ;;  %v12212_v15 = vld [vmem:[#allocation2 + $0xb8] sm:$0xf]  ;;  %v1664_v25 = vrot.slane %v1662_v49, 4 }
  0xf7   : > { %2652 = vrot.lane.b32.xlu1 %v2556_v21, %s11174_s10  ;;  %v1355_v1 = vpop.permute.xlu1 %1354  ;;  %v9762_v59 = vrot.slane %v1508_v30, 9  ;;  %v1669_v27 = vrot.slane %v12212_v15, 5  ;;  %v866_v29 = vld [vmem:[#allocation2 + $0xb8] sm:$0xf]  ;;  %v1507_v34 = vld [vmem:[#allocation2 + $0xb0] sm:$0x1] }
  0xf8   : > { %1441 = vst.msk [vmem:[#allocation3 + $0xc8] sm:$0xf] %vm1430_vm12, %v1355_v1  ;;  %v1387_v31 = vpop.permute.xlu0 %1386  ;;  %v10039_v10 = vld [vmem:[#allocation3 + $0x1f4] sm:$0xf0]  ;;  %v2561_v52 = vrot.slane %v2559_v11, 4  ;;  %v1665_v8 = vrot.slane %v1507_v34, 5  ;;  %v2994_v46 = vsel %vm11335_vm11, %v2989_v41, %v2993_v12 }
  0xf9   : > { %1457 = vst.msk [vmem:[#allocation3 + $0x208] sm:$0xf] %vm1430_vm12, %v1387_v31  ;;  %v10042_v55 = vor.u32 %v10869_v56, %v10039_v10  ;;  %v2843_v24 = vld [vmem:[#allocation2 + $0x58] sm:$0xf]  ;;  %v2974_v20 = vrot.slane %v2972_v51, 4  ;;  %v1670_v39 = vsel %vm11776_vm15, %v9762_v59, %v1669_v27  ;;  %v2977_v63 = vrot.slane %v2975_v14, 5 }
  0xfa   : > { %v10836_v53 = vld [vmem:[#allocation3 + $0xd8] sm:$0xf0]  ;;  %898 = vst.msk [vmem:[#allocation3 + $0x26c] sm:$0xf] %vm224_vm4, %v866_v29  ;;  %v1666_v13 = vsel %vm11776_vm15, %v1664_v25, %v1665_v8  ;;  %v3005_v33 = vshll.u32 %v2843_v24, 16  ;;  %v3009_v50 = vshrl.u32 %v2843_v24, 16  ;;  %v2563_v5 = vsel %vm11776_vm15, %v2561_v52, %v2562_v54 }
  0xfb   : > { %4564 = vmatmul.bf16.gmra.mxu2 %v10038_v57  ;;  %4653 = vmatmul.bf16.gmra.mxu3 %v10042_v55  ;;  %v2441_v18 = vld [vmem:[#allocation2 + $0x48] sm:$0xe]  ;;  %v1745_v19 = vld [vmem:[#allocation2 + $0x34] sm:$0xf]  ;;  %v12235_v45 = vld [vmem:[#allocation2 + $0x58] sm:$0xf]  ;;  %v2978_v37 = vor.u32 %v2977_v63, %v2974_v20 }
  0xfc   : > { %1736 = vst.msk [vmem:[#allocation3 + $0x25c] sm:$0xf] %vm224_vm4, %v1670_v39  ;;  %v10906_v60 = vld [vmem:[%s15078_s1 + $0x88] sm:$0xff]  ;;  %v2844_v61 = vld [vmem:[#allocation2 + $0x5c] sm:$0x1]  ;;  %v12242_v38 = vrot.slane %v3005_v33, 5 }
  0xfd   : > { %3271 = vrot.lane.b32.xlu2 %v2960_v35, %s11174_s10  ;;  %1735 = vst.msk [vmem:[#allocation3 + $0x248] sm:$0xf] %vm224_vm4, %v1666_v13  ;;  %v3011_v22 = vrot.slane %v3009_v50, 4  ;;  %v10876_v2 = vld [vmem:[#allocation3 + $0x218] sm:$0xf0]  ;;  %4680 = vmatpush.bf16.msrb.mxu2 %v10906_v60  ;;  %v9768_v1 = vrot.slane %v2441_v18, 9 }
  0xfe   : > { %2650 = vrot.lane.b32.xlu0 %v2553_v3, %s11174_s10  ;;  %v1859_v26 = vpop.permute.xlu2 %1858  ;;  %v12245_v56 = vld [vmem:[#allocation2 + $0x5c] sm:$0x1]  ;;  %v2842_v4 = vld [vmem:[#allocation2 + $0x54] sm:$0xf]  ;;  %v850_v7 = vld [vmem:[#allocation2 + $0x58] sm:$0xf] }
  0xff   : > { %1818 = vrot.lane.b32.xlu1 %v1746_v9, %s11174_s10  ;;  %1926 = vst.msk [vmem:[#allocation3 + $0x234] sm:$0xf] %vm1430_vm12, %v1859_v26  ;;  %v1393_v58 = vpop.permute.xlu1 %1392  ;;  %v9897_v49 = vld [vmem:[#allocation3 + $0xc8] sm:$0xf]  ;;  %v849_v42 = vld [vmem:[#allocation2 + $0x54] sm:$0xf]  ;;  %v3012_v57 = vor.u32 %v3011_v22, %v12242_v38  ;;  %v2560_v14 = vsel %vm11776_vm15, %v9768_v1, %v2559_v11 }
 0x100   : > { %1460 = vst.msk [vmem:[#allocation3 + $0x244] sm:$0xf] %vm1430_vm12, %v1393_v58  ;;  %v1857_v40 = vpop.permute.xlu0 %1856  ;;  %v9898_v21 = vor.u32 %v10836_v53, %v9897_v49  ;;  %v2566_v17 = vrot.slane %v12235_v45, 5  ;;  %v865_v32 = vld [vmem:[#allocation2 + $0xb4] sm:$0xf]  ;;  %v3015_v10 = vshll.u32 %v2844_v61, 16 }
 0x101   : > { %1925 = vst.msk [vmem:[#allocation3 + $0x220] sm:$0xf] %vm1430_vm12, %v1857_v40  ;;  %v10057_v31 = vld [vmem:[#allocation3 + $0x208] sm:$0xf]  ;;  %v10914_v48 = vld [vmem:[%s15078_s1 + $0xc8] sm:$0xff]  ;;  %v2996_v55 = vshrl.u32 %v2842_v4, 16 }
 0x102   : > { %4529 = vmatmul.bf16.gmra.mxu0 %v9898_v21  ;;  %882 = vst.msk [vmem:[#allocation3 + $0x12c] sm:$0xf] %vm224_vm4, %v850_v7  ;;  %v10874_v3 = vld [vmem:[#allocation3 + $0x20c] sm:$0xf]  ;;  %v2979_v9 = vrot.slane %v2978_v37, 4  ;;  %4769 = vmatpush.bf16.msrb.mxu3 %v10914_v48  ;;  %v10058_v53 = vor.u32 %v10876_v2, %v10057_v31  ;;  %v2569_v41 = vrot.slane %v12245_v56, 5 }
 0x103   : > { %881 = vst.msk [vmem:[#allocation3 + $0x118] sm:$0xf] %vm224_vm4, %v849_v42  ;;  %v1748_v51 = vld [vmem:[#allocation2 + $0x48] sm:$0xf]  ;;  %v2568_v25 = vrot.slane %v2566_v17, 4  ;;  %v3017_v26 = vrot.slane %v3015_v10, 5 }
 0x104   : > { %897 = vst.msk [vmem:[#allocation3 + $0x258] sm:$0xf] %vm224_vm4, %v865_v32  ;;  %v2999_v59 = vshll.u32 %v2842_v4, 16  ;;  %v2763_v29 = vld [vmem:[#allocation2 + $0x18] sm:$0xf]  ;;  %v10921_v34 = vld [vmem:[%s15078_s1 + $0x100] sm:$0xff]  ;;  %v2984_v8 = vsel %vm11335_vm11, %v2979_v9, %v12188_v16 }
 0x105   : > { %1816 = vrot.lane.b32.xlu2 %v1745_v19, %s11174_s10  ;;  %v3013_v62 = vrot.slane %v3012_v57, 4  ;;  %v12270_v11 = vrot.slane %v2996_v55, 4  ;;  %v1931_v52 = vld [vmem:[#allocation2 + $0x10] sm:$0xf]  ;;  %2795 = vst.msk [vmem:[#allocation3 + $0xc] sm:$0xf] %vm224_vm4, %v2763_v29  ;;  %4859 = vmatpush.bf16.msrb.mxu0 %v10921_v34  ;;  %v2570_v42 = vsel %vm11776_vm15, %v2568_v25, %v2569_v41 }
 0x106   : > { %3277 = vrot.lane.b32.xlu0 %v2994_v46, %s11174_s10  ;;  %v1932_v24 = vld [vmem:[#allocation2 + $0x14] sm:$0x1]  ;;  %v1988_v58 = vshll.u32 %v1931_v52, 16  ;;  %v1671_v20 = vrot.slane %v1669_v27, 4  ;;  %v1992_v49 = vshrl.u32 %v1931_v52, 16  ;;  %v3001_v21 = vrot.slane %v2999_v59, 5 }
 0x107   : > { %2656 = vrot.lane.b32.xlu1 %v2563_v5, %s11174_s10  ;;  %v1359_v44 = vpop.permute.xlu1 %1358  ;;  %v1998_v39 = vshll.u32 %v1932_v24, 16  ;;  %v1510_v40 = vld [vmem:[#allocation2 + $0xbc] sm:$0x1]  ;;  %v2846_v63 = vld [vmem:[#allocation2 + $0x64] sm:$0xf]  ;;  %v3018_v61 = vsel %vm11335_vm11, %v3013_v62, %v3017_v26 }
 0x108   : > { %1443 = vst.msk [vmem:[#allocation3 + $0xf0] sm:$0xf] %vm1430_vm12, %v1359_v44  ;;  %v1391_v54 = vpop.permute.xlu0 %1390  ;;  %v10059_v12 = vld [vmem:[#allocation3 + $0x21c] sm:$0xf0]  ;;  %v1361_v30 = vpop.permute.xlu2 %1360  ;;  %v2444_v13 = vld [vmem:[#allocation2 + $0x54] sm:$0xe]  ;;  %v3002_v1 = vor.u32 %v3001_v21, %v12270_v11 }
 0x109   : > { %1459 = vst.msk [vmem:[#allocation3 + $0x230] sm:$0xf] %vm1430_vm12, %v1391_v54  ;;  %v10062_v35 = vor.u32 %v10874_v3, %v10059_v12  ;;  %v12280_v33 = vrot.slane %v1988_v58, 5  ;;  %v1672_v16 = vrot.slane %v1510_v40, 5  ;;  %v3029_v46 = vshll.u32 %v2846_v63, 16  ;;  %v10905_v54 = vld [vmem:[%s15078_s1 + $0x80] sm:$0xff] }
 0x10a   : > { %1444 = vst.msk [vmem:[#allocation3 + $0x104] sm:$0xf] %vm1430_vm12, %v1361_v30  ;;  %v12283_v18 = vld [vmem:[#allocation2 + $0x64] sm:$0xf]  ;;  %v1994_v50 = vrot.slane %v1992_v49, 4  ;;  %v3033_v5 = vshrl.u32 %v2846_v63, 16  ;;  %4681 = vmatpush.bf16.msrb.mxu2 %v10905_v54 }
 0x10b   : > { %4569 = vmatmul.bf16.gmra.mxu2 %v10058_v53  ;;  %4658 = vmatmul.bf16.gmra.mxu3 %v10062_v35  ;;  %v1673_v19 = vsel %vm11776_vm15, %v1671_v20, %v1672_v16  ;;  %v9769_v22 = vrot.slane %v2444_v13, 9  ;;  %v12290_v37 = vld [vmem:[#allocation2 + $0x68] sm:$0x1]  ;;  %v2000_v56 = vrot.slane %v1998_v39, 5  ;;  %v2845_v4 = vld [vmem:[#allocation2 + $0x60] sm:$0xf] }
 0x10c   : > { %v1995_v2 = vor.u32 %v1994_v50, %v12280_v33  ;;  %v1747_v7 = vld [vmem:[#allocation2 + $0x40] sm:$0xf]  ;;  %v10881_v10 = vld [vmem:[#allocation3 + $0x240] sm:$0xf0]  ;;  %v2573_v48 = vrot.slane %v12283_v18, 5  ;;  %v12298_v3 = vrot.slane %v3029_v46, 5 }
 0x10d   : > { %3275 = vrot.lane.b32.xlu2 %v2984_v8, %s11174_s10  ;;  %v2847_v44 = vld [vmem:[#allocation2 + $0x68] sm:$0x1]  ;;  %1737 = vst.msk [vmem:[#allocation3 + $0x270] sm:$0xf] %vm224_vm4, %v1673_v19  ;;  %v1464_v9 = vld [vmem:[#allocation2 + $0x4] sm:$0xf]  ;;  %v2567_v52 = vsel %vm11776_vm15, %v9769_v22, %v2566_v17 }
 0x10e   : > { %2654 = vrot.lane.b32.xlu0 %v2560_v14, %s11174_s10  ;;  %v1996_v55 = vrot.slane %v1995_v2, 4  ;;  %v3035_v12 = vrot.slane %v3033_v5, 4  ;;  %v1465_v14 = vld [vmem:[#allocation2 + $0x8] sm:$0x1]  ;;  %v1564_v53 = vrot.slane %v1464_v9, 5  ;;  %v10913_v35 = vld [vmem:[%s15078_s1 + $0xc0] sm:$0xff] }
 0x10f   : > { %1822 = vrot.lane.b32.xlu1 %v1748_v51, %s11174_s10  ;;  %v9917_v27 = vld [vmem:[#allocation3 + $0xf0] sm:$0xf]  ;;  %v3020_v51 = vshrl.u32 %v2845_v4, 16  ;;  %v3023_v25 = vshll.u32 %v2845_v4, 16  ;;  %v1567_v26 = vrot.slane %v1465_v14, 5  ;;  %v3003_v29 = vrot.slane %v3002_v1, 4  ;;  %4770 = vmatpush.bf16.msrb.mxu3 %v10913_v35 }
 0x110   : > { %v1861_v15 = vpop.permute.xlu0 %1860  ;;  %v10077_v31 = vld [vmem:[#allocation3 + $0x230] sm:$0xf]  ;;  %v2001_v30 = vsel %vm11335_vm11, %v1996_v55, %v2000_v56  ;;  %v1463_v59 = vld [vmem:[#allocation2] sm:$0xe]  ;;  %v2576_v34 = vrot.slane %v12290_v37, 5  ;;  %v1566_v62 = vrot.slane %v1564_v53, 4  ;;  %v3036_v63 = vor.u32 %v3035_v12, %v12298_v3 }
 0x111   : > { %1927 = vst.msk [vmem:[#allocation3 + $0x248] sm:$0xf] %vm1430_vm12, %v1861_v15  ;;  %v10841_v32 = vld [vmem:[#allocation3 + $0x100] sm:$0xf0]  ;;  %v9747_v11 = vrot.slane %v1463_v59, 9  ;;  %v10078_v8 = vor.u32 %v10881_v10, %v10077_v31  ;;  %v12320_v24 = vrot.slane %v2573_v48, 4  ;;  %v3008_v19 = vsel %vm11335_vm11, %v3003_v29, %v12242_v38 }
 0x112   : > { %v1397_v60 = vpop.permute.xlu1 %1396  ;;  %v9918_v57 = vor.u32 %v10841_v32, %v9917_v27  ;;  %v1863_v41 = vpop.permute.xlu2 %1862  ;;  %2395 = vst.msk [vmem:[#allocation3 + $0x1c] sm:$0xf] %vm224_vm4, %v2001_v30  ;;  %v3039_v58 = vshll.u32 %v2847_v44, 16  ;;  %v1930_v20 = vld [vmem:[#allocation2 + $0xc] sm:$0xf]  ;;  %v3022_v21 = vrot.slane %v3020_v51, 4  ;;  %v1568_v45 = vsel %vm11776_vm15, %v1566_v62, %v1567_v26 }
 0x113   : > { %1462 = vst.msk [vmem:[#allocation3 + $0x26c] sm:$0xf] %vm1430_vm12, %v1397_v60  ;;  %v1750_v49 = vld [vmem:[#allocation2 + $0x54] sm:$0xf]  ;;  %v10879_v39 = vld [vmem:[#allocation3 + $0x234] sm:$0xf]  ;;  %v1565_v17 = vsel %vm11776_vm15, %v9747_v11, %v1564_v53 }
 0x114   : > { %4534 = vmatmul.bf16.gmra.mxu0 %v9918_v57  ;;  %1928 = vst.msk [vmem:[#allocation3 + $0x25c] sm:$0xf] %vm1430_vm12, %v1863_v41  ;;  %v3025_v16 = vrot.slane %v3023_v25, 5  ;;  %v1979_v46 = vshrl.u32 %v1930_v20, 16  ;;  %v1982_v50 = vshll.u32 %v1930_v20, 16  ;;  %v3041_v22 = vrot.slane %v3039_v58, 5 }
 0x115   : > { %1820 = vrot.lane.b32.xlu2 %v1747_v7, %s11174_s10  ;;  %1707 = vst.msk [vmem:[#allocation3 + $0x18] sm:$0xf] %vm224_vm4, %v1568_v45  ;;  %v2765_v15 = vld [vmem:[#allocation2 + $0x24] sm:$0xf]  ;;  %v1934_v27 = vld [vmem:[#allocation2 + $0x1c] sm:$0xf] }
 0x116   : > { %3281 = vrot.lane.b32.xlu0 %v3018_v61, %s11174_s10  ;;  %1706 = vst.msk [vmem:[#allocation3 + $0x4] sm:$0xf] %vm224_vm4, %v1565_v17  ;;  %v1981_v5 = vrot.slane %v1979_v46, 4  ;;  %v1984_v60 = vrot.slane %v1982_v50, 5  ;;  %v1935_v61 = vld [vmem:[#allocation2 + $0x20] sm:$0x1]  ;;  %v3026_v12 = vor.u32 %v3025_v16, %v3022_v21 }
 0x117   : > { %2660 = vrot.lane.b32.xlu1 %v2570_v42, %s11174_s10  ;;  %2797 = vst.msk [vmem:[#allocation3 + $0x34] sm:$0xf] %vm224_vm4, %v2765_v15  ;;  %v2012_v2 = vshll.u32 %v1934_v27, 16  ;;  %v2016_v56 = vshrl.u32 %v1934_v27, 16  ;;  %v2022_v4 = vshll.u32 %v1935_v61, 16  ;;  %v3037_v42 = vrot.slane %v3036_v63, 4 }
 0x118   : > { %v10079_v40 = vld [vmem:[#allocation3 + $0x244] sm:$0xf0]  ;;  %v2849_v7 = vld [vmem:[#allocation2 + $0x70] sm:$0xf]  ;;  %v1985_v1 = vor.u32 %v1984_v60, %v1981_v5  ;;  %v2850_v32 = vld [vmem:[#allocation2 + $0x74] sm:$0x1] }
 0x119   : > { %v10082_v13 = vor.u32 %v10879_v39, %v10079_v40  ;;  %v3053_v38 = vshll.u32 %v2849_v7, 16  ;;  %v3057_v31 = vshrl.u32 %v2849_v7, 16  ;;  %v12336_v44 = vld [vmem:[#allocation2 + $0x60] sm:$0xe]  ;;  %v12338_v57 = vrot.slane %v2012_v2, 5 }
 0x11a   : > { %v2018_v55 = vrot.slane %v2016_v56, 4  ;;  %v2764_v9 = vld [vmem:[#allocation2 + $0x1c] sm:$0xf]  ;;  %v1986_v51 = vrot.slane %v1985_v1, 4  ;;  %v2024_v41 = vrot.slane %v2022_v4, 5  ;;  %v3063_v30 = vshll.u32 %v2850_v32, 16 }
 0x11b   : > { %4574 = vmatmul.bf16.gmra.mxu2 %v10078_v8  ;;  %4663 = vmatmul.bf16.gmra.mxu3 %v10082_v13  ;;  %v12342_v14 = vrot.slane %v3053_v38, 5  ;;  %v3059_v53 = vrot.slane %v3057_v31, 4  ;;  %v1467_v25 = vld [vmem:[#allocation2 + $0x10] sm:$0xf]  ;;  %v3042_v59 = vsel %vm11335_vm11, %v3037_v42, %v3041_v22  ;;  %2796 = vst.msk [vmem:[#allocation3 + $0x20] sm:$0xf] %vm224_vm4, %v2764_v9 }
 0x11c   : > { %v2019_v35 = vor.u32 %v2018_v55, %v12338_v57  ;;  %v1991_v29 = vsel %vm11335_vm11, %v1986_v51, %v12280_v33  ;;  %v2848_v62 = vld [vmem:[#allocation2 + $0x6c] sm:$0xf]  ;;  %v1468_v11 = vld [vmem:[#allocation2 + $0x14] sm:$0x1]  ;;  %v1571_v58 = vrot.slane %v1467_v25, 5  ;;  %v9770_v39 = vrot.slane %v12336_v44, 9 }
 0x11d   : > { %3279 = vrot.lane.b32.xlu2 %v3008_v19, %s11174_s10  ;;  %v1574_v20 = vrot.slane %v1468_v11, 5  ;;  %2394 = vst.msk [vmem:[#allocation3 + $0x8] sm:$0xf] %vm224_vm4, %v1991_v29  ;;  %v3060_v33 = vor.u32 %v3059_v53, %v12342_v14  ;;  %v1466_v40 = vld [vmem:[#allocation2 + $0xc] sm:$0xe]  ;;  %v3044_v21 = vshrl.u32 %v2848_v62, 16 }
 0x11e   : > { %2658 = vrot.lane.b32.xlu0 %v2567_v52, %s11174_s10  ;;  %v2577_v52 = vsel %vm11776_vm15, %v12320_v24, %v2576_v34  ;;  %v2020_v8 = vrot.slane %v2019_v35, 4  ;;  %v1749_v63 = vld [vmem:[#allocation2 + $0x4c] sm:$0xf]  ;;  %v1573_v34 = vrot.slane %v1571_v58, 4  ;;  %v9748_v24 = vrot.slane %v1466_v40, 9 }
 0x11f   : > { %1826 = vrot.lane.b32.xlu1 %v1750_v49, %s11174_s10  ;;  %v1365_v26 = vpop.permute.xlu2 %1364  ;;  %v12358_v49 = vrot.slane %v3026_v12, 4  ;;  %v10886_v45 = vld [vmem:[#allocation3 + $0x268] sm:$0xf0]  ;;  %v12368_v17 = vrot.slane %v3063_v30, 5  ;;  %v3047_v13 = vshll.u32 %v2848_v62, 16  ;;  %v12376_v60 = vrot.slane %v3060_v33, 4  ;;  %v12390_v12 = vpop.f32.mrf.mxu0 }
 0x120   : > { %v1395_v10 = vpop.permute.xlu0 %1394  ;;  %1446 = vst.msk [vmem:[#allocation3 + $0x12c] sm:$0xf] %vm1430_vm12, %v1365_v26  ;;  %v2025_v37 = vsel %vm11335_vm11, %v2020_v8, %v2024_v41  ;;  %v1575_v50 = vsel %vm11776_vm15, %v1573_v34, %v1574_v20  ;;  %v12372_v15 = vld [vmem:[#allocation2 + $0x70] sm:$0xf]  ;;  %v1933_v27 = vld [vmem:[#allocation2 + $0x18] sm:$0xf]  ;;  %v1572_v56 = vsel %vm11776_vm15, %v9748_v24, %v1571_v58  ;;  %v2574_v32 = vsel %vm11776_vm15, %v9770_v39, %v2573_v48 }
 0x121   : > { %v1363_v54 = vpop.permute.xlu1 %1362  ;;  %1461 = vst.msk [vmem:[#allocation3 + $0x258] sm:$0xf] %vm1430_vm12, %v1395_v10  ;;  %v2003_v61 = vshrl.u32 %v1933_v27, 16  ;;  %v1752_v22 = vld [vmem:[#allocation2 + $0x60] sm:$0xf]  ;;  %v12379_v2 = vrot.slane %v3044_v21, 4  ;;  %v3032_v53 = vsel %vm11335_vm11, %v12358_v49, %v12298_v3 }
 0x122   : > { %1445 = vst.msk [vmem:[#allocation3 + $0x118] sm:$0xf] %vm1430_vm12, %v1363_v54  ;;  %v2006_v4 = vshll.u32 %v1933_v27, 16  ;;  %v3387_v7 = vld [vmem:[#allocation2 + $0x18] sm:$0xe]  ;;  %v2580_v55 = vrot.slane %v12372_v15, 5 }
 0x123   : > { %2397 = vst.msk [vmem:[#allocation3 + $0x44] sm:$0xf] %vm224_vm4, %v2025_v37  ;;  %v2005_v31 = vrot.slane %v2003_v61, 4  ;;  %v9779_v10 = vrot.slane %v3387_v7, 9  ;;  %v3388_v54 = vld [vmem:[#allocation2 + $0x1c] sm:$0xf] }
 0x124   : > { %1709 = vst.msk [vmem:[#allocation3 + $0x40] sm:$0xf] %vm224_vm4, %v1575_v50  ;;  %v2008_v9 = vrot.slane %v2006_v4, 5  ;;  %v3049_v51 = vrot.slane %v3047_v13, 5  ;;  %v3389_v18 = vld [vmem:[#allocation2 + $0x20] sm:$0x1]  ;;  %v3066_v13 = vsel %vm11335_vm11, %v12376_v60, %v12368_v17 }
 0x125   : > { %1824 = vrot.lane.b32.xlu2 %v1749_v63, %s11174_s10  ;;  %1708 = vst.msk [vmem:[#allocation3 + $0x2c] sm:$0xf] %vm224_vm4, %v1572_v56  ;;  %v3485_v48 = vrot.slane %v3388_v54, 5  ;;  %v10884_v35 = vld [vmem:[#allocation3 + $0x25c] sm:$0xf]  ;;  %v3488_v30 = vrot.slane %v3389_v18, 5 }
 0x126   : > { %3285 = vrot.lane.b32.xlu0 %v3042_v59, %s11174_s10  ;;  %v2009_v41 = vor.u32 %v2008_v9, %v2005_v31  ;;  %v2452_v25 = vld [vmem:[#allocation2 + $0x74] sm:$0x1]  ;;  %v2582_v26 = vrot.slane %v2580_v55, 4  ;;  %v2767_v59 = vld [vmem:[#allocation2 + $0x30] sm:$0xf] }
 0x127   : > { %2664 = vrot.lane.b32.xlu1 %v2577_v52, %s11174_s10  ;;  %v3260_v42 = vpop.permute.xlu2 %3259  ;;  %v10846_v1 = vld [vmem:[#allocation3 + $0x128] sm:$0xf0]  ;;  %v3486_v29 = vsel %vm11776_vm15, %v9779_v10, %v3485_v48  ;;  %v3487_v62 = vrot.slane %v3485_v48, 4  ;;  %v2583_v11 = vrot.slane %v2452_v25, 5  ;;  %2799 = vst.msk [vmem:[#allocation3 + $0x5c] sm:$0xf] %vm224_vm4, %v2767_v59  ;;  %v12427_v7 = vpop.f32.mrf.mxu0 }
 0x128   : > { %v1865_v16 = vpop.permute.xlu0 %1864  ;;  %v10097_v46 = vld [vmem:[#allocation3 + $0x258] sm:$0xf]  ;;  %3355 = vst.msk [vmem:[#allocation3 + $0xc] sm:$0xf] %vm1430_vm12, %v3260_v42  ;;  %v1937_v3 = vld [vmem:[#allocation2 + $0x28] sm:$0xf] }
 0x129   : > { %v2637_v19 = vpop.permute.xlu1 %2636  ;;  %1929 = vst.msk [vmem:[#allocation3 + $0x270] sm:$0xf] %vm1430_vm12, %v1865_v16  ;;  %v9937_v5 = vld [vmem:[#allocation3 + $0x118] sm:$0xf]  ;;  %v10098_v38 = vor.u32 %v10886_v45, %v10097_v46  ;;  %v2010_v58 = vrot.slane %v2009_v41, 4  ;;  %v2036_v20 = vshll.u32 %v1937_v3, 16  ;;  %v3489_v40 = vsel %vm11776_vm15, %v3487_v62, %v3488_v30 }
 0x12a   : > { %2731 = vst.msk [vmem:[#allocation3 + $0x1c] sm:$0xf] %vm1430_vm12, %v2637_v19  ;;  %v9938_v44 = vor.u32 %v10846_v1, %v9937_v5  ;;  %v2450_v33 = vld [vmem:[#allocation2 + $0x6c] sm:$0xe]  ;;  %v1938_v63 = vld [vmem:[#allocation2 + $0x2c] sm:$0x1]  ;;  %v3050_v16 = vor.u32 %v3049_v51, %v12379_v2  ;;  %v2584_v27 = vsel %vm11776_vm15, %v2582_v26, %v2583_v11 }
 0x12b   : > { %4579 = vmatmul.bf16.gmra.mxu2 %v10098_v38  ;;  %3627 = vst.msk [vmem:[#allocation3 + $0x10] sm:$0xf] %vm224_vm4, %v3486_v29  ;;  %v2015_v37 = vsel %vm11335_vm11, %v2010_v58, %v12338_v57  ;;  %v12413_v21 = vrot.slane %v2036_v20, 5  ;;  %v2040_v34 = vshrl.u32 %v1937_v3, 16  ;;  %v2046_v24 = vshll.u32 %v1938_v63, 16 }
 0x12c   : > { %4539 = vmatmul.bf16.gmra.mxu0 %v9938_v44  ;;  %2396 = vst.msk [vmem:[#allocation3 + $0x30] sm:$0xf] %vm224_vm4, %v2015_v37  ;;  %v2852_v46 = vld [vmem:[#allocation2 + $0x7c] sm:$0xf]  ;;  %v1751_v50 = vld [vmem:[#allocation2 + $0x58] sm:$0xf] }
 0x12d   : > { %3283 = vrot.lane.b32.xlu2 %v3032_v53, %s11174_s10  ;;  %v9771_v57 = vrot.slane %v2450_v33, 9  ;;  %v2042_v19 = vrot.slane %v2040_v34, 4  ;;  %v2048_v5 = vrot.slane %v2046_v24, 5  ;;  %3628 = vst.msk [vmem:[#allocation3 + $0x24] sm:$0xf] %vm224_vm4, %v3489_v40  ;;  %v3081_v56 = vshrl.u32 %v2852_v46, 16 }
 0x12e   : > { %2662 = vrot.lane.b32.xlu0 %v2574_v32, %s11174_s10  ;;  %v2853_v61 = vld [vmem:[#allocation2 + $0x80] sm:$0x1]  ;;  %v2766_v60 = vld [vmem:[#allocation2 + $0x28] sm:$0xf]  ;;  %v1470_v2 = vld [vmem:[#allocation2 + $0x1c] sm:$0xf] }
 0x12f   : > { %1830 = vrot.lane.b32.xlu1 %v1752_v22, %s11174_s10  ;;  %v1805_v45 = vpop.permute.xlu2 %1804  ;;  %v3077_v22 = vshll.u32 %v2852_v46, 16  ;;  %v2043_v17 = vor.u32 %v2042_v19, %v12413_v21  ;;  %v1471_v4 = vld [vmem:[#allocation2 + $0x20] sm:$0x1]  ;;  %v12429_v42 = vrot.slane %v3050_v16, 4  ;;  %v3083_v38 = vrot.slane %v3081_v56, 4 }
 0x130   : > { %v2635_v52 = vpop.permute.xlu0 %2634  ;;  %v10099_v8 = vld [vmem:[#allocation3 + $0x26c] sm:$0xf0]  ;;  %1899 = vst.msk [vmem:[#allocation3 + $0x18] sm:$0xf] %vm1430_vm12, %v1805_v45  ;;  %v1578_v31 = vrot.slane %v1470_v2, 5  ;;  %v1581_v51 = vrot.slane %v1471_v4, 5  ;;  %v2581_v41 = vsel %vm11776_vm15, %v9771_v57, %v2580_v55 }
 0x131   : > { %v1803_v49 = vpop.permute.xlu1 %1802  ;;  %2730 = vst.msk [vmem:[#allocation3 + $0x8] sm:$0xf] %vm1430_vm12, %v2635_v52  ;;  %v10102_v39 = vor.u32 %v10884_v35, %v10099_v8  ;;  %v10812_v1 = vld [vmem:[#allocation3 + $0x18] sm:$0xf0]  ;;  %v12432_v32 = vrot.slane %v3077_v22, 5  ;;  %v2044_v54 = vrot.slane %v2043_v17, 4  ;;  %v3056_v52 = vsel %vm11335_vm11, %v12429_v42, %v12342_v14 }
 0x132   : > { %1898 = vst.msk [vmem:[#allocation3 + $0x4] sm:$0xf] %vm1430_vm12, %v1803_v49  ;;  %v9813_v9 = vld [vmem:[#allocation3 + $0x10] sm:$0xf]  ;;  %v3087_v53 = vshll.u32 %v2853_v61, 16  ;;  %v1580_v35 = vrot.slane %v1578_v31, 4 }
 0x133   : > { %4668 = vmatmul.bf16.gmra.mxu3 %v10102_v39  ;;  %2798 = vst.msk [vmem:[#allocation3 + $0x48] sm:$0xf] %vm224_vm4, %v2766_v60  ;;  %v2049_v30 = vsel %vm11335_vm11, %v2044_v54, %v2048_v5  ;;  %v3084_v25 = vor.u32 %v3083_v38, %v12432_v32  ;;  %v1469_v26 = vld [vmem:[#allocation2 + $0x18] sm:$0xe]  ;;  %v12453_v58 = vld [vmem:[#allocation2 + $0x7c] sm:$0xf] }
 0x134   : > { %v2453_v59 = vld [vmem:[#allocation2 + $0x78] sm:$0xe]  ;;  %2399 = vst.msk [vmem:[#allocation3 + $0x6c] sm:$0xf] %vm224_vm4, %v2049_v30  ;;  %v1582_v3 = vsel %vm11776_vm15, %v1580_v35, %v1581_v51  ;;  %v9749_v15 = vrot.slane %v1469_v26, 9  ;;  %v3089_v39 = vrot.slane %v3087_v53, 5 }
 0x135   : > { %1828 = vrot.lane.b32.xlu2 %v1751_v50, %s11174_s10  ;;  %v10813_v8 = vld [vmem:[#allocation3 + $0x20] sm:$0xf0]  ;;  %v12458_v20 = vld [vmem:[%s15079_s2] ss:$0 sm:$0xff]  ;;  %1711 = vst.msk [vmem:[#allocation3 + $0x68] sm:$0xf] %vm224_vm4, %v1582_v3 }
 0x136   : > { %3289 = vrot.lane.b32.xlu0 %v3066_v13, %s11174_s10  ;;  %v9814_v49 = vor.u32 %v10813_v8, %v9813_v9  ;;  %v1579_v33 = vsel %vm11776_vm15, %v9749_v15, %v1578_v31  ;;  %v9772_v40 = vrot.slane %v2453_v59, 9  ;;  %v1936_v63 = vld [vmem:[#allocation2 + $0x24] sm:$0xf]  ;;  %v3085_v37 = vrot.slane %v3084_v25, 4  ;;  %v4634_v13 = vpop.f32.mrf.mxu3  ;;  %v2769_v46 = vld [vmem:[#allocation2 + $0x3c] sm:$0xf] }
 0x137   : > { %2668 = vrot.lane.b32.xlu1 %v2584_v27, %s11174_s10  ;;  %v3264_v29 = vpop.permute.xlu2 %3263  ;;  %v9799_v62 = vld [vmem:[#allocation3 + $0x14] sm:$0xf0]  ;;  %v10810_v14 = vld [vmem:[#allocation3 + $0xc] sm:$0xf]  ;;  %1710 = vst.msk [vmem:[#allocation3 + $0x54] sm:$0xf] %vm224_vm4, %v1579_v33 }
 0x138   : > { %v3262_v10 = vpop.permute.xlu0 %3261  ;;  %v9805_v44 = vld [vmem:[#allocation3 + $0x8] sm:$0xf]  ;;  %3357 = vst.msk [vmem:[#allocation3 + $0x34] sm:$0xf] %vm1430_vm12, %v3264_v29  ;;  %v2587_v34 = vrot.slane %v12453_v58, 5  ;;  %v2027_v24 = vshrl.u32 %v1936_v63, 16 }
 0x139   : > { %v2641_v18 = vpop.permute.xlu1 %2640  ;;  %3356 = vst.msk [vmem:[#allocation3 + $0x20] sm:$0xf] %vm1430_vm12, %v3262_v10  ;;  %v10809_v48 = vld [vmem:[#allocation3 + $0x4] sm:$0xf]  ;;  %v9806_v11 = vor.u32 %v10812_v1, %v9805_v44  ;;  %v2030_v45 = vshll.u32 %v1936_v63, 16  ;;  %v3090_v44 = vsel %vm11335_vm11, %v3085_v37, %v3089_v39 }
 0x13a   : > { %2733 = vst.msk [vmem:[#allocation3 + $0x44] sm:$0xf] %vm1430_vm12, %v2641_v18  ;;  %v9802_v55 = vor.u32 %v10809_v48, %v9799_v62  ;;  %v1940_v50 = vld [vmem:[#allocation2 + $0x34] sm:$0xf]  ;;  %v1941_v57 = vld [vmem:[#allocation2 + $0x38] sm:$0x1]  ;;  %v2588_v61 = vsel %vm11776_vm15, %v9772_v40, %v2587_v34 }
 0x13b   : > { %4682 = vmatmul.bf16.vlgmr.msrb.gmra.mxu2 %v9806_v11  ;;  %v2029_v22 = vrot.slane %v2027_v24, 4  ;;  %v2032_v56 = vrot.slane %v2030_v45, 5  ;;  %2801 = vst.msk [vmem:[#allocation3 + $0x84] sm:$0xf] %vm224_vm4, %v2769_v46  ;;  %v2060_v4 = vshll.u32 %v1940_v50, 16  ;;  %v2064_v42 = vshrl.u32 %v1940_v50, 16 }
 0x13c   : > { %4593 = vmatmul.bf16.vlgmr.msra.gmra.mxu1 %v9802_v55  ;;  %10259 = vmatmul.msk.bf16.vlgmr.msrb.gmra.mxu0 %vm4447_vm0, %v9814_v49  ;;  %v2070_v38 = vshll.u32 %v1941_v57, 16  ;;  %v2854_v31 = vld [vmem:[#allocation2 + $0x84] sm:$0xf]  ;;  %v2855_v51 = vld [vmem:[#allocation2 + $0x88] sm:$0xf] }
 0x13d   : > { %v12467_v16 = vpop.f32.mrf.mxu0  ;;  %3287 = vrot.lane.b32.xlu2 %v3056_v52, %s11174_s10  ;;  %v2033_v1 = vor.u32 %v2032_v56, %v2029_v22  ;;  %v12481_v9 = vrot.slane %v2060_v4, 5  ;;  %v2066_v54 = vrot.slane %v2064_v42, 4  ;;  %v1753_v48 = vld [vmem:[#allocation2 + $0x64] sm:$0xf]  ;;  %v3092_v30 = vshrl.u32 %v2854_v31, 16 }
 0x13e   : > { %2666 = vrot.lane.b32.xlu0 %v2581_v41, %s11174_s10  ;;  %v4545_v5 = vpop.f32.mrf.mxu2  ;;  %v2072_v41 = vrot.slane %v2070_v38, 5  ;;  %v3095_v25 = vshll.u32 %v2854_v31, 16  ;;  %v3101_v59 = vshll.u32 %v2855_v51, 16  ;;  %v2856_v29 = vld [vmem:[#allocation2 + $0x8c] sm:$0x1]  ;;  %v3105_v62 = vshrl.u32 %v2855_v51, 16 }
 0x13f   : > { %v4546_v2 = vadd.f32 %v12458_v20, %v4545_v5  ;;  %2670 = vrot.lane.b32.xlu1 %v2588_v61, %s11174_s10  ;;  %v1809_v10 = vpop.permute.xlu2 %1808  ;;  %v2034_v53 = vrot.slane %v2033_v1, 4  ;;  %v2067_v26 = vor.u32 %v2066_v54, %v12481_v9  ;;  %v2768_v11 = vld [vmem:[#allocation2 + $0x34] sm:$0xf]  ;;  %v3094_v15 = vrot.slane %v3092_v30, 4  ;;  %v3390_v45 = vld [vmem:[#allocation2 + $0x24] sm:$0xe] }
 0x140   : > { %v2639_v27 = vpop.permute.xlu0 %2638  ;;  %v9807_v19 = vld [vmem:[#allocation3 + $0x1c] sm:$0xf0]  ;;  %1901 = vst.msk [vmem:[#allocation3 + $0x40] sm:$0xf] %vm1430_vm12, %v1809_v10  ;;  %v3097_v55 = vrot.slane %v3095_v25, 5  ;;  %v3111_v52 = vshll.u32 %v2856_v29, 16 }
 0x141   : > { %v1807_v17 = vpop.permute.xlu1 %1806  ;;  %2732 = vst.msk [vmem:[#allocation3 + $0x30] sm:$0xf] %vm1430_vm12, %v2639_v27  ;;  %v9810_v60 = vor.u32 %v10810_v14, %v9807_v19  ;;  %v12483_v18 = vadd.f32 %v4634_v13, %v4546_v2  ;;  %v10817_v35 = vld [vmem:[#allocation3 + $0x40] sm:$0xf0]  ;;  %v2039_v3 = vsel %vm11335_vm11, %v2034_v53, %v12413_v21  ;;  %v2068_v49 = vrot.slane %v2067_v26, 4  ;;  %v12497_v21 = vpop.f32.mrf.mxu3 }
 0x142   : > { %1900 = vst.msk [vmem:[#allocation3 + $0x2c] sm:$0xf] %vm1430_vm12, %v1807_v17  ;;  %v3103_v39 = vrot.slane %v3101_v59, 5  ;;  %v3107_v33 = vrot.slane %v3105_v62, 4  ;;  %v3098_v37 = vor.u32 %v3097_v55, %v3094_v15  ;;  %v3113_v24 = vrot.slane %v3111_v52, 5 }
 0x143   : > { %4771 = vmatmul.bf16.vlgmr.msrb.gmra.mxu3 %v9810_v60  ;;  %2800 = vst.msk [vmem:[#allocation3 + $0x70] sm:$0xf] %vm224_vm4, %v2768_v11  ;;  %v2073_v57 = vsel %vm11335_vm11, %v2068_v49, %v2072_v41  ;;  %v3391_v27 = vld [vmem:[#allocation2 + $0x28] sm:$0xf]  ;;  %v3392_v61 = vld [vmem:[#allocation2 + $0x2c] sm:$0x1] }
 0x144   : > { %2398 = vst.msk [vmem:[#allocation3 + $0x58] sm:$0xf] %vm224_vm4, %v2039_v3  ;;  %v3099_v19 = vrot.slane %v3098_v37, 4  ;;  %v3108_v5 = vor.u32 %v3107_v33, %v3103_v39  ;;  %v9780_v22 = vrot.slane %v3390_v45, 9  ;;  %v3492_v60 = vrot.slane %v3391_v27, 5 }
 0x145   : > { %v12493_v8 = vpop.f32.mrf.mxu0  ;;  %1832 = vrot.lane.b32.xlu2 %v1753_v48, %s11174_s10  ;;  %2401 = vst.msk [vmem:[#allocation3 + $0x94] sm:$0xf] %vm224_vm4, %v2073_v57  ;;  %v3495_v2 = vrot.slane %v3392_v61, 5  ;;  %v10815_v42 = vld [vmem:[#allocation3 + $0x34] sm:$0xf] }
 0x146   : > { %3293 = vrot.lane.b32.xlu0 %v3090_v44, %s11174_s10  ;;  %v12495_v63 = vpop.f32.mrf.mxu2  ;;  %v3104_v1 = vsel %vm11335_vm11, %v3099_v19, %v3103_v39  ;;  %v3109_v38 = vrot.slane %v3108_v5, 4  ;;  %v1473_v31 = vld [vmem:[#allocation2 + $0x28] sm:$0xf]  ;;  %v3493_v10 = vsel %vm11776_vm15, %v9780_v22, %v3492_v60  ;;  %v3494_v44 = vrot.slane %v3492_v60, 4  ;;  %v1474_v54 = vld [vmem:[#allocation2 + $0x2c] sm:$0x1] }
 0x147   : > { %v3268_v56 = vpop.permute.xlu2 %3267  ;;  %v9819_v17 = vld [vmem:[#allocation3 + $0x3c] sm:$0xf0]  ;;  %v1585_v51 = vrot.slane %v1473_v31, 5  ;;  %v1472_v48 = vld [vmem:[#allocation2 + $0x24] sm:$0xe] }
 0x148   : > { %v3266_v40 = vpop.permute.xlu0 %3265  ;;  %v9825_v14 = vld [vmem:[#allocation3 + $0x30] sm:$0xf]  ;;  %3359 = vst.msk [vmem:[#allocation3 + $0x5c] sm:$0xf] %vm1430_vm12, %v3268_v56  ;;  %v3114_v53 = vsel %vm11335_vm11, %v3109_v38, %v3113_v24  ;;  %v9750_v41 = vrot.slane %v1472_v48, 9  ;;  %v3496_v25 = vsel %vm11776_vm15, %v3494_v44, %v3495_v2 }
 0x149   : > { %v2645_v13 = vpop.permute.xlu1 %2644  ;;  %3358 = vst.msk [vmem:[#allocation3 + $0x48] sm:$0xf] %vm1430_vm12, %v3266_v40  ;;  %v10814_v46 = vld [vmem:[#allocation3 + $0x2c] sm:$0xf]  ;;  %v9826_v50 = vor.u32 %v10817_v35, %v9825_v14  ;;  %v1588_v35 = vrot.slane %v1474_v54, 5  ;;  %3297 = vrot.lane.b32.xlu1 %v3114_v53, %s11174_s10  ;;  %v1587_v26 = vrot.slane %v1585_v51, 4 }
 0x14a   : > { %2735 = vst.msk [vmem:[#allocation3 + $0x6c] sm:$0xf] %vm1430_vm12, %v2645_v13  ;;  %v9822_v4 = vor.u32 %v10814_v46, %v9819_v17  ;;  %v2851_v30 = vld [vmem:[#allocation2 + $0x78] sm:$0xf]  ;;  %v1939_v62 = vld [vmem:[#allocation2 + $0x30] sm:$0xf]  ;;  %v1586_v45 = vsel %vm11776_vm15, %v9750_v41, %v1585_v51 }
 0x14b   : > { %4687 = vmatmul.bf16.gmra.mxu2 %v9826_v50  ;;  %3629 = vst.msk [vmem:[#allocation3 + $0x38] sm:$0xf] %vm224_vm4, %v3493_v10  ;;  %v3068_v59 = vshrl.u32 %v2851_v30, 16  ;;  %v3071_v29 = vshll.u32 %v2851_v30, 16  ;;  %v2051_v55 = vshrl.u32 %v1939_v62, 16  ;;  %v2054_v52 = vshll.u32 %v1939_v62, 16 }
 0x14c   : > { %4598 = vmatmul.bf16.gmra.mxu1 %v9822_v4  ;;  %3630 = vst.msk [vmem:[#allocation3 + $0x4c] sm:$0xf] %vm224_vm4, %v3496_v25  ;;  %v1589_v14 = vsel %vm11776_vm15, %v1587_v26, %v1588_v35  ;;  %v12530_v19 = vld [vmem:[#allocation2 + $0x88] sm:$0xf]  ;;  %v2458_v56 = vld [vmem:[#allocation2 + $0x8c] sm:$0x1] }
 0x14d   : > { %v3070_v37 = vrot.slane %v3068_v59, 4  ;;  %v3073_v13 = vrot.slane %v3071_v29, 5  ;;  %v2053_v46 = vrot.slane %v2051_v55, 4  ;;  %v2056_v50 = vrot.slane %v2054_v52, 5  ;;  %1713 = vst.msk [vmem:[#allocation3 + $0x90] sm:$0xf] %vm224_vm4, %v1589_v14 }
 0x14e   : > { %3295 = vrot.lane.b32.xlu0 %v3104_v1, %s11174_s10  ;;  %v4550_v15 = vpop.f32.mrf.mxu2  ;;  %v4639_v40 = vpop.f32.mrf.mxu3  ;;  %v2594_v17 = vrot.slane %v12530_v19, 5  ;;  %1712 = vst.msk [vmem:[#allocation3 + $0x7c] sm:$0xf] %vm224_vm4, %v1586_v45  ;;  %v2597_v2 = vrot.slane %v2458_v56, 5  ;;  %v2771_v38 = vld [vmem:[#allocation2 + $0x48] sm:$0xf] }
 0x14f   : > { %v4551_v33 = vadd.f32 %v12458_v20, %v4550_v15  ;;  %v12523_v24 = vpop.f32.mrf.mxu0  ;;  %v1813_v57 = vpop.permute.xlu2 %1812  ;;  %v3074_v5 = vor.u32 %v3073_v13, %v3070_v37  ;;  %v2057_v61 = vor.u32 %v2056_v50, %v2053_v46  ;;  %2803 = vst.msk [vmem:[#allocation3 + $0xac] sm:$0xf] %vm224_vm4, %v2771_v38  ;;  %v1943_v10 = vld [vmem:[#allocation2 + $0x40] sm:$0xf]  ;;  %v1944_v30 = vld [vmem:[#allocation2 + $0x44] sm:$0x1] }
 0x150   : > { %v2643_v11 = vpop.permute.xlu0 %2642  ;;  %v9827_v3 = vld [vmem:[#allocation3 + $0x44] sm:$0xf0]  ;;  %1903 = vst.msk [vmem:[#allocation3 + $0x68] sm:$0xf] %vm1430_vm12, %v1813_v57  ;;  %v2596_v1 = vrot.slane %v2594_v17, 4  ;;  %v2094_v15 = vshll.u32 %v1944_v30, 16 }
 0x151   : > { %v1811_v49 = vpop.permute.xlu1 %1810  ;;  %2734 = vst.msk [vmem:[#allocation3 + $0x58] sm:$0xf] %vm1430_vm12, %v2643_v11  ;;  %v9830_v39 = vor.u32 %v10815_v42, %v9827_v3  ;;  %v12527_v27 = vadd.f32 %v4639_v40, %v4551_v33  ;;  %v10822_v22 = vld [vmem:[#allocation3 + $0x68] sm:$0xf0]  ;;  %v3075_v4 = vrot.slane %v3074_v5, 4  ;;  %v2058_v42 = vrot.slane %v2057_v61, 4 }
 0x152   : > { %1902 = vst.msk [vmem:[#allocation3 + $0x54] sm:$0xf] %vm1430_vm12, %v1811_v49  ;;  %v9833_v60 = vld [vmem:[#allocation3 + $0x38] sm:$0xf]  ;;  %v2598_v41 = vsel %vm11776_vm15, %v2596_v1, %v2597_v2  ;;  %v2084_v11 = vshll.u32 %v1943_v10, 16  ;;  %v2096_v57 = vrot.slane %v2094_v15, 5 }
 0x153   : > { %4776 = vmatmul.bf16.gmra.mxu3 %v9830_v39  ;;  %v10818_v31 = vld [vmem:[#allocation3 + $0x48] sm:$0xf0]  ;;  %v3080_v48 = vsel %vm11335_vm11, %v3075_v4, %v12432_v32  ;;  %v2063_v53 = vsel %vm11335_vm11, %v2058_v42, %v12481_v9  ;;  %v2857_v25 = vld [vmem:[#allocation2 + $0x90] sm:$0xf]  ;;  %v2088_v9 = vshrl.u32 %v1943_v10, 16  ;;  %v2589_v38 = vrot.slane %v2587_v34, 4 }
 0x154   : > { %v9834_v54 = vor.u32 %v10818_v31, %v9833_v60  ;;  %3291 = vrot.lane.b32.xlu2 %v3080_v48, %s11174_s10  ;;  %v12554_v55 = vld [vmem:[#allocation2 + $0x94] sm:$0xf]  ;;  %v3116_v52 = vshrl.u32 %v2857_v25, 16  ;;  %2400 = vst.msk [vmem:[#allocation3 + $0x80] sm:$0xf] %vm224_vm4, %v2063_v53  ;;  %v12559_v40 = vrot.slane %v2084_v11, 5 }
 0x155   : > { %v2090_v14 = vrot.slane %v2088_v9, 4  ;;  %v10820_v45 = vld [vmem:[#allocation3 + $0x5c] sm:$0xf]  ;;  %v3119_v46 = vshll.u32 %v2857_v25, 16  ;;  %v3125_v5 = vshll.u32 %v12554_v55, 16 }
 0x156   : > { %v4552_v51 = vpop.f32.mrf.mxu2  ;;  %v4641_v62 = vpop.f32.mrf.mxu3  ;;  %2676 = vrot.lane.b32.xlu0 %v2598_v41, %s11174_s10  ;;  %10260 = vmatmul.msk.bf16.gmra.mxu0 %vm4447_vm0, %v9834_v54  ;;  %v3118_v13 = vrot.slane %v3116_v52, 4  ;;  %v2770_v61 = vld [vmem:[#allocation2 + $0x40] sm:$0xf]  ;;  %v3394_v60 = vld [vmem:[#allocation2 + $0x34] sm:$0xf] }
 0x157   : > { %v4553_v29 = vadd.f32 %v12458_v20, %v4552_v51  ;;  %v12552_v3 = vpop.f32.mrf.mxu0  ;;  %v3272_v49 = vpop.permute.xlu2 %3271  ;;  %v9839_v39 = vld [vmem:[#allocation3 + $0x64] sm:$0xf0]  ;;  %v2091_v50 = vor.u32 %v2090_v14, %v12559_v40  ;;  %v3121_v56 = vrot.slane %v3119_v46, 5  ;;  %2802 = vst.msk [vmem:[#allocation3 + $0x98] sm:$0xf] %vm224_vm4, %v2770_v61  ;;  %v3499_v1 = vrot.slane %v3394_v60, 5 }
 0x158   : > { %v3270_v44 = vpop.permute.xlu0 %3269  ;;  %v9845_v35 = vld [vmem:[#allocation3 + $0x58] sm:$0xf]  ;;  %3361 = vst.msk [vmem:[#allocation3 + $0x84] sm:$0xf] %vm1430_vm12, %v3272_v49  ;;  %v3395_v42 = vld [vmem:[#allocation2 + $0x38] sm:$0x1] }
 0x159   : > { %v2649_v26 = vpop.permute.xlu1 %2648  ;;  %3360 = vst.msk [vmem:[#allocation3 + $0x70] sm:$0xf] %vm1430_vm12, %v3270_v44  ;;  %v10819_v59 = vld [vmem:[#allocation3 + $0x54] sm:$0xf]  ;;  %v9846_v32 = vor.u32 %v10822_v22, %v9845_v35  ;;  %v12556_v33 = vadd.f32 %v4641_v62, %v4553_v29  ;;  %v3393_v22 = vld [vmem:[#allocation2 + $0x30] sm:$0xe]  ;;  %v3122_v54 = vor.u32 %v3121_v56, %v3118_v13 }
 0x15a   : > { %2737 = vst.msk [vmem:[#allocation3 + $0x94] sm:$0xf] %vm1430_vm12, %v2649_v26  ;;  %v9842_v37 = vor.u32 %v10819_v59, %v9839_v39  ;;  %v9781_v2 = vrot.slane %v3393_v22, 9  ;;  %v2092_v4 = vrot.slane %v2091_v50, 4  ;;  %v12569_v51 = vrot.slane %v3125_v5, 5 }
 0x15b   : > { %4692 = vmatmul.bf16.gmra.mxu2 %v9846_v32  ;;  %v3502_v48 = vrot.slane %v3395_v42, 5  ;;  %v2455_v53 = vld [vmem:[#allocation2 + $0x80] sm:$0x1]  ;;  %v1476_v34 = vld [vmem:[#allocation2 + $0x34] sm:$0xf]  ;;  %v3123_v59 = vrot.slane %v3122_v54, 4 }
 0x15c   : > { %4603 = vmatmul.bf16.gmra.mxu1 %v9842_v37  ;;  %v2097_v25 = vsel %vm11335_vm11, %v2092_v4, %v2096_v57  ;;  %v3500_v58 = vsel %vm11776_vm15, %v9781_v2, %v3499_v1  ;;  %v1477_v26 = vld [vmem:[#allocation2 + $0x38] sm:$0x1]  ;;  %v3501_v62 = vrot.slane %v3499_v1, 4  ;;  %v2590_v32 = vrot.slane %v2455_v53, 5  ;;  %v1475_v52 = vld [vmem:[#allocation2 + $0x30] sm:$0xe] }
 0x15d   : > { %v1592_v11 = vrot.slane %v1476_v34, 5  ;;  %2403 = vst.msk [vmem:[#allocation3 + $0xbc] sm:$0xf] %vm224_vm4, %v2097_v25  ;;  %v1595_v15 = vrot.slane %v1477_v26, 5  ;;  %v3128_v49 = vsel %vm11335_vm11, %v3123_v59, %v12569_v51  ;;  %v9751_v13 = vrot.slane %v1475_v52, 9 }
 0x15e   : > { %v12567_v44 = vpop.f32.mrf.mxu2  ;;  %v12572_v30 = vpop.f32.mrf.mxu3  ;;  %v3503_v39 = vsel %vm11776_vm15, %v3501_v62, %v3502_v48  ;;  %v2591_v14 = vsel %vm11776_vm15, %v2589_v38, %v2590_v32  ;;  %3299 = vrot.lane.b32.xlu1 %v3128_v49, %s11174_s10  ;;  %3631 = vst.msk [vmem:[#allocation3 + $0x60] sm:$0xf] %vm224_vm4, %v3500_v58  ;;  %v2460_v46 = vld [vmem:[#allocation2 + $0x94] sm:$0xf]  ;;  %v1942_v61 = vld [vmem:[#allocation2 + $0x3c] sm:$0xf] }
 0x15f   : > { %v12579_v29 = vpop.f32.mrf.mxu0  ;;  %v1817_v9 = vpop.permute.xlu2 %1816  ;;  %v1594_v37 = vrot.slane %v1592_v11, 4  ;;  %2672 = vrot.lane.b32.xlu2 %v2591_v14, %s11174_s10  ;;  %3632 = vst.msk [vmem:[#allocation3 + $0x74] sm:$0xf] %vm224_vm4, %v3503_v39  ;;  %v2601_v5 = vrot.slane %v2460_v46, 5  ;;  %v1593_v22 = vsel %vm11776_vm15, %v9751_v13, %v1592_v11  ;;  %v2075_v56 = vshrl.u32 %v1942_v61, 16 }
 0x160   : > { %v2647_v31 = vpop.permute.xlu0 %2646  ;;  %v9847_v10 = vld [vmem:[#allocation3 + $0x6c] sm:$0xf0]  ;;  %1905 = vst.msk [vmem:[#allocation3 + $0x90] sm:$0xf] %vm1430_vm12, %v1817_v9  ;;  %v2078_v60 = vshll.u32 %v1942_v61, 16  ;;  %v3129_v9 = vshrl.u32 %v12554_v55, 16 }
 0x161   : > { %v1815_v35 = vpop.permute.xlu1 %1814  ;;  %2736 = vst.msk [vmem:[#allocation3 + $0x80] sm:$0xf] %vm1430_vm12, %v2647_v31  ;;  %v9850_v41 = vor.u32 %v10820_v45, %v9847_v10  ;;  %v2459_v45 = vld [vmem:[#allocation2 + $0x90] sm:$0xe]  ;;  %v1596_v57 = vsel %vm11776_vm15, %v1594_v37, %v1595_v15  ;;  %v10827_v2 = vld [vmem:[#allocation3 + $0x90] sm:$0xf0] }
 0x162   : > { %1904 = vst.msk [vmem:[#allocation3 + $0x7c] sm:$0xf] %vm1430_vm12, %v1815_v35  ;;  %v9774_v50 = vrot.slane %v2459_v45, 9  ;;  %v2077_v48 = vrot.slane %v2075_v56, 4  ;;  %v2080_v53 = vrot.slane %v2078_v60, 5  ;;  %v2603_v58 = vrot.slane %v2601_v5, 4 }
 0x163   : > { %4781 = vmatmul.bf16.gmra.mxu3 %v9850_v41  ;;  %1715 = vst.msk [vmem:[#allocation3 + $0xb8] sm:$0xf] %vm224_vm4, %v1596_v57  ;;  %v4548_v41 = vadd.f32 %v12458_v20, %v12495_v63  ;;  %v2461_v25 = vld [vmem:[#allocation2 + $0x98] sm:$0x1]  ;;  %v2773_v11 = vld [vmem:[#allocation2 + $0x54] sm:$0xf] }
 0x164   : > { %1714 = vst.msk [vmem:[#allocation3 + $0xa4] sm:$0xf] %vm224_vm4, %v1593_v22  ;;  %v2602_v1 = vsel %vm11776_vm15, %v9774_v50, %v2601_v5  ;;  %v2081_v59 = vor.u32 %v2080_v53, %v2077_v48  ;;  %v2604_v32 = vrot.slane %v2461_v25, 5  ;;  %v10825_v49 = vld [vmem:[#allocation3 + $0x84] sm:$0xf] }
 0x165   : > { %2678 = vrot.lane.b32.xlu0 %v2602_v1, %s11174_s10  ;;  %v9853_v52 = vld [vmem:[#allocation3 + $0x60] sm:$0xf]  ;;  %v1946_v39 = vld [vmem:[#allocation2 + $0x4c] sm:$0xf]  ;;  %2805 = vst.msk [vmem:[#allocation3 + $0xd4] sm:$0xf] %vm224_vm4, %v2773_v11  ;;  %v12620_v57 = vadd.f32 %v12497_v21, %v4548_v41 }
 0x166   : > { %v12599_v42 = vpop.f32.mrf.mxu2  ;;  %v12605_v54 = vpop.f32.mrf.mxu3  ;;  %v10823_v63 = vld [vmem:[#allocation3 + $0x70] sm:$0xf0]  ;;  %v2082_v14 = vrot.slane %v2081_v59, 4  ;;  %v2605_v37 = vsel %vm11776_vm15, %v2603_v58, %v2604_v32  ;;  %v2108_v45 = vshll.u32 %v1946_v39, 16  ;;  %v1947_v55 = vld [vmem:[#allocation2 + $0x50] sm:$0x1] }
 0x167   : > { %v3276_v34 = vpop.permute.xlu2 %3275  ;;  %v9859_v26 = vld [vmem:[#allocation3 + $0x8c] sm:$0xf0]  ;;  %v12611_v62 = vpop.f32.mrf.mxu0  ;;  %v9854_v13 = vor.u32 %v10823_v63, %v9853_v52  ;;  %2680 = vrot.lane.b32.xlu1 %v2605_v37, %s11174_s10  ;;  %v2112_v46 = vshrl.u32 %v1946_v39, 16  ;;  %v2456_v50 = vld [vmem:[#allocation2 + $0x84] sm:$0xe]  ;;  %v2118_v22 = vshll.u32 %v1947_v55, 16 }
 0x168   : > { %v3274_v4 = vpop.permute.xlu0 %3273  ;;  %v9865_v38 = vld [vmem:[#allocation3 + $0x80] sm:$0xf]  ;;  %3363 = vst.msk [vmem:[#allocation3 + $0xac] sm:$0xf] %vm1430_vm12, %v3276_v34  ;;  %v2087_v5 = vsel %vm11335_vm11, %v2082_v14, %v12559_v40  ;;  %v12625_v61 = vrot.slane %v2108_v45, 5  ;;  %v9773_v56 = vrot.slane %v2456_v50, 9 }
 0x169   : > { %v2653_v31 = vpop.permute.xlu1 %2652  ;;  %3362 = vst.msk [vmem:[#allocation3 + $0x98] sm:$0xf] %vm1430_vm12, %v3274_v4  ;;  %v10824_v10 = vld [vmem:[#allocation3 + $0x7c] sm:$0xf]  ;;  %v9866_v35 = vor.u32 %v10827_v2, %v9865_v38  ;;  %v2861_v60 = vld [vmem:[#allocation2 + $0xa0] sm:$0xf]  ;;  %10261 = vmatmul.msk.bf16.gmra.mxu0 %vm4447_vm0, %v9854_v13 }
 0x16a   : > { %2739 = vst.msk [vmem:[#allocation3 + $0xbc] sm:$0xf] %vm1430_vm12, %v2653_v31  ;;  %v9862_v15 = vor.u32 %v10824_v10, %v9859_v26  ;;  %v2114_v38 = vrot.slane %v2112_v46, 4  ;;  %v3149_v21 = vshll.u32 %v2861_v60, 16  ;;  %v2120_v48 = vrot.slane %v2118_v22, 5 }
 0x16b   : > { %4697 = vmatmul.bf16.gmra.mxu2 %v9866_v35  ;;  %2402 = vst.msk [vmem:[#allocation3 + $0xa8] sm:$0xf] %vm224_vm4, %v2087_v5  ;;  %v2595_v53 = vsel %vm11776_vm15, %v9773_v56, %v2594_v17  ;;  %v2862_v35 = vld [vmem:[#allocation2 + $0xa4] sm:$0x1]  ;;  %v3131_v41 = vrot.slane %v3129_v9, 4  ;;  %v3153_v34 = vshrl.u32 %v2861_v60, 16 }
 0x16c   : > { %4608 = vmatmul.bf16.gmra.mxu1 %v9862_v15  ;;  %v2115_v25 = vor.u32 %v2114_v38, %v12625_v61  ;;  %2674 = vrot.lane.b32.xlu2 %v2595_v53, %s11174_s10  ;;  %v12641_v58 = vrot.slane %v3149_v21, 5  ;;  %v3159_v26 = vshll.u32 %v2862_v35, 16  ;;  %v2772_v32 = vld [vmem:[#allocation2 + $0x4c] sm:$0xf]  ;;  %v3396_v11 = vld [vmem:[#allocation2 + $0x3c] sm:$0xe] }
 0x16d   : > { %v3397_v19 = vld [vmem:[#allocation2 + $0x40] sm:$0xf]  ;;  %v3155_v15 = vrot.slane %v3153_v34, 4  ;;  %v9782_v9 = vrot.slane %v3396_v11, 9  ;;  %2804 = vst.msk [vmem:[#allocation3 + $0xc0] sm:$0xf] %vm224_vm4, %v2772_v32  ;;  %v3132_v63 = vor.u32 %v3131_v41, %v12569_v51 }
 0x16e   : > { %v12629_v1 = vpop.f32.mrf.mxu2  ;;  %v12632_v40 = vpop.f32.mrf.mxu3  ;;  %v2116_v17 = vrot.slane %v2115_v25, 4  ;;  %v3506_v39 = vrot.slane %v3397_v19, 5  ;;  %v3161_v45 = vrot.slane %v3159_v26, 5  ;;  %v1479_v55 = vld [vmem:[#allocation2 + $0x40] sm:$0xf] }
 0x16f   : > { %v1821_v59 = vpop.permute.xlu2 %1820  ;;  %v12645_v52 = vpop.f32.mrf.mxu0  ;;  %v3156_v37 = vor.u32 %v3155_v15, %v12641_v58  ;;  %v1480_v46 = vld [vmem:[#allocation2 + $0x44] sm:$0x1]  ;;  %v1599_v22 = vrot.slane %v1479_v55, 5  ;;  %v2859_v41 = vld [vmem:[#allocation2 + $0x98] sm:$0x1]  ;;  %v3133_v11 = vrot.slane %v3132_v63, 4 }
 0x170   : > { %v2651_v2 = vpop.permute.xlu0 %2650  ;;  %v9867_v4 = vld [vmem:[#allocation3 + $0x94] sm:$0xf0]  ;;  %1907 = vst.msk [vmem:[#allocation3 + $0xb8] sm:$0xf] %vm1430_vm12, %v1821_v59  ;;  %v2121_v14 = vsel %vm11335_vm11, %v2116_v17, %v2120_v48  ;;  %v3507_v50 = vsel %vm11776_vm15, %v9782_v9, %v3506_v39  ;;  %v3508_v5 = vrot.slane %v3506_v39, 4  ;;  %v1602_v56 = vrot.slane %v1480_v46, 5 }
 0x171   : > { %v1819_v31 = vpop.permute.xlu1 %1818  ;;  %2738 = vst.msk [vmem:[#allocation3 + $0xa8] sm:$0xf] %vm1430_vm12, %v2651_v2  ;;  %v9870_v10 = vor.u32 %v10825_v49, %v9867_v4  ;;  %v3398_v49 = vld [vmem:[#allocation2 + $0x44] sm:$0x1]  ;;  %v3157_v60 = vrot.slane %v3156_v37, 4  ;;  %v1601_v48 = vrot.slane %v1599_v22, 4 }
 0x172   : > { %1906 = vst.msk [vmem:[#allocation3 + $0xa4] sm:$0xf] %vm1430_vm12, %v1819_v31  ;;  %v3509_v13 = vrot.slane %v3398_v49, 5  ;;  %v1478_v4 = vld [vmem:[#allocation2 + $0x3c] sm:$0xe]  ;;  %v3135_v19 = vshll.u32 %v2859_v41, 16 }
 0x173   : > { %4786 = vmatmul.bf16.gmra.mxu3 %v9870_v10  ;;  %2405 = vst.msk [vmem:[#allocation3 + $0xe4] sm:$0xf] %vm224_vm4, %v2121_v14  ;;  %v9752_v53 = vrot.slane %v1478_v4, 9  ;;  %v3162_v35 = vsel %vm11335_vm11, %v3157_v60, %v3161_v45  ;;  %v2462_v25 = vld [vmem:[#allocation2 + $0x9c] sm:$0xe]  ;;  %v1603_v59 = vsel %vm11776_vm15, %v1601_v48, %v1602_v56 }
 0x174   : > { %3633 = vst.msk [vmem:[#allocation3 + $0x88] sm:$0xf] %vm224_vm4, %v3507_v50  ;;  %v3510_v31 = vsel %vm11776_vm15, %v3508_v5, %v3509_v13  ;;  %3305 = vrot.lane.b32.xlu0 %v3162_v35, %s11174_s10  ;;  %v12672_v15 = vld [vmem:[#allocation2 + $0xa0] sm:$0xf]  ;;  %v9775_v9 = vrot.slane %v2462_v25, 9  ;;  %v3137_v49 = vrot.slane %v3135_v19, 5  ;;  %v4556_v19 = vadd.f32 %v12458_v20, %v12567_v44 }
 0x175   : > { %3634 = vst.msk [vmem:[#allocation3 + $0x9c] sm:$0xf] %vm224_vm4, %v3510_v31  ;;  %v1600_v32 = vsel %vm11776_vm15, %v9752_v53, %v1599_v22  ;;  %v15084_v39 = vrot.slane %v12672_v15, 5  ;;  %v1945_v14 = vld [vmem:[#allocation2 + $0x48] sm:$0xf] }
 0x176   : > { %v12655_v51 = vpop.f32.mrf.mxu2  ;;  %v12660_v10 = vpop.f32.mrf.mxu3  ;;  %1717 = vst.msk [vmem:[#allocation3 + $0xe0] sm:$0xf] %vm224_vm4, %v1603_v59  ;;  %v2099_v37 = vshrl.u32 %v1945_v14, 16  ;;  %v2102_v45 = vshll.u32 %v1945_v14, 16  ;;  %v3138_v55 = vsel %vm11335_vm11, %v3133_v11, %v3137_v49  ;;  %v10832_v50 = vld [vmem:[#allocation3 + $0xb8] sm:$0xf0] }
 0x177   : > { %15108 = vst [vmem:[#allocation7_spill] sm:$0xff] %v12660_v10  ;;  %v3280_v34 = vpop.permute.xlu2 %3279  ;;  %v9879_v26 = vld [vmem:[#allocation3 + $0xb4] sm:$0xf0]  ;;  %v2609_v46 = vsel %vm11776_vm15, %v9775_v9, %v15084_v39  ;;  %v12683_v5 = vpop.f32.mrf.mxu0  ;;  %v10830_v22 = vld [vmem:[#allocation3 + $0xac] sm:$0xf]  ;;  %3301 = vrot.lane.b32.xlu2 %v3138_v55, %s11174_s10 }
 0x178   : > { %v3278_v2 = vpop.permute.xlu0 %3277  ;;  %3365 = vst.msk [vmem:[#allocation3 + $0xd4] sm:$0xf] %vm1430_vm12, %v3280_v34  ;;  %v9885_v13 = vld [vmem:[#allocation3 + $0xa8] sm:$0xf]  ;;  %2682 = vrot.lane.b32.xlu1 %v2609_v46, %s11174_s10  ;;  %v2101_v56 = vrot.slane %v2099_v37, 4  ;;  %v2104_v60 = vrot.slane %v2102_v45, 5 }
 0x179   : > { %v2657_v38 = vpop.permute.xlu1 %2656  ;;  %3364 = vst.msk [vmem:[#allocation3 + $0xc0] sm:$0xf] %vm1430_vm12, %v3278_v2  ;;  %v10829_v21 = vld [vmem:[#allocation3 + $0xa4] sm:$0xf]  ;;  %v9886_v4 = vor.u32 %v10832_v50, %v9885_v13  ;;  %v2775_v31 = vld [vmem:[#allocation2 + $0x60] sm:$0xf] }
 0x17a   : > { %2741 = vst.msk [vmem:[#allocation3 + $0xe4] sm:$0xf] %vm1430_vm12, %v2657_v38  ;;  %v9882_v17 = vor.u32 %v10829_v21, %v9879_v26  ;;  %v1949_v25 = vld [vmem:[#allocation2 + $0x58] sm:$0xf]  ;;  %v1950_v34 = vld [vmem:[#allocation2 + $0x5c] sm:$0x1]  ;;  %v2105_v59 = vor.u32 %v2104_v60, %v2101_v56 }
 0x17b   : > { %1716 = vst.msk [vmem:[#allocation3 + $0xcc] sm:$0xf] %vm224_vm4, %v1600_v32  ;;  %v9873_v63 = vld [vmem:[#allocation3 + $0x88] sm:$0xf]  ;;  %4702 = vmatmul.bf16.gmra.mxu2 %v9886_v4  ;;  %v2132_v32 = vshll.u32 %v1949_v25, 16  ;;  %v2136_v11 = vshrl.u32 %v1949_v25, 16 }
 0x17c   : > { %4613 = vmatmul.bf16.gmra.mxu1 %v9882_v17  ;;  %2807 = vst.msk [vmem:[#allocation3 + $0xfc] sm:$0xf] %vm224_vm4, %v2775_v31  ;;  %v10828_v26 = vld [vmem:[#allocation3 + $0x98] sm:$0xf0]  ;;  %v2142_v14 = vshll.u32 %v1950_v34, 16  ;;  %v2106_v13 = vrot.slane %v2105_v59, 4 }
 0x17d   : > { %v9874_v17 = vor.u32 %v10828_v26, %v9873_v63  ;;  %v2863_v37 = vld [vmem:[#allocation2 + $0xa8] sm:$0xf]  ;;  %v2864_v45 = vld [vmem:[#allocation2 + $0xac] sm:$0xf]  ;;  %v12695_v55 = vrot.slane %v2132_v32, 5  ;;  %v2138_v46 = vrot.slane %v2136_v11, 4 }
 0x17e   : > { %v4565_v21 = vpop.f32.mrf.mxu2  ;;  %v4654_v41 = vpop.f32.mrf.mxu3  ;;  %v3164_v50 = vshrl.u32 %v2863_v37, 16  ;;  %v3167_v56 = vshll.u32 %v2863_v37, 16  ;;  %v2865_v44 = vld [vmem:[#allocation2 + $0xb0] sm:$0x1]  ;;  %v3177_v63 = vshrl.u32 %v2864_v45, 16  ;;  %v2111_v60 = vsel %vm11335_vm11, %v2106_v13, %v12625_v61 }
 0x17f   : > { %v4566_v35 = vadd.f32 %v12458_v20, %v4565_v21  ;;  %v1825_v9 = vpop.permute.xlu2 %1824  ;;  %10262 = vmatmul.msk.bf16.gmra.mxu0 %vm4447_vm0, %v9874_v17  ;;  %v3173_v20 = vshll.u32 %v2864_v45, 16  ;;  %v2139_v4 = vor.u32 %v2138_v46, %v12695_v55  ;;  %v3183_v21 = vshll.u32 %v2865_v44, 16  ;;  %v2774_v31 = vld [vmem:[#allocation2 + $0x58] sm:$0xf]  ;;  %2404 = vst.msk [vmem:[#allocation3 + $0xd0] sm:$0xf] %vm224_vm4, %v2111_v60 }
 0x180   : > { %v2655_v2 = vpop.permute.xlu0 %2654  ;;  %v9887_v38 = vld [vmem:[#allocation3 + $0xbc] sm:$0xf0]  ;;  %1909 = vst.msk [vmem:[#allocation3 + $0xe0] sm:$0xf] %vm1430_vm12, %v1825_v9  ;;  %v3400_v32 = vld [vmem:[#allocation2 + $0x4c] sm:$0xf]  ;;  %v12707_v61 = vadd.f32 %v12572_v30, %v4556_v19 }
 0x181   : > { %v1823_v48 = vpop.permute.xlu1 %1822  ;;  %v9890_v53 = vor.u32 %v10830_v22, %v9887_v38  ;;  %v12692_v49 = vadd.f32 %v4654_v41, %v4566_v35  ;;  %v2144_v22 = vrot.slane %v2142_v14, 5  ;;  %v3166_v38 = vrot.slane %v3164_v50, 4  ;;  %2740 = vst.msk [vmem:[#allocation3 + $0xd0] sm:$0xf] %vm1430_vm12, %v2655_v2  ;;  %v3401_v45 = vld [vmem:[#allocation2 + $0x50] sm:$0x1] }
 0x182   : > { %1908 = vst.msk [vmem:[#allocation3 + $0xcc] sm:$0xf] %vm1430_vm12, %v1823_v48  ;;  %v3399_v48 = vld [vmem:[#allocation2 + $0x48] sm:$0xe]  ;;  %v3175_v35 = vrot.slane %v3173_v20, 5  ;;  %v3179_v41 = vrot.slane %v3177_v63, 4  ;;  %v12716_v63 = vpop.f32.mrf.mxu0 }
 0x183   : > { %4791 = vmatmul.bf16.gmra.mxu3 %v9890_v53  ;;  %15109 = vst [vmem:[#allocation8_spill] sm:$0xff] %v12692_v49  ;;  %v3169_v53 = vrot.slane %v3167_v56, 5  ;;  %v9783_v25 = vrot.slane %v3399_v48, 9  ;;  %v2140_v34 = vrot.slane %v2139_v4, 4  ;;  %v3185_v26 = vrot.slane %v3183_v21, 5 }
 0x184   : > { %v3180_v14 = vor.u32 %v3179_v41, %v3175_v35  ;;  %2806 = vst.msk [vmem:[#allocation3 + $0xe8] sm:$0xf] %vm224_vm4, %v2774_v31  ;;  %v3513_v46 = vrot.slane %v3400_v32, 5  ;;  %v3516_v50 = vrot.slane %v3401_v45, 5  ;;  %v1482_v56 = vld [vmem:[#allocation2 + $0x4c] sm:$0xf] }
 0x185   : > { %v3170_v9 = vor.u32 %v3169_v53, %v3166_v38  ;;  %v2145_v2 = vsel %vm11335_vm11, %v2140_v34, %v2144_v22  ;;  %v1483_v38 = vld [vmem:[#allocation2 + $0x50] sm:$0x1]  ;;  %v1606_v21 = vrot.slane %v1482_v56, 5  ;;  %v1481_v41 = vld [vmem:[#allocation2 + $0x48] sm:$0xe] }
 0x186   : > { %v12704_v11 = vpop.f32.mrf.mxu2  ;;  %v12710_v13 = vpop.f32.mrf.mxu3  ;;  %2407 = vst.msk [vmem:[#allocation3 + $0x10c] sm:$0xf] %vm224_vm4, %v2145_v2  ;;  %v3181_v19 = vrot.slane %v3180_v14, 4  ;;  %v3514_v4 = vsel %vm11776_vm15, %v9783_v25, %v3513_v46  ;;  %v3515_v22 = vrot.slane %v3513_v46, 4  ;;  %v1609_v53 = vrot.slane %v1483_v38, 5 }
 0x187   : > { %15110 = vst [vmem:[#allocation9_spill] sm:$0xff] %v12704_v11  ;;  %v3284_v20 = vpop.permute.xlu2 %3283  ;;  %v3171_v30 = vrot.slane %v3170_v9, 4  ;;  %v9899_v44 = vld [vmem:[#allocation3 + $0xdc] sm:$0xf0]  ;;  %v1608_v34 = vrot.slane %v1606_v21, 4 }
 0x188   : > { %v3282_v59 = vpop.permute.xlu0 %3281  ;;  %15111 = vst [vmem:[#allocation10_spill] sm:$0xff] %v12710_v13  ;;  %v3186_v48 = vsel %vm11335_vm11, %v3181_v19, %v3185_v26  ;;  %v3517_v25 = vsel %vm11776_vm15, %v3515_v22, %v3516_v50  ;;  %v2860_v32 = vld [vmem:[#allocation2 + $0x9c] sm:$0xf]  ;;  %v5502_v26 = vld [vmem:[#allocation2 + $0x4] sm:$0xf] }
 0x189   : > { %v2661_v17 = vpop.permute.xlu1 %2660  ;;  %v10834_v37 = vld [vmem:[#allocation3 + $0xcc] sm:$0xf]  ;;  %3366 = vst.msk [vmem:[#allocation3 + $0xe8] sm:$0xf] %vm1430_vm12, %v3282_v59  ;;  %v3176_v31 = vsel %vm11335_vm11, %v3171_v30, %v3175_v35  ;;  %3309 = vrot.lane.b32.xlu1 %v3186_v48, %s11174_s10  ;;  %v9753_v59 = vrot.slane %v1481_v41, 9  ;;  %v3140_v35 = vshrl.u32 %v2860_v32, 16  ;;  %v1610_v9 = vsel %vm11776_vm15, %v1608_v34, %v1609_v53 }
 0x18a   : > { %3367 = vst.msk [vmem:[#allocation3 + $0xfc] sm:$0xf] %vm1430_vm12, %v3284_v20  ;;  %v9902_v60 = vor.u32 %v10834_v37, %v9899_v44  ;;  %3307 = vrot.lane.b32.xlu0 %v3176_v31, %s11174_s10  ;;  %v5503_v37 = vld [vmem:[#allocation2 + $0x8] sm:$0x1]  ;;  %v5559_v45 = vshll.u32 %v5502_v26, 16  ;;  %v5563_v2 = vshrl.u32 %v5502_v26, 16 }
 0x18b   : > { %2743 = vst.msk [vmem:[#allocation3 + $0x10c] sm:$0xf] %vm1430_vm12, %v2661_v17  ;;  %v3143_v17 = vshll.u32 %v2860_v32, 16  ;;  %v1607_v14 = vsel %vm11776_vm15, %v9753_v59, %v1606_v21  ;;  %v2465_v46 = vld [vmem:[#allocation2 + $0xa8] sm:$0xe]  ;;  %v3142_v30 = vrot.slane %v3140_v35, 4 }
 0x18c   : > { %3635 = vst.msk [vmem:[#allocation3 + $0xb0] sm:$0xf] %vm224_vm4, %v3514_v4  ;;  %4618 = vmatmul.bf16.gmra.mxu1 %v9902_v60  ;;  %v5569_v44 = vshll.u32 %v5503_v37, 16  ;;  %v9776_v60 = vrot.slane %v2465_v46, 9  ;;  %v12740_v22 = vrot.slane %v5559_v45, 5  ;;  %v5565_v38 = vrot.slane %v5563_v2, 4  ;;  %v12762_v46 = vpop.f32.mrf.mxu0 }
 0x18d   : > { %3636 = vst.msk [vmem:[#allocation3 + $0xc4] sm:$0xf] %vm224_vm4, %v3517_v25  ;;  %v3145_v19 = vrot.slane %v3143_v17, 5  ;;  %v12742_v21 = vld [vmem:[#allocation2 + $0xac] sm:$0xf] }
 0x18e   : > { %v4570_v56 = vpop.f32.mrf.mxu2  ;;  %1719 = vst.msk [vmem:[#allocation3 + $0x108] sm:$0xf] %vm224_vm4, %v1610_v9  ;;  %v4659_v4 = vpop.f32.mrf.mxu3  ;;  %v12747_v31 = vld [vmem:[%s15079_s2] ss:$0 sm:$0xff]  ;;  %v5571_v34 = vrot.slane %v5569_v44, 5  ;;  %v15083_v59 = vrot.slane %v12742_v21, 5  ;;  %v5566_v35 = vor.u32 %v5565_v38, %v12740_v22 }
 0x18f   : > { %1718 = vst.msk [vmem:[#allocation3 + $0xf4] sm:$0xf] %vm224_vm4, %v1607_v14  ;;  %v4571_v48 = vadd.f32 %v12747_v31, %v4570_v56  ;;  %v4561_v53 = vadd.f32 %v12747_v31, %v12629_v1  ;;  %v1829_v41 = vpop.permute.xlu2 %1828  ;;  %v3146_v25 = vor.u32 %v3145_v19, %v3142_v30  ;;  %v1948_v32 = vld [vmem:[#allocation2 + $0x54] sm:$0xf]  ;;  %v9905_v9 = vld [vmem:[#allocation3 + $0xd0] sm:$0xf] }
 0x190   : > { %v12736_v50 = vpop.permute.xlu0 %2658  ;;  %1911 = vst.msk [vmem:[#allocation3 + $0x108] sm:$0xf] %vm1430_vm12, %v1829_v41  ;;  %v2123_v17 = vshrl.u32 %v1948_v32, 16  ;;  %v2126_v26 = vshll.u32 %v1948_v32, 16  ;;  %v2616_v1 = vsel %vm11776_vm15, %v9776_v60, %v15083_v59  ;;  %v10837_v2 = vld [vmem:[#allocation3 + $0xe0] sm:$0xf0] }
 0x191   : > { %v1827_v20 = vpop.permute.xlu1 %1826  ;;  %v12756_v14 = vadd.f32 %v4659_v4, %v4571_v48  ;;  %v3147_v45 = vrot.slane %v3146_v25, 4  ;;  %2686 = vrot.lane.b32.xlu1 %v2616_v1, %s11174_s10  ;;  %v9906_v44 = vor.u32 %v10837_v2, %v9905_v9  ;;  %v10835_v48 = vld [vmem:[#allocation3 + $0xd4] sm:$0xf]  ;;  %v9907_v41 = vld [vmem:[#allocation3 + $0xe4] sm:$0xf0]  ;;  %v12769_v60 = vadd.f32 %v12632_v40, %v4561_v53 }
 0x192   : > { %1910 = vst.msk [vmem:[#allocation3 + $0xf4] sm:$0xf] %vm1430_vm12, %v1827_v20  ;;  %v5567_v20 = vrot.slane %v5566_v35, 4  ;;  %v2125_v30 = vrot.slane %v2123_v17, 4  ;;  %v2128_v19 = vrot.slane %v2126_v26, 5  ;;  %v9910_v17 = vor.u32 %v10835_v48, %v9907_v41 }
 0x193   : > { %15112 = vst [vmem:[#allocation11_spill] sm:$0xff] %v12756_v14  ;;  %v9893_v37 = vld [vmem:[#allocation3 + $0xb0] sm:$0xf]  ;;  %v3152_v4 = vsel %vm11335_vm11, %v3147_v45, %v12641_v58  ;;  %v2777_v25 = vld [vmem:[#allocation2 + $0x6c] sm:$0xf]  ;;  %4707 = vmatmul.bf16.gmra.mxu2 %v9906_v44 }
 0x194   : > { %v10833_v56 = vld [vmem:[#allocation3 + $0xc0] sm:$0xf0]  ;;  %3303 = vrot.lane.b32.xlu2 %v3152_v4, %s11174_s10  ;;  %v5572_v32 = vsel %vm11335_vm11, %v5567_v20, %v5571_v34  ;;  %v2129_v35 = vor.u32 %v2128_v19, %v2125_v30  ;;  %2809 = vst.msk [vmem:[#allocation3 + $0x124] sm:$0xf] %vm224_vm4, %v2777_v25  ;;  %v1952_v26 = vld [vmem:[#allocation2 + $0x64] sm:$0xf]  ;;  %4796 = vmatmul.bf16.gmra.mxu3 %v9910_v17 }
 0x195   : > { %v9894_v38 = vor.u32 %v10833_v56, %v9893_v37  ;;  %v1953_v9 = vld [vmem:[#allocation2 + $0x68] sm:$0x1]  ;;  %5935 = vrot.lane.b32.xlu0 %v5572_v32, %s11174_s10  ;;  %v2156_v40 = vshll.u32 %v1952_v26, 16  ;;  %v2160_v53 = vshrl.u32 %v1952_v26, 16  ;;  %v2866_v1 = vld [vmem:[#allocation2 + $0xb4] sm:$0xf] }
 0x196   : > { %v12775_v58 = vpop.f32.mrf.mxu2  ;;  %v2166_v45 = vshll.u32 %v1953_v9, 16  ;;  %v12779_v2 = vpop.f32.mrf.mxu3  ;;  %v2130_v34 = vrot.slane %v2129_v35, 4  ;;  %v2867_v56 = vld [vmem:[#allocation2 + $0xb8] sm:$0xf]  ;;  %v3188_v20 = vshrl.u32 %v2866_v1, 16  ;;  %v3191_v30 = vshll.u32 %v2866_v1, 16 }
 0x197   : > { %15113 = vst [vmem:[#allocation12_spill] sm:$0xff] %v12775_v58  ;;  %10263 = vmatmul.msk.bf16.gmra.mxu0 %vm4447_vm0, %v9894_v38  ;;  %v3288_v19 = vpop.permute.xlu2 %3287  ;;  %v12781_v44 = vrot.slane %v2156_v40, 5  ;;  %v2162_v4 = vrot.slane %v2160_v53, 4  ;;  %v3197_v41 = vshll.u32 %v2867_v56, 16  ;;  %v2868_v38 = vld [vmem:[#allocation2 + $0xbc] sm:$0x1] }
 0x198   : > { %v3286_v37 = vpop.permute.xlu0 %3285  ;;  %15114 = vst [vmem:[#allocation13_spill] sm:$0xff] %v12779_v2  ;;  %v2168_v48 = vrot.slane %v2166_v45, 5  ;;  %v2135_v25 = vsel %vm11335_vm11, %v2130_v34, %v12695_v55  ;;  %v3190_v26 = vrot.slane %v3188_v20, 4  ;;  %v3193_v35 = vrot.slane %v3191_v30, 5  ;;  %v2776_v53 = vld [vmem:[#allocation2 + $0x64] sm:$0xf]  ;;  %v12792_v20 = vpop.f32.mrf.mxu0 }
 0x199   : > { %3369 = vst.msk [vmem:[#allocation3 + $0x124] sm:$0xf] %vm1430_vm12, %v3288_v19  ;;  %v2665_v32 = vpop.permute.xlu1 %2664  ;;  %v3201_v17 = vshrl.u32 %v2867_v56, 16  ;;  %v2163_v9 = vor.u32 %v2162_v4, %v12781_v44  ;;  %v3199_v40 = vrot.slane %v3197_v41, 5  ;;  %v3207_v1 = vshll.u32 %v2868_v38, 16 }
 0x19a   : > { %2406 = vst.msk [vmem:[#allocation3 + $0xf8] sm:$0xf] %vm224_vm4, %v2135_v25  ;;  %v3194_v45 = vor.u32 %v3193_v35, %v3190_v26  ;;  %v10839_v39 = vld [vmem:[#allocation3 + $0xf4] sm:$0xf]  ;;  %v9919_v34 = vld [vmem:[#allocation3 + $0x104] sm:$0xf0] }
 0x19b   : > { %2742 = vst.msk [vmem:[#allocation3 + $0xf8] sm:$0xf] %vm1430_vm12, %v12736_v50  ;;  %v3203_v59 = vrot.slane %v3201_v17, 4  ;;  %v2164_v55 = vrot.slane %v2163_v9, 4  ;;  %v3209_v19 = vrot.slane %v3207_v1, 5  ;;  %v9922_v4 = vor.u32 %v10839_v39, %v9919_v34 }
 0x19c   : > { %2808 = vst.msk [vmem:[#allocation3 + $0x110] sm:$0xf] %vm224_vm4, %v2776_v53  ;;  %v3195_v56 = vrot.slane %v3194_v45, 4  ;;  %v3402_v41 = vld [vmem:[#allocation2 + $0x54] sm:$0xe]  ;;  %v15115_v9 = vrot.slane %v12672_v15, 5 }
 0x19d   : > { %v3204_v30 = vor.u32 %v3203_v59, %v3199_v40  ;;  %3368 = vst.msk [vmem:[#allocation3 + $0x110] sm:$0xf] %vm1430_vm12, %v3286_v37  ;;  %v2169_v50 = vsel %vm11335_vm11, %v2164_v55, %v2168_v48  ;;  %v3403_v26 = vld [vmem:[#allocation2 + $0x58] sm:$0xf]  ;;  %v3404_v35 = vld [vmem:[#allocation2 + $0x5c] sm:$0x1]  ;;  %4623 = vmatmul.bf16.gmra.mxu1 %v9922_v4 }
 0x19e   : > { %v4575_v25 = vpop.f32.mrf.mxu2  ;;  %v9784_v17 = vrot.slane %v3402_v41, 9  ;;  %v2610_v53 = vrot.slane %v15115_v9, 4  ;;  %2409 = vst.msk [vmem:[#allocation3 + $0x134] sm:$0xf] %vm224_vm4, %v2169_v50  ;;  %v3200_v39 = vsel %vm11335_vm11, %v3195_v56, %v3199_v40  ;;  %v3520_v37 = vrot.slane %v3403_v26, 5  ;;  %v4664_v34 = vpop.f32.mrf.mxu3 }
 0x19f   : > { %v4576_v45 = vadd.f32 %v12747_v31, %v4575_v25  ;;  %v3205_v59 = vrot.slane %v3204_v30, 4  ;;  %v3523_v1 = vrot.slane %v3404_v35, 5  ;;  %2745 = vst.msk [vmem:[#allocation3 + $0x134] sm:$0xf] %vm1430_vm12, %v2665_v32  ;;  %3311 = vrot.lane.b32.xlu0 %v3200_v39, %s11174_s10  ;;  %v2464_v48 = vld [vmem:[#allocation2 + $0xa4] sm:$0x1] }
 0x1a0   : > { %v12795_v38 = vpop.permute.xlu0 %2662  ;;  %v1485_v55 = vld [vmem:[#allocation2 + $0x58] sm:$0xf]  ;;  %v3521_v25 = vsel %vm11776_vm15, %v9784_v17, %v3520_v37  ;;  %v3522_v40 = vrot.slane %v3520_v37, 4  ;;  %v2611_v56 = vrot.slane %v2464_v48, 5  ;;  %v1486_v30 = vld [vmem:[#allocation2 + $0x5c] sm:$0x1]  ;;  %v1833_v37 = vpop.permute.xlu2 %1832 }
 0x1a1   : > { %v12807_v15 = vadd.f32 %v4664_v34, %v4576_v45  ;;  %v3210_v41 = vsel %vm11335_vm11, %v3205_v59, %v3209_v19  ;;  %v1484_v4 = vld [vmem:[#allocation2 + $0x54] sm:$0xe]  ;;  %3637 = vst.msk [vmem:[#allocation3 + $0xd8] sm:$0xf] %vm224_vm4, %v3521_v25  ;;  %v1613_v32 = vrot.slane %v1485_v55, 5  ;;  %v1616_v50 = vrot.slane %v1486_v30, 5  ;;  %v1831_v9 = vpop.permute.xlu1 %1830 }
 0x1a2   : > { %3313 = vrot.lane.b32.xlu1 %v3210_v41, %s11174_s10  ;;  %v9754_v26 = vrot.slane %v1484_v4, 9  ;;  %v3524_v35 = vsel %vm11776_vm15, %v3522_v40, %v3523_v1  ;;  %v2612_v19 = vsel %vm11776_vm15, %v2610_v53, %v2611_v56  ;;  %v1951_v45 = vld [vmem:[#allocation2 + $0x60] sm:$0xf]  ;;  %v9925_v17 = vld [vmem:[#allocation3 + $0xf8] sm:$0xf] }
 0x1a3   : > { %15116 = vst [vmem:[#allocation14_spill] sm:$0xff] %v12807_v15  ;;  %v10842_v39 = vld [vmem:[#allocation3 + $0x108] sm:$0xf0]  ;;  %2684 = vrot.lane.b32.xlu2 %v2612_v19, %s11174_s10  ;;  %v1615_v59 = vrot.slane %v1613_v32, 4  ;;  %v2147_v48 = vshrl.u32 %v1951_v45, 16  ;;  %v2150_v55 = vshll.u32 %v1951_v45, 16 }
 0x1a4   : > { %3638 = vst.msk [vmem:[#allocation3 + $0xec] sm:$0xf] %vm224_vm4, %v3524_v35  ;;  %v1614_v34 = vsel %vm11776_vm15, %v9754_v26, %v1613_v32  ;;  %v9926_v1 = vor.u32 %v10842_v39, %v9925_v17  ;;  %v10840_v41 = vld [vmem:[#allocation3 + $0xfc] sm:$0xf]  ;;  %v9927_v53 = vld [vmem:[#allocation3 + $0x10c] sm:$0xf0]  ;;  %v12829_v35 = vpop.f32.mrf.mxu0 }
 0x1a5   : > { %1720 = vst.msk [vmem:[#allocation3 + $0x11c] sm:$0xf] %vm224_vm4, %v1614_v34  ;;  %v1617_v56 = vsel %vm11776_vm15, %v1615_v59, %v1616_v50  ;;  %v2149_v30 = vrot.slane %v2147_v48, 4  ;;  %v2152_v4 = vrot.slane %v2150_v55, 5  ;;  %v9930_v32 = vor.u32 %v10840_v41, %v9927_v53  ;;  %v5501_v26 = vld [vmem:[#allocation2] sm:$0xf] }
 0x1a6   : > { %v12824_v40 = vpop.f32.mrf.mxu2  ;;  %1912 = vst.msk [vmem:[#allocation3 + $0x11c] sm:$0xf] %vm1430_vm12, %v1831_v9  ;;  %4712 = vmatmul.bf16.gmra.mxu2 %v9926_v1  ;;  %v5550_v19 = vshrl.u32 %v5501_v26, 16  ;;  %v5553_v45 = vshll.u32 %v5501_v26, 16  ;;  %v2778_v17 = vld [vmem:[#allocation2 + $0x70] sm:$0xf]  ;;  %v12834_v55 = vpop.f32.mrf.mxu3 }
 0x1a7   : > { %15117 = vst [vmem:[#allocation15_spill] sm:$0xff] %v12824_v40  ;;  %v2153_v39 = vor.u32 %v2152_v4, %v2149_v30  ;;  %4801 = vmatmul.bf16.gmra.mxu3 %v9930_v32  ;;  %v3405_v34 = vld [vmem:[#allocation2 + $0x60] sm:$0xe]  ;;  %v3406_v50 = vld [vmem:[#allocation2 + $0x64] sm:$0xf] }
 0x1a8   : > { %v3290_v25 = vpop.permute.xlu0 %3289  ;;  %1721 = vst.msk [vmem:[#allocation3 + $0x130] sm:$0xf] %vm224_vm4, %v1617_v56  ;;  %v9913_v59 = vld [vmem:[#allocation3 + $0xd8] sm:$0xf]  ;;  %v5552_v9 = vrot.slane %v5550_v19, 4  ;;  %v5555_v48 = vrot.slane %v5553_v45, 5 }
 0x1a9   : > { %1913 = vst.msk [vmem:[#allocation3 + $0x130] sm:$0xf] %vm1430_vm12, %v1833_v37  ;;  %v2154_v41 = vrot.slane %v2153_v39, 4  ;;  %v3407_v1 = vld [vmem:[#allocation2 + $0x68] sm:$0x1]  ;;  %v9785_v53 = vrot.slane %v3405_v34, 9 }
 0x1aa   : > { %2810 = vst.msk [vmem:[#allocation3 + $0x138] sm:$0xf] %vm224_vm4, %v2778_v17  ;;  %v5556_v26 = vor.u32 %v5555_v48, %v5552_v9  ;;  %v3527_v40 = vrot.slane %v3406_v50, 5  ;;  %v3530_v37 = vrot.slane %v3407_v1, 5  ;;  %v2467_v32 = vld [vmem:[#allocation2 + $0xb0] sm:$0x1]  ;;  %v12840_v17 = vpop.permute.xlu1 %2668 }
 0x1ab   : > { %15118 = vst [vmem:[#allocation16_spill] sm:$0xff] %v12834_v55  ;;  %v10838_v56 = vld [vmem:[#allocation3 + $0xe8] sm:$0xf0]  ;;  %v2159_v4 = vsel %vm11335_vm11, %v2154_v41, %v12781_v44  ;;  %v1954_v19 = vld [vmem:[#allocation2 + $0x6c] sm:$0xf]  ;;  %v15119_v44 = vrot.slane %v12742_v21, 5 }
 0x1ac   : > { %3370 = vst.msk [vmem:[#allocation3 + $0x138] sm:$0xf] %vm1430_vm12, %v3290_v25  ;;  %v9914_v30 = vor.u32 %v10838_v56, %v9913_v59  ;;  %v1955_v45 = vld [vmem:[#allocation2 + $0x70] sm:$0xf]  ;;  %v5557_v39 = vrot.slane %v5556_v26, 4  ;;  %v3528_v34 = vsel %vm11776_vm15, %v9785_v53, %v3527_v40  ;;  %v3529_v9 = vrot.slane %v3527_v40, 4 }
 0x1ad   : > { %2408 = vst.msk [vmem:[#allocation3 + $0x120] sm:$0xf] %vm224_vm4, %v2159_v4  ;;  %v10844_v25 = vld [vmem:[#allocation3 + $0x11c] sm:$0xf]  ;;  %v2617_v59 = vrot.slane %v15119_v44, 4  ;;  %v2171_v41 = vshrl.u32 %v1954_v19, 16 }
 0x1ae   : > { %v4580_v48 = vpop.f32.mrf.mxu2  ;;  %10264 = vmatmul.msk.bf16.gmra.mxu0 %vm4447_vm0, %v9914_v30  ;;  %2744 = vst.msk [vmem:[#allocation3 + $0x120] sm:$0xf] %vm1430_vm12, %v12795_v38  ;;  %v2174_v1 = vshll.u32 %v1954_v19, 16  ;;  %v2180_v56 = vshll.u32 %v1955_v45, 16  ;;  %v5562_v26 = vsel %vm11335_vm11, %v5557_v39, %v12740_v22  ;;  %v3531_v40 = vsel %vm11776_vm15, %v3529_v9, %v3530_v37  ;;  %v12858_v38 = vpop.f32.mrf.mxu0  ;;  %v10847_v22 = vld [vmem:[#allocation3 + $0x130] sm:$0xf0] }
 0x1af   : > { %3639 = vst.msk [vmem:[#allocation3 + $0x100] sm:$0xf] %vm224_vm4, %v3528_v34  ;;  %v2618_v53 = vrot.slane %v2467_v32, 5  ;;  %v4581_v30 = vadd.f32 %v12747_v31, %v4580_v48  ;;  %5933 = vrot.lane.b32.xlu2 %v5562_v26, %s11174_s10  ;;  %v2173_v19 = vrot.slane %v2171_v41, 4  ;;  %v10845_v39 = vld [vmem:[#allocation3 + $0x124] sm:$0xf]  ;;  %v3292_v37 = vpop.permute.xlu2 %3291 }
 0x1b0   : > { %v2667_v50 = vpop.permute.xlu0 %2666  ;;  %v9939_v4 = vld [vmem:[#allocation3 + $0x12c] sm:$0xf0]  ;;  %3640 = vst.msk [vmem:[#allocation3 + $0x114] sm:$0xf] %vm224_vm4, %v3531_v40  ;;  %v2176_v44 = vrot.slane %v2174_v1, 5  ;;  %v2182_v55 = vrot.slane %v2180_v56, 5 }
 0x1b1   : > { %v9942_v21 = vor.u32 %v10844_v25, %v9939_v4  ;;  %v1956_v2 = vld [vmem:[#allocation2 + $0x74] sm:$0x1]  ;;  %v2184_v32 = vshrl.u32 %v1955_v45, 16  ;;  %v2779_v48 = vld [vmem:[#allocation2 + $0x78] sm:$0xf]  ;;  %v2619_v45 = vsel %vm11776_vm15, %v2617_v59, %v2618_v53 }
 0x1b2   : > { %v2177_v34 = vor.u32 %v2176_v44, %v2173_v19  ;;  %v2190_v9 = vshll.u32 %v1956_v2, 16  ;;  %v2780_v58 = vld [vmem:[#allocation2 + $0x7c] sm:$0xf]  ;;  %2811 = vst.msk [vmem:[#allocation3 + $0x14c] sm:$0xf] %vm224_vm4, %v2779_v48  ;;  %v12865_v14 = vpop.permute.xlu1 %2670 }
 0x1b3   : > { %v9947_v15 = vld [vmem:[#allocation3 + $0x134] sm:$0xf0]  ;;  %4628 = vmatmul.bf16.gmra.mxu1 %v9942_v21  ;;  %v3408_v25 = vld [vmem:[#allocation2 + $0x6c] sm:$0xe]  ;;  %v2186_v1 = vrot.slane %v2184_v32, 4 }
 0x1b4   : > { %v3409_v4 = vld [vmem:[#allocation2 + $0x70] sm:$0xf]  ;;  %v2178_v40 = vrot.slane %v2177_v34, 4  ;;  %v2192_v56 = vrot.slane %v2190_v9, 5  ;;  %3371 = vst.msk [vmem:[#allocation3 + $0x14c] sm:$0xf] %vm1430_vm12, %v3292_v37  ;;  %v9950_v21 = vor.u32 %v10845_v39, %v9947_v15 }
 0x1b5   : > { %v9945_v2 = vld [vmem:[#allocation3 + $0x120] sm:$0xf]  ;;  %2812 = vst.msk [vmem:[#allocation3 + $0x160] sm:$0xf] %vm224_vm4, %v2780_v58  ;;  %v3410_v44 = vld [vmem:[#allocation2 + $0x74] sm:$0x1]  ;;  %v2187_v9 = vor.u32 %v2186_v1, %v2182_v55 }
 0x1b6   : > { %v4669_v26 = vpop.f32.mrf.mxu3  ;;  %v12870_v48 = vpop.f32.mrf.mxu2  ;;  %v9933_v34 = vld [vmem:[#allocation3 + $0x100] sm:$0xf]  ;;  %v9946_v32 = vor.u32 %v10847_v22, %v9945_v2  ;;  %v9786_v37 = vrot.slane %v3408_v25, 9  ;;  %v3534_v59 = vrot.slane %v3409_v4, 5  ;;  %v3537_v15 = vrot.slane %v3410_v44, 5 }
 0x1b7   : > { %v12862_v41 = vadd.f32 %v4669_v26, %v4581_v30  ;;  %15121 = vst [vmem:[#allocation18_spill] sm:$0xff] %v12870_v48  ;;  %v2183_v30 = vsel %vm11335_vm11, %v2178_v40, %v2182_v55  ;;  %v10843_v26 = vld [vmem:[#allocation3 + $0x110] sm:$0xf0]  ;;  %2688 = vrot.lane.b32.xlu2 %v2619_v45, %s11174_s10  ;;  %v2188_v53 = vrot.slane %v2187_v9, 4  ;;  %v1957_v39 = vld [vmem:[#allocation2 + $0x78] sm:$0xf]  ;;  %4806 = vmatmul.bf16.gmra.mxu3 %v9950_v21  ;;  %v12880_v2 = vpop.f32.mrf.mxu0 }
 0x1b8   : > { %v3294_v19 = vpop.permute.xlu0 %3293  ;;  %2410 = vst.msk [vmem:[#allocation3 + $0x148] sm:$0xf] %vm224_vm4, %v2183_v30  ;;  %4717 = vmatmul.bf16.gmra.mxu2 %v9946_v32  ;;  %v3535_v55 = vsel %vm11776_vm15, %v9786_v37, %v3534_v59  ;;  %v3536_v22 = vrot.slane %v3534_v59, 4  ;;  %v1958_v40 = vld [vmem:[#allocation2 + $0x7c] sm:$0xf]  ;;  %v2195_v25 = vshrl.u32 %v1957_v39, 16  ;;  %v9934_v1 = vor.u32 %v10843_v26, %v9933_v34 }
 0x1b9   : > { %15120 = vst [vmem:[#allocation17_spill] sm:$0xff] %v12862_v41  ;;  %v4594_v58 = vpop.f32.mrf.mxu1  ;;  %v2193_v4 = vsel %vm11335_vm11, %v2188_v53, %v2192_v56  ;;  %v2204_v45 = vshll.u32 %v1958_v40, 16  ;;  %v2208_v32 = vshrl.u32 %v1958_v40, 16  ;;  %v4506_v34 = vadd.f32 %v12747_v31, %v12390_v12 }
 0x1ba   : > { %3372 = vst.msk [vmem:[#allocation3 + $0x160] sm:$0xf] %vm1430_vm12, %v3294_v19  ;;  %v1959_v19 = vld [vmem:[#allocation2 + $0x80] sm:$0x1]  ;;  %v3538_v21 = vsel %vm11776_vm15, %v3536_v22, %v3537_v15  ;;  %v2197_v30 = vrot.slane %v2195_v25, 4 }
 0x1bb   : > { %2746 = vst.msk [vmem:[#allocation3 + $0x148] sm:$0xf] %vm1430_vm12, %v2667_v50  ;;  %v2198_v50 = vshll.u32 %v1957_v39, 16  ;;  %v2206_v9 = vrot.slane %v2204_v45, 5  ;;  %v2214_v37 = vshll.u32 %v1959_v19, 16  ;;  %v2210_v59 = vrot.slane %v2208_v32, 4 }
 0x1bc   : > { %3641 = vst.msk [vmem:[#allocation3 + $0x128] sm:$0xf] %vm224_vm4, %v3535_v55  ;;  %v4595_v15 = vadd.f32 %v4594_v58, %v4506_v34  ;;  %v2781_v55 = vld [vmem:[#allocation2 + $0x84] sm:$0xf]  ;;  %v2782_v22 = vld [vmem:[#allocation2 + $0x88] sm:$0xf] }
 0x1bd   : > { %2411 = vst.msk [vmem:[#allocation3 + $0x15c] sm:$0xf] %vm224_vm4, %v2193_v4  ;;  %v2200_v56 = vrot.slane %v2198_v50, 5  ;;  %v10850_v40 = vld [vmem:[#allocation3 + $0x14c] sm:$0xf]  ;;  %v2211_v12 = vor.u32 %v2210_v59, %v2206_v9  ;;  %v2216_v4 = vrot.slane %v2214_v37, 5  ;;  %v4508_v59 = vadd.f32 %v12747_v31, %v12427_v7 }
 0x1be   : > { %v12888_v44 = vpop.f32.mrf.mxu3  ;;  %2747 = vst.msk [vmem:[#allocation3 + $0x15c] sm:$0xf] %vm1430_vm12, %v12840_v17  ;;  %v4683_v26 = vpop.f32.mrf.mxu2  ;;  %10265 = vmatmul.msk.bf16.gmra.mxu0 %vm4447_vm0, %v9934_v1  ;;  %v3411_v50 = vld [vmem:[#allocation2 + $0x78] sm:$0xe]  ;;  %v3412_v32 = vld [vmem:[#allocation2 + $0x7c] sm:$0xf] }
 0x1bf   : > { %15122 = vst [vmem:[#allocation19_spill] sm:$0xff] %v12888_v44  ;;  %v2201_v39 = vor.u32 %v2200_v56, %v2197_v30  ;;  %v3298_v17 = vpop.permute.xlu1 %3297  ;;  %v9787_v44 = vrot.slane %v3411_v50, 9  ;;  %v2212_v58 = vrot.slane %v2211_v12, 4  ;;  %v3541_v30 = vrot.slane %v3412_v32, 5  ;;  %v4861_v56 = vpop.f32.mrf.mxu0  ;;  %v3413_v37 = vld [vmem:[#allocation2 + $0x80] sm:$0x1] }
 0x1c0   : > { %3642 = vst.msk [vmem:[#allocation3 + $0x13c] sm:$0xf] %vm224_vm4, %v3538_v21  ;;  %v3296_v53 = vpop.permute.xlu0 %3295  ;;  %v4684_v21 = vadd.f32 %v4683_v26, %v4595_v15  ;;  %v1960_v7 = vld [vmem:[#allocation2 + $0x84] sm:$0xf] }
 0x1c1   : > { %v9967_v25 = vld [vmem:[#allocation3 + $0x15c] sm:$0xf0]  ;;  %2813 = vst.msk [vmem:[#allocation3 + $0x174] sm:$0xf] %vm224_vm4, %v2781_v55  ;;  %v4596_v45 = vpop.f32.mrf.mxu1  ;;  %v2202_v19 = vrot.slane %v2201_v39, 4  ;;  %v2217_v15 = vsel %vm11335_vm11, %v2212_v58, %v2216_v4  ;;  %v2673_v39 = vpop.permute.xlu2 %2672  ;;  %v3543_v55 = vrot.slane %v3541_v30, 4  ;;  %v3542_v50 = vsel %vm11776_vm15, %v9787_v44, %v3541_v30 }
 0x1c2   : > { %3373 = vst.msk [vmem:[#allocation3 + $0x174] sm:$0xf] %vm1430_vm12, %v3296_v53  ;;  %v9965_v1 = vld [vmem:[#allocation3 + $0x148] sm:$0xf]  ;;  %v9970_v12 = vor.u32 %v10850_v40, %v9967_v25  ;;  %v4597_v32 = vadd.f32 %v4596_v45, %v4508_v59  ;;  %v2222_v48 = vshll.u32 %v1960_v7, 16 }
 0x1c3   : > { %2814 = vst.msk [vmem:[#allocation3 + $0x188] sm:$0xf] %vm224_vm4, %v2782_v22  ;;  %v2207_v34 = vsel %vm11335_vm11, %v2202_v19, %v2206_v9  ;;  %v3544_v22 = vrot.slane %v3413_v37, 5  ;;  %v9953_v19 = vld [vmem:[#allocation3 + $0x128] sm:$0xf]  ;;  %v2219_v37 = vshrl.u32 %v1960_v7, 16 }
 0x1c4   : > { %3374 = vst.msk [vmem:[#allocation3 + $0x188] sm:$0xf] %vm1430_vm12, %v3298_v17  ;;  %v1962_v40 = vld [vmem:[#allocation2 + $0x8c] sm:$0x1] }
 0x1c5   : > { %2412 = vst.msk [vmem:[#allocation3 + $0x170] sm:$0xf] %vm224_vm4, %v2207_v34  ;;  %v10852_v26 = vld [vmem:[#allocation3 + $0x158] sm:$0xf0]  ;;  %v3545_v4 = vsel %vm11776_vm15, %v3543_v55, %v3544_v22  ;;  %v1961_v34 = vld [vmem:[#allocation2 + $0x88] sm:$0xf] }
 0x1c6   : > { %v4772_v53 = vpop.f32.mrf.mxu3  ;;  %2748 = vst.msk [vmem:[#allocation3 + $0x170] sm:$0xf] %vm1430_vm12, %v12865_v14  ;;  %v9966_v9 = vor.u32 %v10852_v26, %v9965_v1  ;;  %v4685_v58 = vpop.f32.mrf.mxu2  ;;  %v2228_v14 = vshll.u32 %v1961_v34, 16  ;;  %v2232_v25 = vshrl.u32 %v1961_v34, 16  ;;  %v2221_v45 = vrot.slane %v2219_v37, 4 }
 0x1c7   : > { %v4773_v17 = vadd.f32 %v4772_v53, %v4684_v21  ;;  %2413 = vst.msk [vmem:[#allocation3 + $0x184] sm:$0xf] %vm224_vm4, %v2217_v15  ;;  %v10848_v21 = vld [vmem:[#allocation3 + $0x138] sm:$0xf0]  ;;  %v4686_v44 = vadd.f32 %v4685_v58, %v4597_v32  ;;  %v2224_v1 = vrot.slane %v2222_v48, 5  ;;  %v2238_v15 = vshll.u32 %v1962_v40, 16  ;;  %4811 = vmatmul.bf16.gmra.mxu3 %v9970_v12 }
 0x1c8   : > { %2749 = vst.msk [vmem:[#allocation3 + $0x184] sm:$0xf] %vm1430_vm12, %v2673_v39  ;;  %4722 = vmatmul.bf16.gmra.mxu2 %v9966_v9  ;;  %v2230_v26 = vrot.slane %v2228_v14, 5  ;;  %v2234_v53 = vrot.slane %v2232_v25, 4  ;;  %v2784_v39 = vld [vmem:[#allocation2 + $0x94] sm:$0xf]  ;;  %v9954_v22 = vor.u32 %v10848_v21, %v9953_v19 }
 0x1c9   : > { %v4862_v41 = vadd.f32 %v4861_v56, %v4773_v17  ;;  %3643 = vst.msk [vmem:[#allocation3 + $0x150] sm:$0xf] %vm224_vm4, %v3542_v50  ;;  %v4599_v59 = vpop.f32.mrf.mxu1  ;;  %v2225_v56 = vor.u32 %v2224_v1, %v2221_v45  ;;  %v2783_v55 = vld [vmem:[#allocation2 + $0x90] sm:$0xf]  ;;  %v2240_v48 = vrot.slane %v2238_v15, 5  ;;  %v2675_v40 = vpop.permute.xlu2 %2674 }
 0x1ca   : > { %3644 = vst.msk [vmem:[#allocation3 + $0x164] sm:$0xf] %vm224_vm4, %v3545_v4  ;;  %v2235_v7 = vor.u32 %v2234_v53, %v2230_v26  ;;  %v4863_v4 = vpop.f32.mrf.mxu0  ;;  %v12921_v12 = vld [vmem:[#allocation3 + $0x174] sm:$0xf]  ;;  %v2468_v37 = vld [vmem:[#allocation2 + $0xb4] sm:$0xe] }
 0x1cb   : > { %v4941_v30 = vmax.f32 %v4862_v41, 0.0  ;;  %2816 = vst.msk [vmem:[#allocation3 + $0x1b0] sm:$0xf] %vm224_vm4, %v2784_v39  ;;  %v2226_v32 = vrot.slane %v2225_v56, 4  ;;  %v4511_v41 = vadd.f32 %v12747_v31, %v12467_v16  ;;  %v12923_v34 = vld [vmem:[#allocation3 + $0x184] sm:$0xf0]  ;;  %v2677_v56 = vpop.permute.xlu0 %2676 }
 0x1cc   : > { %2815 = vst.msk [vmem:[#allocation3 + $0x19c] sm:$0xf] %vm224_vm4, %v2783_v55  ;;  %v2236_v19 = vrot.slane %v2235_v7, 4  ;;  %v12929_v45 = vld [vmem:[#allocation2 + $0xb8] sm:$0xf]  ;;  %v9777_v1 = vrot.slane %v2468_v37, 9 }
 0x1cd   : > { %v4973_v17 = vpack.c.bf16 %v4941_v30, %v4941_v30  ;;  %v2231_v14 = vsel %vm11335_vm11, %v2226_v32, %v2230_v26  ;;  %v12927_v25 = vld [vmem:[#allocation3 + $0x170] sm:$0xf]  ;;  %v4600_v30 = vadd.f32 %v4599_v59, %v4511_v41  ;;  %v5325_v39 = vld [vmem:[#allocation2 + $0xc] sm:$0xf]  ;;  %v15085_v55 = vrot.slane %v12929_v45, 5 }
 0x1ce   : > { %v4774_v50 = vpop.f32.mrf.mxu3  ;;  %v4688_v21 = vpop.f32.mrf.mxu2  ;;  %10266 = vmatmul.msk.bf16.gmra.mxu0 %vm4447_vm0, %v9954_v22  ;;  %2414 = vst.msk [vmem:[#allocation3 + $0x198] sm:$0xf] %vm224_vm4, %v2231_v14  ;;  %v2241_v26 = vsel %vm11335_vm11, %v2236_v19, %v2240_v48  ;;  %v3414_v59 = vld [vmem:[#allocation2 + $0x84] sm:$0xe] }
 0x1cf   : > { %v5006_v9 = vshrl.u32 %v4973_v17, 16  ;;  %v4775_v58 = vadd.f32 %v4774_v50, %v4686_v44  ;;  %v5009_v44 = vshll.u32 %v4973_v17, 16  ;;  %v10857_v15 = vld [vmem:[#allocation3 + $0x180] sm:$0xf0]  ;;  %2750 = vst.msk [vmem:[#allocation3 + $0x198] sm:$0xf] %vm1430_vm12, %v2675_v40  ;;  %v4689_v32 = vadd.f32 %v4688_v21, %v4600_v30 }
 0x1d0   : > { %2415 = vst.msk [vmem:[#allocation3 + $0x1ac] sm:$0xf] %vm224_vm4, %v2241_v26  ;;  %v4513_v17 = vadd.f32 %v12747_v31, %v12493_v8  ;;  %v9986_v41 = vor.u32 %v10857_v15, %v12927_v25  ;;  %v2623_v48 = vsel %vm11776_vm15, %v9777_v1, %v15085_v55  ;;  %v9788_v8 = vrot.slane %v3414_v59, 9  ;;  %v1963_v40 = vld [vmem:[#allocation2 + $0x90] sm:$0xf] }
 0x1d1   : > { %v12932_v16 = vrot.slane %v5006_v9, 7  ;;  %v4864_v53 = vadd.f32 %v4863_v4, %v4775_v58  ;;  %v4601_v50 = vpop.f32.mrf.mxu1  ;;  %v9990_v9 = vor.u32 %v12921_v12, %v12923_v34  ;;  %2751 = vst.msk [vmem:[#allocation3 + $0x1ac] sm:$0xf] %vm1430_vm12, %v2677_v56  ;;  %v3415_v4 = vld [vmem:[#allocation2 + $0x88] sm:$0xf]  ;;  %2690 = vrot.lane.b32.xlu1 %v2623_v48, %s11174_s10  ;;  %v2243_v21 = vshrl.u32 %v1963_v40, 16  ;;  %v3300_v56 = vpop.permute.xlu1 %3299 }
 0x1d2   : > { %v3416_v58 = vld [vmem:[#allocation2 + $0x8c] sm:$0x1]  ;;  %v3548_v14 = vrot.slane %v3415_v4, 5  ;;  %v1964_v25 = vld [vmem:[#allocation2 + $0x94] sm:$0xf]  ;;  %v4602_v48 = vadd.f32 %v4601_v50, %v4513_v17  ;;  %v3302_v11 = vpop.permute.xlu2 %3301 }
 0x1d3   : > { %v5011_v7 = vor.u32 %v5009_v44, %v12932_v16  ;;  %v4942_v22 = vmax.f32 %v4864_v53, 0.0  ;;  %v3551_v34 = vrot.slane %v3416_v58, 5  ;;  %v2246_v44 = vshll.u32 %v1963_v40, 16  ;;  %v4866_v26 = vpop.f32.mrf.mxu0  ;;  %v5329_v59 = vld [vmem:[#allocation2 + $0x14] sm:$0x1] }
 0x1d4   : > { %v2252_v30 = vshll.u32 %v1964_v25, 16  ;;  %v5012_v1 = vrot.slane %v12932_v16, 4  ;;  %3375 = vst.msk [vmem:[#allocation3 + $0x19c] sm:$0xf] %vm1430_vm12, %v3300_v56  ;;  %v3550_v4 = vrot.slane %v3548_v14, 4 }
 0x1d5   : > { %v5326_v19 = vsel %vm11296_vm7, %v5011_v7, %v5325_v39  ;;  %v4974_v37 = vpack.c.bf16 %v4942_v22, %v4942_v22  ;;  %v3549_v39 = vsel %vm11776_vm15, %v9788_v8, %v3548_v14  ;;  %v1965_v7 = vld [vmem:[#allocation2 + $0x98] sm:$0x1]  ;;  %v9973_v22 = vld [vmem:[#allocation3 + $0x150] sm:$0xf]  ;;  %v2248_v40 = vrot.slane %v2246_v44, 5 }
 0x1d6   : > { %5327 = vst [vmem:[#allocation2 + $0xc] sm:$0xf] %v5326_v19  ;;  %v4777_v12 = vpop.f32.mrf.mxu3  ;;  %v4690_v58 = vpop.f32.mrf.mxu2  ;;  %v2245_v19 = vrot.slane %v2243_v21, 4  ;;  %v3552_v8 = vsel %vm11776_vm15, %v3550_v4, %v3551_v34  ;;  %v2254_v10 = vrot.slane %v2252_v30, 5  ;;  %v2262_v50 = vshll.u32 %v1965_v7, 16 }
 0x1d7   : > { %v5014_v53 = vshrl.u32 %v4974_v37, 16  ;;  %v4778_v15 = vadd.f32 %v4777_v12, %v4689_v32  ;;  %v5017_v13 = vshll.u32 %v4974_v37, 16  ;;  %3645 = vst.msk [vmem:[#allocation3 + $0x178] sm:$0xf] %vm224_vm4, %v3549_v39  ;;  %v2256_v32 = vshrl.u32 %v1964_v25, 16  ;;  %4816 = vmatmul.bf16.gmra.mxu3 %v9990_v9 }
 0x1d8   : > { %v10853_v12 = vld [vmem:[#allocation3 + $0x160] sm:$0xf0]  ;;  %v2249_v49 = vor.u32 %v2248_v40, %v2245_v19  ;;  %4727 = vmatmul.bf16.gmra.mxu2 %v9986_v41  ;;  %3376 = vst.msk [vmem:[#allocation3 + $0x1b0] sm:$0xf] %vm1430_vm12, %v3302_v11  ;;  %v4691_v44 = vadd.f32 %v4690_v58, %v4602_v48  ;;  %v3417_v41 = vld [vmem:[#allocation2 + $0x90] sm:$0xe]  ;;  %v2679_v40 = vpop.permute.xlu0 %2678 }
 0x1d9   : > { %v5016_v55 = vrot.slane %v5014_v53, 7  ;;  %v4867_v16 = vadd.f32 %v4866_v26, %v4778_v15  ;;  %v2785_v17 = vld [vmem:[#allocation2 + $0x9c] sm:$0xf]  ;;  %v4604_v21 = vpop.f32.mrf.mxu1  ;;  %3646 = vst.msk [vmem:[#allocation3 + $0x18c] sm:$0xf] %vm224_vm4, %v3552_v8  ;;  %v2258_v53 = vrot.slane %v2256_v32, 4  ;;  %v9974_v15 = vor.u32 %v10853_v12, %v9973_v22 }
 0x1da   : > { %v2250_v25 = vrot.slane %v2249_v49, 4  ;;  %2817 = vst.msk [vmem:[#allocation3 + $0x1c4] sm:$0xf] %vm224_vm4, %v2785_v17  ;;  %v2264_v26 = vrot.slane %v2262_v50, 5  ;;  %v3418_v39 = vld [vmem:[#allocation2 + $0x94] sm:$0xf]  ;;  %v2681_v17 = vpop.permute.xlu1 %2680 }
 0x1db   : > { %v5019_v56 = vor.u32 %v5017_v13, %v5016_v55  ;;  %v5021_v14 = vrot.slane %v5016_v55, 4  ;;  %v4943_v37 = vmax.f32 %v4867_v16, 0.0  ;;  %v2786_v55 = vld [vmem:[#allocation2 + $0xa0] sm:$0xf]  ;;  %v2259_v49 = vor.u32 %v2258_v53, %v2254_v10  ;;  %v4868_v22 = vpop.f32.mrf.mxu0  ;;  %v12971_v48 = vld [vmem:[#allocation3 + $0x198] sm:$0xf] }
 0x1dc   : > { %v2255_v9 = vsel %vm11335_vm11, %v2250_v25, %v2254_v10  ;;  %v3419_v4 = vld [vmem:[#allocation2 + $0x98] sm:$0x1]  ;;  %v9789_v12 = vrot.slane %v3417_v41, 9  ;;  %v4516_v10 = vadd.f32 %v12747_v31, %v12523_v24  ;;  %2818 = vst.msk [vmem:[#allocation3 + $0x1d8] sm:$0xf] %vm224_vm4, %v2786_v55 }
 0x1dd   : > { %v5020_v34 = vsel %vm11305_vm10, %v5012_v1, %v5019_v56  ;;  %v5330_v30 = vsel %vm11258_vm2, %v5021_v14, %v5329_v59  ;;  %v4975_v13 = vpack.c.bf16 %v4943_v37, %v4943_v37  ;;  %v12973_v59 = vld [vmem:[#allocation3 + $0x1a8] sm:$0xf0]  ;;  %v5332_v19 = vld [vmem:[#allocation2 + $0x18] sm:$0xf]  ;;  %2416 = vst.msk [vmem:[#allocation3 + $0x1c0] sm:$0xf] %vm224_vm4, %v2255_v9 }
 0x1de   : > { %5328 = vst.msk [vmem:[#allocation2 + $0x10] sm:$0xf] %vm224_vm4, %v5020_v34  ;;  %v4779_v11 = vpop.f32.mrf.mxu3  ;;  %v4693_v16 = vpop.f32.mrf.mxu2  ;;  %v2260_v32 = vrot.slane %v2259_v49, 4  ;;  %10267 = vmatmul.msk.bf16.gmra.mxu0 %vm4447_vm0, %v9974_v15  ;;  %v3555_v56 = vrot.slane %v3418_v39, 5  ;;  %v5504_v14 = vld [vmem:[#allocation2 + $0xc] sm:$0xf]  ;;  %v4518_v15 = vadd.f32 %v12747_v31, %v12552_v3 }
 0x1df   : > { %5331 = vst [vmem:[#allocation2 + $0x14] sm:$0x1] %v5330_v30  ;;  %v5023_v7 = vshrl.u32 %v4975_v13, 16  ;;  %v4780_v1 = vadd.f32 %v4779_v11, %v4691_v44  ;;  %v5026_v58 = vshll.u32 %v4975_v13, 16  ;;  %v12982_v37 = vld [vmem:[#allocation3 + $0x178] sm:$0xf]  ;;  %v4605_v30 = vadd.f32 %v4604_v21, %v4516_v10 }
 0x1e0   : > { %2752 = vst.msk [vmem:[#allocation3 + $0x1c0] sm:$0xf] %vm1430_vm12, %v2679_v40  ;;  %v10860_v44 = vld [vmem:[#allocation3 + $0x19c] sm:$0xf]  ;;  %v10007_v25 = vld [vmem:[#allocation3 + $0x1ac] sm:$0xf0]  ;;  %v2265_v53 = vsel %vm11335_vm11, %v2260_v32, %v2264_v26  ;;  %v10006_v26 = vor.u32 %v12973_v59, %v12971_v48  ;;  %v3556_v55 = vsel %vm11776_vm15, %v9789_v12, %v3555_v56 }
 0x1e1   : > { %v12979_v8 = vrot.slane %v5023_v7, 7  ;;  %v4869_v50 = vadd.f32 %v4868_v22, %v4780_v1  ;;  %v3558_v24 = vrot.slane %v3419_v4, 5  ;;  %v5574_v34 = vshrl.u32 %v5504_v14, 16  ;;  %v12990_v41 = vld [vmem:[#allocation3 + $0x188] sm:$0xf0]  ;;  %v4606_v11 = vpop.f32.mrf.mxu1 }
 0x1e2   : > { %2417 = vst.msk [vmem:[#allocation3 + $0x1d4] sm:$0xf] %vm224_vm4, %v2265_v53  ;;  %v3557_v3 = vrot.slane %v3555_v56, 4  ;;  %v1966_v31 = vld [vmem:[#allocation2 + $0x9c] sm:$0xf]  ;;  %v5577_v22 = vshll.u32 %v5504_v14, 16  ;;  %v4694_v4 = vadd.f32 %v4693_v16, %v4605_v30  ;;  %v9994_v12 = vor.u32 %v12990_v41, %v12982_v37 }
 0x1e3   : > { %v5028_v13 = vor.u32 %v5026_v58, %v12979_v8  ;;  %v4944_v9 = vmax.f32 %v4869_v50, 0.0  ;;  %v5029_v49 = vrot.slane %v12979_v8, 4  ;;  %2753 = vst.msk [vmem:[#allocation3 + $0x1d4] sm:$0xf] %vm1430_vm12, %v2681_v17  ;;  %v5576_v1 = vrot.slane %v5574_v34, 4 }
 0x1e4   : > { %3647 = vst.msk [vmem:[#allocation3 + $0x1a0] sm:$0xf] %vm224_vm4, %v3556_v55  ;;  %v3559_v48 = vsel %vm11776_vm15, %v3557_v3, %v3558_v24  ;;  %v5579_v8 = vrot.slane %v5577_v22, 5  ;;  %v1967_v14 = vld [vmem:[#allocation2 + $0xa0] sm:$0xf]  ;;  %v2267_v16 = vshrl.u32 %v1966_v31, 16 }
 0x1e5   : > { %v5333_v21 = vsel %vm11296_vm7, %v5028_v13, %v5332_v19  ;;  %v4976_v39 = vpack.c.bf16 %v4944_v9, %v4944_v9  ;;  %v5505_v7 = vld [vmem:[#allocation2 + $0x10] sm:$0xf]  ;;  %v10010_v19 = vor.u32 %v10860_v44, %v10007_v25  ;;  %3648 = vst.msk [vmem:[#allocation3 + $0x1b4] sm:$0xf] %vm224_vm4, %v3559_v48  ;;  %v2270_v13 = vshll.u32 %v1966_v31, 16 }
 0x1e6   : > { %5334 = vst [vmem:[#allocation2 + $0x18] sm:$0xf] %v5333_v21  ;;  %v4782_v58 = vpop.f32.mrf.mxu3  ;;  %v5583_v59 = vshll.u32 %v5505_v7, 16  ;;  %v5587_v40 = vshrl.u32 %v5505_v7, 16  ;;  %v5506_v32 = vld [vmem:[#allocation2 + $0x14] sm:$0x1]  ;;  %v5580_v30 = vor.u32 %v5579_v8, %v5576_v1  ;;  %v4695_v24 = vpop.f32.mrf.mxu2  ;;  %v4607_v48 = vadd.f32 %v4606_v11, %v4518_v15 }
 0x1e7   : > { %v5031_v10 = vshrl.u32 %v4976_v39, 16  ;;  %v5593_v56 = vshll.u32 %v5506_v32, 16  ;;  %v5034_v34 = vshll.u32 %v4976_v39, 16  ;;  %v5336_v9 = vld [vmem:[#allocation2 + $0x20] sm:$0x1]  ;;  %v4783_v55 = vadd.f32 %v4782_v58, %v4694_v4  ;;  %4821 = vmatmul.bf16.gmra.mxu3 %v10010_v19  ;;  %v3306_v58 = vpop.permute.xlu0 %3305  ;;  %v4871_v32 = vpop.f32.mrf.mxu0 }
 0x1e8   : > { %v5585_v50 = vrot.slane %v5583_v59, 5  ;;  %v5589_v17 = vrot.slane %v5587_v40, 4  ;;  %v2269_v21 = vrot.slane %v2267_v16, 4  ;;  %v2276_v37 = vshll.u32 %v1967_v14, 16  ;;  %4732 = vmatmul.bf16.gmra.mxu2 %v10006_v26  ;;  %v2470_v1 = vld [vmem:[#allocation2 + $0xbc] sm:$0x1] }
 0x1e9   : > { %v5033_v53 = vrot.slane %v5031_v10, 7  ;;  %v13007_v25 = vpop.f32.mrf.mxu1  ;;  %v5581_v7 = vrot.slane %v5580_v30, 4  ;;  %v2272_v22 = vrot.slane %v2270_v13, 5  ;;  %v5595_v40 = vrot.slane %v5593_v56, 5  ;;  %v1968_v8 = vld [vmem:[#allocation2 + $0xa4] sm:$0x1] }
 0x1ea   : > { %v5590_v3 = vor.u32 %v5589_v17, %v5585_v50  ;;  %v2278_v39 = vrot.slane %v2276_v37, 5  ;;  %v332_v17 = vld [vmem:[#allocation2 + $0xc8] sm:$0x1]  ;;  %v4872_v15 = vadd.f32 %v4871_v32, %v4783_v55  ;;  %v4696_v11 = vadd.f32 %v4695_v24, %v4607_v48  ;;  %v13019_v56 = vld [vmem:[#allocation2 + $0xc4] sm:$0xf] }
 0x1eb   : > { %v5036_v41 = vor.u32 %v5034_v34, %v5033_v53  ;;  %v5038_v44 = vrot.slane %v5033_v53, 4  ;;  %v5586_v26 = vsel %vm11335_vm11, %v5581_v7, %v5585_v50  ;;  %v2273_v10 = vor.u32 %v2272_v22, %v2269_v21  ;;  %v2869_v16 = vld [vmem:[#allocation2 + $0xc0] sm:$0xf]  ;;  %3378 = vst.msk [vmem:[#allocation3 + $0x1d8] sm:$0xf] %vm1430_vm12, %v3306_v58 }
 0x1ec   : > { %v5591_v59 = vrot.slane %v5590_v3, 4  ;;  %5937 = vrot.lane.b32.xlu2 %v5586_v26, %s11174_s10  ;;  %v15123_v53 = vrot.slane %v12929_v45, 5  ;;  %v2625_v30 = vrot.slane %v2470_v1, 5  ;;  %v2280_v13 = vshrl.u32 %v1967_v14, 16  ;;  %v13034_v7 = vld [vmem:[#allocation3 + $0x1b0] sm:$0xf0] }
 0x1ed   : > { %v5037_v31 = vsel %vm11305_vm10, %v5029_v49, %v5036_v41  ;;  %v5337_v4 = vsel %vm11258_vm2, %v5038_v44, %v5336_v9  ;;  %v2274_v50 = vrot.slane %v2273_v10, 4  ;;  %v4945_v9 = vmax.f32 %v4872_v15, 0.0  ;;  %v13032_v44 = vld [vmem:[#allocation3 + $0x1a0] sm:$0xf]  ;;  %v2788_v32 = vld [vmem:[#allocation2 + $0xac] sm:$0xf] }
 0x1ee   : > { %5335 = vst.msk [vmem:[#allocation2 + $0x1c] sm:$0xf] %vm224_vm4, %v5037_v31  ;;  %v4784_v19 = vpop.f32.mrf.mxu3  ;;  %v5596_v49 = vsel %vm11335_vm11, %v5591_v59, %v5595_v40  ;;  %v2624_v34 = vrot.slane %v15123_v53, 4  ;;  %v2286_v24 = vshll.u32 %v1968_v8, 16  ;;  %v333_v55 = vsel %vm11274_vm5, 0, %v332_v17  ;;  %10268 = vmatmul.msk.bf16.gmra.mxu0 %vm4447_vm0, %v9994_v12  ;;  %v3304_v41 = vpop.permute.xlu2 %3303 }
 0x1ef   : > { %5338 = vst [vmem:[#allocation2 + $0x20] sm:$0x1] %v5337_v4  ;;  %5939 = vrot.lane.b32.xlu0 %v5596_v49, %s11174_s10  ;;  %v2279_v3 = vsel %vm11335_vm11, %v2274_v50, %v2278_v39  ;;  %v2282_v21 = vrot.slane %v2280_v13, 4  ;;  %v3221_v37 = vshll.u32 %v13019_v56, 16  ;;  %v672_v45 = vrot.slane %v11861_v47, 4  ;;  %v2683_v40 = vpop.permute.xlu1 %2682  ;;  %v4698_v47 = vpop.f32.mrf.mxu2 }
 0x1f0   : > { %334 = vst [vmem:[#allocation2 + $0xc8] sm:$0x1] %v333_v55  ;;  %v4977_v14 = vpack.c.bf16 %v4945_v9, %v4945_v9  ;;  %v4785_v22 = vadd.f32 %v4784_v19, %v4696_v11  ;;  %v10025_v6 = vld [vmem:[#allocation3 + $0x1c0] sm:$0xf]  ;;  %v10867_v12 = vld [vmem:[#allocation3 + $0x1d0] sm:$0xf0]  ;;  %v2626_v1 = vsel %vm11776_vm15, %v2624_v34, %v2625_v30  ;;  %v4873_v49 = vpop.f32.mrf.mxu0  ;;  %v10014_v55 = vor.u32 %v13034_v7, %v13032_v44 }
 0x1f1   : > { %2418 = vst.msk [vmem:[#allocation3 + $0x1e8] sm:$0xf] %vm224_vm4, %v2279_v3  ;;  %v3212_v48 = vshrl.u32 %v2869_v16, 16  ;;  %v2787_v59 = vld [vmem:[#allocation2 + $0xa8] sm:$0xf]  ;;  %v2283_v31 = vor.u32 %v2282_v21, %v2278_v39  ;;  %v2288_v4 = vrot.slane %v2286_v24, 5  ;;  %v4611_v19 = vpop.f32.mrf.mxu1  ;;  %v10026_v3 = vor.u32 %v10867_v12, %v10025_v6 }
 0x1f2   : > { %3377 = vst.msk [vmem:[#allocation3 + $0x1c4] sm:$0xf] %vm1430_vm12, %v3304_v41  ;;  %v3215_v58 = vshll.u32 %v2869_v16, 16  ;;  %v13043_v26 = vld [vmem:[%s15079_s2] ss:$0 sm:$0xff]  ;;  %v5040_v8 = vshrl.u32 %v4977_v14, 16  ;;  %v4874_v13 = vadd.f32 %v4873_v49, %v4785_v22 }
 0x1f3   : > { %v4521_v10 = vadd.f32 %v13043_v26, %v12579_v29  ;;  %2754 = vst.msk [vmem:[#allocation3 + $0x1e8] sm:$0xf] %vm1430_vm12, %v2683_v40  ;;  %v13048_v17 = vrot.slane %v3221_v37, 5  ;;  %v3225_v15 = vshrl.u32 %v13019_v56, 16  ;;  %v5043_v11 = vshll.u32 %v4977_v14, 16  ;;  %v11012_v24 = vld [vmem:[%s15080_s3 + $0x38] sm:$0xff] }
 0x1f4   : > { %v5339_v39 = vld [vmem:[#allocation2 + $0x24] sm:$0xf]  ;;  %v2284_v16 = vrot.slane %v2283_v31, 4  ;;  %v3214_v50 = vrot.slane %v3212_v48, 4  ;;  %v3217_v53 = vrot.slane %v3215_v58, 5  ;;  %v4523_v34 = vadd.f32 %v13043_v26, %v12611_v62  ;;  %2692 = vrot.lane.b32.xlu2 %v2626_v1, %s11174_s10  ;;  %9089 = vmatpush.bf16.msrb.mxu1 %v11012_v24 }
 0x1f5   : > { %2819 = vst.msk [vmem:[#allocation3 + $0x1ec] sm:$0xf] %vm224_vm4, %v2787_v59  ;;  %v4610_v29 = vadd.f32 %v13007_v25, %v4521_v10  ;;  %v13055_v30 = vrot.slane %v5040_v8, 7  ;;  %v3420_v9 = vld [vmem:[#allocation2 + $0x9c] sm:$0xe]  ;;  %v4946_v22 = vmax.f32 %v4874_v13, 0.0 }
 0x1f6   : > { %v4787_v56 = vpop.f32.mrf.mxu3  ;;  %2820 = vst.msk [vmem:[#allocation3 + $0x200] sm:$0xf] %vm224_vm4, %v2788_v32  ;;  %v10027_v62 = vld [vmem:[#allocation3 + $0x1d4] sm:$0xf0]  ;;  %v2289_v25 = vsel %vm11335_vm11, %v2284_v16, %v2288_v4  ;;  %v3218_v21 = vor.u32 %v3217_v53, %v3214_v50  ;;  %v3421_v37 = vld [vmem:[#allocation2 + $0xa0] sm:$0xf]  ;;  %v4612_v1 = vadd.f32 %v4611_v19, %v4523_v34 }
 0x1f7   : > { %v3422_v41 = vld [vmem:[#allocation2 + $0xa4] sm:$0x1]  ;;  %v5045_v14 = vor.u32 %v5043_v11, %v13055_v30  ;;  %v4699_v48 = vadd.f32 %v4698_v47, %v4610_v29  ;;  %2419 = vst.msk [vmem:[#allocation3 + $0x1fc] sm:$0xf] %vm224_vm4, %v2289_v25  ;;  %v832_v59 = vld [vmem:[#allocation2 + $0xc8] sm:$0x1]  ;;  %v4978_v47 = vpack.c.bf16 %v4946_v22, %v4946_v22  ;;  %v4700_v25 = vpop.f32.mrf.mxu2 }
 0x1f8   : > { %v3227_v40 = vrot.slane %v3225_v15, 4  ;;  %v833_v6 = vsel %vm11258_vm2, %v672_v45, %v832_v59  ;;  %v3219_v12 = vrot.slane %v3218_v21, 4  ;;  %v9790_v31 = vrot.slane %v3420_v9, 9  ;;  %v5507_v58 = vld [vmem:[#allocation2 + $0x18] sm:$0xf]  ;;  %v11011_v4 = vld [vmem:[%s15080_s3 + $0x30] sm:$0xff]  ;;  %4737 = vmatmul.bf16.gmra.mxu2 %v10026_v3 }
 0x1f9   : > { %v5340_v32 = vsel %vm11296_vm7, %v5045_v14, %v5339_v39  ;;  %v10865_v10 = vld [vmem:[#allocation3 + $0x1c4] sm:$0xf]  ;;  %834 = vst [vmem:[#allocation2 + $0xc8] sm:$0x1] %v833_v6  ;;  %v3562_v8 = vrot.slane %v3421_v37, 5  ;;  %v3565_v15 = vrot.slane %v3422_v41, 5  ;;  %9090 = vmatpush.bf16.msrb.mxu1 %v11011_v4  ;;  %v4788_v37 = vadd.f32 %v4787_v56, %v4699_v48  ;;  %v13088_v22 = vpop.f32.mrf.mxu1 }
 0x1fa   : > { %5341 = vst [vmem:[#allocation2 + $0x24] sm:$0xf] %v5340_v32  ;;  %v10030_v11 = vor.u32 %v10865_v10, %v10027_v62  ;;  %v3224_v45 = vsel %vm11335_vm11, %v3219_v12, %v13048_v17  ;;  %v5508_v19 = vld [vmem:[#allocation2 + $0x1c] sm:$0xf]  ;;  %v5598_v49 = vshrl.u32 %v5507_v58, 16  ;;  %v5601_v16 = vshll.u32 %v5507_v58, 16 }
 0x1fb   : > { %v5046_v50 = vrot.slane %v13055_v30, 4  ;;  %v5048_v53 = vshrl.u32 %v4978_v47, 16  ;;  %v3228_v39 = vor.u32 %v3227_v40, %v13048_v17  ;;  %3315 = vrot.lane.b32.xlu0 %v3224_v45, %s11174_s10  ;;  %v3563_v34 = vsel %vm11776_vm15, %v9790_v31, %v3562_v8  ;;  %v5437_v29 = vld [vmem:[#allocation2] sm:$0xf]  ;;  %v11010_v41 = vld [vmem:[%s15080_s3 + $0x28] sm:$0xff] }
 0x1fc   : > { %v5509_v13 = vld [vmem:[#allocation2 + $0x20] sm:$0x1]  ;;  %4826 = vmatmul.bf16.gmra.mxu3 %v10030_v11  ;;  %v3564_v9 = vrot.slane %v3562_v8, 4  ;;  %3649 = vst.msk [vmem:[#allocation3 + $0x1c8] sm:$0xf] %vm224_vm4, %v3563_v34  ;;  %v5600_v24 = vrot.slane %v5598_v49, 4  ;;  %v3308_v56 = vpop.permute.xlu0 %3307  ;;  %v4701_v11 = vadd.f32 %v4700_v25, %v4612_v1  ;;  %v4876_v44 = vpop.f32.mrf.mxu0 }
 0x1fd   : > { %v5603_v3 = vrot.slane %v5601_v16, 5  ;;  %v5607_v62 = vshll.u32 %v5508_v19, 16  ;;  %v5050_v30 = vrot.slane %v5048_v53, 7  ;;  %v5051_v21 = vshll.u32 %v4978_v47, 16  ;;  %5469 = vst.msk [vmem:[#allocation3] sm:$0xf] %vm224_vm4, %v5437_v29  ;;  %9091 = vmatpush.bf16.msrb.mxu1 %v11010_v41  ;;  %v2685_v47 = vpop.permute.xlu2 %2684  ;;  %v3310_v16 = vpop.permute.xlu1 %3309 }
 0x1fe   : > { %v5611_v17 = vshrl.u32 %v5508_v19, 16  ;;  %v5343_v14 = vld [vmem:[#allocation2 + $0x2c] sm:$0x1]  ;;  %v3566_v59 = vsel %vm11776_vm15, %v3564_v9, %v3565_v15  ;;  %v4789_v12 = vpop.f32.mrf.mxu3  ;;  %v5617_v31 = vshll.u32 %v5509_v13, 16  ;;  %v1969_v32 = vld [vmem:[#allocation2 + $0xa8] sm:$0xf]  ;;  %10269 = vmatmul.msk.bf16.gmra.mxu0 %vm4447_vm0, %v10014_v55  ;;  %v4877_v1 = vadd.f32 %v4876_v44, %v4788_v37 }
 0x1ff   : > { %v5604_v40 = vor.u32 %v5603_v3, %v5600_v24  ;;  %v5609_v6 = vrot.slane %v5607_v62, 5  ;;  %v5053_v58 = vor.u32 %v5051_v21, %v5050_v30  ;;  %v5055_v4 = vrot.slane %v5050_v30, 4  ;;  %3650 = vst.msk [vmem:[#allocation3 + $0x1dc] sm:$0xf] %vm224_vm4, %v3566_v59  ;;  %v1970_v55 = vld [vmem:[#allocation2 + $0xac] sm:$0xf] }
 0x200   : > { %v5613_v48 = vrot.slane %v5611_v17, 4  ;;  %v2871_v10 = vld [vmem:[#allocation2 + $0xc8] sm:$0x1]  ;;  %v3229_v8 = vrot.slane %v3228_v39, 4  ;;  %3379 = vst.msk [vmem:[#allocation3 + $0x1ec] sm:$0xf] %vm1430_vm12, %v3308_v56  ;;  %v4790_v37 = vadd.f32 %v4789_v12, %v4701_v11  ;;  %v4703_v12 = vpop.f32.mrf.mxu2 }
 0x201   : > { %v5605_v15 = vrot.slane %v5604_v40, 4  ;;  %v5054_v45 = vsel %vm11305_vm10, %v5046_v50, %v5053_v58  ;;  %v5344_v19 = vsel %vm11258_vm2, %v5055_v4, %v5343_v14  ;;  %2755 = vst.msk [vmem:[#allocation3 + $0x1fc] sm:$0xf] %vm1430_vm12, %v2685_v47  ;;  %v3231_v49 = vshll.u32 %v2871_v10, 16  ;;  %v11009_v53 = vld [vmem:[%s15080_s3 + $0x20] sm:$0xff]  ;;  %v11008_v59 = vld [vmem:[%s15080_s3 + $0x18] sm:$0xff] }
 0x202   : > { %v5614_v7 = vor.u32 %v5613_v48, %v5609_v6  ;;  %5342 = vst.msk [vmem:[#allocation2 + $0x28] sm:$0xf] %vm224_vm4, %v5054_v45  ;;  %v5438_v39 = vld [vmem:[#allocation2 + $0x4] sm:$0xf]  ;;  %v2291_v34 = vshrl.u32 %v1969_v32, 16  ;;  %v2294_v29 = vshll.u32 %v1969_v32, 16  ;;  %9092 = vmatpush.bf16.msrb.mxu1 %v11009_v53  ;;  %v4526_v10 = vadd.f32 %v13043_v26, %v12645_v52 }
 0x203   : > { %v5610_v50 = vsel %vm11335_vm11, %v5605_v15, %v5609_v6  ;;  %5345 = vst [vmem:[#allocation2 + $0x2c] sm:$0x1] %v5344_v19  ;;  %v3233_v13 = vrot.slane %v3231_v49, 5  ;;  %v5619_v24 = vrot.slane %v5617_v31, 5  ;;  %v4947_v3 = vmax.f32 %v4877_v1, 0.0  ;;  %v13124_v15 = vpop.f32.mrf.mxu1 }
 0x204   : > { %5941 = vrot.lane.b32.xlu2 %v5610_v50, %s11174_s10  ;;  %v5615_v9 = vrot.slane %v5614_v7, 4  ;;  %3380 = vst.msk [vmem:[#allocation3 + $0x200] sm:$0xf] %vm1430_vm12, %v3310_v16  ;;  %v2293_v62 = vrot.slane %v2291_v34, 4  ;;  %v2296_v25 = vrot.slane %v2294_v29, 5  ;;  %v2300_v30 = vshll.u32 %v1970_v55, 16  ;;  %v4878_v7 = vpop.f32.mrf.mxu0 }
 0x205   : > { %v3234_v21 = vsel %vm11335_vm11, %v3229_v8, %v3233_v13  ;;  %5470 = vst.msk [vmem:[#allocation3 + $0x14] sm:$0xf] %vm224_vm4, %v5438_v39  ;;  %v1971_v41 = vld [vmem:[#allocation2 + $0xb0] sm:$0x1]  ;;  %v2304_v14 = vshrl.u32 %v1970_v55, 16  ;;  %v4979_v40 = vpack.c.bf16 %v4947_v3, %v4947_v3  ;;  %v4879_v13 = vadd.f32 %v4878_v7, %v4790_v37 }
 0x206   : > { %v5620_v17 = vsel %vm11335_vm11, %v5615_v9, %v5619_v24  ;;  %3317 = vrot.lane.b32.xlu1 %v3234_v21, %s11174_s10  ;;  %v2297_v6 = vor.u32 %v2296_v25, %v2293_v62  ;;  %v2302_v31 = vrot.slane %v2300_v30, 5  ;;  %v10045_v58 = vld [vmem:[#allocation3 + $0x1e8] sm:$0xf]  ;;  %v2310_v4 = vshll.u32 %v1971_v41, 16  ;;  %v2789_v56 = vld [vmem:[#allocation2 + $0xb4] sm:$0xf]  ;;  %9093 = vmatpush.bf16.msrb.mxu1 %v11008_v59  ;;  %v4792_v49 = vpop.f32.mrf.mxu3 }
 0x207   : > { %5943 = vrot.lane.b32.xlu0 %v5620_v17, %s11174_s10  ;;  %v10033_v48 = vld [vmem:[#allocation3 + $0x1c8] sm:$0xf]  ;;  %v10868_v32 = vld [vmem:[#allocation3 + $0x1d8] sm:$0xf0]  ;;  %v2306_v47 = vrot.slane %v2304_v14, 4  ;;  %v5057_v8 = vshrl.u32 %v4979_v40, 16  ;;  %v5936_v29 = vpop.permute.xlu0 %5935  ;;  %v4615_v3 = vadd.f32 %v13088_v22, %v4526_v10  ;;  %v2687_v14 = vpop.permute.xlu1 %2686 }
 0x208   : > { %2821 = vst.msk [vmem:[#allocation3 + $0x214] sm:$0xf] %vm224_vm4, %v2789_v56  ;;  %v2298_v11 = vrot.slane %v2297_v6, 4  ;;  %v10872_v45 = vld [vmem:[#allocation3 + $0x1f8] sm:$0xf0]  ;;  %v5060_v16 = vshll.u32 %v4979_v40, 16  ;;  %v10034_v17 = vor.u32 %v10868_v32, %v10033_v48 }
 0x209   : > { %v10870_v19 = vld [vmem:[#allocation3 + $0x1ec] sm:$0xf]  ;;  %v5346_v44 = vld [vmem:[#allocation2 + $0x30] sm:$0xf]  ;;  %v10046_v55 = vor.u32 %v10872_v45, %v10045_v58  ;;  %v2307_v53 = vor.u32 %v2306_v47, %v2302_v31  ;;  %v2312_v1 = vrot.slane %v2310_v4, 5  ;;  %v13126_v34 = vrot.slane %v5057_v8, 7  ;;  %v5934_v41 = vpop.permute.xlu2 %5933 }
 0x20a   : > { %v2790_v50 = vld [vmem:[#allocation2 + $0xb8] sm:$0xf]  ;;  %v3423_v39 = vld [vmem:[#allocation2 + $0xa8] sm:$0xe]  ;;  %v2303_v52 = vsel %vm11335_vm11, %v2298_v11, %v2302_v31  ;;  %v3424_v9 = vld [vmem:[#allocation2 + $0xac] sm:$0xf]  ;;  %v4704_v6 = vadd.f32 %v4703_v12, %v4615_v3 }
 0x20b   : > { %2822 = vst.msk [vmem:[#allocation3 + $0x228] sm:$0xf] %vm224_vm4, %v2790_v50  ;;  %v9791_v24 = vrot.slane %v3423_v39, 9  ;;  %4742 = vmatmul.bf16.gmra.mxu2 %v10046_v55  ;;  %v10047_v62 = vld [vmem:[#allocation3 + $0x1fc] sm:$0xf0]  ;;  %v2308_v25 = vrot.slane %v2307_v53, 4  ;;  %v5062_v21 = vor.u32 %v5060_v16, %v13126_v34  ;;  %v4705_v55 = vpop.f32.mrf.mxu2  ;;  %v4528_v53 = vadd.f32 %v13043_v26, %v12683_v5 }
 0x20c   : > { %6030 = vst.msk [vmem:[#allocation3 + $0x14] sm:$0xf] %vm1430_vm12, %v5936_v29  ;;  %v3569_v30 = vrot.slane %v3424_v9, 5  ;;  %v4948_v37 = vmax.f32 %v4879_v13, 0.0  ;;  %v10050_v59 = vor.u32 %v10870_v19, %v10047_v62  ;;  %v3425_v40 = vld [vmem:[#allocation2 + $0xb0] sm:$0x1]  ;;  %v13156_v9 = vpop.f32.mrf.mxu1 }
 0x20d   : > { %2420 = vst.msk [vmem:[#allocation3 + $0x210] sm:$0xf] %vm224_vm4, %v2303_v52  ;;  %v2313_v22 = vsel %vm11335_vm11, %v2308_v25, %v2312_v1  ;;  %v5510_v4 = vld [vmem:[#allocation2 + $0x24] sm:$0xf]  ;;  %v11007_v56 = vld [vmem:[%s15080_s3 + $0x10] sm:$0xff]  ;;  %v5347_v48 = vsel %vm11296_vm7, %v5062_v21, %v5346_v44  ;;  %v3572_v12 = vrot.slane %v3425_v40, 5  ;;  %v4793_v1 = vadd.f32 %v4792_v49, %v4704_v6 }
 0x20e   : > { %6029 = vst.msk [vmem:[#allocation3] sm:$0xf] %vm1430_vm12, %v5934_v41  ;;  %v3570_v31 = vsel %vm11776_vm15, %v9791_v24, %v3569_v30  ;;  %v3571_v58 = vrot.slane %v3569_v30, 4  ;;  %v4980_v32 = vpack.c.bf16 %v4948_v37, %v4948_v37  ;;  %4831 = vmatmul.bf16.gmra.mxu3 %v10050_v59  ;;  %v5511_v47 = vld [vmem:[#allocation2 + $0x28] sm:$0xf]  ;;  %v5622_v10 = vshrl.u32 %v5510_v4, 16  ;;  %9094 = vmatpush.bf16.msrb.mxu1 %v11007_v56  ;;  %v4794_v24 = vpop.f32.mrf.mxu3 }
 0x20f   : > { %2756 = vst.msk [vmem:[#allocation3 + $0x210] sm:$0xf] %vm1430_vm12, %v2687_v14  ;;  %v5625_v8 = vshll.u32 %v5510_v4, 16  ;;  %v5631_v11 = vshll.u32 %v5511_v47, 16  ;;  %v5635_v45 = vshrl.u32 %v5511_v47, 16  ;;  %v11006_v19 = vld [vmem:[%s15080_s3 + $0x8] sm:$0xff]  ;;  %10270 = vmatmul.msk.bf16.gmra.mxu0 %vm4447_vm0, %v10034_v17  ;;  %v4617_v25 = vadd.f32 %v13124_v15, %v4528_v53 }
 0x210   : > { %5348 = vst [vmem:[#allocation2 + $0x30] sm:$0xf] %v5347_v48  ;;  %v5065_v16 = vshrl.u32 %v4980_v32, 16  ;;  %v3573_v44 = vsel %vm11776_vm15, %v3571_v58, %v3572_v12  ;;  %v5624_v7 = vrot.slane %v5622_v10, 4  ;;  %v5512_v29 = vld [vmem:[#allocation2 + $0x2c] sm:$0x1] }
 0x211   : > { %2421 = vst.msk [vmem:[#allocation3 + $0x224] sm:$0xf] %vm224_vm4, %v2313_v22  ;;  %v5627_v50 = vrot.slane %v5625_v8, 5  ;;  %v5633_v39 = vrot.slane %v5631_v11, 5  ;;  %v5068_v13 = vshll.u32 %v4980_v32, 16  ;;  %v5637_v3 = vrot.slane %v5635_v45, 4  ;;  %v2689_v14 = vpop.permute.xlu2 %2688  ;;  %v3312_v37 = vpop.permute.xlu0 %3311 }
 0x212   : > { %3651 = vst.msk [vmem:[#allocation3 + $0x1f0] sm:$0xf] %vm224_vm4, %v3570_v31  ;;  %v5067_v52 = vrot.slane %v5065_v16, 7  ;;  %v5641_v62 = vshll.u32 %v5512_v29, 16  ;;  %v5350_v30 = vld [vmem:[#allocation2 + $0x38] sm:$0x1]  ;;  %9095 = vmatpush.bf16.msrb.mxu1 %v11006_v19  ;;  %v4706_v31 = vadd.f32 %v4705_v55, %v4617_v25 }
 0x213   : > { %3652 = vst.msk [vmem:[#allocation3 + $0x204] sm:$0xf] %vm224_vm4, %v3573_v44  ;;  %v5628_v21 = vor.u32 %v5627_v50, %v5624_v7  ;;  %v11005_v5 = vld [vmem:[%s15080_s3] sm:$0xff]  ;;  %v5063_v49 = vrot.slane %v13126_v34, 4  ;;  %v5638_v59 = vor.u32 %v5637_v3, %v5633_v39  ;;  %v3426_v40 = vld [vmem:[#allocation2 + $0xb4] sm:$0xe] }
 0x214   : > { %v5070_v17 = vor.u32 %v5068_v13, %v5067_v52  ;;  %v5072_v41 = vrot.slane %v5067_v52, 4  ;;  %v3427_v6 = vld [vmem:[#allocation2 + $0xb8] sm:$0xf]  ;;  %2757 = vst.msk [vmem:[#allocation3 + $0x224] sm:$0xf] %vm1430_vm12, %v2689_v14  ;;  %v4881_v22 = vpop.f32.mrf.mxu0  ;;  %v5643_v58 = vrot.slane %v5641_v62, 5  ;;  %v3314_v48 = vpop.permute.xlu1 %3313  ;;  %v4795_v29 = vadd.f32 %v4794_v24, %v4706_v31 }
 0x215   : > { %v5629_v15 = vrot.slane %v5628_v21, 4  ;;  %v3428_v4 = vld [vmem:[#allocation2 + $0xbc] sm:$0x1]  ;;  %3381 = vst.msk [vmem:[#allocation3 + $0x214] sm:$0xf] %vm1430_vm12, %v3312_v37  ;;  %v4882_v32 = vadd.f32 %v4881_v22, %v4793_v1  ;;  %v5639_v12 = vrot.slane %v5638_v59, 4 }
 0x216   : > { %v5071_v56 = vsel %vm11305_vm10, %v5063_v49, %v5070_v17  ;;  %v5351_v34 = vsel %vm11258_vm2, %v5072_v41, %v5350_v30  ;;  %v9792_v8 = vrot.slane %v3426_v40, 9  ;;  %v3576_v11 = vrot.slane %v3427_v6, 5  ;;  %9096 = vmatpush.bf16.msrb.mxu1 %v11005_v5  ;;  %v10325_v45 = vld [vmem:[#allocation3] sm:$0xf]  ;;  %v10065_v44 = vld [vmem:[#allocation3 + $0x210] sm:$0xf]  ;;  %v13180_v52 = vpop.f32.mrf.mxu2  ;;  %v13183_v41 = vpop.f32.mrf.mxu1 }
 0x217   : > { %v5513_v47 = vld [vmem:[#allocation2 + $0x30] sm:$0xf]  ;;  %5349 = vst.msk [vmem:[#allocation2 + $0x34] sm:$0xf] %vm224_vm4, %v5071_v56  ;;  %v5634_v10 = vsel %vm11335_vm11, %v5629_v15, %v5633_v39  ;;  %v4949_v19 = vmax.f32 %v4882_v32, 0.0  ;;  %v5644_v16 = vsel %vm11335_vm11, %v5639_v12, %v5643_v58  ;;  %v3579_v7 = vrot.slane %v3428_v4, 5  ;;  %v13185_v37 = vpop.f32.mrf.mxu3 }
 0x218   : > { %5352 = vst [vmem:[#allocation2 + $0x38] sm:$0x1] %v5351_v34  ;;  %5945 = vrot.lane.b32.xlu1 %v5634_v10, %s11174_s10  ;;  %v5646_v55 = vshrl.u32 %v5513_v47, 16  ;;  %5947 = vrot.lane.b32.xlu2 %v5644_v16, %s11174_s10  ;;  %v3577_v50 = vsel %vm11776_vm15, %v9792_v8, %v3576_v11  ;;  %v3578_v13 = vrot.slane %v3576_v11, 4  ;;  %v10927_v3 = vld [vmem:[#allocation3 + $0x10] sm:$0xf0] }
 0x219   : > { %3382 = vst.msk [vmem:[#allocation3 + $0x228] sm:$0xf] %vm1430_vm12, %v3314_v48  ;;  %v10053_v53 = vld [vmem:[#allocation3 + $0x1f0] sm:$0xf]  ;;  %v4981_v39 = vpack.c.bf16 %v4949_v19, %v4949_v19  ;;  %v5649_v25 = vshll.u32 %v5513_v47, 16  ;;  %v10326_v30 = vor.u32 %v10927_v3, %v10325_v45 }
 0x21a   : > { %v10873_v1 = vld [vmem:[#allocation3 + $0x200] sm:$0xf0]  ;;  %3653 = vst.msk [vmem:[#allocation3 + $0x218] sm:$0xf] %vm224_vm4, %v3577_v50  ;;  %v5648_v62 = vrot.slane %v5646_v55, 4  ;;  %v3580_v24 = vsel %vm11776_vm15, %v3578_v13, %v3579_v7  ;;  %v4531_v55 = vadd.f32 %v13043_v26, %v12716_v63 }
 0x21b   : > { %v5439_v21 = vld [vmem:[#allocation2 + $0xc] sm:$0xf]  ;;  %v5441_v5 = vld [vmem:[#allocation2 + $0x18] sm:$0xf]  ;;  %v5074_v49 = vshrl.u32 %v4981_v39, 16  ;;  %v10054_v17 = vor.u32 %v10873_v1, %v10053_v53  ;;  %v5651_v15 = vrot.slane %v5649_v25, 5  ;;  %9097 = vmatmul.bf16.vlgmr.msrb.gmra.mxu1 %v10326_v30 }
 0x21c   : > { %v10877_v14 = vld [vmem:[#allocation3 + $0x220] sm:$0xf0]  ;;  %5471 = vst.msk [vmem:[#allocation3 + $0x28] sm:$0xf] %vm224_vm4, %v5439_v21  ;;  %v4883_v40 = vpop.f32.mrf.mxu0  ;;  %v10875_v22 = vld [vmem:[#allocation3 + $0x214] sm:$0xf] }
 0x21d   : > { %v5353_v59 = vld [vmem:[#allocation2 + $0x3c] sm:$0xf]  ;;  %v10066_v6 = vor.u32 %v10877_v14, %v10065_v44  ;;  %3654 = vst.msk [vmem:[#allocation3 + $0x22c] sm:$0xf] %vm224_vm4, %v3580_v24  ;;  %v5076_v31 = vrot.slane %v5074_v49, 7  ;;  %v5077_v58 = vshll.u32 %v4981_v39, 16  ;;  %v4884_v4 = vadd.f32 %v4883_v40, %v4795_v29 }
 0x21e   : > { %v5514_v56 = vld [vmem:[#allocation2 + $0x34] sm:$0xf]  ;;  %5473 = vst.msk [vmem:[#allocation3 + $0x50] sm:$0xf] %vm224_vm4, %v5441_v5  ;;  %v5652_v34 = vor.u32 %v5651_v15, %v5648_v62  ;;  %v5440_v47 = vld [vmem:[#allocation2 + $0x10] sm:$0xf]  ;;  %v4710_v50 = vpop.f32.mrf.mxu2  ;;  %v4620_v62 = vadd.f32 %v13156_v9, %v4531_v55  ;;  %v4624_v24 = vpop.f32.mrf.mxu1 }
 0x21f   : > { %4747 = vmatmul.bf16.gmra.mxu2 %v10066_v6  ;;  %v5655_v48 = vshll.u32 %v5514_v56, 16  ;;  %v5659_v32 = vshrl.u32 %v5514_v56, 16  ;;  %v5515_v12 = vld [vmem:[#allocation2 + $0x38] sm:$0x1]  ;;  %v5079_v10 = vor.u32 %v5077_v58, %v5076_v31  ;;  %10271 = vmatmul.msk.bf16.gmra.mxu0 %vm4447_vm0, %v10054_v17  ;;  %v4950_v8 = vmax.f32 %v4884_v4, 0.0  ;;  %v4799_v63 = vpop.f32.mrf.mxu3 }
 0x220   : > { %v10067_v11 = vld [vmem:[#allocation3 + $0x224] sm:$0xf0]  ;;  %v5665_v45 = vshll.u32 %v5515_v12, 16  ;;  %v5653_v16 = vrot.slane %v5652_v34, 4  ;;  %5472 = vst.msk [vmem:[#allocation3 + $0x3c] sm:$0xf] %vm224_vm4, %v5440_v47  ;;  %v4709_v14 = vadd.f32 %v13180_v52, %v4620_v62  ;;  %v4533_v4 = vadd.f32 %v13043_v26, %v12762_v46 }
 0x221   : > { %v10070_v19 = vor.u32 %v10875_v22, %v10067_v11  ;;  %v5657_v44 = vrot.slane %v5655_v48, 5  ;;  %v5661_v7 = vrot.slane %v5659_v32, 4  ;;  %v5354_v53 = vsel %vm11296_vm7, %v5079_v10, %v5353_v59  ;;  %v5444_v13 = vld [vmem:[#allocation2 + $0x28] sm:$0xf]  ;;  %v5442_v3 = vld [vmem:[#allocation2 + $0x1c] sm:$0xf] }
 0x222   : > { %v4982_v1 = vpack.c.bf16 %v4950_v8, %v4950_v8  ;;  %5355 = vst [vmem:[#allocation2 + $0x3c] sm:$0xf] %v5354_v53  ;;  %v5667_v21 = vrot.slane %v5665_v45, 5  ;;  %v5443_v5 = vld [vmem:[#allocation2 + $0x24] sm:$0xf]  ;;  %v5080_v40 = vrot.slane %v5076_v31, 4  ;;  %v4798_v34 = vadd.f32 %v13185_v37, %v4709_v14 }
 0x223   : > { %4836 = vmatmul.bf16.gmra.mxu3 %v10070_v19  ;;  %v5658_v39 = vsel %vm11335_vm11, %v5653_v16, %v5657_v44  ;;  %v5662_v29 = vor.u32 %v5661_v7, %v5657_v44  ;;  %5476 = vst.msk [vmem:[#allocation3 + $0x8c] sm:$0xf] %vm224_vm4, %v5444_v13  ;;  %v5357_v59 = vld [vmem:[#allocation2 + $0x44] sm:$0x1]  ;;  %v10073_v15 = vld [vmem:[#allocation3 + $0x218] sm:$0xf]  ;;  %v4622_v47 = vadd.f32 %v13183_v41, %v4533_v4 }
 0x224   : > { %v5082_v25 = vshrl.u32 %v4982_v1, 16  ;;  %5949 = vrot.lane.b32.xlu0 %v5658_v39, %s11174_s10  ;;  %5474 = vst.msk [vmem:[#allocation3 + $0x64] sm:$0xf] %vm224_vm4, %v5442_v3  ;;  %v5085_v17 = vshll.u32 %v4982_v1, 16  ;;  %v10878_v58 = vld [vmem:[#allocation3 + $0x228] sm:$0xf0]  ;;  %v4536_v53 = vadd.f32 %v13043_v26, %v12792_v20 }
 0x225   : > { %v5663_v30 = vrot.slane %v5662_v29, 4  ;;  %5475 = vst.msk [vmem:[#allocation3 + $0x78] sm:$0xf] %vm224_vm4, %v5443_v5  ;;  %v5445_v12 = vld [vmem:[#allocation2 + $0x30] sm:$0xf]  ;;  %v10074_v10 = vor.u32 %v10878_v58, %v10073_v15  ;;  %v4711_v44 = vadd.f32 %v4710_v50, %v4622_v47 }
 0x226   : > { %v5084_v49 = vrot.slane %v5082_v25, 7  ;;  %5477 = vst.msk [vmem:[#allocation3 + $0xa0] sm:$0xf] %vm224_vm4, %v5445_v12  ;;  %v4626_v7 = vpop.f32.mrf.mxu1  ;;  %v5446_v62 = vld [vmem:[#allocation2 + $0x34] sm:$0xf]  ;;  %v4625_v25 = vadd.f32 %v4624_v24, %v4536_v53 }
 0x227   : > { %v5668_v9 = vsel %vm11335_vm11, %v5663_v30, %v5667_v21  ;;  %v4800_v1 = vadd.f32 %v4799_v63, %v4711_v44  ;;  %5478 = vst.msk [vmem:[#allocation3 + $0xb4] sm:$0xf] %vm224_vm4, %v5446_v62 }
 0x228   : > { %v5087_v6 = vor.u32 %v5085_v17, %v5084_v49  ;;  %v5089_v22 = vrot.slane %v5084_v49, 4  ;;  %5951 = vrot.lane.b32.xlu1 %v5668_v9, %s11174_s10 }
 0x229   : > { %v5516_v48 = vld [vmem:[#allocation2 + $0x3c] sm:$0xf]  ;;  %v4713_v8 = vpop.f32.mrf.mxu2 }
 0x22a   : > { %v5088_v52 = vsel %vm11305_vm10, %v5080_v40, %v5087_v6  ;;  %v5358_v56 = vsel %vm11258_vm2, %v5089_v22, %v5357_v59  ;;  %v5670_v31 = vshrl.u32 %v5516_v48, 16  ;;  %v5673_v32 = vshll.u32 %v5516_v48, 16  ;;  %v4802_v11 = vpop.f32.mrf.mxu3  ;;  %v5360_v6 = vld [vmem:[#allocation2 + $0x48] sm:$0xf]  ;;  %v5447_v47 = vld [vmem:[#allocation2 + $0x3c] sm:$0xf] }
 0x22b   : > { %5356 = vst.msk [vmem:[#allocation2 + $0x40] sm:$0xf] %vm224_vm4, %v5088_v52  ;;  %v4886_v46 = vpop.f32.mrf.mxu0  ;;  %v4714_v63 = vadd.f32 %v4713_v8, %v4625_v25 }
 0x22c   : > { %5359 = vst [vmem:[#allocation2 + $0x44] sm:$0x1] %v5358_v56  ;;  %v5672_v45 = vrot.slane %v5670_v31, 4  ;;  %v5675_v19 = vrot.slane %v5673_v32, 5  ;;  %v4887_v16 = vadd.f32 %v4886_v46, %v4798_v34  ;;  %v4538_v56 = vadd.f32 %v13043_v26, %v12829_v35 }
 0x22d   : > { %v4803_v32 = vadd.f32 %v4802_v11, %v4714_v63  ;;  %5479 = vst.msk [vmem:[#allocation3 + $0xc8] sm:$0xf] %vm224_vm4, %v5447_v47 }
 0x22e   : > { %v4951_v37 = vmax.f32 %v4887_v16, 0.0  ;;  %v5676_v55 = vor.u32 %v5675_v19, %v5672_v45 }
 0x22f   : > { %10272 = vmatmul.msk.bf16.gmra.mxu0 %vm4447_vm0, %v10074_v10  ;;  %v4627_v10 = vadd.f32 %v4626_v7, %v4538_v56  ;;  %v4541_v7 = vadd.f32 %v13043_v26, %v12858_v38 }
 0x230   : > { %v4983_v41 = vpack.c.bf16 %v4951_v37, %v4951_v37  ;;  %v5677_v5 = vrot.slane %v5676_v55, 4  ;;  %v4629_v31 = vpop.f32.mrf.mxu1  ;;  %v5364_v55 = vld [vmem:[#allocation2 + $0x50] sm:$0x1] }
 0x231   : > { %v4715_v21 = vpop.f32.mrf.mxu2  ;;  %v4630_v25 = vadd.f32 %v4629_v31, %v4541_v7 }
 0x232   : > { %v5517_v39 = vld [vmem:[#allocation2 + $0x40] sm:$0xf]  ;;  %v5091_v30 = vshrl.u32 %v4983_v41, 16  ;;  %v4804_v17 = vpop.f32.mrf.mxu3  ;;  %v5094_v20 = vshll.u32 %v4983_v41, 16  ;;  %v4716_v44 = vadd.f32 %v4715_v21, %v4627_v10 }
 0x233   : > { %v5679_v29 = vshll.u32 %v5517_v39, 16  ;;  %v5683_v13 = vshrl.u32 %v5517_v39, 16  ;;  %v5518_v3 = vld [vmem:[#allocation2 + $0x44] sm:$0x1]  ;;  %v4888_v50 = vpop.f32.mrf.mxu0 }
 0x234   : > { %v5689_v59 = vshll.u32 %v5518_v3, 16  ;;  %v5093_v9 = vrot.slane %v5091_v30, 7  ;;  %v4889_v40 = vadd.f32 %v4888_v50, %v4800_v1  ;;  %v4805_v3 = vadd.f32 %v4804_v17, %v4716_v44  ;;  %v5448_v50 = vld [vmem:[#allocation2 + $0x40] sm:$0xf] }
 0x235   : > { %v5681_v49 = vrot.slane %v5679_v29, 5  ;;  %v5685_v14 = vrot.slane %v5683_v13, 4  ;;  %5480 = vst.msk [vmem:[#allocation3 + $0xdc] sm:$0xf] %vm224_vm4, %v5448_v50  ;;  %v4543_v17 = vadd.f32 %v13043_v26, %v12880_v2 }
 0x236   : > { %v5096_v24 = vor.u32 %v5094_v20, %v5093_v9  ;;  %v4952_v58 = vmax.f32 %v4889_v40, 0.0  ;;  %v5691_v52 = vrot.slane %v5689_v59, 5  ;;  %v5097_v11 = vrot.slane %v5093_v9, 4 }
 0x237   : > { %v5682_v22 = vsel %vm11335_vm11, %v5677_v5, %v5681_v49  ;;  %v5686_v15 = vor.u32 %v5685_v14, %v5681_v49 }
 0x238   : > { %5953 = vrot.lane.b32.xlu2 %v5682_v22, %s11174_s10  ;;  %v5361_v34 = vsel %vm11296_vm7, %v5096_v24, %v5360_v6  ;;  %v4984_v48 = vpack.c.bf16 %v4952_v58, %v4952_v58  ;;  %v4631_v49 = vpop.f32.mrf.mxu1  ;;  %v5367_v24 = vld [vmem:[#allocation2 + $0x54] sm:$0xf] }
 0x239   : > { %v5687_v4 = vrot.slane %v5686_v15, 4  ;;  %5362 = vst [vmem:[#allocation2 + $0x48] sm:$0xf] %v5361_v34  ;;  %v13244_v15 = vld [vmem:[#allocation2 + $0x10] sm:$0xf] }
 0x23a   : > { %v5099_v8 = vshrl.u32 %v4984_v48, 16  ;;  %v5102_v19 = vshll.u32 %v4984_v48, 16  ;;  %v4807_v37 = vpop.f32.mrf.mxu3  ;;  %v6583_v31 = vshll.u32 %v13244_v15, 16  ;;  %v6587_v44 = vshrl.u32 %v13244_v15, 16 }
 0x23b   : > { %v5692_v12 = vsel %vm11335_vm11, %v5687_v4, %v5691_v52  ;;  %v4891_v46 = vpop.f32.mrf.mxu0  ;;  %v4718_v45 = vpop.f32.mrf.mxu2  ;;  %v4632_v52 = vadd.f32 %v4631_v49, %v4543_v17 }
 0x23c   : > { %5955 = vrot.lane.b32.xlu0 %v5692_v12, %s11174_s10  ;;  %v5101_v35 = vrot.slane %v5099_v8, 7  ;;  %v4892_v16 = vadd.f32 %v4891_v46, %v4803_v32  ;;  %v4719_v38 = vadd.f32 %v4718_v45, %v4630_v25  ;;  %v1973_v25 = vld [vmem:[#allocation2 + $0xb8] sm:$0xf] }
 0x23e   : > { %v5104_v53 = vor.u32 %v5102_v19, %v5101_v35  ;;  %v5106_v41 = vrot.slane %v5101_v35, 4  ;;  %v4953_v1 = vmax.f32 %v4892_v16, 0.0  ;;  %v4808_v48 = vadd.f32 %v4807_v37, %v4719_v38  ;;  %v1972_v16 = vld [vmem:[#allocation2 + $0xb4] sm:$0xf]  ;;  %v5371_v37 = vld [vmem:[#allocation2 + $0x5c] sm:$0x1] }
 0x23f   : > { %v2318_v7 = vshll.u32 %v1972_v16, 16 }
 0x240   : > { %v5105_v39 = vsel %vm11305_vm10, %v5097_v11, %v5104_v53  ;;  %v5365_v29 = vsel %vm11258_vm2, %v5106_v41, %v5364_v55  ;;  %v4985_v13 = vpack.c.bf16 %v4953_v1, %v4953_v1  ;;  %v5519_v62 = vld [vmem:[#allocation2 + $0x48] sm:$0xf]  ;;  %v2315_v1 = vshrl.u32 %v1972_v16, 16 }
 0x241   : > { %5363 = vst.msk [vmem:[#allocation2 + $0x4c] sm:$0xf] %vm224_vm4, %v5105_v39  ;;  %v5694_v30 = vshrl.u32 %v5519_v62, 16  ;;  %v5697_v21 = vshll.u32 %v5519_v62, 16  ;;  %v2320_v49 = vrot.slane %v2318_v7, 5 }
 0x242   : > { %5366 = vst [vmem:[#allocation2 + $0x50] sm:$0x1] %v5365_v29  ;;  %v5108_v5 = vshrl.u32 %v4985_v13, 16  ;;  %v5111_v63 = vshll.u32 %v4985_v13, 16  ;;  %v4809_v22 = vpop.f32.mrf.mxu3 }
 0x243   : > { %v4893_v14 = vpop.f32.mrf.mxu0  ;;  %v5696_v59 = vrot.slane %v5694_v30, 4  ;;  %v5699_v9 = vrot.slane %v5697_v21, 5  ;;  %v4720_v20 = vpop.f32.mrf.mxu2  ;;  %v5449_v30 = vld [vmem:[#allocation2 + $0x48] sm:$0xf] }
 0x244   : > { %v5110_v40 = vrot.slane %v5108_v5, 7  ;;  %v4894_v6 = vadd.f32 %v4893_v14, %v4805_v3  ;;  %v4721_v47 = vadd.f32 %v4720_v20, %v4632_v52  ;;  %v2317_v5 = vrot.slane %v2315_v1, 4  ;;  %v1974_v14 = vld [vmem:[#allocation2 + $0xbc] sm:$0x1]  ;;  %5481 = vst.msk [vmem:[#allocation3 + $0xf0] sm:$0xf] %vm224_vm4, %v5449_v30 }
 0x245   : > { %v5700_v34 = vor.u32 %v5699_v9, %v5696_v59 }
 0x246   : > { %v5938_v58 = vpop.permute.xlu2 %5937  ;;  %v5113_v4 = vor.u32 %v5111_v63, %v5110_v40  ;;  %v4954_v56 = vmax.f32 %v4894_v6, 0.0  ;;  %v5114_v32 = vrot.slane %v5110_v40, 4  ;;  %v4810_v3 = vadd.f32 %v4809_v22, %v4721_v47 }
 0x247   : > { %6031 = vst.msk [vmem:[#allocation3 + $0x28] sm:$0xf] %vm1430_vm12, %v5938_v58  ;;  %v5701_v35 = vrot.slane %v5700_v34, 4  ;;  %v2321_v40 = vor.u32 %v2320_v49, %v2317_v5  ;;  %v2324_v63 = vshll.u32 %v1973_v25, 16  ;;  %v2328_v6 = vshrl.u32 %v1973_v25, 16 }
 0x248   : > { %v5368_v2 = vsel %vm11296_vm7, %v5113_v4, %v5367_v24  ;;  %v4986_v26 = vpack.c.bf16 %v4954_v56, %v4954_v56  ;;  %v5520_v12 = vld [vmem:[#allocation2 + $0x4c] sm:$0xf]  ;;  %v2334_v4 = vshll.u32 %v1974_v14, 16 }
 0x249   : > { %5369 = vst [vmem:[#allocation2 + $0x54] sm:$0xf] %v5368_v2  ;;  %v5703_v10 = vshll.u32 %v5520_v12, 16  ;;  %v5707_v8 = vshrl.u32 %v5520_v12, 16  ;;  %v5521_v46 = vld [vmem:[#allocation2 + $0x50] sm:$0x1]  ;;  %v2691_v12 = vpop.permute.xlu1 %2690 }
 0x24a   : > { %v5116_v45 = vshrl.u32 %v4986_v26, 16  ;;  %v5713_v19 = vshll.u32 %v5521_v46, 16  ;;  %v5119_v29 = vshll.u32 %v4986_v26, 16  ;;  %v13251_v62 = vpop.f32.mrf.mxu3  ;;  %v6527_v2 = vld [vmem:[#allocation2 + $0x14] sm:$0x1]  ;;  %v2330_v47 = vrot.slane %v2328_v6, 4 }
 0x24b   : > { %v4896_v55 = vpop.f32.mrf.mxu0  ;;  %v5705_v11 = vrot.slane %v5703_v10, 5  ;;  %v5709_v53 = vrot.slane %v5707_v8, 4  ;;  %v4723_v41 = vpop.f32.mrf.mxu2  ;;  %v13265_v8 = vrot.slane %v6583_v31, 5  ;;  %v6064_v46 = vld [vmem:[#allocation2 + $0xc] sm:$0xe] }
 0x24c   : > { %v5118_v39 = vrot.slane %v5116_v45, 7  ;;  %v4897_v13 = vadd.f32 %v4896_v55, %v4808_v48  ;;  %v5715_v20 = vrot.slane %v5713_v19, 5  ;;  %v2322_v48 = vrot.slane %v2321_v40, 4  ;;  %v5450_v55 = vld [vmem:[#allocation2 + $0x4c] sm:$0xf] }
 0x24d   : > { %v5706_v21 = vsel %vm11335_vm11, %v5701_v35, %v5705_v11  ;;  %v5710_v50 = vor.u32 %v5709_v53, %v5705_v11  ;;  %v4724_v35 = vadd.f32 %v4723_v41, %v12483_v18  ;;  %v6589_v11 = vrot.slane %v6587_v44, 4  ;;  %5482 = vst.msk [vmem:[#allocation3 + $0x104] sm:$0xf] %vm224_vm4, %v5450_v55  ;;  %v13273_v31 = vld [vmem:[#allocation2 + $0x10] sm:$0xf] }
 0x24e   : > { %v5121_v38 = vor.u32 %v5119_v29, %v5118_v39  ;;  %v5123_v59 = vrot.slane %v5118_v39, 4  ;;  %v4955_v9 = vmax.f32 %v4897_v13, 0.0  ;;  %5957 = vrot.lane.b32.xlu1 %v5706_v21, %s11174_s10  ;;  %v2693_v10 = vpop.permute.xlu2 %2692  ;;  %v5374_v13 = vld [vmem:[#allocation2 + $0x60] sm:$0xf]  ;;  %v2336_v41 = vrot.slane %v2334_v4, 5 }
 0x24f   : > { %v5711_v17 = vrot.slane %v5710_v50, 4  ;;  %v6590_v50 = vor.u32 %v6589_v11, %v13265_v8  ;;  %v10276_v5 = vrot.slane %v6064_v46, 9  ;;  %v6166_v49 = vrot.slane %v13273_v31, 5 }
 0x250   : > { %v5122_v22 = vsel %vm11305_vm10, %v5114_v32, %v5121_v38  ;;  %v5372_v15 = vsel %vm11258_vm2, %v5123_v59, %v5371_v37  ;;  %v4987_v24 = vpack.c.bf16 %v4955_v9, %v4955_v9  ;;  %v5522_v58 = vld [vmem:[#allocation2 + $0x54] sm:$0xf]  ;;  %v2326_v32 = vrot.slane %v2324_v63, 5 }
 0x251   : > { %5370 = vst.msk [vmem:[#allocation2 + $0x58] sm:$0xf] %vm224_vm4, %v5122_v22  ;;  %v5716_v52 = vsel %vm11335_vm11, %v5711_v17, %v5715_v20  ;;  %v5718_v56 = vshrl.u32 %v5522_v58, 16  ;;  %v5721_v34 = vshll.u32 %v5522_v58, 16  ;;  %v4813_v59 = vadd.f32 %v13251_v62, %v4724_v35 }
 0x252   : > { %5373 = vst [vmem:[#allocation2 + $0x5c] sm:$0x1] %v5372_v15  ;;  %v5125_v26 = vshrl.u32 %v4987_v24, 16  ;;  %5959 = vrot.lane.b32.xlu2 %v5716_v52, %s11174_s10  ;;  %v5128_v1 = vshll.u32 %v4987_v24, 16  ;;  %v2327_v39 = vsel %vm11335_vm11, %v2322_v48, %v2326_v32  ;;  %v4814_v29 = vpop.f32.mrf.mxu3  ;;  %v2331_v18 = vor.u32 %v2330_v47, %v2326_v32  ;;  %v5451_v48 = vld [vmem:[#allocation2 + $0x54] sm:$0xf] }
 0x253   : > { %v4898_v45 = vpop.f32.mrf.mxu0  ;;  %v5720_v19 = vrot.slane %v5718_v56, 4  ;;  %v5723_v16 = vrot.slane %v5721_v34, 5  ;;  %v4725_v37 = vpop.f32.mrf.mxu2  ;;  %2422 = vst.msk [vmem:[#allocation3 + $0x238] sm:$0xf] %vm224_vm4, %v2327_v39  ;;  %v6591_v24 = vrot.slane %v6590_v50, 4  ;;  %v6167_v46 = vsel %vm11776_vm15, %v10276_v5, %v6166_v49 }
 0x254   : > { %v13268_v53 = vrot.slane %v5125_v26, 7  ;;  %v4899_v7 = vadd.f32 %v4898_v45, %v4810_v3  ;;  %2758 = vst.msk [vmem:[#allocation3 + $0x238] sm:$0xf] %vm1430_vm12, %v2691_v12  ;;  %v6593_v3 = vshll.u32 %v6527_v2, 16  ;;  %v2332_v21 = vrot.slane %v2331_v18, 4 }
 0x255   : > { %v5724_v25 = vor.u32 %v5723_v16, %v5720_v19  ;;  %v4726_v56 = vadd.f32 %v4725_v37, %v12620_v57  ;;  %5483 = vst.msk [vmem:[#allocation3 + $0x118] sm:$0xf] %vm224_vm4, %v5451_v48  ;;  %v5378_v45 = vld [vmem:[#allocation2 + $0x68] sm:$0x1] }
 0x256   : > { %v5130_v44 = vor.u32 %v5128_v1, %v13268_v53  ;;  %v4956_v30 = vmax.f32 %v4899_v7, 0.0  ;;  %v2337_v63 = vsel %vm11335_vm11, %v2332_v21, %v2336_v41  ;;  %v6595_v58 = vrot.slane %v6593_v3, 5  ;;  %6303 = vst.msk [vmem:[#allocation3 + $0x2c] sm:$0xf] %vm224_vm4, %v6167_v46  ;;  %v5385_v46 = vld [vmem:[#allocation2 + $0x74] sm:$0x1] }
 0x257   : > { %v5725_v20 = vrot.slane %v5724_v25, 4  ;;  %2423 = vst.msk [vmem:[#allocation3 + $0x24c] sm:$0xf] %vm224_vm4, %v2337_v63  ;;  %v5131_v19 = vrot.slane %v13268_v53, 4  ;;  %v4815_v25 = vadd.f32 %v4814_v29, %v4726_v56 }
 0x258   : > { %v5375_v14 = vsel %vm11296_vm7, %v5130_v44, %v5374_v13  ;;  %v4988_v38 = vpack.c.bf16 %v4956_v30, %v4956_v30  ;;  %v5523_v9 = vld [vmem:[#allocation2 + $0x58] sm:$0xf]  ;;  %2759 = vst.msk [vmem:[#allocation3 + $0x24c] sm:$0xf] %vm1430_vm12, %v2693_v10  ;;  %v6596_v35 = vsel %vm11335_vm11, %v6591_v24, %v6595_v58 }
 0x259   : > { %5376 = vst [vmem:[#allocation2 + $0x60] sm:$0xf] %v5375_v14  ;;  %v5727_v17 = vshll.u32 %v5523_v9, 16  ;;  %v5731_v40 = vshrl.u32 %v5523_v9, 16  ;;  %v5524_v6 = vld [vmem:[#allocation2 + $0x5c] sm:$0x1] }
 0x25a   : > { %v5133_v22 = vshrl.u32 %v4988_v38, 16  ;;  %v5737_v15 = vshll.u32 %v5524_v6, 16  ;;  %v5136_v26 = vshll.u32 %v4988_v38, 16  ;;  %v4817_v47 = vpop.f32.mrf.mxu3  ;;  %6990 = vst.msk [vmem:[#allocation3 + $0x1c] sm:$0xf] %vm224_vm4, %v6596_v35 }
 0x25b   : > { %v4901_v4 = vpop.f32.mrf.mxu0  ;;  %v5729_v52 = vrot.slane %v5727_v17, 5  ;;  %v5733_v62 = vrot.slane %v5731_v40, 4  ;;  %v4728_v34 = vpop.f32.mrf.mxu2  ;;  %v10085_v53 = vld [vmem:[#allocation3 + $0x238] sm:$0xf]  ;;  %v5452_v3 = vld [vmem:[#allocation2 + $0x58] sm:$0xf] }
 0x25c   : > { %v5135_v2 = vrot.slane %v5133_v22, 7  ;;  %v4902_v32 = vadd.f32 %v4901_v4, %v4813_v59  ;;  %v5739_v1 = vrot.slane %v5737_v15, 5  ;;  %v4729_v63 = vadd.f32 %v4728_v34, %v12527_v27  ;;  %5484 = vst.msk [vmem:[#allocation3 + $0x12c] sm:$0xf] %vm224_vm4, %v5452_v3  ;;  %v5381_v22 = vld [vmem:[#allocation2 + $0x6c] sm:$0xf] }
 0x25d   : > { %v5730_v57 = vsel %vm11335_vm11, %v5725_v20, %v5729_v52  ;;  %v5734_v10 = vor.u32 %v5733_v62, %v5729_v52 }
 0x25e   : > { %v5942_v12 = vpop.permute.xlu2 %5941  ;;  %v5138_v16 = vor.u32 %v5136_v26, %v5135_v2  ;;  %v5140_v37 = vrot.slane %v5135_v2, 4  ;;  %v4957_v55 = vmax.f32 %v4902_v32, 0.0  ;;  %5961 = vrot.lane.b32.xlu0 %v5730_v57, %s11174_s10  ;;  %v4818_v56 = vadd.f32 %v4817_v47, %v4729_v63 }
 0x25f   : > { %6033 = vst.msk [vmem:[#allocation3 + $0x50] sm:$0xf] %vm1430_vm12, %v5942_v12  ;;  %v5735_v11 = vrot.slane %v5734_v10, 4  ;;  %v10882_v50 = vld [vmem:[#allocation3 + $0x248] sm:$0xf0] }
 0x260   : > { %v5139_v7 = vsel %vm11305_vm10, %v5131_v19, %v5138_v16  ;;  %v5379_v39 = vsel %vm11258_vm2, %v5140_v37, %v5378_v45  ;;  %v4989_v13 = vpack.c.bf16 %v4957_v55, %v4957_v55  ;;  %v5525_v18 = vld [vmem:[#allocation2 + $0x60] sm:$0xf]  ;;  %v10086_v38 = vor.u32 %v10882_v50, %v10085_v53  ;;  %v2792_v12 = vld [vmem:[#allocation2 + $0xc4] sm:$0xf] }
 0x261   : > { %5377 = vst.msk [vmem:[#allocation2 + $0x64] sm:$0xf] %vm224_vm4, %v5139_v7  ;;  %v5740_v41 = vsel %vm11335_vm11, %v5735_v11, %v5739_v1  ;;  %v5742_v44 = vshrl.u32 %v5525_v18, 16  ;;  %v5745_v30 = vshll.u32 %v5525_v18, 16  ;;  %v5940_v5 = vpop.permute.xlu0 %5939  ;;  %v2791_v16 = vld [vmem:[#allocation2 + $0xc0] sm:$0xf] }
 0x262   : > { %5380 = vst [vmem:[#allocation2 + $0x68] sm:$0x1] %v5379_v39  ;;  %v5142_v21 = vshrl.u32 %v4989_v13, 16  ;;  %5963 = vrot.lane.b32.xlu1 %v5740_v41, %s11174_s10  ;;  %v5145_v17 = vshll.u32 %v4989_v13, 16  ;;  %v4819_v6 = vpop.f32.mrf.mxu3  ;;  %4752 = vmatmul.bf16.gmra.mxu2 %v10086_v38  ;;  %v6529_v39 = vld [vmem:[#allocation2 + $0x1c] sm:$0xf] }
 0x263   : > { %v4903_v14 = vpop.f32.mrf.mxu0  ;;  %v5744_v59 = vrot.slane %v5742_v44, 4  ;;  %v5747_v29 = vrot.slane %v5745_v30, 5  ;;  %v4730_v9 = vpop.f32.mrf.mxu2  ;;  %6032 = vst.msk [vmem:[#allocation3 + $0x3c] sm:$0xf] %vm1430_vm12, %v5940_v5  ;;  %v5453_v53 = vld [vmem:[#allocation2 + $0x60] sm:$0xf] }
 0x264   : > { %v5144_v20 = vrot.slane %v5142_v21, 7  ;;  %v4904_v40 = vadd.f32 %v4903_v14, %v4815_v25  ;;  %v4731_v10 = vadd.f32 %v4730_v9, %v12556_v33  ;;  %2824 = vst.msk [vmem:[#allocation3 + $0x250] sm:$0xf] %vm224_vm4, %v2792_v12  ;;  %v10345_v30 = vld [vmem:[#allocation3 + $0x28] sm:$0xf]  ;;  %v6607_v63 = vshll.u32 %v6529_v39, 16 }
 0x265   : > { %v5748_v58 = vor.u32 %v5747_v29, %v5744_v59  ;;  %2823 = vst.msk [vmem:[#allocation3 + $0x23c] sm:$0xf] %vm224_vm4, %v2791_v16  ;;  %v3431_v12 = vld [vmem:[#allocation2 + $0xc8] sm:$0x1] }
 0x266   : > { %v5147_v15 = vor.u32 %v5145_v17, %v5144_v20  ;;  %v4958_v24 = vmax.f32 %v4904_v40, 0.0  ;;  %v5148_v47 = vrot.slane %v5144_v20, 4  ;;  %5485 = vst.msk [vmem:[#allocation3 + $0x140] sm:$0xf] %vm224_vm4, %v5453_v53  ;;  %v4820_v59 = vadd.f32 %v4819_v6, %v4731_v10  ;;  %v13336_v6 = vld [vmem:[%s15079_s2] ss:$0 sm:$0xff] }
 0x267   : > { %v5749_v27 = vrot.slane %v5748_v58, 4  ;;  %v4558_v58 = vadd.f32 %v13336_v6, %v12599_v42  ;;  %v3586_v10 = vrot.slane %v3431_v12, 5  ;;  %v6530_v42 = vld [vmem:[#allocation2 + $0x20] sm:$0x1] }
 0x268   : > { %v5382_v4 = vsel %vm11296_vm7, %v5147_v15, %v5381_v22  ;;  %v4990_v52 = vpack.c.bf16 %v4958_v24, %v4958_v24  ;;  %v5526_v62 = vld [vmem:[#allocation2 + $0x64] sm:$0xf]  ;;  %v3429_v15 = vld [vmem:[#allocation2 + $0xc0] sm:$0xe]  ;;  %v6611_v24 = vshrl.u32 %v6529_v39, 16 }
 0x269   : > { %5383 = vst [vmem:[#allocation2 + $0x6c] sm:$0xf] %v5382_v4  ;;  %v5751_v48 = vshll.u32 %v5526_v62, 16  ;;  %v5755_v2 = vshrl.u32 %v5526_v62, 16  ;;  %v5527_v26 = vld [vmem:[#allocation2 + $0x68] sm:$0x1] }
 0x26a   : > { %v5150_v32 = vshrl.u32 %v4990_v52, 16  ;;  %v5761_v34 = vshll.u32 %v5527_v26, 16  ;;  %v5153_v55 = vshll.u32 %v4990_v52, 16  ;;  %v13317_v1 = vpop.f32.mrf.mxu3  ;;  %v10932_v33 = vld [vmem:[#allocation3 + $0x38] sm:$0xf0] }
 0x26b   : > { %v4906_v45 = vpop.f32.mrf.mxu0  ;;  %v5753_v57 = vrot.slane %v5751_v48, 5  ;;  %v5757_v35 = vrot.slane %v5755_v2, 4  ;;  %v4733_v19 = vpop.f32.mrf.mxu2  ;;  %v10346_v50 = vor.u32 %v10932_v33, %v10345_v30  ;;  %v3430_v2 = vld [vmem:[#allocation2 + $0xc4] sm:$0xf] }
 0x26c   : > { %v5152_v37 = vrot.slane %v5150_v32, 7  ;;  %v4907_v11 = vadd.f32 %v4906_v45, %v4818_v56  ;;  %v5763_v21 = vrot.slane %v5761_v34, 5  ;;  %v4734_v52 = vadd.f32 %v4733_v19, %v12707_v61  ;;  %v5388_v45 = vld [vmem:[#allocation2 + $0x78] sm:$0xf] }
 0x26d   : > { %v3316_v7 = vpop.permute.xlu0 %3315  ;;  %v5754_v13 = vsel %vm11335_vm11, %v5749_v27, %v5753_v57  ;;  %v5758_v25 = vor.u32 %v5757_v35, %v5753_v57  ;;  %9102 = vmatmul.bf16.gmra.mxu1 %v10346_v50  ;;  %v3583_v57 = vrot.slane %v3430_v2, 5 }
 0x26e   : > { %3383 = vst.msk [vmem:[#allocation3 + $0x23c] sm:$0xf] %vm1430_vm12, %v3316_v7  ;;  %v5155_v18 = vor.u32 %v5153_v55, %v5152_v37  ;;  %v5157_v41 = vrot.slane %v5152_v37, 4  ;;  %v4959_v44 = vmax.f32 %v4907_v11, 0.0  ;;  %5965 = vrot.lane.b32.xlu2 %v5754_v13, %s11174_s10  ;;  %v6613_v37 = vrot.slane %v6611_v24, 4 }
 0x26f   : > { %v5759_v3 = vrot.slane %v5758_v25, 4  ;;  %v4647_v55 = vadd.f32 %v12605_v54, %v4558_v58  ;;  %v3585_v39 = vrot.slane %v3583_v57, 4  ;;  %v4823_v33 = vadd.f32 %v13317_v1, %v4734_v52  ;;  %v10365_v52 = vld [vmem:[#allocation3 + $0x50] sm:$0xf] }
 0x270   : > { %v5156_v5 = vsel %vm11305_vm10, %v5148_v47, %v5155_v18  ;;  %v5386_v14 = vsel %vm11258_vm2, %v5157_v41, %v5385_v46  ;;  %v4991_v38 = vpack.c.bf16 %v4959_v44, %v4959_v44  ;;  %v5528_v29 = vld [vmem:[#allocation2 + $0x6c] sm:$0xf]  ;;  %v9793_v46 = vrot.slane %v3429_v15, 9 }
 0x271   : > { %5384 = vst.msk [vmem:[#allocation2 + $0x70] sm:$0xf] %vm224_vm4, %v5156_v5  ;;  %v5764_v9 = vsel %vm11335_vm11, %v5759_v3, %v5763_v21  ;;  %v5766_v17 = vshrl.u32 %v5528_v29, 16  ;;  %v5769_v40 = vshll.u32 %v5528_v29, 16  ;;  %v13345_v47 = vrot.slane %v6607_v63, 5 }
 0x272   : > { %v5948_v20 = vpop.permute.xlu2 %5947  ;;  %5387 = vst [vmem:[#allocation2 + $0x74] sm:$0x1] %v5386_v14  ;;  %v5159_v22 = vshrl.u32 %v4991_v38, 16  ;;  %5967 = vrot.lane.b32.xlu0 %v5764_v9, %s11174_s10  ;;  %v5162_v32 = vshll.u32 %v4991_v38, 16  ;;  %v4824_v34 = vpop.f32.mrf.mxu3  ;;  %v3584_v7 = vsel %vm11776_vm15, %v9793_v46, %v3583_v57  ;;  %v6617_v18 = vshll.u32 %v6530_v42, 16 }
 0x273   : > { %v4908_v4 = vpop.f32.mrf.mxu0  ;;  %6036 = vst.msk [vmem:[#allocation3 + $0x8c] sm:$0xf] %vm1430_vm12, %v5948_v20  ;;  %v5768_v56 = vrot.slane %v5766_v17, 4  ;;  %v5771_v62 = vrot.slane %v5769_v40, 5  ;;  %v4735_v48 = vpop.f32.mrf.mxu2  ;;  %v3587_v30 = vsel %vm11776_vm15, %v3585_v39, %v3586_v10  ;;  %v6614_v50 = vor.u32 %v6613_v37, %v13345_v47  ;;  %v5392_v40 = vld [vmem:[#allocation2 + $0x80] sm:$0x1] }
 0x274   : > { %v13342_v26 = vrot.slane %v5159_v22, 7  ;;  %v4909_v27 = vadd.f32 %v4908_v4, %v4820_v59  ;;  %v4736_v21 = vadd.f32 %v4735_v48, %v4647_v55  ;;  %3655 = vst.msk [vmem:[#allocation3 + $0x240] sm:$0xf] %vm224_vm4, %v3584_v7  ;;  %v4563_v9 = vadd.f32 %v13336_v6, %v12655_v51 }
 0x275   : > { %v5772_v11 = vor.u32 %v5771_v62, %v5768_v56  ;;  %3656 = vst.msk [vmem:[#allocation3 + $0x254] sm:$0xf] %vm224_vm4, %v3587_v30  ;;  %v10880_v22 = vld [vmem:[#allocation3 + $0x23c] sm:$0xf]  ;;  %v5454_v56 = vld [vmem:[#allocation2 + $0x64] sm:$0xf] }
 0x276   : > { %v5164_v35 = vor.u32 %v5162_v32, %v13342_v26  ;;  %v4960_v61 = vmax.f32 %v4909_v27, 0.0  ;;  %v5165_v15 = vrot.slane %v13342_v26, 4  ;;  %v6619_v62 = vrot.slane %v6617_v18, 5  ;;  %5486 = vst.msk [vmem:[#allocation3 + $0x154] sm:$0xf] %vm224_vm4, %v5454_v56 }
 0x277   : > { %v5773_v14 = vrot.slane %v5772_v11, 4  ;;  %v4825_v51 = vadd.f32 %v4824_v34, %v4736_v21  ;;  %v6615_v57 = vrot.slane %v6614_v50, 4  ;;  %v6067_v21 = vld [vmem:[#allocation2 + $0x18] sm:$0xe] }
 0x278   : > { %v3318_v19 = vpop.permute.xlu1 %3317  ;;  %v5389_v13 = vsel %vm11296_vm7, %v5164_v35, %v5388_v45  ;;  %v4992_v25 = vpack.c.bf16 %v4960_v61, %v4960_v61  ;;  %v5529_v53 = vld [vmem:[#allocation2 + $0x70] sm:$0xf]  ;;  %v15124_v50 = vld [vmem:[#allocation7_spill] sm:$0xff] }
 0x279   : > { %v5944_v16 = vpop.permute.xlu0 %5943  ;;  %3384 = vst.msk [vmem:[#allocation3 + $0x250] sm:$0xf] %vm1430_vm12, %v3318_v19  ;;  %v5775_v41 = vshll.u32 %v5529_v53, 16  ;;  %v5779_v54 = vshrl.u32 %v5529_v53, 16  ;;  %v5530_v44 = vld [vmem:[#allocation2 + $0x74] sm:$0x1]  ;;  %v6620_v11 = vsel %vm11335_vm11, %v6615_v57, %v6619_v62 }
 0x27a   : > { %6034 = vst.msk [vmem:[#allocation3 + $0x64] sm:$0xf] %vm1430_vm12, %v5944_v16  ;;  %v5167_v3 = vshrl.u32 %v4992_v25, 16  ;;  %v5785_v59 = vshll.u32 %v5530_v44, 16  ;;  %v5170_v17 = vshll.u32 %v4992_v25, 16 }
 0x27b   : > { %5390 = vst [vmem:[#allocation2 + $0x78] sm:$0xf] %v5389_v13  ;;  %v4911_v5 = vpop.f32.mrf.mxu0  ;;  %v5777_v1 = vrot.slane %v5775_v41, 5  ;;  %v5781_v38 = vrot.slane %v5779_v54, 4  ;;  %v4738_v29 = vpop.f32.mrf.mxu2  ;;  %v10093_v16 = vld [vmem:[#allocation3 + $0x240] sm:$0xf] }
 0x27c   : > { %v5169_v20 = vrot.slane %v5167_v3, 7  ;;  %v4912_v63 = vadd.f32 %v4911_v5, %v4823_v33  ;;  %v5787_v46 = vrot.slane %v5785_v59, 5  ;;  %v10883_v39 = vld [vmem:[#allocation3 + $0x250] sm:$0xf0]  ;;  %v4739_v25 = vadd.f32 %v4738_v29, %v12769_v60  ;;  %v13378_v54 = vld [vmem:[#allocation2 + $0x1c] sm:$0xf] }
 0x27d   : > { %v5778_v24 = vsel %vm11335_vm11, %v5773_v14, %v5777_v1  ;;  %v5782_v58 = vor.u32 %v5781_v38, %v5777_v1  ;;  %v10094_v33 = vor.u32 %v10883_v39, %v10093_v16  ;;  %6992 = vst.msk [vmem:[#allocation3 + $0x44] sm:$0xf] %vm224_vm4, %v6620_v11  ;;  %v4652_v5 = vadd.f32 %v15124_v50, %v4563_v9  ;;  %v5395_v14 = vld [vmem:[#allocation2 + $0x84] sm:$0xf]  ;;  %v5455_v1 = vld [vmem:[#allocation2 + $0x6c] sm:$0xf] }
 0x27e   : > { %v5172_v48 = vor.u32 %v5170_v17, %v5169_v20  ;;  %v5174_v2 = vrot.slane %v5169_v20, 4  ;;  %v4961_v32 = vmax.f32 %v4912_v63, 0.0  ;;  %5969 = vrot.lane.b32.xlu1 %v5778_v24, %s11174_s10  ;;  %v6532_v60 = vld [vmem:[#allocation2 + $0x28] sm:$0xf]  ;;  %5487 = vst.msk [vmem:[#allocation3 + $0x168] sm:$0xf] %vm224_vm4, %v5455_v1 }
 0x27f   : > { %v4827_v4 = vpop.f32.mrf.mxu3  ;;  %v5783_v12 = vrot.slane %v5782_v58, 4  ;;  %10273 = vmatmul.msk.bf16.gmra.mxu0 %vm4447_vm0, %v10094_v33  ;;  %v6173_v20 = vrot.slane %v13378_v54, 5  ;;  %v10277_v58 = vrot.slane %v6067_v21, 9  ;;  %v7357_v56 = vld [vmem:[#allocation2 + $0x18] sm:$0xf]  ;;  %v6635_v39 = vshrl.u32 %v6532_v60, 16 }
 0x280   : > { %v10087_v27 = vld [vmem:[#allocation3 + $0x24c] sm:$0xf0]  ;;  %v5173_v10 = vsel %vm11305_vm10, %v5165_v15, %v5172_v48  ;;  %v5393_v42 = vsel %vm11258_vm2, %v5174_v2, %v5392_v40  ;;  %v4993_v35 = vpack.c.bf16 %v4961_v32, %v4961_v32  ;;  %v4828_v17 = vadd.f32 %v4827_v4, %v4739_v25  ;;  %7389 = vst.msk [vmem:[#allocation3 + $0xc] sm:$0xf] %vm224_vm4, %v7357_v56  ;;  %v5456_v11 = vld [vmem:[#allocation2 + $0x70] sm:$0xf] }
 0x281   : > { %v10090_v26 = vor.u32 %v10880_v22, %v10087_v27  ;;  %v10937_v45 = vld [vmem:[#allocation3 + $0x60] sm:$0xf0]  ;;  %5391 = vst.msk [vmem:[#allocation2 + $0x7c] sm:$0xf] %vm224_vm4, %v5173_v10  ;;  %v5788_v34 = vsel %vm11335_vm11, %v5783_v12, %v5787_v46  ;;  %v6174_v4 = vsel %vm11776_vm15, %v10277_v58, %v6173_v20  ;;  %v6533_v27 = vld [vmem:[#allocation2 + $0x2c] sm:$0x1] }
 0x282   : > { %v5531_v61 = vld [vmem:[#allocation2 + $0x78] sm:$0xf]  ;;  %v10366_v19 = vor.u32 %v10937_v45, %v10365_v52  ;;  %5394 = vst [vmem:[#allocation2 + $0x80] sm:$0x1] %v5393_v42  ;;  %v5176_v7 = vshrl.u32 %v4993_v35, 16  ;;  %5971 = vrot.lane.b32.xlu2 %v5788_v34, %s11174_s10  ;;  %v5179_v30 = vshll.u32 %v4993_v35, 16 }
 0x283   : > { %4841 = vmatmul.bf16.gmra.mxu3 %v10090_v26  ;;  %v5790_v37 = vshrl.u32 %v5531_v61, 16  ;;  %v5793_v55 = vshll.u32 %v5531_v61, 16  ;;  %v4913_v13 = vpop.f32.mrf.mxu0  ;;  %v4740_v41 = vpop.f32.mrf.mxu2  ;;  %v6631_v52 = vshll.u32 %v6532_v60, 16  ;;  %v5399_v12 = vld [vmem:[#allocation2 + $0x8c] sm:$0x1] }
 0x284   : > { %9107 = vmatmul.bf16.gmra.mxu1 %v10366_v19  ;;  %v13380_v44 = vrot.slane %v5176_v7, 7  ;;  %v4914_v3 = vadd.f32 %v4913_v13, %v4825_v51  ;;  %v4741_v63 = vadd.f32 %v4740_v41, %v4652_v5  ;;  %6305 = vst.msk [vmem:[#allocation3 + $0x54] sm:$0xf] %vm224_vm4, %v6174_v4  ;;  %v13397_v16 = vld [vmem:[#allocation2 + $0x28] sm:$0xf]  ;;  %v15125_v4 = vld [vmem:[#allocation8_spill] sm:$0xff] }
 0x285   : > { %v5792_v53 = vrot.slane %v5790_v37, 4  ;;  %v5795_v18 = vrot.slane %v5793_v55, 5  ;;  %v13402_v7 = vrot.slane %v6631_v52, 5  ;;  %v6070_v13 = vld [vmem:[#allocation2 + $0x24] sm:$0xe] }
 0x286   : > { %v5181_v38 = vor.u32 %v5179_v30, %v13380_v44  ;;  %v4962_v59 = vmax.f32 %v4914_v3, 0.0  ;;  %v5182_v32 = vrot.slane %v13380_v44, 4  ;;  %5488 = vst.msk [vmem:[#allocation3 + $0x17c] sm:$0xf] %vm224_vm4, %v5456_v11  ;;  %v6637_v30 = vrot.slane %v6635_v39, 4 }
 0x287   : > { %v4829_v29 = vpop.f32.mrf.mxu3  ;;  %v5796_v40 = vor.u32 %v5795_v18, %v5792_v53  ;;  %v6641_v18 = vshll.u32 %v6533_v27, 16  ;;  %v6180_v3 = vrot.slane %v13397_v16, 5  ;;  %v7984_v16 = vld [vmem:[#allocation2 + $0x24] sm:$0xe] }
 0x288   : > { %v5396_v22 = vsel %vm11296_vm7, %v5181_v38, %v5395_v14  ;;  %v4994_v9 = vpack.c.bf16 %v4962_v59, %v4962_v59  ;;  %v5532_v15 = vld [vmem:[#allocation2 + $0x7c] sm:$0xf]  ;;  %v4830_v19 = vadd.f32 %v4829_v29, %v4741_v63  ;;  %v10942_v38 = vld [vmem:[#allocation3 + $0x88] sm:$0xf0]  ;;  %v10278_v59 = vrot.slane %v6070_v13, 9 }
 0x289   : > { %5397 = vst [vmem:[#allocation2 + $0x84] sm:$0xf] %v5396_v22  ;;  %v5799_v62 = vshll.u32 %v5532_v15, 16  ;;  %v5803_v48 = vshrl.u32 %v5532_v15, 16  ;;  %v5533_v2 = vld [vmem:[#allocation2 + $0x80] sm:$0x1]  ;;  %v6638_v22 = vor.u32 %v6637_v30, %v13402_v7 }
 0x28a   : > { %v5946_v24 = vpop.permute.xlu1 %5945  ;;  %v5184_v51 = vshrl.u32 %v4994_v9, 16  ;;  %v5797_v26 = vrot.slane %v5796_v40, 4  ;;  %v5809_v10 = vshll.u32 %v5533_v2, 16  ;;  %v5187_v35 = vshll.u32 %v4994_v9, 16 }
 0x28b   : > { %6035 = vst.msk [vmem:[#allocation3 + $0x78] sm:$0xf] %vm1430_vm12, %v5946_v24  ;;  %v5801_v45 = vrot.slane %v5799_v62, 5  ;;  %v5805_v57 = vrot.slane %v5803_v48, 4  ;;  %v6643_v24 = vrot.slane %v6641_v18, 5  ;;  %v6639_v62 = vrot.slane %v6638_v22, 4 }
 0x28c   : > { %v4916_v46 = vpop.f32.mrf.mxu0  ;;  %v5186_v42 = vrot.slane %v5184_v51, 7  ;;  %v5811_v44 = vrot.slane %v5809_v10, 5  ;;  %v6181_v48 = vsel %vm11776_vm15, %v10278_v59, %v6180_v3  ;;  %v5458_v22 = vld [vmem:[#allocation2 + $0x7c] sm:$0xf] }
 0x28d   : > { %v4917_v61 = vadd.f32 %v4916_v46, %v4828_v17  ;;  %v5802_v37 = vsel %vm11335_vm11, %v5797_v26, %v5801_v45  ;;  %v5806_v55 = vor.u32 %v5805_v57, %v5801_v45  ;;  %6307 = vst.msk [vmem:[#allocation3 + $0x7c] sm:$0xf] %vm224_vm4, %v6181_v48  ;;  %v5402_v46 = vld [vmem:[#allocation2 + $0x90] sm:$0xf]  ;;  %v5457_v26 = vld [vmem:[#allocation2 + $0x78] sm:$0xf]  ;;  %v6644_v45 = vsel %vm11335_vm11, %v6639_v62, %v6643_v24 }
 0x28e   : > { %v4743_v34 = vpop.f32.mrf.mxu2  ;;  %v5189_v25 = vor.u32 %v5187_v35, %v5186_v42  ;;  %v5191_v33 = vrot.slane %v5186_v42, 4  ;;  %5973 = vrot.lane.b32.xlu0 %v5802_v37, %s11174_s10  ;;  %v15126_v57 = vld [vmem:[#allocation9_spill] sm:$0xff]  ;;  %5489 = vst.msk [vmem:[#allocation3 + $0x190] sm:$0xf] %vm224_vm4, %v5457_v26 }
 0x28f   : > { %v4963_v53 = vmax.f32 %v4917_v61, 0.0  ;;  %v5807_v41 = vrot.slane %v5806_v55, 4  ;;  %v4744_v27 = vadd.f32 %v4743_v34, %v15125_v4  ;;  %v4568_v10 = vadd.f32 %v13336_v6, %v15126_v57  ;;  %6994 = vst.msk [vmem:[#allocation3 + $0x6c] sm:$0xf] %vm224_vm4, %v6644_v45 }
 0x290   : > { %v5190_v21 = vsel %vm11305_vm10, %v5182_v32, %v5189_v25  ;;  %v5400_v50 = vsel %vm11258_vm2, %v5191_v33, %v5399_v12  ;;  %v5534_v60 = vld [vmem:[#allocation2 + $0x84] sm:$0xf]  ;;  %5490 = vst.msk [vmem:[#allocation3 + $0x1a4] sm:$0xf] %vm224_vm4, %v5458_v22 }
 0x291   : > { %v4995_v5 = vpack.c.bf16 %v4963_v53, %v4963_v53  ;;  %v4832_v1 = vpop.f32.mrf.mxu3  ;;  %5398 = vst.msk [vmem:[#allocation2 + $0x88] sm:$0xf] %vm224_vm4, %v5190_v21  ;;  %v5812_v29 = vsel %vm11335_vm11, %v5807_v41, %v5811_v44  ;;  %v5814_v17 = vshrl.u32 %v5534_v60, 16  ;;  %v5817_v40 = vshll.u32 %v5534_v60, 16  ;;  %v15127_v53 = vld [vmem:[#allocation10_spill] sm:$0xff] }
 0x292   : > { %v5954_v14 = vpop.permute.xlu2 %5953  ;;  %v10385_v63 = vld [vmem:[#allocation3 + $0x78] sm:$0xf]  ;;  %5401 = vst [vmem:[#allocation2 + $0x8c] sm:$0x1] %v5400_v50  ;;  %5975 = vrot.lane.b32.xlu1 %v5812_v29, %s11174_s10  ;;  %v4833_v55 = vadd.f32 %v4832_v1, %v4744_v27  ;;  %v4657_v18 = vadd.f32 %v15127_v53, %v4568_v10  ;;  %v6535_v29 = vld [vmem:[#allocation2 + $0x34] sm:$0xf] }
 0x293   : > { %v5193_v9 = vshrl.u32 %v4995_v5, 16  ;;  %v10386_v15 = vor.u32 %v10942_v38, %v10385_v63  ;;  %6039 = vst.msk [vmem:[#allocation3 + $0xc8] sm:$0xf] %vm1430_vm12, %v5954_v14  ;;  %v5816_v52 = vrot.slane %v5814_v17, 4  ;;  %v5819_v56 = vrot.slane %v5817_v40, 5 }
 0x294   : > { %v4918_v58 = vpop.f32.mrf.mxu0  ;;  %v5196_v32 = vshll.u32 %v4995_v5, 16  ;;  %v5406_v17 = vld [vmem:[#allocation2 + $0x98] sm:$0x1]  ;;  %v6655_v62 = vshll.u32 %v6535_v29, 16  ;;  %v6659_v48 = vshrl.u32 %v6535_v29, 16 }
 0x295   : > { %v5195_v2 = vrot.slane %v5193_v9, 7  ;;  %v4919_v51 = vadd.f32 %v4918_v58, %v4830_v19  ;;  %9112 = vmatmul.bf16.gmra.mxu1 %v10386_v15  ;;  %v5820_v19 = vor.u32 %v5819_v56, %v5816_v52 }
 0x296   : > { %v5950_v12 = vpop.permute.xlu0 %5949  ;;  %v4745_v61 = vpop.f32.mrf.mxu2 }
 0x297   : > { %6037 = vst.msk [vmem:[#allocation3 + $0xa0] sm:$0xf] %vm1430_vm12, %v5950_v12  ;;  %v5198_v42 = vor.u32 %v5196_v32, %v5195_v2  ;;  %v4964_v35 = vmax.f32 %v4919_v51, 0.0  ;;  %v5821_v21 = vrot.slane %v5820_v19, 4  ;;  %v4746_v59 = vadd.f32 %v4745_v61, %v4657_v18  ;;  %v11020_v61 = vld [vmem:[%s15080_s3 + $0x78] sm:$0xff] }
 0x298   : > { %v5535_v11 = vld [vmem:[#allocation2 + $0x88] sm:$0xf]  ;;  %v5199_v9 = vrot.slane %v5195_v2, 4  ;;  %v11028_v19 = vld [vmem:[%s15080_s3 + $0xb8] sm:$0xff]  ;;  %9178 = vmatpush.bf16.msra.mxu2 %v11020_v61 }
 0x299   : > { %v5403_v34 = vsel %vm11296_vm7, %v5198_v42, %v5402_v46  ;;  %v4996_v37 = vpack.c.bf16 %v4964_v35, %v4964_v35  ;;  %v5823_v13 = vshll.u32 %v5535_v11, 16  ;;  %v5827_v25 = vshrl.u32 %v5535_v11, 16  ;;  %v5536_v33 = vld [vmem:[#allocation2 + $0x8c] sm:$0x1]  ;;  %v4834_v44 = vpop.f32.mrf.mxu3  ;;  %v11036_v11 = vld [vmem:[%s15080_s3 + $0xf8] sm:$0xff]  ;;  %9267 = vmatpush.bf16.msra.mxu3 %v11028_v19 }
 0x29a   : > { %v5952_v39 = vpop.permute.xlu1 %5951  ;;  %5404 = vst [vmem:[#allocation2 + $0x90] sm:$0xf] %v5403_v34  ;;  %v5833_v14 = vshll.u32 %v5536_v33, 16  ;;  %v4835_v27 = vadd.f32 %v4834_v44, %v4746_v59  ;;  %9356 = vmatpush.bf16.msra.mxu0 %v11036_v11 }
 0x29b   : > { %v5201_v41 = vshrl.u32 %v4996_v37, 16  ;;  %6038 = vst.msk [vmem:[#allocation3 + $0xb4] sm:$0xf] %vm1430_vm12, %v5952_v39  ;;  %v5825_v50 = vrot.slane %v5823_v13, 5  ;;  %v5829_v5 = vrot.slane %v5827_v25, 4  ;;  %v5204_v38 = vshll.u32 %v4996_v37, 16 }
 0x29c   : > { %v4921_v30 = vpop.f32.mrf.mxu0  ;;  %v5835_v56 = vrot.slane %v5833_v14, 5  ;;  %v11040_v39 = vld [vmem:[%s15080_s3 + $0x118] sm:$0xff]  ;;  %v13458_v13 = vrot.slane %v6655_v62, 5  ;;  %v6661_v25 = vrot.slane %v6659_v48, 4 }
 0x29d   : > { %v5203_v60 = vrot.slane %v5201_v41, 7  ;;  %v4922_v1 = vadd.f32 %v4921_v30, %v4833_v55  ;;  %v5826_v40 = vsel %vm11335_vm11, %v5821_v21, %v5825_v50  ;;  %v5830_v63 = vor.u32 %v5829_v5, %v5825_v50  ;;  %v15128_v41 = vld [vmem:[#allocation11_spill] sm:$0xff]  ;;  %v15129_v50 = vld [vmem:[#allocation12_spill] sm:$0xff]  ;;  %9449 = vmatpush.bf16.msra.mxu1 %v11040_v39 }
 0x29e   : > { %5977 = vrot.lane.b32.xlu2 %v5826_v40, %s11174_s10  ;;  %v10405_v46 = vld [vmem:[#allocation3 + $0xa0] sm:$0xf]  ;;  %v4573_v5 = vadd.f32 %v13336_v6, %v15129_v50  ;;  %v5409_v14 = vld [vmem:[#allocation2 + $0x9c] sm:$0xf]  ;;  %v6662_v6 = vor.u32 %v6661_v25, %v13458_v13 }
 0x29f   : > { %v5206_v15 = vor.u32 %v5204_v38, %v5203_v60  ;;  %v5208_v24 = vrot.slane %v5203_v60, 4  ;;  %v4965_v58 = vmax.f32 %v4922_v1, 0.0  ;;  %v5831_v52 = vrot.slane %v5830_v63, 4  ;;  %v6536_v21 = vld [vmem:[#allocation2 + $0x38] sm:$0x1] }
 0x2a0   : > { %v5459_v60 = vld [vmem:[#allocation2 + $0x84] sm:$0xf]  ;;  %v6665_v29 = vshll.u32 %v6536_v21, 16 }
 0x2a1   : > { %v5207_v32 = vsel %vm11305_vm10, %v5199_v9, %v5206_v15  ;;  %v5407_v51 = vsel %vm11258_vm2, %v5208_v24, %v5406_v17  ;;  %v4997_v4 = vpack.c.bf16 %v4965_v58, %v4965_v58  ;;  %v5537_v12 = vld [vmem:[#allocation2 + $0x90] sm:$0xf]  ;;  %v5836_v26 = vsel %vm11335_vm11, %v5831_v52, %v5835_v56  ;;  %5491 = vst.msk [vmem:[#allocation3 + $0x1b8] sm:$0xf] %vm224_vm4, %v5459_v60  ;;  %v15130_v15 = vld [vmem:[#allocation13_spill] sm:$0xff] }
 0x2a2   : > { %v4748_v2 = vpop.f32.mrf.mxu2  ;;  %5405 = vst.msk [vmem:[#allocation2 + $0x94] sm:$0xf] %vm224_vm4, %v5207_v32  ;;  %v5838_v45 = vshrl.u32 %v5537_v12, 16  ;;  %v5841_v57 = vshll.u32 %v5537_v12, 16  ;;  %v10947_v10 = vld [vmem:[#allocation3 + $0xb0] sm:$0xf0]  ;;  %5979 = vrot.lane.b32.xlu0 %v5836_v26, %s11174_s10  ;;  %v4662_v24 = vadd.f32 %v15130_v15, %v4573_v5 }
 0x2a3   : > { %5408 = vst [vmem:[#allocation2 + $0x98] sm:$0x1] %v5407_v51  ;;  %v5210_v42 = vshrl.u32 %v4997_v4, 16  ;;  %v10406_v35 = vor.u32 %v10947_v10, %v10405_v46  ;;  %v5213_v53 = vshll.u32 %v4997_v4, 16  ;;  %v4749_v44 = vadd.f32 %v4748_v2, %v15128_v41  ;;  %v5413_v26 = vld [vmem:[#allocation2 + $0xa4] sm:$0x1] }
 0x2a4   : > { %v4923_v34 = vpop.f32.mrf.mxu0  ;;  %v5840_v37 = vrot.slane %v5838_v45, 4  ;;  %v5843_v55 = vrot.slane %v5841_v57, 5 }
 0x2a5   : > { %v5212_v33 = vrot.slane %v5210_v42, 7  ;;  %v4924_v18 = vadd.f32 %v4923_v34, %v4835_v27  ;;  %9117 = vmatmul.bf16.gmra.mxu1 %v10406_v35  ;;  %v6663_v42 = vrot.slane %v6662_v6, 4  ;;  %v5460_v34 = vld [vmem:[#allocation2 + $0x88] sm:$0xf]  ;;  %v10425_v6 = vld [vmem:[#allocation3 + $0xc8] sm:$0xf] }
 0x2a6   : > { %v4837_v30 = vpop.f32.mrf.mxu3  ;;  %v5844_v59 = vor.u32 %v5843_v55, %v5840_v37  ;;  %v6667_v37 = vrot.slane %v6665_v29, 5  ;;  %5492 = vst.msk [vmem:[#allocation3 + $0x1cc] sm:$0xf] %vm224_vm4, %v5460_v34 }
 0x2a7   : > { %v5215_v38 = vor.u32 %v5213_v53, %v5212_v33  ;;  %v4966_v1 = vmax.f32 %v4924_v18, 0.0  ;;  %v4838_v63 = vadd.f32 %v4837_v30, %v4749_v44  ;;  %v5216_v55 = vrot.slane %v5212_v33, 4 }
 0x2a8   : > { %v5845_v48 = vrot.slane %v5844_v59, 4  ;;  %v6668_v50 = vsel %vm11335_vm11, %v6663_v42, %v6667_v37  ;;  %v2471_v42 = vld [vmem:[#allocation2 + $0xc0] sm:$0xe] }
 0x2a9   : > { %v5410_v17 = vsel %vm11296_vm7, %v5215_v38, %v5409_v14  ;;  %v4998_v40 = vpack.c.bf16 %v4966_v1, %v4966_v1  ;;  %v5538_v22 = vld [vmem:[#allocation2 + $0x94] sm:$0xf]  ;;  %v2873_v1 = vld [vmem:[#allocation2 + $0xd0] sm:$0xf]  ;;  %6996 = vst.msk [vmem:[#allocation3 + $0x94] sm:$0xf] %vm224_vm4, %v6668_v50 }
 0x2aa   : > { %v4750_v9 = vpop.f32.mrf.mxu2  ;;  %5411 = vst [vmem:[#allocation2 + $0x9c] sm:$0xf] %v5410_v17  ;;  %v5847_v58 = vshll.u32 %v5538_v22, 16  ;;  %v5851_v52 = vshrl.u32 %v5538_v22, 16  ;;  %v5539_v56 = vld [vmem:[#allocation2 + $0x98] sm:$0x1] }
 0x2ab   : > { %v5218_v62 = vshrl.u32 %v4998_v40, 16  ;;  %v4751_v4 = vadd.f32 %v4750_v9, %v4662_v24  ;;  %v5857_v2 = vshll.u32 %v5539_v56, 16  ;;  %v5221_v46 = vshll.u32 %v4998_v40, 16  ;;  %v5416_v22 = vld [vmem:[#allocation2 + $0xa8] sm:$0xf] }
 0x2ac   : > { %v4926_v32 = vpop.f32.mrf.mxu0  ;;  %v5849_v51 = vrot.slane %v5847_v58, 5  ;;  %v5853_v27 = vrot.slane %v5851_v52, 4  ;;  %v5960_v57 = vpop.permute.xlu2 %5959  ;;  %v3245_v24 = vshll.u32 %v2873_v1, 16  ;;  %v11019_v58 = vld [vmem:[%s15080_s3 + $0x70] sm:$0xff] }
 0x2ad   : > { %v5220_v12 = vrot.slane %v5218_v62, 7  ;;  %v4927_v45 = vadd.f32 %v4926_v32, %v4838_v63  ;;  %6042 = vst.msk [vmem:[#allocation3 + $0x104] sm:$0xf] %vm1430_vm12, %v5960_v57  ;;  %v5859_v41 = vrot.slane %v5857_v2, 5  ;;  %v11027_v52 = vld [vmem:[%s15080_s3 + $0xb0] sm:$0xff]  ;;  %v3249_v32 = vshrl.u32 %v2873_v1, 16  ;;  %9179 = vmatpush.bf16.msra.mxu2 %v11019_v58 }
 0x2ae   : > { %v4839_v10 = vpop.f32.mrf.mxu3  ;;  %v5850_v35 = vsel %vm11335_vm11, %v5845_v48, %v5849_v51  ;;  %v5854_v61 = vor.u32 %v5853_v27, %v5849_v51  ;;  %v5956_v19 = vpop.permute.xlu0 %5955  ;;  %v5461_v51 = vld [vmem:[#allocation2 + $0x90] sm:$0xf]  ;;  %9268 = vmatpush.bf16.msra.mxu3 %v11027_v52  ;;  %v13513_v58 = vld [vmem:[#allocation2 + $0x34] sm:$0xf] }
 0x2af   : > { %v5223_v11 = vor.u32 %v5221_v46, %v5220_v12  ;;  %v5225_v39 = vrot.slane %v5220_v12, 4  ;;  %v4967_v25 = vmax.f32 %v4927_v45, 0.0  ;;  %5981 = vrot.lane.b32.xlu1 %v5850_v35, %s11174_s10  ;;  %6040 = vst.msk [vmem:[#allocation3 + $0xdc] sm:$0xf] %vm1430_vm12, %v5956_v19  ;;  %v4840_v53 = vadd.f32 %v4839_v10, %v4751_v4  ;;  %v2874_v46 = vld [vmem:[#allocation2 + $0xd4] sm:$0x1] }
 0x2b0   : > { %v5855_v18 = vrot.slane %v5854_v61, 4  ;;  %5493 = vst.msk [vmem:[#allocation3 + $0x1e0] sm:$0xf] %vm224_vm4, %v5461_v51  ;;  %v13494_v35 = vrot.slane %v3245_v24, 5  ;;  %v3251_v61 = vrot.slane %v3249_v32, 4 }
 0x2b1   : > { %v5224_v44 = vsel %vm11305_vm10, %v5216_v55, %v5223_v11  ;;  %v5414_v30 = vsel %vm11258_vm2, %v5225_v39, %v5413_v26  ;;  %v4999_v21 = vpack.c.bf16 %v4967_v25, %v4967_v25  ;;  %v5540_v33 = vld [vmem:[#allocation2 + $0x9c] sm:$0xf]  ;;  %v2872_v11 = vld [vmem:[#allocation2 + $0xcc] sm:$0xf] }
 0x2b2   : > { %5412 = vst.msk [vmem:[#allocation2 + $0xa0] sm:$0xf] %vm224_vm4, %v5224_v44  ;;  %v5860_v5 = vsel %vm11335_vm11, %v5855_v18, %v5859_v41  ;;  %v5862_v14 = vshrl.u32 %v5540_v33, 16  ;;  %v5865_v60 = vshll.u32 %v5540_v33, 16  ;;  %v3255_v18 = vshll.u32 %v2874_v46, 16 }
 0x2b3   : > { %5415 = vst [vmem:[#allocation2 + $0xa4] sm:$0x1] %v5414_v30  ;;  %v5227_v38 = vshrl.u32 %v4999_v21, 16  ;;  %5983 = vrot.lane.b32.xlu2 %v5860_v5, %s11174_s10  ;;  %v5230_v63 = vshll.u32 %v4999_v21, 16  ;;  %v5420_v44 = vld [vmem:[#allocation2 + $0xb0] sm:$0x1] }
 0x2b4   : > { %v4928_v59 = vpop.f32.mrf.mxu0  ;;  %v5864_v29 = vrot.slane %v5862_v14, 4  ;;  %v5867_v17 = vrot.slane %v5865_v60, 5  ;;  %v5462_v33 = vld [vmem:[#allocation2 + $0x94] sm:$0xf]  ;;  %v3252_v14 = vor.u32 %v3251_v61, %v13494_v35  ;;  %v3236_v60 = vshrl.u32 %v2872_v11, 16 }
 0x2b5   : > { %v5229_v40 = vrot.slane %v5227_v38, 7  ;;  %v4929_v9 = vadd.f32 %v4928_v59, %v4840_v53  ;;  %v13496_v53 = vld [vmem:[#allocation2 + $0xc4] sm:$0xf]  ;;  %5494 = vst.msk [vmem:[#allocation3 + $0x1f4] sm:$0xf] %vm224_vm4, %v5462_v33  ;;  %v9778_v59 = vrot.slane %v2471_v42, 9 }
 0x2b6   : > { %v10952_v15 = vld [vmem:[#allocation3 + $0xd8] sm:$0xf0]  ;;  %v5868_v4 = vor.u32 %v5867_v17, %v5864_v29  ;;  %v2629_v29 = vrot.slane %v13496_v53, 5  ;;  %v3239_v24 = vshll.u32 %v2872_v11, 16  ;;  %v6076_v32 = vld [vmem:[#allocation2 + $0x3c] sm:$0xe] }
 0x2b7   : > { %v5232_v56 = vor.u32 %v5230_v63, %v5229_v40  ;;  %v4968_v62 = vmax.f32 %v4929_v9, 0.0  ;;  %v10426_v48 = vor.u32 %v10952_v15, %v10425_v6  ;;  %v5233_v41 = vrot.slane %v5229_v40, 4  ;;  %v11035_v17 = vld [vmem:[%s15080_s3 + $0xf0] sm:$0xff]  ;;  %v13524_v46 = vld [vmem:[#allocation2 + $0x40] sm:$0xf] }
 0x2b8   : > { %v5869_v19 = vrot.slane %v5868_v4, 4  ;;  %v6073_v40 = vld [vmem:[#allocation2 + $0x30] sm:$0xe]  ;;  %v13511_v15 = vrot.slane %v3255_v18, 5  ;;  %9357 = vmatpush.bf16.msra.mxu0 %v11035_v17  ;;  %v13519_v51 = vrot.slane %v3252_v14, 4  ;;  %v13521_v4 = vrot.slane %v3236_v60, 4 }
 0x2b9   : > { %v5417_v27 = vsel %vm11296_vm7, %v5232_v56, %v5416_v22  ;;  %v5000_v2 = vpack.c.bf16 %v4968_v62, %v4968_v62  ;;  %v5541_v12 = vld [vmem:[#allocation2 + $0xa0] sm:$0xf]  ;;  %9122 = vmatmul.bf16.gmra.mxu1 %v10426_v48  ;;  %v5463_v11 = vld [vmem:[#allocation2 + $0x9c] sm:$0xf]  ;;  %v6194_v33 = vrot.slane %v13524_v46, 5 }
 0x2ba   : > { %5418 = vst [vmem:[#allocation2 + $0xa8] sm:$0xf] %v5417_v27  ;;  %v5871_v26 = vshll.u32 %v5541_v12, 16  ;;  %v5875_v45 = vshrl.u32 %v5541_v12, 16  ;;  %v5542_v57 = vld [vmem:[#allocation2 + $0xa4] sm:$0x1] }
 0x2bb   : > { %v5235_v10 = vshrl.u32 %v5000_v2, 16  ;;  %v5881_v55 = vshll.u32 %v5542_v57, 16  ;;  %v5238_v25 = vshll.u32 %v5000_v2, 16  ;;  %v6538_v48 = vld [vmem:[#allocation2 + $0x40] sm:$0xf]  ;;  %v10279_v57 = vrot.slane %v6073_v40, 9 }
 0x2bc   : > { %v5873_v34 = vrot.slane %v5871_v26, 5  ;;  %v5877_v37 = vrot.slane %v5875_v45, 4  ;;  %v6539_v27 = vld [vmem:[#allocation2 + $0x44] sm:$0x1]  ;;  %v6066_v26 = vld [vmem:[#allocation2 + $0x14] sm:$0x1] }
 0x2bd   : > { %v5237_v39 = vrot.slane %v5235_v10, 7  ;;  %v5883_v1 = vrot.slane %v5881_v55, 5  ;;  %v6525_v45 = vld [vmem:[#allocation2 + $0xc] sm:$0xf]  ;;  %v6187_v10 = vrot.slane %v13513_v58, 5  ;;  %v6679_v42 = vshll.u32 %v6538_v48, 16 }
 0x2be   : > { %v5874_v30 = vsel %vm11335_vm11, %v5869_v19, %v5873_v34  ;;  %v5878_v21 = vor.u32 %v5877_v37, %v5873_v34  ;;  %v6683_v61 = vshrl.u32 %v6538_v48, 16  ;;  %v7359_v19 = vld [vmem:[#allocation2 + $0x24] sm:$0xf]  ;;  %v2630_v34 = vsel %vm11776_vm15, %v9778_v59, %v2629_v29  ;;  %5495 = vst.msk [vmem:[#allocation3 + $0x208] sm:$0xf] %vm224_vm4, %v5463_v11 }
 0x2bf   : > { %v5240_v50 = vor.u32 %v5238_v25, %v5237_v39  ;;  %v5242_v5 = vrot.slane %v5237_v39, 4  ;;  %5985 = vrot.lane.b32.xlu0 %v5874_v30, %s11174_s10  ;;  %v13531_v55 = vrot.slane %v3239_v24, 5  ;;  %v6689_v39 = vshll.u32 %v6539_v27, 16  ;;  %7391 = vst.msk [vmem:[#allocation3 + $0x34] sm:$0xf] %vm224_vm4, %v7359_v19 }
 0x2c0   : > { %v5879_v38 = vrot.slane %v5878_v21, 4  ;;  %v5958_v9 = vpop.permute.xlu1 %5957  ;;  %v6188_v25 = vsel %vm11776_vm15, %v10279_v57, %v6187_v10  ;;  %v13539_v18 = vrot.slane %v6679_v42, 5  ;;  %v10957_v60 = vld [vmem:[#allocation3 + $0x100] sm:$0xf0]  ;;  %v6574_v59 = vshrl.u32 %v6525_v45, 16 }
 0x2c1   : > { %v5241_v63 = vsel %vm11305_vm10, %v5233_v41, %v5240_v50  ;;  %v5421_v22 = vsel %vm11258_vm2, %v5242_v5, %v5420_v44  ;;  %v5543_v6 = vld [vmem:[#allocation2 + $0xa8] sm:$0xf]  ;;  %6041 = vst.msk [vmem:[#allocation3 + $0xf0] sm:$0xf] %vm1430_vm12, %v5958_v9  ;;  %v6685_v41 = vrot.slane %v6683_v61, 4  ;;  %v10280_v44 = vrot.slane %v6076_v32, 9 }
 0x2c2   : > { %5419 = vst.msk [vmem:[#allocation2 + $0xac] sm:$0xf] %vm224_vm4, %v5241_v63  ;;  %v5884_v52 = vsel %vm11335_vm11, %v5879_v38, %v5883_v1  ;;  %v5886_v56 = vshrl.u32 %v5543_v6, 16  ;;  %v5889_v62 = vshll.u32 %v5543_v6, 16  ;;  %v6691_v21 = vrot.slane %v6689_v39, 5 }
 0x2c3   : > { %5422 = vst [vmem:[#allocation2 + $0xb0] sm:$0x1] %v5421_v22  ;;  %5987 = vrot.lane.b32.xlu1 %v5884_v52, %s11174_s10  ;;  %v6168_v50 = vrot.slane %v6166_v49, 4  ;;  %v6686_v38 = vor.u32 %v6685_v41, %v13539_v18  ;;  %v6169_v1 = vrot.slane %v6066_v26, 5  ;;  %v6577_v17 = vshll.u32 %v6525_v45, 16 }
 0x2c4   : > { %v5888_v2 = vrot.slane %v5886_v56, 4  ;;  %v5891_v12 = vrot.slane %v5889_v62, 5  ;;  %6309 = vst.msk [vmem:[#allocation3 + $0xa4] sm:$0xf] %vm224_vm4, %v6188_v25  ;;  %v6069_v40 = vld [vmem:[#allocation2 + $0x20] sm:$0x1]  ;;  %v6195_v31 = vsel %vm11776_vm15, %v10280_v44, %v6194_v33  ;;  %v3242_v54 = vor.u32 %v13531_v55, %v13521_v4 }
 0x2c5   : > { %v2473_v6 = vld [vmem:[#allocation2 + $0xc8] sm:$0x1]  ;;  %v6687_v52 = vrot.slane %v6686_v38, 4  ;;  %6311 = vst.msk [vmem:[#allocation3 + $0xcc] sm:$0xf] %vm224_vm4, %v6195_v31  ;;  %v6170_v56 = vsel %vm11776_vm15, %v6168_v50, %v6169_v1  ;;  %v6576_v27 = vrot.slane %v6574_v59, 4 }
 0x2c6   : > { %v5892_v37 = vor.u32 %v5891_v12, %v5888_v2  ;;  %6304 = vst.msk [vmem:[#allocation3 + $0x40] sm:$0xf] %vm224_vm4, %v6170_v56  ;;  %v3258_v2 = vsel %vm11335_vm11, %v13519_v51, %v13511_v15  ;;  %v6579_v26 = vrot.slane %v6577_v17, 5  ;;  %v6175_v45 = vrot.slane %v6173_v20, 4  ;;  %v7358_v57 = vld [vmem:[#allocation2 + $0x1c] sm:$0xf] }
 0x2c7   : > { %v6692_v12 = vsel %vm11335_vm11, %v6687_v52, %v6691_v21  ;;  %v2631_v19 = vrot.slane %v2629_v29, 4  ;;  %v6176_v15 = vrot.slane %v6069_v40, 5  ;;  %v2632_v20 = vrot.slane %v2473_v6, 5  ;;  %v6528_v11 = vld [vmem:[#allocation2 + $0x18] sm:$0xf]  ;;  %v11026_v21 = vld [vmem:[%s15080_s3 + $0xa8] sm:$0xff] }
 0x2c8   : > { %v5893_v30 = vrot.slane %v5892_v37, 4  ;;  %v5966_v5 = vpop.permute.xlu2 %5965  ;;  %v10445_v49 = vld [vmem:[#allocation3 + $0xf0] sm:$0xf]  ;;  %6998 = vst.msk [vmem:[#allocation3 + $0xbc] sm:$0xf] %vm224_vm4, %v6692_v12  ;;  %v6580_v37 = vor.u32 %v6579_v26, %v6576_v27  ;;  %v6598_v29 = vshrl.u32 %v6528_v11, 16  ;;  %9269 = vmatpush.bf16.msra.mxu3 %v11026_v21 }
 0x2c9   : > { %v5544_v14 = vld [vmem:[#allocation2 + $0xac] sm:$0xf]  ;;  %6045 = vst.msk [vmem:[#allocation3 + $0x140] sm:$0xf] %vm1430_vm12, %v5966_v5  ;;  %v10446_v48 = vor.u32 %v10957_v60, %v10445_v49  ;;  %v6177_v53 = vsel %vm11776_vm15, %v6175_v45, %v6176_v15  ;;  %v6601_v25 = vshll.u32 %v6528_v11, 16  ;;  %v2633_v60 = vsel %vm11776_vm15, %v2631_v19, %v2632_v20 }
 0x2ca   : > { %v5895_v63 = vshll.u32 %v5544_v14, 16  ;;  %v5899_v22 = vshrl.u32 %v5544_v14, 16  ;;  %v5545_v9 = vld [vmem:[#allocation2 + $0xb0] sm:$0x1]  ;;  %7390 = vst.msk [vmem:[#allocation3 + $0x20] sm:$0xf] %vm224_vm4, %v7358_v57 }
 0x2cb   : > { %2694 = vrot.lane.b32.xlu1 %v2630_v34, %s11174_s10  ;;  %v5905_v24 = vshll.u32 %v5545_v9, 16  ;;  %9127 = vmatmul.bf16.gmra.mxu1 %v10446_v48  ;;  %v5464_v34 = vld [vmem:[#allocation2 + $0xa0] sm:$0xf]  ;;  %v6581_v44 = vrot.slane %v6580_v37, 4  ;;  %6306 = vst.msk [vmem:[#allocation3 + $0x68] sm:$0xf] %vm224_vm4, %v6177_v53 }
 0x2cc   : > { %v5897_v62 = vrot.slane %v5895_v63, 5  ;;  %v5901_v32 = vrot.slane %v5899_v22, 4  ;;  %5496 = vst.msk [vmem:[#allocation3 + $0x21c] sm:$0xf] %vm224_vm4, %v5464_v34  ;;  %v13580_v55 = vld [vmem:[#allocation2 + $0x10] sm:$0xf] }
 0x2cd   : > { %v5907_v51 = vrot.slane %v5905_v24, 5  ;;  %v6586_v50 = vsel %vm11335_vm11, %v6581_v44, %v13265_v8  ;;  %v7981_v5 = vld [vmem:[#allocation2 + $0x18] sm:$0xe]  ;;  %v3243_v14 = vrot.slane %v3242_v54, 4  ;;  %v6600_v38 = vrot.slane %v6598_v29, 4  ;;  %v11034_v53 = vld [vmem:[%s15080_s3 + $0xe8] sm:$0xff] }
 0x2ce   : > { %v5898_v42 = vsel %vm11335_vm11, %v5893_v30, %v5897_v62  ;;  %v5902_v61 = vor.u32 %v5901_v32, %v5897_v62  ;;  %v11018_v30 = vld [vmem:[%s15080_s3 + $0x68] sm:$0xff]  ;;  %6989 = vst.msk [vmem:[#allocation3 + $0x8] sm:$0xf] %vm224_vm4, %v6586_v50  ;;  %v6603_v1 = vrot.slane %v6601_v25, 5  ;;  %v7982_v17 = vld [vmem:[#allocation2 + $0x1c] sm:$0xf]  ;;  %9358 = vmatpush.bf16.msra.mxu0 %v11034_v53 }
 0x2cf   : > { %5989 = vrot.lane.b32.xlu2 %v5898_v42, %s11174_s10  ;;  %9180 = vmatpush.bf16.msra.mxu2 %v11018_v30  ;;  %v5465_v40 = vld [vmem:[#allocation2 + $0xa8] sm:$0xf]  ;;  %v10307_v22 = vrot.slane %v7981_v5, 9  ;;  %v8079_v9 = vrot.slane %v7982_v17, 5  ;;  %v7119_v8 = vrot.slane %v13580_v55, 5  ;;  %v3248_v6 = vsel %vm11335_vm11, %v3243_v14, %v13494_v35  ;;  %v11039_v30 = vld [vmem:[%s15080_s3 + $0x110] sm:$0xff] }
 0x2d0   : > { %v5903_v39 = vrot.slane %v5902_v61, 4  ;;  %v5962_v41 = vpop.permute.xlu0 %5961  ;;  %v6604_v63 = vor.u32 %v6603_v1, %v6600_v38  ;;  %5497 = vst.msk [vmem:[#allocation3 + $0x230] sm:$0xf] %vm224_vm4, %v5465_v40  ;;  %v7983_v31 = vld [vmem:[#allocation2 + $0x20] sm:$0x1]  ;;  %v6182_v48 = vrot.slane %v6180_v3, 4  ;;  %9450 = vmatpush.bf16.msra.mxu1 %v11039_v30 }
 0x2d1   : > { %6043 = vst.msk [vmem:[#allocation3 + $0x118] sm:$0xf] %vm1430_vm12, %v5962_v41  ;;  %v8080_v49 = vsel %vm11776_vm15, %v10307_v22, %v8079_v9  ;;  %v6072_v24 = vld [vmem:[#allocation2 + $0x2c] sm:$0x1]  ;;  %v8081_v52 = vrot.slane %v8079_v9, 4  ;;  %v7121_v35 = vrot.slane %v7119_v8, 4 }
 0x2d2   : > { %v5908_v4 = vsel %vm11335_vm11, %v5903_v39, %v5907_v51  ;;  %8221 = vst.msk [vmem:[#allocation3 + $0x10] sm:$0xf] %vm224_vm4, %v8080_v49  ;;  %v6333_v56 = vld [vmem:[#allocation2 + $0xc] sm:$0xf]  ;;  %v6605_v62 = vrot.slane %v6604_v63, 4  ;;  %v6183_v12 = vrot.slane %v6072_v24, 5 }
 0x2d3   : > { %3321 = vrot.lane.b32.xlu1 %v3258_v2, %s11174_s10  ;;  %5991 = vrot.lane.b32.xlu0 %v5908_v4, %s11174_s10  ;;  %v7023_v32 = vld [vmem:[#allocation2 + $0x14] sm:$0x1]  ;;  %v7361_v27 = vld [vmem:[#allocation2 + $0x30] sm:$0xf]  ;;  %v8082_v2 = vrot.slane %v7983_v31, 5  ;;  %v10308_v37 = vrot.slane %v7984_v16, 9 }
 0x2d4   : > { %v5964_v59 = vpop.permute.xlu1 %5963  ;;  %7393 = vst.msk [vmem:[#allocation3 + $0x5c] sm:$0xf] %vm224_vm4, %v7361_v27  ;;  %v6610_v26 = vsel %vm11335_vm11, %v6605_v62, %v13345_v47  ;;  %v6531_v45 = vld [vmem:[#allocation2 + $0x24] sm:$0xf]  ;;  %v7360_v19 = vld [vmem:[#allocation2 + $0x28] sm:$0xf]  ;;  %v6184_v15 = vsel %vm11776_vm15, %v6182_v48, %v6183_v12 }
 0x2d5   : > { %6044 = vst.msk [vmem:[#allocation3 + $0x12c] sm:$0xf] %vm1430_vm12, %v5964_v59  ;;  %v8083_v61 = vsel %vm11776_vm15, %v8081_v52, %v8082_v2  ;;  %v6622_v51 = vshrl.u32 %v6531_v45, 16  ;;  %v6625_v54 = vshll.u32 %v6531_v45, 16  ;;  %v7985_v20 = vld [vmem:[#allocation2 + $0x28] sm:$0xf] }
 0x2d6   : > { %6991 = vst.msk [vmem:[#allocation3 + $0x30] sm:$0xf] %vm224_vm4, %v6610_v26  ;;  %v7986_v47 = vld [vmem:[#allocation2 + $0x2c] sm:$0x1]  ;;  %v8086_v11 = vrot.slane %v7985_v20, 5  ;;  %v7122_v39 = vrot.slane %v7023_v32, 5 }
 0x2d7   : > { %2696 = vrot.lane.b32.xlu2 %v2633_v60, %s11174_s10  ;;  %8222 = vst.msk [vmem:[#allocation3 + $0x24] sm:$0xf] %vm224_vm4, %v8083_v61  ;;  %v6624_v29 = vrot.slane %v6622_v51, 4  ;;  %v6627_v25 = vrot.slane %v6625_v54, 5  ;;  %v8089_v21 = vrot.slane %v7986_v47, 5  ;;  %v6189_v40 = vrot.slane %v6187_v10, 4 }
 0x2d8   : > { %v10465_v57 = vld [vmem:[#allocation3 + $0x118] sm:$0xf]  ;;  %6308 = vst.msk [vmem:[#allocation3 + $0x90] sm:$0xf] %vm224_vm4, %v6184_v15  ;;  %v8087_v41 = vsel %vm11776_vm15, %v10308_v37, %v8086_v11  ;;  %v8088_v44 = vrot.slane %v8086_v11, 4  ;;  %v7123_v4 = vsel %vm11776_vm15, %v7121_v35, %v7122_v39 }
 0x2d9   : > { %7392 = vst.msk [vmem:[#allocation3 + $0x48] sm:$0xf] %vm224_vm4, %v7360_v19  ;;  %v6628_v50 = vor.u32 %v6627_v25, %v6624_v29  ;;  %v5466_v5 = vld [vmem:[#allocation2 + $0xac] sm:$0xf]  ;;  %v6075_v60 = vld [vmem:[#allocation2 + $0x38] sm:$0x1] }
 0x2da   : > { %8223 = vst.msk [vmem:[#allocation3 + $0x38] sm:$0xf] %vm224_vm4, %v8087_v41  ;;  %v8090_v14 = vsel %vm11776_vm15, %v8088_v44, %v8089_v21  ;;  %v13639_v1 = vld [vmem:[#allocation2 + $0x1c] sm:$0xf]  ;;  %v7362_v59 = vld [vmem:[#allocation2 + $0x34] sm:$0xf] }
 0x2db   : > { %6397 = vrot.lane.b32.xlu1 %v6333_v56, %s11174_s10  ;;  %3319 = vrot.lane.b32.xlu0 %v3248_v6, %s11174_s10  ;;  %5498 = vst.msk [vmem:[#allocation3 + $0x244] sm:$0xf] %vm224_vm4, %v5466_v5  ;;  %v6629_v17 = vrot.slane %v6628_v50, 4  ;;  %v6534_v63 = vld [vmem:[#allocation2 + $0x30] sm:$0xf]  ;;  %v6190_v22 = vrot.slane %v6075_v60, 5 }
 0x2dc   : > { %v5972_v3 = vpop.permute.xlu2 %5971  ;;  %v10962_v42 = vld [vmem:[#allocation3 + $0x128] sm:$0xf0]  ;;  %8224 = vst.msk [vmem:[#allocation3 + $0x4c] sm:$0xf] %vm224_vm4, %v8090_v14  ;;  %v6646_v9 = vshrl.u32 %v6534_v63, 16  ;;  %v6649_v6 = vshll.u32 %v6534_v63, 16 }
 0x2dd   : > { %6048 = vst.msk [vmem:[#allocation3 + $0x17c] sm:$0xf] %vm1430_vm12, %v5972_v3  ;;  %v10466_v34 = vor.u32 %v10962_v42, %v10465_v57  ;;  %v7126_v31 = vrot.slane %v13639_v1, 5  ;;  %v6634_v49 = vsel %vm11335_vm11, %v6629_v17, %v13402_v7  ;;  %v7987_v24 = vld [vmem:[#allocation2 + $0x30] sm:$0xe]  ;;  %v6191_v58 = vsel %vm11776_vm15, %v6189_v40, %v6190_v22 }
 0x2de   : > { %7394 = vst.msk [vmem:[#allocation3 + $0x70] sm:$0xf] %vm224_vm4, %v7362_v59  ;;  %v6648_v10 = vrot.slane %v6646_v9, 4  ;;  %v6651_v52 = vrot.slane %v6649_v6, 5  ;;  %v7988_v56 = vld [vmem:[#allocation2 + $0x34] sm:$0xf] }
 0x2df   : > { %9132 = vmatmul.bf16.gmra.mxu1 %v10466_v34  ;;  %6993 = vst.msk [vmem:[#allocation3 + $0x58] sm:$0xf] %vm224_vm4, %v6634_v49  ;;  %v6335_v62 = vld [vmem:[#allocation2 + $0x18] sm:$0xf]  ;;  %v7363_v48 = vld [vmem:[#allocation2 + $0x3c] sm:$0xf] }
 0x2e0   : > { %v10485_v32 = vld [vmem:[#allocation3 + $0x140] sm:$0xf]  ;;  %v7026_v35 = vld [vmem:[#allocation2 + $0x20] sm:$0x1]  ;;  %7395 = vst.msk [vmem:[#allocation3 + $0x84] sm:$0xf] %vm224_vm4, %v7363_v48  ;;  %v6652_v7 = vor.u32 %v6651_v52, %v6648_v10 }
 0x2e1   : > { %v7989_v27 = vld [vmem:[#allocation2 + $0x38] sm:$0x1]  ;;  %6310 = vst.msk [vmem:[#allocation3 + $0xb8] sm:$0xf] %vm224_vm4, %v6191_v58  ;;  %v10309_v2 = vrot.slane %v7987_v24, 9  ;;  %v8093_v12 = vrot.slane %v7988_v56, 5 }
 0x2e2   : > { %v6537_v26 = vld [vmem:[#allocation2 + $0x3c] sm:$0xf]  ;;  %v7128_v16 = vrot.slane %v7126_v31, 4  ;;  %v6653_v3 = vrot.slane %v6652_v7, 4  ;;  %v8096_v15 = vrot.slane %v7989_v27, 5  ;;  %v7129_v54 = vrot.slane %v7026_v35, 5 }
 0x2e3   : > { %7231 = vrot.lane.b32.xlu1 %v7123_v4, %s11174_s10  ;;  %v6670_v57 = vshrl.u32 %v6537_v26, 16  ;;  %v6673_v42 = vshll.u32 %v6537_v26, 16  ;;  %v8094_v19 = vsel %vm11776_vm15, %v10309_v2, %v8093_v12  ;;  %v8095_v34 = vrot.slane %v8093_v12, 4  ;;  %v13671_v53 = vld [vmem:[#allocation2 + $0x28] sm:$0xf]  ;;  %v13696_v26 = vpop.f32.mrf.mxu1 }
 0x2e4   : > { %v5968_v38 = vpop.permute.xlu0 %5967  ;;  %v6658_v51 = vsel %vm11335_vm11, %v6653_v3, %v13458_v13  ;;  %8225 = vst.msk [vmem:[#allocation3 + $0x60] sm:$0xf] %vm224_vm4, %v8094_v19  ;;  %v7130_v39 = vsel %vm11776_vm15, %v7128_v16, %v7129_v54  ;;  %v6079_v13 = vld [vmem:[#allocation2 + $0x48] sm:$0xe]  ;;  %v7364_v29 = vld [vmem:[#allocation2 + $0x40] sm:$0xf] }
 0x2e5   : > { %6046 = vst.msk [vmem:[#allocation3 + $0x154] sm:$0xf] %vm1430_vm12, %v5968_v38  ;;  %v8097_v20 = vsel %vm11776_vm15, %v8095_v34, %v8096_v15  ;;  %v6672_v47 = vrot.slane %v6670_v57, 4  ;;  %v6675_v11 = vrot.slane %v6673_v42, 5  ;;  %v6078_v25 = vld [vmem:[#allocation2 + $0x44] sm:$0x1]  ;;  %v4753_v19 = vpop.f32.mrf.mxu2 }
 0x2e6   : > { %6995 = vst.msk [vmem:[#allocation3 + $0x80] sm:$0xf] %vm224_vm4, %v6658_v51  ;;  %v7991_v44 = vld [vmem:[#allocation2 + $0x40] sm:$0xf]  ;;  %v6196_v4 = vrot.slane %v6194_v33, 4  ;;  %v7133_v50 = vrot.slane %v13671_v53, 5 }
 0x2e7   : > { %8226 = vst.msk [vmem:[#allocation3 + $0x74] sm:$0xf] %vm224_vm4, %v8097_v20  ;;  %v6676_v41 = vor.u32 %v6675_v11, %v6672_v47  ;;  %v7990_v30 = vld [vmem:[#allocation2 + $0x3c] sm:$0xe]  ;;  %v8100_v21 = vrot.slane %v7991_v44, 5  ;;  %v10281_v5 = vrot.slane %v6079_v13, 9 }
 0x2e8   : > { %7396 = vst.msk [vmem:[#allocation3 + $0x98] sm:$0xf] %vm224_vm4, %v7364_v29  ;;  %v6197_v14 = vrot.slane %v6078_v25, 5  ;;  %v7992_v60 = vld [vmem:[#allocation2 + $0x44] sm:$0x1]  ;;  %v10310_v63 = vrot.slane %v7990_v30, 9 }
 0x2e9   : > { %v6337_v38 = vld [vmem:[#allocation2 + $0x24] sm:$0xf]  ;;  %v6541_v59 = vld [vmem:[#allocation2 + $0x4c] sm:$0xf]  ;;  %v6542_v17 = vld [vmem:[#allocation2 + $0x50] sm:$0x1] }
 0x2ea   : > { %v6677_v40 = vrot.slane %v6676_v41, 4  ;;  %v6703_v6 = vshll.u32 %v6541_v59, 16  ;;  %v6707_v49 = vshrl.u32 %v6541_v59, 16  ;;  %v6198_v46 = vsel %vm11776_vm15, %v6196_v4, %v6197_v14  ;;  %v6080_v24 = vld [vmem:[#allocation2 + $0x4c] sm:$0xf]  ;;  %v11017_v3 = vld [vmem:[%s15080_s3 + $0x60] sm:$0xff] }
 0x2eb   : > { %6401 = vrot.lane.b32.xlu1 %v6335_v62, %s11174_s10  ;;  %v8102_v33 = vrot.slane %v8100_v21, 4  ;;  %v7365_v58 = vld [vmem:[#allocation2 + $0x48] sm:$0xf]  ;;  %v6713_v62 = vshll.u32 %v6542_v17, 16  ;;  %v6201_v48 = vrot.slane %v6080_v24, 5  ;;  %v8101_v35 = vsel %vm11776_vm15, %v10310_v63, %v8100_v21  ;;  %v11025_v57 = vld [vmem:[%s15080_s3 + $0xa0] sm:$0xff]  ;;  %9181 = vmatpush.bf16.msra.mxu2 %v11017_v3 }
 0x2ec   : > { %v10967_v45 = vld [vmem:[#allocation3 + $0x150] sm:$0xf0]  ;;  %v6682_v10 = vsel %vm11335_vm11, %v6677_v40, %v13539_v18  ;;  %v13686_v52 = vrot.slane %v6703_v6, 5  ;;  %v6709_v56 = vrot.slane %v6707_v49, 4  ;;  %7397 = vst.msk [vmem:[#allocation3 + $0xac] sm:$0xf] %vm224_vm4, %v7365_v58  ;;  %9270 = vmatpush.bf16.msra.mxu3 %v11025_v57 }
 0x2ed   : > { %v10486_v61 = vor.u32 %v10967_v45, %v10485_v32  ;;  %v7029_v32 = vld [vmem:[#allocation2 + $0x2c] sm:$0x1]  ;;  %6312 = vst.msk [vmem:[#allocation3 + $0xe0] sm:$0xf] %vm224_vm4, %v6198_v46  ;;  %v8103_v7 = vrot.slane %v7992_v60, 5  ;;  %v6202_v18 = vsel %vm11776_vm15, %v10281_v5, %v6201_v48  ;;  %v7135_v16 = vrot.slane %v7133_v50, 4 }
 0x2ee   : > { %v10972_v27 = vld [vmem:[#allocation3 + $0x178] sm:$0xf0]  ;;  %v6710_v2 = vor.u32 %v6709_v56, %v13686_v52  ;;  %6997 = vst.msk [vmem:[#allocation3 + $0xa8] sm:$0xf] %vm224_vm4, %v6682_v10  ;;  %v6540_v12 = vld [vmem:[#allocation2 + $0x48] sm:$0xf]  ;;  %v13734_v56 = vpop.f32.mrf.mxu1 }
 0x2ef   : > { %9137 = vmatmul.bf16.gmra.mxu1 %v10486_v61  ;;  %6313 = vst.msk [vmem:[#allocation3 + $0xf4] sm:$0xf] %vm224_vm4, %v6202_v18  ;;  %v8104_v42 = vsel %vm11776_vm15, %v8102_v33, %v8103_v7  ;;  %v6694_v61 = vshrl.u32 %v6540_v12, 16  ;;  %v6715_v15 = vrot.slane %v6713_v62, 5  ;;  %v6697_v51 = vshll.u32 %v6540_v12, 16  ;;  %v11033_v20 = vld [vmem:[%s15080_s3 + $0xe0] sm:$0xff] }
 0x2f0   : > { %v5970_v37 = vpop.permute.xlu1 %5969  ;;  %v6711_v34 = vrot.slane %v6710_v2, 4  ;;  %8227 = vst.msk [vmem:[#allocation3 + $0x88] sm:$0xf] %vm224_vm4, %v8101_v35  ;;  %v7136_v54 = vrot.slane %v7029_v32, 5  ;;  %9359 = vmatpush.bf16.msra.mxu0 %v11033_v20  ;;  %v6081_v29 = vld [vmem:[#allocation2 + $0x50] sm:$0x1]  ;;  %v4755_v32 = vpop.f32.mrf.mxu2 }
 0x2f1   : > { %6047 = vst.msk [vmem:[#allocation3 + $0x168] sm:$0xf] %vm1430_vm12, %v5970_v37  ;;  %v6696_v11 = vrot.slane %v6694_v61, 4  ;;  %v7366_v25 = vld [vmem:[#allocation2 + $0x4c] sm:$0xf]  ;;  %v6699_v41 = vrot.slane %v6697_v51, 5 }
 0x2f2   : > { %v6716_v37 = vsel %vm11335_vm11, %v6711_v34, %v6715_v15  ;;  %8228 = vst.msk [vmem:[#allocation3 + $0x9c] sm:$0xf] %vm224_vm4, %v8104_v42  ;;  %v7137_v13 = vsel %vm11776_vm15, %v7135_v16, %v7136_v54  ;;  %v15131_v44 = vld [vmem:[#allocation14_spill] sm:$0xff]  ;;  %v7994_v21 = vld [vmem:[#allocation2 + $0x4c] sm:$0xf]  ;;  %v6204_v59 = vrot.slane %v6081_v29, 5 }
 0x2f3   : > { %7235 = vrot.lane.b32.xlu1 %v7130_v39, %s11174_s10  ;;  %v7993_v39 = vld [vmem:[#allocation2 + $0x48] sm:$0xe]  ;;  %7000 = vst.msk [vmem:[#allocation3 + $0xe4] sm:$0xf] %vm224_vm4, %v6716_v37  ;;  %v4754_v4 = vadd.f32 %v4753_v19, %v15131_v44  ;;  %v6700_v17 = vor.u32 %v6699_v41, %v6696_v11  ;;  %v7995_v40 = vld [vmem:[#allocation2 + $0x50] sm:$0x1] }
 0x2f4   : > { %7398 = vst.msk [vmem:[#allocation3 + $0xc0] sm:$0xf] %vm224_vm4, %v7366_v25  ;;  %v10311_v5 = vrot.slane %v7993_v39, 9  ;;  %v8107_v63 = vrot.slane %v7994_v21, 5  ;;  %v13728_v46 = vld [vmem:[#allocation2 + $0x34] sm:$0xf] }
 0x2f5   : > { %v6701_v24 = vrot.slane %v6700_v17, 4  ;;  %v15133_v7 = vld [vmem:[#allocation16_spill] sm:$0xff]  ;;  %v6339_v18 = vld [vmem:[#allocation2 + $0x30] sm:$0xf]  ;;  %v7140_v12 = vrot.slane %v13728_v46, 5  ;;  %v11022_v53 = vld [vmem:[%s15080_s3 + $0x88] sm:$0xff] }
 0x2f6   : > { %v8108_v58 = vsel %vm11776_vm15, %v10311_v5, %v8107_v63  ;;  %v8109_v10 = vrot.slane %v8107_v63, 4  ;;  %v6543_v3 = vld [vmem:[#allocation2 + $0x54] sm:$0xf]  ;;  %v13752_v25 = vpop.f32.mrf.mxu1  ;;  %v6544_v17 = vld [vmem:[#allocation2 + $0x58] sm:$0xf] }
 0x2f7   : > { %v6706_v35 = vsel %vm11335_vm11, %v6701_v24, %v13686_v52  ;;  %8229 = vst.msk [vmem:[#allocation3 + $0xb0] sm:$0xf] %vm224_vm4, %v8108_v58  ;;  %v7032_v52 = vld [vmem:[#allocation2 + $0x38] sm:$0x1]  ;;  %v6718_v61 = vshrl.u32 %v6543_v3, 16  ;;  %v6721_v19 = vshll.u32 %v6543_v3, 16 }
 0x2f8   : > { %v5978_v22 = vpop.permute.xlu2 %5977  ;;  %v10505_v9 = vld [vmem:[#allocation3 + $0x168] sm:$0xf]  ;;  %6999 = vst.msk [vmem:[#allocation3 + $0xd0] sm:$0xf] %vm224_vm4, %v6706_v35  ;;  %v7142_v11 = vrot.slane %v7140_v12, 4  ;;  %v6727_v63 = vshll.u32 %v6544_v17, 16 }
 0x2f9   : > { %6051 = vst.msk [vmem:[#allocation3 + $0x1b8] sm:$0xf] %vm1430_vm12, %v5978_v22  ;;  %v10506_v45 = vor.u32 %v10972_v27, %v10505_v9  ;;  %v11106_v22 = vld [vmem:[%s15079_s2] ss:$0 sm:$0xff]  ;;  %v15132_v9 = vld [vmem:[#allocation15_spill] sm:$0xff]  ;;  %v6723_v29 = vrot.slane %v6721_v19, 5 }
 0x2fa   : > { %v4578_v6 = vadd.f32 %v11106_v22, %v15132_v9  ;;  %v5423_v21 = vld [vmem:[#allocation2 + $0xb4] sm:$0xf]  ;;  %v6731_v22 = vshrl.u32 %v6544_v17, 16  ;;  %v6083_v9 = vld [vmem:[#allocation2 + $0x58] sm:$0xf] }
 0x2fb   : > { %6405 = vrot.lane.b32.xlu1 %v6337_v38, %s11174_s10  ;;  %v6203_v38 = vrot.slane %v6201_v48, 4  ;;  %v8110_v48 = vrot.slane %v7995_v40, 5  ;;  %v6082_v5 = vld [vmem:[#allocation2 + $0x54] sm:$0xe]  ;;  %v6545_v24 = vld [vmem:[#allocation2 + $0x5c] sm:$0x1] }
 0x2fc   : > { %v4931_v30 = vpop.f32.mrf.mxu0  ;;  %v4667_v27 = vadd.f32 %v15133_v7, %v4578_v6  ;;  %v10282_v58 = vrot.slane %v6082_v5, 9  ;;  %v6733_v35 = vrot.slane %v6731_v22, 4  ;;  %v6084_v19 = vld [vmem:[#allocation2 + $0x5c] sm:$0x1]  ;;  %v6358_v36 = vld [vmem:[#allocation2 + $0xa0] sm:$0xf] }
 0x2fd   : > { %v6205_v33 = vsel %vm11776_vm15, %v6203_v38, %v6204_v59  ;;  %v8111_v16 = vsel %vm11776_vm15, %v8109_v10, %v8110_v48  ;;  %v13759_v59 = vld [vmem:[#allocation2 + $0x40] sm:$0xf]  ;;  %v6208_v10 = vrot.slane %v6083_v9, 5  ;;  %v6211_v5 = vrot.slane %v6084_v19, 5  ;;  %v13793_v9 = vld [vmem:[#allocation2 + $0x1c] sm:$0xf] }
 0x2fe   : > { %6314 = vst.msk [vmem:[#allocation3 + $0x108] sm:$0xf] %vm224_vm4, %v6205_v33  ;;  %v4756_v57 = vadd.f32 %v4755_v32, %v4667_v27  ;;  %v13764_v33 = vld [vmem:[#allocation2 + $0x18] sm:$0xf]  ;;  %v7147_v48 = vrot.slane %v13759_v59, 5  ;;  %v6729_v32 = vrot.slane %v6727_v63, 5 }
 0x2ff   : > { %9142 = vmatmul.bf16.gmra.mxu1 %v10506_v45  ;;  %v7367_v45 = vld [vmem:[#allocation2 + $0x54] sm:$0xf]  ;;  %8230 = vst.msk [vmem:[#allocation3 + $0xc4] sm:$0xf] %vm224_vm4, %v8111_v16  ;;  %v11016_v27 = vld [vmem:[%s15080_s3 + $0x58] sm:$0xff]  ;;  %v7470_v16 = vshrl.u32 %v13764_v33, 16 }
 0x300   : > { %v5974_v47 = vpop.permute.xlu0 %5973  ;;  %7399 = vst.msk [vmem:[#allocation3 + $0xd4] sm:$0xf] %vm224_vm4, %v7367_v45  ;;  %v6734_v3 = vor.u32 %v6733_v35, %v6729_v32  ;;  %9182 = vmatpush.bf16.msra.mxu2 %v11016_v27  ;;  %v1977_v27 = vld [vmem:[#allocation2 + $0xc8] sm:$0x1]  ;;  %v11013_v59 = vld [vmem:[%s15080_s3 + $0x40] sm:$0xff] }
 0x301   : > { %6049 = vst.msk [vmem:[#allocation3 + $0x190] sm:$0xf] %vm1430_vm12, %v5974_v47  ;;  %v13806_v19 = vrot.slane %v7470_v16, 4 }
 0x303   : > { %7239 = vrot.lane.b32.xlu1 %v7137_v13, %s11174_s10  ;;  %v6720_v13 = vrot.slane %v6718_v61, 4  ;;  %v6341_v61 = vld [vmem:[#allocation2 + $0x3c] sm:$0xf] }
 0x304   : > { %v5976_v14 = vpop.permute.xlu1 %5975  ;;  %v4933_v39 = vpop.f32.mrf.mxu0 }
 0x305   : > { %6050 = vst.msk [vmem:[#allocation3 + $0x1a4] sm:$0xf] %vm1430_vm12, %v5976_v14  ;;  %v6724_v40 = vor.u32 %v6723_v29, %v6720_v13  ;;  %v7149_v13 = vrot.slane %v7147_v48, 4  ;;  %v7369_v29 = vld [vmem:[#allocation2 + $0x60] sm:$0xf] }
 0x306   : > { %v4842_v60 = vpop.f32.mrf.mxu3  ;;  %7401 = vst.msk [vmem:[#allocation3 + $0xfc] sm:$0xf] %vm224_vm4, %v7369_v29 }
 0x307   : > { %v4843_v49 = vadd.f32 %v4842_v60, %v4754_v4  ;;  %v6725_v45 = vrot.slane %v6724_v40, 4 }
 0x308   : > { %v10525_v15 = vld [vmem:[#allocation3 + $0x190] sm:$0xf] }
 0x309   : > { %v4932_v62 = vadd.f32 %v4931_v30, %v4843_v49  ;;  %v7143_v30 = vrot.slane %v7032_v52, 5 }
 0x30b   : > { %v4969_v2 = vmax.f32 %v4932_v62, 0.0  ;;  %6409 = vrot.lane.b32.xlu1 %v6339_v18, %s11174_s10  ;;  %v7144_v38 = vsel %vm11776_vm15, %v7142_v11, %v7143_v30  ;;  %v6209_v18 = vsel %vm11776_vm15, %v10282_v58, %v6208_v10  ;;  %v1976_v30 = vld [vmem:[#allocation2 + $0xc4] sm:$0xf] }
 0x30c   : > { %v10977_v51 = vld [vmem:[#allocation3 + $0x1a0] sm:$0xf0]  ;;  %6315 = vst.msk [vmem:[#allocation3 + $0x11c] sm:$0xf] %vm224_vm4, %v6209_v18 }
 0x30d   : > { %v5001_v42 = vpack.c.bf16 %v4969_v2, %v4969_v2  ;;  %v5984_v34 = vpop.permute.xlu2 %5983  ;;  %v10526_v47 = vor.u32 %v10977_v51, %v10525_v15  ;;  %v11024_v2 = vld [vmem:[%s15080_s3 + $0x98] sm:$0xff]  ;;  %v6735_v51 = vrot.slane %v6734_v3, 4  ;;  %v2358_v3 = vshll.u32 %v1977_v27, 16 }
 0x30e   : > { %v4844_v54 = vpop.f32.mrf.mxu3  ;;  %6054 = vst.msk [vmem:[#allocation3 + $0x1f4] sm:$0xf] %vm1430_vm12, %v5984_v34  ;;  %9271 = vmatpush.bf16.msra.mxu3 %v11024_v2  ;;  %v6730_v34 = vsel %vm11335_vm11, %v6725_v45, %v6729_v32  ;;  %v5427_v15 = vld [vmem:[#allocation2 + $0xbc] sm:$0x1]  ;;  %v2352_v2 = vshrl.u32 %v1976_v30, 16 }
 0x30f   : > { %v5244_v20 = vshrl.u32 %v5001_v42, 16  ;;  %v4845_v37 = vadd.f32 %v4844_v54, %v4756_v57  ;;  %v5247_v44 = vshll.u32 %v5001_v42, 16  ;;  %9147 = vmatmul.bf16.gmra.mxu1 %v10526_v47  ;;  %v6737_v57 = vshll.u32 %v6545_v24, 16  ;;  %7001 = vst.msk [vmem:[#allocation3 + $0xf8] sm:$0xf] %vm224_vm4, %v6730_v34 }
 0x310   : > { %v6210_v54 = vrot.slane %v6208_v10, 4  ;;  %v7473_v34 = vshll.u32 %v13764_v33, 16  ;;  %v2794_v33 = vld [vmem:[#allocation2 + $0xd0] sm:$0xf] }
 0x311   : > { %v13754_v41 = vrot.slane %v5244_v20, 7  ;;  %v4934_v4 = vadd.f32 %v4933_v39, %v4845_v37  ;;  %v13781_v20 = vpop.f32.mrf.mxu1  ;;  %v7035_v39 = vld [vmem:[#allocation2 + $0x44] sm:$0x1]  ;;  %2826 = vst.msk [vmem:[#allocation3 + $0x278] sm:$0xf] %vm224_vm4, %v2794_v33 }
 0x312   : > { %v7150_v32 = vrot.slane %v7035_v39, 5  ;;  %v2360_v39 = vrot.slane %v2358_v3, 5  ;;  %v7424_v3 = vld [vmem:[#allocation2 + $0x24] sm:$0xf] }
 0x313   : > { %v5249_v14 = vor.u32 %v5247_v44, %v13754_v41  ;;  %v4970_v60 = vmax.f32 %v4934_v4, 0.0  ;;  %7243 = vrot.lane.b32.xlu1 %v7144_v38, %s11174_s10  ;;  %v5250_v47 = vrot.slane %v13754_v41, 4  ;;  %v10545_v44 = vld [vmem:[#allocation3 + $0x1b8] sm:$0xf]  ;;  %v1975_v4 = vld [vmem:[#allocation2 + $0xc0] sm:$0xf] }
 0x314   : > { %v5980_v62 = vpop.permute.xlu0 %5979  ;;  %v2339_v38 = vshrl.u32 %v1975_v4, 16  ;;  %v2342_v17 = vshll.u32 %v1975_v4, 16  ;;  %v7497_v33 = vshll.u32 %v7424_v3, 16 }
 0x315   : > { %v5424_v6 = vsel %vm11296_vm7, %v5249_v14, %v5423_v21  ;;  %v5002_v49 = vpack.c.bf16 %v4970_v60, %v4970_v60  ;;  %6052 = vst.msk [vmem:[#allocation3 + $0x1cc] sm:$0xf] %vm1430_vm12, %v5980_v62  ;;  %v6739_v21 = vrot.slane %v6737_v57, 5  ;;  %v2348_v62 = vshll.u32 %v1976_v30, 16  ;;  %v11032_v57 = vld [vmem:[%s15080_s3 + $0xd8] sm:$0xff] }
 0x316   : > { %5425 = vst [vmem:[#allocation2 + $0xb4] sm:$0xf] %v5424_v6  ;;  %v2341_v58 = vrot.slane %v2339_v38, 4  ;;  %v2344_v10 = vrot.slane %v2342_v17, 5  ;;  %9360 = vmatpush.bf16.msra.mxu0 %v11032_v57  ;;  %v6343_v57 = vld [vmem:[#allocation2 + $0x48] sm:$0xf] }
 0x317   : > { %v5252_v7 = vshrl.u32 %v5002_v49, 16  ;;  %v5255_v52 = vshll.u32 %v5002_v49, 16  ;;  %v6740_v6 = vsel %vm11335_vm11, %v6735_v51, %v6739_v21  ;;  %v6212_v49 = vsel %vm11776_vm15, %v6210_v54, %v6211_v5  ;;  %v13817_v21 = vld [vmem:[#allocation2 + $0x4c] sm:$0xf]  ;;  %v6548_v5 = vld [vmem:[#allocation2 + $0x68] sm:$0x1] }
 0x318   : > { %v2345_v18 = vor.u32 %v2344_v10, %v2341_v58  ;;  %v2350_v45 = vrot.slane %v2348_v62, 5  ;;  %7002 = vst.msk [vmem:[#allocation3 + $0x10c] sm:$0xf] %vm224_vm4, %v6740_v6 }
 0x319   : > { %v5254_v42 = vrot.slane %v5252_v7, 7  ;;  %6316 = vst.msk [vmem:[#allocation3 + $0x130] sm:$0xf] %vm224_vm4, %v6212_v49  ;;  %v13815_v4 = vpop.f32.mrf.mxu1 }
 0x31a   : > { %v2346_v54 = vrot.slane %v2345_v18, 4 }
 0x31b   : > { %v5257_v37 = vor.u32 %v5255_v52, %v5254_v42  ;;  %v5259_v11 = vrot.slane %v5254_v42, 4  ;;  %6413 = vrot.lane.b32.xlu1 %v6341_v61, %s11174_s10  ;;  %v11038_v42 = vld [vmem:[%s15080_s3 + $0x108] sm:$0xff]  ;;  %v2354_v61 = vrot.slane %v2352_v2, 4  ;;  %v15088_v2 = vrot.slane %v13817_v21, 5 }
 0x31c   : > { %v10982_v40 = vld [vmem:[#allocation3 + $0x1c8] sm:$0xf0]  ;;  %9451 = vmatpush.bf16.msra.mxu1 %v11038_v42  ;;  %v7425_v42 = vld [vmem:[#allocation2 + $0x28] sm:$0xf] }
 0x31d   : > { %v5258_v14 = vsel %vm11305_vm10, %v5250_v47, %v5257_v37  ;;  %v5428_v41 = vsel %vm11258_vm2, %v5259_v11, %v5427_v15  ;;  %v5546_v60 = vld [vmem:[#allocation2 + $0xb4] sm:$0xf]  ;;  %v10546_v24 = vor.u32 %v10982_v40, %v10545_v44  ;;  %v7151_v15 = vsel %vm11776_vm15, %v7149_v13, %v7150_v32  ;;  %v6547_v37 = vld [vmem:[#allocation2 + $0x64] sm:$0xf]  ;;  %v7368_v11 = vld [vmem:[#allocation2 + $0x58] sm:$0xf] }
 0x31e   : > { %5426 = vst.msk [vmem:[#allocation2 + $0xb8] sm:$0xf] %vm224_vm4, %v5258_v14  ;;  %v5910_v63 = vshrl.u32 %v5546_v60, 16  ;;  %v5913_v22 = vshll.u32 %v5546_v60, 16  ;;  %v7479_v47 = vshll.u32 %v13793_v9, 16  ;;  %v2355_v16 = vor.u32 %v2354_v61, %v2350_v45 }
 0x31f   : > { %5429 = vst [vmem:[#allocation2 + $0xbc] sm:$0x1] %v5428_v41  ;;  %9152 = vmatmul.bf16.gmra.mxu1 %v10546_v24  ;;  %v6751_v29 = vshll.u32 %v6547_v37, 16  ;;  %v6085_v44 = vld [vmem:[#allocation2 + $0x60] sm:$0xe]  ;;  %v2351_v13 = vsel %vm11335_vm11, %v2346_v54, %v2350_v45  ;;  %v6761_v32 = vshll.u32 %v6548_v5, 16 }
 0x320   : > { %v5912_v35 = vrot.slane %v5910_v63, 4  ;;  %v5915_v7 = vrot.slane %v5913_v22, 5  ;;  %2424 = vst.msk [vmem:[#allocation3 + $0x260] sm:$0xf] %vm224_vm4, %v2351_v13  ;;  %v2356_v17 = vrot.slane %v2355_v16, 4  ;;  %v6755_v63 = vshrl.u32 %v6547_v37, 16 }
 0x321   : > { %v5982_v52 = vpop.permute.xlu1 %5981  ;;  %v13823_v40 = vrot.slane %v6751_v29, 5  ;;  %v13825_v22 = vld [vmem:[#allocation2 + $0x64] sm:$0xf]  ;;  %7400 = vst.msk [vmem:[#allocation3 + $0xe8] sm:$0xf] %vm224_vm4, %v7368_v11  ;;  %v7475_v45 = vrot.slane %v7473_v34, 5 }
 0x322   : > { %6053 = vst.msk [vmem:[#allocation3 + $0x1e0] sm:$0xf] %vm1430_vm12, %v5982_v52  ;;  %v5916_v51 = vor.u32 %v5915_v7, %v5912_v35  ;;  %v6215_v58 = vrot.slane %v13825_v22, 5  ;;  %v2361_v10 = vsel %vm11335_vm11, %v2356_v17, %v2360_v39  ;;  %v6757_v62 = vrot.slane %v6755_v63, 4  ;;  %v7021_v34 = vld [vmem:[#allocation2 + $0xc] sm:$0xe] }
 0x323   : > { %7247 = vrot.lane.b32.xlu1 %v7151_v15, %s11174_s10  ;;  %v10283_v35 = vrot.slane %v6085_v44, 9  ;;  %2425 = vst.msk [vmem:[#allocation3 + $0x274] sm:$0xf] %vm224_vm4, %v2361_v10  ;;  %v13843_v37 = vrot.slane %v7479_v47, 5  ;;  %v7483_v11 = vshrl.u32 %v13793_v9, 16  ;;  %v7494_v39 = vshrl.u32 %v7424_v3, 16  ;;  %v13852_v47 = vpop.f32.mrf.mxu1 }
 0x324   : > { %v5917_v38 = vrot.slane %v5916_v51, 4  ;;  %v6758_v52 = vor.u32 %v6757_v62, %v13823_v40  ;;  %v7038_v16 = vld [vmem:[#allocation2 + $0x50] sm:$0x1]  ;;  %v6763_v44 = vrot.slane %v6761_v32, 5  ;;  %v7156_v13 = vrot.slane %v15088_v2, 4 }
 0x325   : > { %v5547_v30 = vld [vmem:[#allocation2 + $0xb8] sm:$0xf]  ;;  %v6216_v61 = vsel %vm11776_vm15, %v10283_v35, %v6215_v58  ;;  %v2793_v10 = vld [vmem:[#allocation2 + $0xcc] sm:$0xf]  ;;  %v7507_v62 = vshrl.u32 %v7425_v42, 16  ;;  %v7157_v32 = vrot.slane %v7038_v16, 5 }
 0x326   : > { %v5919_v14 = vshll.u32 %v5547_v30, 16  ;;  %v5923_v41 = vshrl.u32 %v5547_v30, 16  ;;  %v5548_v60 = vld [vmem:[#allocation2 + $0xbc] sm:$0x1]  ;;  %v6759_v29 = vrot.slane %v6758_v52, 4  ;;  %v10291_v35 = vrot.slane %v7021_v34, 9 }
 0x327   : > { %v5929_v24 = vshll.u32 %v5548_v60, 16  ;;  %v10987_v30 = vld [vmem:[#allocation3 + $0x1f0] sm:$0xf0]  ;;  %6317 = vst.msk [vmem:[#allocation3 + $0x144] sm:$0xf] %vm224_vm4, %v6216_v61  ;;  %v7496_v61 = vrot.slane %v7494_v39, 4 }
 0x328   : > { %v5921_v6 = vrot.slane %v5919_v14, 5  ;;  %v5925_v49 = vrot.slane %v5923_v41, 4  ;;  %v7476_v14 = vor.u32 %v7475_v45, %v13806_v19  ;;  %v7503_v41 = vshll.u32 %v7425_v42, 16  ;;  %v6061_v60 = vld [vmem:[#allocation2] sm:$0xe] }
 0x329   : > { %v5990_v7 = vpop.permute.xlu2 %5989  ;;  %v10565_v15 = vld [vmem:[#allocation3 + $0x1e0] sm:$0xf]  ;;  %v5931_v54 = vrot.slane %v5929_v24, 5  ;;  %v6764_v17 = vsel %vm11335_vm11, %v6759_v29, %v6763_v44  ;;  %v10275_v24 = vrot.slane %v6061_v60, 9  ;;  %2825 = vst.msk [vmem:[#allocation3 + $0x264] sm:$0xf] %vm224_vm4, %v2793_v10  ;;  %v7158_v42 = vsel %vm11776_vm15, %v7156_v13, %v7157_v32 }
 0x32a   : > { %v5922_v27 = vsel %vm11335_vm11, %v5917_v38, %v5921_v6  ;;  %v5926_v18 = vor.u32 %v5925_v49, %v5921_v6  ;;  %6057 = vst.msk [vmem:[#allocation3 + $0x230] sm:$0xf] %vm1430_vm12, %v5990_v7  ;;  %v10566_v9 = vor.u32 %v10987_v30, %v10565_v15  ;;  %v13855_v38 = vld [vmem:[#allocation2 + $0x4] sm:$0xf]  ;;  %v7997_v63 = vld [vmem:[#allocation2 + $0x58] sm:$0xf]  ;;  %v7120_v39 = vsel %vm11776_vm15, %v10291_v35, %v7119_v8 }
 0x32b   : > { %5993 = vrot.lane.b32.xlu2 %v5922_v27, %s11174_s10  ;;  %6417 = vrot.lane.b32.xlu1 %v6343_v57, %s11174_s10  ;;  %v6334_v6 = vld [vmem:[#allocation2 + $0x10] sm:$0xf]  ;;  %v7485_v49 = vrot.slane %v7483_v11, 4  ;;  %v6159_v19 = vrot.slane %v13855_v38, 5  ;;  %v7996_v7 = vld [vmem:[#allocation2 + $0x54] sm:$0xe] }
 0x32c   : > { %v5927_v51 = vrot.slane %v5926_v18, 4  ;;  %v7477_v45 = vrot.slane %v7476_v14, 4  ;;  %v7423_v3 = vld [vmem:[#allocation2 + $0x20] sm:$0x1]  ;;  %7004 = vst.msk [vmem:[#allocation3 + $0x134] sm:$0xf] %vm224_vm4, %v6764_v17 }
 0x32d   : > { %v6160_v57 = vsel %vm11776_vm15, %v10275_v24, %v6159_v19  ;;  %v8114_v52 = vrot.slane %v7997_v63, 5  ;;  %v7499_v15 = vrot.slane %v7497_v33, 5  ;;  %v7486_v34 = vor.u32 %v7485_v49, %v13843_v37  ;;  %v7371_v29 = vld [vmem:[#allocation2 + $0x6c] sm:$0xf]  ;;  %v7998_v44 = vld [vmem:[#allocation2 + $0x5c] sm:$0x1] }
 0x32e   : > { %v5932_v5 = vsel %vm11335_vm11, %v5927_v51, %v5931_v54  ;;  %v13870_v51 = vrot.slane %v7503_v41, 5  ;;  %v13874_v54 = vld [vmem:[#allocation2 + $0x58] sm:$0xf]  ;;  %v7509_v11 = vrot.slane %v7507_v62, 4  ;;  %v10312_v16 = vrot.slane %v7996_v7, 9  ;;  %v13895_v62 = vpop.f32.mrf.mxu1  ;;  %v11015_v32 = vld [vmem:[%s15080_s3 + $0x50] sm:$0xff] }
 0x32f   : > { %5995 = vrot.lane.b32.xlu0 %v5932_v5, %s11174_s10  ;;  %9157 = vmatmul.bf16.gmra.mxu1 %v10566_v9  ;;  %6301 = vst.msk [vmem:[#allocation3 + $0x4] sm:$0xf] %vm224_vm4, %v6160_v57  ;;  %v7489_v33 = vshll.u32 %v7423_v3, 16  ;;  %v13882_v13 = vld [vmem:[#allocation2 + $0x18] sm:$0xe]  ;;  %v8116_v41 = vrot.slane %v8114_v52, 4  ;;  %v7500_v49 = vor.u32 %v7499_v15, %v7496_v61  ;;  %v7482_v3 = vsel %vm11335_vm11, %v7477_v45, %v13843_v37 }
 0x330   : > { %v6550_v5 = vld [vmem:[#allocation2 + $0x70] sm:$0xf]  ;;  %v6088_v14 = vld [vmem:[#allocation2 + $0x6c] sm:$0xe]  ;;  %v13886_v9 = vld [vmem:[#allocation2 + $0x2c] sm:$0x1]  ;;  %v8115_v55 = vsel %vm11776_vm15, %v10312_v16, %v8114_v52  ;;  %v7510_v24 = vor.u32 %v7509_v11, %v13870_v51  ;;  %9183 = vmatpush.bf16.msra.mxu2 %v11015_v32 }
 0x331   : > { %v5986_v27 = vpop.permute.xlu0 %5985  ;;  %v2697_v18 = vpop.permute.xlu2 %2696  ;;  %v6551_v60 = vld [vmem:[#allocation2 + $0x74] sm:$0x1]  ;;  %v6775_v17 = vshll.u32 %v6550_v5, 16  ;;  %v6779_v63 = vshrl.u32 %v6550_v5, 16  ;;  %v15087_v8 = vrot.slane %v13874_v54, 5  ;;  %v10284_v52 = vrot.slane %v6088_v14, 9 }
 0x332   : > { %6055 = vst.msk [vmem:[#allocation3 + $0x208] sm:$0xf] %vm1430_vm12, %v5986_v27  ;;  %v13892_v10 = vld [vmem:[#allocation2 + $0x70] sm:$0xf]  ;;  %v6785_v27 = vshll.u32 %v6551_v60, 16  ;;  %v7491_v15 = vrot.slane %v7489_v33, 5 }
 0x333   : > { %6399 = vrot.lane.b32.xlu2 %v6334_v6, %s11174_s10  ;;  %7251 = vrot.lane.b32.xlu1 %v7158_v42, %s11174_s10  ;;  %2761 = vst.msk [vmem:[#allocation3 + $0x274] sm:$0xf] %vm1430_vm12, %v2697_v18  ;;  %v7487_v6 = vrot.slane %v7486_v34, 4  ;;  %v13900_v35 = vrot.slane %v6775_v17, 5  ;;  %v6781_v7 = vrot.slane %v6779_v63, 4  ;;  %v8117_v18 = vrot.slane %v7998_v44, 5 }
 0x334   : > { %7403 = vst.msk [vmem:[#allocation3 + $0x124] sm:$0xf] %vm224_vm4, %v7371_v29  ;;  %v13905_v57 = vld [vmem:[#allocation2 + $0x30] sm:$0xf]  ;;  %v6222_v42 = vrot.slane %v13892_v10, 5  ;;  %v10292_v34 = vrot.slane %v13882_v13, 9 }
 0x335   : > { %v5988_v30 = vpop.permute.xlu1 %5987  ;;  %8231 = vst.msk [vmem:[#allocation3 + $0xd8] sm:$0xf] %vm224_vm4, %v8115_v55  ;;  %v6345_v61 = vld [vmem:[#allocation2 + $0x54] sm:$0xf]  ;;  %v6782_v37 = vor.u32 %v6781_v7, %v13900_v35  ;;  %v8118_v45 = vsel %vm11776_vm15, %v8116_v41, %v8117_v18  ;;  %v7041_v16 = vld [vmem:[#allocation2 + $0x5c] sm:$0x1]  ;;  %v7492_v55 = vsel %vm11335_vm11, %v7487_v6, %v7491_v15 }
 0x336   : > { %6056 = vst.msk [vmem:[#allocation3 + $0x21c] sm:$0xf] %vm1430_vm12, %v5988_v30  ;;  %v11023_v11 = vld [vmem:[%s15080_s3 + $0x90] sm:$0xff]  ;;  %v13918_v29 = vrot.slane %v7500_v49, 4  ;;  %v13920_v44 = vrot.slane %v7510_v24, 4  ;;  %v7513_v30 = vshll.u32 %v13886_v9, 16 }
 0x337   : > { %7229 = vrot.lane.b32.xlu0 %v7120_v39, %s11174_s10  ;;  %v6223_v39 = vsel %vm11776_vm15, %v10284_v52, %v6222_v42  ;;  %v7163_v33 = vrot.slane %v15087_v8, 4  ;;  %9272 = vmatpush.bf16.msra.mxu3 %v11023_v11  ;;  %v7518_v5 = vshrl.u32 %v13905_v57, 16  ;;  %v6783_v14 = vrot.slane %v6782_v37, 4  ;;  %v13933_v49 = vld [vmem:[#allocation2 + $0x34] sm:$0xf] }
 0x338   : > { %v6787_v41 = vrot.slane %v6785_v27, 5  ;;  %6319 = vst.msk [vmem:[#allocation3 + $0x16c] sm:$0xf] %vm224_vm4, %v6223_v39  ;;  %v3432_v32 = vld [vmem:[#allocation2 + $0xcc] sm:$0xe]  ;;  %v7164_v15 = vrot.slane %v7041_v16, 5 }
 0x339   : > { %v10585_v17 = vld [vmem:[#allocation3 + $0x208] sm:$0xf]  ;;  %8232 = vst.msk [vmem:[#allocation3 + $0xec] sm:$0xf] %vm224_vm4, %v8118_v45  ;;  %v3433_v7 = vld [vmem:[#allocation2 + $0xd0] sm:$0xf] }
 0x33a   : > { %v6788_v27 = vsel %vm11335_vm11, %v6783_v14, %v6787_v41  ;;  %v6336_v18 = vld [vmem:[#allocation2 + $0x1c] sm:$0xf]  ;;  %v9794_v52 = vrot.slane %v3432_v32, 9  ;;  %v8026_v11 = vld [vmem:[#allocation2 + $0xcc] sm:$0xe]  ;;  %v11031_v14 = vld [vmem:[%s15080_s3 + $0xd0] sm:$0xff]  ;;  %v13947_v41 = vpop.f32.mrf.mxu1  ;;  %v7165_v16 = vsel %vm11776_vm15, %v7163_v33, %v7164_v15 }
 0x33b   : > { %7853 = vrot.lane.b32.xlu2 %v7482_v3, %s11174_s10  ;;  %6421 = vrot.lane.b32.xlu1 %v6345_v61, %s11174_s10  ;;  %v3434_v3 = vld [vmem:[#allocation2 + $0xd4] sm:$0x1]  ;;  %v3590_v61 = vrot.slane %v3433_v7, 5  ;;  %v6087_v6 = vld [vmem:[#allocation2 + $0x68] sm:$0x1]  ;;  %v7527_v32 = vshll.u32 %v13933_v49, 16 }
 0x33c   : > { %v3593_v37 = vrot.slane %v3434_v3, 5  ;;  %v8027_v45 = vld [vmem:[#allocation2 + $0xd0] sm:$0xf]  ;;  %v8028_v39 = vld [vmem:[#allocation2 + $0xd4] sm:$0x1]  ;;  %v10322_v33 = vrot.slane %v8026_v11, 9  ;;  %9361 = vmatpush.bf16.msra.mxu0 %v11031_v14  ;;  %9273 = vmatpush.bf16.msra.mxu3 %v11022_v53 }
 0x33d   : > { %v2695_v60 = vpop.permute.xlu1 %2694  ;;  %v10992_v63 = vld [vmem:[#allocation3 + $0x218] sm:$0xf0]  ;;  %7006 = vst.msk [vmem:[#allocation3 + $0x15c] sm:$0xf] %vm224_vm4, %v6788_v27  ;;  %v10887_v7 = vld [vmem:[#allocation3 + $0x270] sm:$0xf0] }
 0x33e   : > { %2760 = vst.msk [vmem:[#allocation3 + $0x260] sm:$0xf] %vm1430_vm12, %v2695_v60  ;;  %v10586_v24 = vor.u32 %v10992_v63, %v10585_v17  ;;  %v3591_v60 = vsel %vm11776_vm15, %v9794_v52, %v3590_v61  ;;  %v3592_v17 = vrot.slane %v3590_v61, 4  ;;  %v8184_v63 = vrot.slane %v8027_v45, 5  ;;  %v13959_v27 = vld [vmem:[#allocation2 + $0x64] sm:$0xf] }
 0x33f   : > { %7855 = vrot.lane.b32.xlu0 %v7492_v55, %s11174_s10  ;;  %v7521_v55 = vshll.u32 %v13905_v57, 16  ;;  %3657 = vst.msk [vmem:[#allocation3 + $0x268] sm:$0xf] %vm224_vm4, %v3591_v60  ;;  %v6217_v57 = vrot.slane %v6215_v58, 4  ;;  %v6553_v52 = vld [vmem:[#allocation2 + $0x7c] sm:$0xf]  ;;  %v7127_v45 = vsel %vm11776_vm15, %v10292_v34, %v7126_v31 }
 0x340   : > { %9162 = vmatmul.bf16.gmra.mxu1 %v10586_v24  ;;  %v13953_v24 = vrot.slane %v7518_v5, 4  ;;  %v3594_v3 = vsel %vm11776_vm15, %v3592_v17, %v3593_v37  ;;  %v8187_v5 = vrot.slane %v8028_v39, 5  ;;  %v6218_v61 = vrot.slane %v6087_v6, 5  ;;  %v6554_v11 = vld [vmem:[#allocation2 + $0x80] sm:$0x1] }
 0x341   : > { %3658 = vst.msk [vmem:[#allocation3 + $0x27c] sm:$0xf] %vm224_vm4, %v3594_v3  ;;  %v8186_v37 = vrot.slane %v8184_v63, 4  ;;  %v6799_v60 = vshll.u32 %v6553_v52, 16  ;;  %v7523_v39 = vrot.slane %v7521_v55, 5  ;;  %v6803_v6 = vshrl.u32 %v6553_v52, 16 }
 0x342   : > { %v6219_v17 = vsel %vm11776_vm15, %v6217_v57, %v6218_v61  ;;  %v8185_v1 = vsel %vm11776_vm15, %v10322_v33, %v8184_v63  ;;  %v13978_v13 = vrot.slane %v7527_v32, 5  ;;  %v7429_v31 = vld [vmem:[#allocation2 + $0x38] sm:$0x1]  ;;  %v6347_v14 = vld [vmem:[#allocation2 + $0x60] sm:$0xf]  ;;  %v6809_v3 = vshll.u32 %v6554_v11, 16 }
 0x343   : > { %6403 = vrot.lane.b32.xlu2 %v6336_v18, %s11174_s10  ;;  %7255 = vrot.lane.b32.xlu1 %v7165_v16, %s11174_s10  ;;  %v7531_v18 = vshrl.u32 %v13933_v49, 16  ;;  %v13980_v34 = vrot.slane %v6799_v60, 5  ;;  %v15086_v16 = vrot.slane %v13959_v27, 5  ;;  %v6805_v55 = vrot.slane %v6803_v6, 4  ;;  %v13989_v32 = vld [vmem:[#allocation2 + $0x7c] sm:$0xf] }
 0x344   : > { %v7506_v57 = vsel %vm11335_vm11, %v13918_v29, %v13870_v51  ;;  %v8188_v63 = vsel %vm11776_vm15, %v8186_v37, %v8187_v5  ;;  %6318 = vst.msk [vmem:[#allocation3 + $0x158] sm:$0xf] %vm224_vm4, %v6219_v17  ;;  %v7515_v33 = vrot.slane %v7513_v30, 5  ;;  %v7430_v61 = vld [vmem:[#allocation2 + $0x3c] sm:$0xf]  ;;  %v6229_v11 = vrot.slane %v13989_v32, 5 }
 0x345   : > { %v3322_v15 = vpop.permute.xlu1 %3321  ;;  %v5992_v22 = vpop.permute.xlu0 %5991  ;;  %v10105_v58 = vld [vmem:[#allocation3 + $0x260] sm:$0xf]  ;;  %v7388_v51 = vld [vmem:[#allocation2 + $0xd0] sm:$0xf]  ;;  %v7027_v30 = vld [vmem:[#allocation2 + $0x24] sm:$0xe] }
 0x346   : > { %3386 = vst.msk [vmem:[#allocation3 + $0x278] sm:$0xf] %vm1430_vm12, %v3322_v15  ;;  %v10106_v49 = vor.u32 %v10887_v7, %v10105_v58  ;;  %v7533_v7 = vrot.slane %v7531_v18, 4  ;;  %v10113_v52 = vld [vmem:[#allocation3 + $0x268] sm:$0xf]  ;;  %v7537_v18 = vshll.u32 %v7429_v31, 16  ;;  %v6806_v15 = vor.u32 %v6805_v55, %v13980_v34 }
 0x347   : > { %7233 = vrot.lane.b32.xlu0 %v7127_v45, %s11174_s10  ;;  %6058 = vst.msk [vmem:[#allocation3 + $0x244] sm:$0xf] %vm1430_vm12, %v5992_v22  ;;  %v6091_v5 = vld [vmem:[#allocation2 + $0x78] sm:$0xe]  ;;  %v13998_v22 = vpop.f32.mrf.mxu1  ;;  %v7044_v58 = vld [vmem:[#allocation2 + $0x68] sm:$0x1]  ;;  %v7516_v9 = vsel %vm11335_vm11, %v13920_v44, %v7515_v33 }
 0x348   : > { %4757 = vmatmul.bf16.gmra.mxu2 %v10106_v49  ;;  %8251 = vst.msk [vmem:[#allocation3 + $0x268] sm:$0xf] %vm224_vm4, %v8185_v1  ;;  %v10888_v29 = vld [vmem:[#allocation3 + $0x278] sm:$0xf0]  ;;  %v7170_v45 = vrot.slane %v15086_v16, 4  ;;  %v7524_v1 = vor.u32 %v7523_v39, %v13953_v24  ;;  %v7534_v31 = vor.u32 %v7533_v7, %v13978_v13  ;;  %v6811_v55 = vrot.slane %v6809_v3, 5 }
 0x349   : > { %v10114_v37 = vor.u32 %v10888_v29, %v10113_v52  ;;  %8252 = vst.msk [vmem:[#allocation3 + $0x27c] sm:$0xf] %vm224_vm4, %v8188_v63  ;;  %v10605_v17 = vld [vmem:[#allocation3 + $0x230] sm:$0xf]  ;;  %v10285_v52 = vrot.slane %v6091_v5, 9  ;;  %v7545_v33 = vshll.u32 %v7430_v61, 16 }
 0x34a   : > { %v6546_v39 = vld [vmem:[#allocation2 + $0x60] sm:$0xf]  ;;  %v7171_v7 = vrot.slane %v7044_v58, 5  ;;  %v6338_v3 = vld [vmem:[#allocation2 + $0x28] sm:$0xf]  ;;  %v7525_v29 = vrot.slane %v7524_v1, 4 }
 0x34b   : > { %7857 = vrot.lane.b32.xlu2 %v7506_v57, %s11174_s10  ;;  %6425 = vrot.lane.b32.xlu1 %v6347_v14, %s11174_s10  ;;  %v6807_v14 = vrot.slane %v6806_v15, 4  ;;  %v7542_v57 = vshrl.u32 %v7430_v61, 16  ;;  %v6230_v15 = vsel %vm11776_vm15, %v10285_v52, %v6229_v11  ;;  %v14022_v5 = vrot.slane %v7534_v31, 4  ;;  %v7373_v1 = vld [vmem:[#allocation2 + $0x78] sm:$0xf] }
 0x34c   : > { %10274 = vmatmul.msk.bf16.gmra.mxu0 %vm4447_vm0, %v10114_v37  ;;  %v6742_v61 = vshrl.u32 %v6546_v39, 16  ;;  %v14028_v58 = vrot.slane %v7537_v18, 5  ;;  %6321 = vst.msk [vmem:[#allocation3 + $0x194] sm:$0xf] %vm224_vm4, %v6230_v15  ;;  %v6745_v31 = vshll.u32 %v6546_v39, 16  ;;  %v11014_v39 = vld [vmem:[%s15080_s3 + $0x48] sm:$0xff] }
 0x34d   : > { %v14007_v60 = vld [vmem:[#allocation3 + $0x274] sm:$0xf0]  ;;  %v6398_v49 = vpop.permute.xlu1 %6397  ;;  %v3320_v6 = vpop.permute.xlu0 %3319  ;;  %v6812_v24 = vsel %vm11335_vm11, %v6807_v14, %v6811_v55  ;;  %v14030_v37 = vrot.slane %v7542_v57, 4  ;;  %v7431_v14 = vld [vmem:[#allocation2 + $0x40] sm:$0xf]  ;;  %9184 = vmatpush.bf16.msra.mxu2 %v11014_v39 }
 0x34e   : > { %7420 = vst.msk [vmem:[#allocation3 + $0x278] sm:$0xf] %vm224_vm4, %v7388_v51  ;;  %v10997_v44 = vld [vmem:[#allocation3 + $0x240] sm:$0xf0]  ;;  %v10293_v51 = vrot.slane %v7027_v30, 9  ;;  %v14033_v30 = vrot.slane %v7545_v33, 5 }
 0x34f   : > { %7859 = vrot.lane.b32.xlu0 %v7516_v9, %s11174_s10  ;;  %6493 = vst.msk [vmem:[#allocation3 + $0x4] sm:$0xf] %vm1430_vm12, %v6398_v49  ;;  %v10606_v63 = vor.u32 %v10997_v44, %v10605_v17  ;;  %v7172_v9 = vsel %vm11776_vm15, %v7170_v45, %v7171_v7  ;;  %v6094_v49 = vld [vmem:[#allocation2 + $0x84] sm:$0xe]  ;;  %v7387_v17 = vld [vmem:[#allocation2 + $0xcc] sm:$0xf]  ;;  %v14053_v15 = vpop.f32.mrf.mxu1 }
 0x350   : > { %3385 = vst.msk [vmem:[#allocation3 + $0x264] sm:$0xf] %vm1430_vm12, %v3320_v6  ;;  %v7370_v6 = vld [vmem:[#allocation2 + $0x64] sm:$0xf]  ;;  %v6556_v55 = vld [vmem:[#allocation2 + $0x88] sm:$0xf]  ;;  %v7134_v57 = vsel %vm11776_vm15, %v10293_v51, %v7133_v50 }
 0x351   : > { %9167 = vmatmul.bf16.gmra.mxu1 %v10606_v63  ;;  %7008 = vst.msk [vmem:[#allocation3 + $0x184] sm:$0xf] %vm224_vm4, %v6812_v24  ;;  %v6557_v45 = vld [vmem:[#allocation2 + $0x8c] sm:$0x1]  ;;  %v14036_v44 = vld [vmem:[#allocation2 + $0x88] sm:$0xf]  ;;  %9185 = vmatpush.bf16.msra.mxu2 %v11013_v59 }
 0x352   : > { %v14042_v52 = vld [vmem:[#allocation2 + $0x70] sm:$0xf]  ;;  %v10286_v63 = vrot.slane %v6094_v49, 9  ;;  %7402 = vst.msk [vmem:[#allocation3 + $0x110] sm:$0xf] %vm224_vm4, %v7370_v6  ;;  %v6744_v33 = vrot.slane %v6742_v61, 4  ;;  %v7530_v61 = vsel %vm11335_vm11, %v7525_v29, %v13978_v13 }
 0x353   : > { %6407 = vrot.lane.b32.xlu2 %v6338_v3, %s11174_s10  ;;  %7259 = vrot.lane.b32.xlu1 %v7172_v9, %s11174_s10  ;;  %v7999_v24 = vld [vmem:[#allocation2 + $0x60] sm:$0xe]  ;;  %v8000_v7 = vld [vmem:[#allocation2 + $0x64] sm:$0xf]  ;;  %v6823_v50 = vshll.u32 %v6556_v55, 16  ;;  %v6827_v3 = vshrl.u32 %v6556_v55, 16 }
 0x354   : > { %v6833_v9 = vshll.u32 %v6557_v45, 16  ;;  %v15092_v49 = vrot.slane %v14036_v44, 5  ;;  %7405 = vst.msk [vmem:[#allocation3 + $0x14c] sm:$0xf] %vm224_vm4, %v7373_v1  ;;  %v6349_v16 = vld [vmem:[#allocation2 + $0x6c] sm:$0xf] }
 0x355   : > { %v7232_v18 = vpop.permute.xlu1 %7231  ;;  %v6829_v55 = vrot.slane %v6827_v3, 4  ;;  %v7551_v8 = vshll.u32 %v7431_v14, 16  ;;  %v7555_v2 = vshrl.u32 %v7431_v14, 16  ;;  %v8121_v29 = vrot.slane %v8000_v7, 5  ;;  %v7432_v7 = vld [vmem:[#allocation2 + $0x44] sm:$0x1] }
 0x356   : > { %7326 = vst.msk [vmem:[#allocation3 + $0x1c] sm:$0xf] %vm1430_vm12, %v7232_v18  ;;  %v14062_v18 = vrot.slane %v6823_v50, 5  ;;  %v6237_v13 = vsel %vm11776_vm15, %v10286_v63, %v15092_v49  ;;  %v10313_v45 = vrot.slane %v7999_v24, 9  ;;  %v7540_v14 = vsel %vm11335_vm11, %v14022_v5, %v14028_v58  ;;  %v14079_v39 = vld [vmem:[#allocation2 + $0x48] sm:$0xf] }
 0x357   : > { %7237 = vrot.lane.b32.xlu0 %v7134_v57, %s11174_s10  ;;  %v10885_v51 = vld [vmem:[#allocation3 + $0x264] sm:$0xf]  ;;  %v6747_v57 = vrot.slane %v6745_v31, 5  ;;  %6323 = vst.msk [vmem:[#allocation3 + $0x1bc] sm:$0xf] %vm224_vm4, %v6237_v13  ;;  %v7548_v63 = vor.u32 %v14033_v30, %v14030_v37  ;;  %v7557_v5 = vrot.slane %v7555_v2, 4 }
 0x358   : > { %7419 = vst.msk [vmem:[#allocation3 + $0x264] sm:$0xf] %vm224_vm4, %v7387_v17  ;;  %v10110_v6 = vor.u32 %v10885_v51, %v14007_v60  ;;  %v15089_v60 = vrot.slane %v14042_v52, 5  ;;  %v6830_v17 = vor.u32 %v6829_v55, %v14062_v18  ;;  %v8001_v31 = vld [vmem:[#allocation2 + $0x68] sm:$0x1]  ;;  %v6835_v51 = vrot.slane %v6833_v9, 5 }
 0x359   : > { %v6748_v1 = vor.u32 %v6747_v57, %v6744_v33  ;;  %v7047_v53 = vld [vmem:[#allocation2 + $0x74] sm:$0x1]  ;;  %v7030_v50 = vld [vmem:[#allocation2 + $0x30] sm:$0xe]  ;;  %v14081_v3 = vld [vmem:[#allocation2 + $0x3c] sm:$0xe] }
 0x35a   : > { %4846 = vmatmul.bf16.gmra.mxu3 %v10110_v6  ;;  %v6831_v33 = vrot.slane %v6830_v17, 4  ;;  %v14085_v6 = vrot.slane %v7551_v8, 5  ;;  %v8123_v58 = vrot.slane %v8121_v29, 4  ;;  %v8124_v55 = vrot.slane %v8001_v31, 5  ;;  %v11030_v9 = vld [vmem:[%s15080_s3 + $0xc8] sm:$0xff]  ;;  %v11037_v2 = vld [vmem:[%s15080_s3 + $0x100] sm:$0xff] }
 0x35b   : > { %7861 = vrot.lane.b32.xlu2 %v7530_v61, %s11174_s10  ;;  %6429 = vrot.lane.b32.xlu1 %v6349_v16, %s11174_s10  ;;  %v6749_v24 = vrot.slane %v6748_v1, 4  ;;  %v8122_v16 = vsel %vm11776_vm15, %v10313_v45, %v8121_v29  ;;  %v7177_v37 = vrot.slane %v15089_v60, 4  ;;  %v7561_v30 = vshll.u32 %v7432_v7, 16  ;;  %v6340_v29 = vld [vmem:[#allocation2 + $0x34] sm:$0xf]  ;;  %v14110_v7 = vpop.f32.mrf.mxu1 }
 0x35c   : > { %8233 = vst.msk [vmem:[#allocation3 + $0x100] sm:$0xf] %vm224_vm4, %v8122_v16  ;;  %v6836_v8 = vsel %vm11335_vm11, %v6831_v33, %v6835_v51  ;;  %v7178_v13 = vrot.slane %v7047_v53, 5  ;;  %v14103_v17 = vld [vmem:[#allocation2 + $0x4c] sm:$0xf]  ;;  %v7566_v1 = vshrl.u32 %v14079_v39, 16  ;;  %v8125_v31 = vsel %vm11776_vm15, %v8123_v58, %v8124_v55  ;;  %9362 = vmatpush.bf16.msra.mxu0 %v11030_v9  ;;  %9452 = vmatpush.bf16.msra.mxu1 %v11037_v2 }
 0x35d   : > { %v6402_v61 = vpop.permute.xlu1 %6401  ;;  %v6754_v57 = vsel %vm11335_vm11, %v6749_v24, %v13823_v40  ;;  %7010 = vst.msk [vmem:[#allocation3 + $0x1ac] sm:$0xf] %vm224_vm4, %v6836_v8  ;;  %v6090_v45 = vld [vmem:[#allocation2 + $0x74] sm:$0x1]  ;;  %v10294_v40 = vrot.slane %v7030_v50, 9  ;;  %v7549_v53 = vrot.slane %v7548_v63, 4  ;;  %v7558_v33 = vor.u32 %v7557_v5, %v14085_v6 }
 0x35e   : > { %6495 = vst.msk [vmem:[#allocation3 + $0x2c] sm:$0xf] %vm1430_vm12, %v6402_v61  ;;  %v7179_v24 = vsel %vm11776_vm15, %v7177_v37, %v7178_v13  ;;  %v14118_v16 = vrot.slane %v7561_v30, 5  ;;  %v7569_v61 = vshll.u32 %v14079_v39, 16  ;;  %v6224_v58 = vrot.slane %v6222_v42, 4 }
 0x35f   : > { %7863 = vrot.lane.b32.xlu0 %v7540_v14, %s11174_s10  ;;  %7003 = vst.msk [vmem:[#allocation3 + $0x120] sm:$0xf] %vm224_vm4, %v6754_v57  ;;  %v6549_v14 = vld [vmem:[#allocation2 + $0x6c] sm:$0xf]  ;;  %v14124_v63 = vrot.slane %v7566_v1, 4  ;;  %v7575_v50 = vshll.u32 %v14103_v17, 16  ;;  %v7141_v10 = vsel %vm11776_vm15, %v10294_v40, %v7140_v12 }
 0x360   : > { %8234 = vst.msk [vmem:[#allocation3 + $0x114] sm:$0xf] %vm224_vm4, %v8125_v31  ;;  %v6559_v5 = vld [vmem:[#allocation2 + $0x94] sm:$0xf]  ;;  %v6225_v55 = vrot.slane %v6090_v45, 5  ;;  %v6766_v9 = vshrl.u32 %v6549_v14, 16 }
 0x361   : > { %v14127_v2 = vld [vmem:[#allocation2 + $0x54] sm:$0xf]  ;;  %v6560_v37 = vld [vmem:[#allocation2 + $0x98] sm:$0x1]  ;;  %v6847_v8 = vshll.u32 %v6559_v5, 16  ;;  %v6851_v30 = vshrl.u32 %v6559_v5, 16 }
 0x362   : > { %v14129_v57 = vld [vmem:[#allocation2 + $0x94] sm:$0xf]  ;;  %v14135_v42 = vld [vmem:[#allocation2 + $0x7c] sm:$0xf]  ;;  %v7559_v13 = vrot.slane %v7558_v33, 4  ;;  %v6769_v1 = vshll.u32 %v6549_v14, 16  ;;  %v6226_v5 = vsel %vm11776_vm15, %v6224_v58, %v6225_v55 }
 0x363   : > { %6411 = vrot.lane.b32.xlu2 %v6340_v29, %s11174_s10  ;;  %7263 = vrot.lane.b32.xlu1 %v7179_v24, %s11174_s10  ;;  %v6097_v29 = vld [vmem:[#allocation2 + $0x90] sm:$0xe]  ;;  %v5467_v31 = vld [vmem:[#allocation2 + $0xb4] sm:$0xf]  ;;  %v14139_v45 = vrot.slane %v6847_v8, 5  ;;  %v6853_v24 = vrot.slane %v6851_v30, 4  ;;  %v7554_v30 = vsel %vm11335_vm11, %v7549_v53, %v14085_v6 }
 0x364   : > { %v7571_v46 = vrot.slane %v7569_v61, 5  ;;  %v14143_v60 = vrot.slane %v7575_v50, 5  ;;  %5499 = vst.msk [vmem:[#allocation3 + $0x258] sm:$0xf] %vm224_vm4, %v5467_v31  ;;  %v6857_v12 = vshll.u32 %v6560_v37, 16  ;;  %v15091_v40 = vrot.slane %v14129_v57, 5  ;;  %v14160_v31 = vpop.f32.mrf.mxu1 }
 0x365   : > { %v7236_v39 = vpop.permute.xlu1 %7235  ;;  %v6351_v14 = vld [vmem:[#allocation2 + $0x78] sm:$0xf]  ;;  %v7579_v33 = vshrl.u32 %v14103_v17, 16  ;;  %v6768_v8 = vrot.slane %v6766_v9, 4  ;;  %v15090_v61 = vrot.slane %v14135_v42, 5  ;;  %v7590_v58 = vshrl.u32 %v14127_v2, 16 }
 0x366   : > { %7328 = vst.msk [vmem:[#allocation3 + $0x44] sm:$0xf] %vm1430_vm12, %v7236_v39  ;;  %v6854_v39 = vor.u32 %v6853_v24, %v14139_v45  ;;  %v7372_v50 = vld [vmem:[#allocation2 + $0x70] sm:$0xf]  ;;  %v7437_v55 = vld [vmem:[#allocation2 + $0x58] sm:$0xf] }
 0x367   : > { %7241 = vrot.lane.b32.xlu0 %v7141_v10, %s11174_s10  ;;  %v10287_v10 = vrot.slane %v6097_v29, 9  ;;  %6320 = vst.msk [vmem:[#allocation3 + $0x180] sm:$0xf] %vm224_vm4, %v6226_v5  ;;  %v6859_v17 = vrot.slane %v6857_v12, 5  ;;  %v6771_v29 = vrot.slane %v6769_v1, 5  ;;  %v7184_v1 = vrot.slane %v15090_v61, 4 }
 0x368   : > { %v6855_v37 = vrot.slane %v6854_v39, 4  ;;  %v7050_v6 = vld [vmem:[#allocation2 + $0x80] sm:$0x1]  ;;  %v8002_v53 = vld [vmem:[#allocation2 + $0x6c] sm:$0xe]  ;;  %v7599_v61 = vshll.u32 %v7437_v55, 16 }
 0x369   : > { %v6244_v9 = vsel %vm11776_vm15, %v10287_v10, %v15091_v40  ;;  %7404 = vst.msk [vmem:[#allocation3 + $0x138] sm:$0xf] %vm224_vm4, %v7372_v50  ;;  %v7375_v5 = vld [vmem:[#allocation2 + $0x84] sm:$0xf]  ;;  %v6772_v12 = vor.u32 %v6771_v29, %v6768_v8  ;;  %v8003_v39 = vld [vmem:[#allocation2 + $0x70] sm:$0xf]  ;;  %v7572_v8 = vor.u32 %v7571_v46, %v14124_v63 }
 0x36a   : > { %6325 = vst.msk [vmem:[#allocation3 + $0x1e4] sm:$0xf] %vm224_vm4, %v6244_v9  ;;  %v6860_v24 = vsel %vm11335_vm11, %v6855_v37, %v6859_v17  ;;  %v14172_v10 = vld [vmem:[#allocation2 + $0x50] sm:$0x1]  ;;  %v7593_v9 = vshll.u32 %v14127_v2, 16  ;;  %v6161_v17 = vrot.slane %v6159_v19, 4 }
 0x36b   : > { %7865 = vrot.lane.b32.xlu2 %v7554_v30, %s11174_s10  ;;  %6433 = vrot.lane.b32.xlu1 %v6351_v14, %s11174_s10  ;;  %v7564_v14 = vsel %vm11335_vm11, %v7559_v13, %v14118_v16  ;;  %7012 = vst.msk [vmem:[#allocation3 + $0x1d4] sm:$0xf] %vm224_vm4, %v6860_v24  ;;  %v8004_v37 = vld [vmem:[#allocation2 + $0x74] sm:$0x1]  ;;  %v6063_v50 = vld [vmem:[#allocation2 + $0x8] sm:$0x1] }
 0x36c   : > { %v6773_v29 = vrot.slane %v6772_v12, 4  ;;  %v6162_v16 = vrot.slane %v6063_v50, 5  ;;  %7407 = vst.msk [vmem:[#allocation3 + $0x174] sm:$0xf] %vm224_vm4, %v7375_v5  ;;  %v10314_v13 = vrot.slane %v8002_v53, 9  ;;  %v8128_v2 = vrot.slane %v8003_v39, 5 }
 0x36d   : > { %v6406_v30 = vpop.permute.xlu1 %6405  ;;  %v7185_v40 = vrot.slane %v7050_v6, 5  ;;  %v6342_v24 = vld [vmem:[#allocation2 + $0x40] sm:$0xf]  ;;  %v7581_v49 = vrot.slane %v7579_v33, 4  ;;  %v7603_v51 = vshrl.u32 %v7437_v55, 16  ;;  %v8131_v46 = vrot.slane %v8004_v37, 5 }
 0x36e   : > { %6497 = vst.msk [vmem:[#allocation3 + $0x54] sm:$0xf] %vm1430_vm12, %v6406_v30  ;;  %v6778_v30 = vsel %vm11335_vm11, %v6773_v29, %v13900_v35  ;;  %v6163_v63 = vsel %vm11776_vm15, %v6161_v17, %v6162_v16  ;;  %v8129_v38 = vsel %vm11776_vm15, %v10314_v13, %v8128_v2  ;;  %v8130_v19 = vrot.slane %v8128_v2, 4  ;;  %v6093_v53 = vld [vmem:[#allocation2 + $0x80] sm:$0x1] }
 0x36f   : > { %7867 = vrot.lane.b32.xlu0 %v7564_v14, %s11174_s10  ;;  %7005 = vst.msk [vmem:[#allocation3 + $0x148] sm:$0xf] %vm224_vm4, %v6778_v30  ;;  %v7186_v6 = vsel %vm11776_vm15, %v7184_v1, %v7185_v40  ;;  %v7573_v33 = vrot.slane %v7572_v8, 4  ;;  %v7585_v55 = vshll.u32 %v14172_v10, 16  ;;  %v6231_v35 = vrot.slane %v6229_v11, 4  ;;  %v14205_v8 = vpop.f32.mrf.mxu1 }
 0x370   : > { %6302 = vst.msk [vmem:[#allocation3 + $0x18] sm:$0xf] %vm224_vm4, %v6163_v63  ;;  %v7592_v5 = vrot.slane %v7590_v58, 4  ;;  %v7595_v12 = vrot.slane %v7593_v9, 5  ;;  %v14198_v39 = vrot.slane %v7599_v61, 5  ;;  %v8132_v14 = vsel %vm11776_vm15, %v8130_v19, %v8131_v46 }
 0x371   : > { %v14202_v40 = vld [vmem:[#allocation2 + $0x48] sm:$0xe]  ;;  %v7605_v1 = vrot.slane %v7603_v51, 4  ;;  %8235 = vst.msk [vmem:[#allocation3 + $0x128] sm:$0xf] %vm224_vm4, %v8129_v38  ;;  %v6232_v10 = vrot.slane %v6093_v53, 5  ;;  %v7582_v58 = vor.u32 %v7581_v49, %v14143_v60  ;;  %v7578_v17 = vsel %vm11335_vm11, %v7573_v33, %v14143_v60 }
 0x372   : > { %v6552_v37 = vld [vmem:[#allocation2 + $0x78] sm:$0xf]  ;;  %v15134_v11 = vrot.slane %v14081_v3, 9  ;;  %v7438_v9 = vld [vmem:[#allocation2 + $0x5c] sm:$0x1]  ;;  %v7596_v2 = vor.u32 %v7595_v12, %v7592_v5  ;;  %v7587_v19 = vrot.slane %v7585_v55, 5 }
 0x373   : > { %6415 = vrot.lane.b32.xlu2 %v6342_v24, %s11174_s10  ;;  %7267 = vrot.lane.b32.xlu1 %v7186_v6, %s11174_s10  ;;  %8236 = vst.msk [vmem:[#allocation3 + $0x13c] sm:$0xf] %vm224_vm4, %v8132_v14  ;;  %v7374_v51 = vld [vmem:[#allocation2 + $0x7c] sm:$0xf]  ;;  %v14217_v50 = vld [vmem:[#allocation2 + $0x88] sm:$0xf]  ;;  %v6233_v49 = vsel %vm11776_vm15, %v6231_v35, %v6232_v10  ;;  %v7606_v24 = vor.u32 %v7605_v1, %v14198_v39 }
 0x374   : > { %v7148_v61 = vsel %vm11776_vm15, %v15134_v11, %v7147_v48  ;;  %v11021_v48 = vld [vmem:[%s15080_s3 + $0x80] sm:$0xff]  ;;  %v14225_v3 = vld [vmem:[#allocation2 + $0x54] sm:$0xe]  ;;  %6322 = vst.msk [vmem:[#allocation3 + $0x1a8] sm:$0xf] %vm224_vm4, %v6233_v49  ;;  %v6790_v29 = vshrl.u32 %v6552_v37, 16 }
 0x375   : > { %v7240_v32 = vpop.permute.xlu1 %7239  ;;  %v6793_v16 = vshll.u32 %v6552_v37, 16  ;;  %v14233_v13 = vld [vmem:[#allocation2 + $0x7c] sm:$0xf]  ;;  %v7609_v30 = vshll.u32 %v7438_v9, 16  ;;  %9274 = vmatpush.bf16.msra.mxu3 %v11021_v48  ;;  %7406 = vst.msk [vmem:[#allocation3 + $0x160] sm:$0xf] %vm224_vm4, %v7374_v51 }
 0x376   : > { %7330 = vst.msk [vmem:[#allocation3 + $0x6c] sm:$0xf] %vm1430_vm12, %v7240_v32  ;;  %v8005_v63 = vld [vmem:[#allocation2 + $0x78] sm:$0xe]  ;;  %v7583_v38 = vrot.slane %v7582_v58, 4  ;;  %v10296_v46 = vrot.slane %v14202_v40, 9 }
 0x377   : > { %7245 = vrot.lane.b32.xlu0 %v7148_v61, %s11174_s10  ;;  %v8135_v60 = vrot.slane %v14233_v13, 5  ;;  %v6096_v53 = vld [vmem:[#allocation2 + $0x8c] sm:$0x1]  ;;  %v6353_v6 = vld [vmem:[#allocation2 + $0x84] sm:$0xf]  ;;  %v15093_v33 = vrot.slane %v14217_v50, 5 }
 0x378   : > { %v7439_v35 = vld [vmem:[#allocation2 + $0x60] sm:$0xf]  ;;  %v15135_v5 = vrot.slane %v14036_v44, 5  ;;  %v7440_v1 = vld [vmem:[#allocation2 + $0x64] sm:$0xf]  ;;  %v6792_v55 = vrot.slane %v6790_v29, 4  ;;  %v7588_v44 = vsel %vm11335_vm11, %v7583_v38, %v7587_v19  ;;  %v14266_v38 = vpop.f32.mrf.mxu1 }
 0x379   : > { %v6795_v10 = vrot.slane %v6793_v16, 5  ;;  %v10315_v37 = vrot.slane %v8005_v63, 9  ;;  %v14245_v32 = vrot.slane %v7596_v2, 4  ;;  %v14247_v11 = vrot.slane %v7606_v24, 4  ;;  %v7377_v58 = vld [vmem:[#allocation2 + $0x90] sm:$0xf] }
 0x37a   : > { %v6238_v12 = vrot.slane %v15135_v5, 4  ;;  %v14249_v61 = vrot.slane %v7609_v30, 5  ;;  %v6239_v9 = vrot.slane %v6096_v53, 5  ;;  %v7053_v59 = vld [vmem:[#allocation2 + $0x8c] sm:$0x1]  ;;  %v7614_v48 = vshrl.u32 %v7439_v35, 16 }
 0x37b   : > { %7869 = vrot.lane.b32.xlu2 %v7578_v17, %s11174_s10  ;;  %6437 = vrot.lane.b32.xlu1 %v6353_v6, %s11174_s10  ;;  %v7617_v49 = vshll.u32 %v7439_v35, 16  ;;  %v6562_v17 = vld [vmem:[#allocation2 + $0xa0] sm:$0xf]  ;;  %v8136_v29 = vsel %vm11776_vm15, %v10315_v37, %v8135_v60  ;;  %v7191_v16 = vrot.slane %v15093_v33, 4  ;;  %v7623_v2 = vshll.u32 %v7440_v1, 16 }
 0x37c   : > { %v11029_v24 = vld [vmem:[%s15080_s3 + $0xc0] sm:$0xff]  ;;  %v6871_v30 = vshll.u32 %v6562_v17, 16  ;;  %v6240_v63 = vsel %vm11776_vm15, %v6238_v12, %v6239_v9  ;;  %v6344_v19 = vld [vmem:[#allocation2 + $0x4c] sm:$0xf]  ;;  %v7627_v53 = vshrl.u32 %v7440_v1, 16  ;;  %v6875_v35 = vshrl.u32 %v6562_v17, 16 }
 0x37d   : > { %v6410_v51 = vpop.permute.xlu1 %6409  ;;  %v6563_v6 = vld [vmem:[#allocation2 + $0xa4] sm:$0x1]  ;;  %7409 = vst.msk [vmem:[#allocation3 + $0x19c] sm:$0xf] %vm224_vm4, %v7377_v58  ;;  %v6796_v5 = vor.u32 %v6795_v10, %v6792_v55  ;;  %v7192_v37 = vrot.slane %v7053_v59, 5  ;;  %9363 = vmatpush.bf16.msra.mxu0 %v11029_v24  ;;  %v14276_v12 = vrot.slane %v7614_v48, 4 }
 0x37e   : > { %6499 = vst.msk [vmem:[#allocation3 + $0x7c] sm:$0xf] %vm1430_vm12, %v6410_v51  ;;  %v14269_v51 = vld [vmem:[#allocation2 + $0x68] sm:$0x1]  ;;  %v14274_v33 = vld [vmem:[#allocation2 + $0x94] sm:$0xf] }
 0x37f   : > { %7871 = vrot.lane.b32.xlu0 %v7588_v44, %s11174_s10  ;;  %v14271_v44 = vrot.slane %v6871_v30, 5  ;;  %8237 = vst.msk [vmem:[#allocation3 + $0x150] sm:$0xf] %vm224_vm4, %v8136_v29  ;;  %v6877_v9 = vrot.slane %v6875_v35, 4  ;;  %v7193_v1 = vsel %vm11776_vm15, %v7191_v16, %v7192_v37  ;;  %v14282_v55 = vld [vmem:[#allocation2 + $0x98] sm:$0x1] }
 0x380   : > { %6324 = vst.msk [vmem:[#allocation3 + $0x1d0] sm:$0xf] %vm224_vm4, %v6240_v63  ;;  %v14284_v10 = vrot.slane %v7617_v49, 5  ;;  %v6881_v58 = vshll.u32 %v6563_v6, 16  ;;  %v8007_v59 = vld [vmem:[#allocation2 + $0x80] sm:$0x1] }
 0x381   : > { %v14287_v17 = vrot.slane %v7623_v2, 5  ;;  %v14289_v48 = vrot.slane %v7627_v53, 4  ;;  %v7442_v24 = vld [vmem:[#allocation2 + $0x6c] sm:$0xf]  ;;  %v6797_v30 = vrot.slane %v6796_v5, 4  ;;  %v7196_v16 = vrot.slane %v14274_v33, 5 }
 0x382   : > { %v6100_v35 = vld [vmem:[#allocation2 + $0x9c] sm:$0xe]  ;;  %v14294_v49 = vld [vmem:[#allocation2 + $0xa0] sm:$0xf]  ;;  %v8137_v6 = vrot.slane %v8135_v60, 4  ;;  %v15136_v2 = vrot.slane %v13817_v21, 5 }
 0x383   : > { %6419 = vrot.lane.b32.xlu2 %v6344_v19, %s11174_s10  ;;  %7271 = vrot.lane.b32.xlu1 %v7193_v1, %s11174_s10  ;;  %v6878_v19 = vor.u32 %v6877_v9, %v14271_v44  ;;  %v14306_v1 = vld [vmem:[#allocation2 + $0x70] sm:$0xf]  ;;  %v6802_v9 = vsel %vm11335_vm11, %v6797_v30, %v13980_v34  ;;  %v8138_v13 = vrot.slane %v8007_v59, 5  ;;  %v5468_v60 = vld [vmem:[#allocation2 + $0xb8] sm:$0xf]  ;;  %v7638_v40 = vshrl.u32 %v7442_v24, 16 }
 0x384   : > { %v7155_v53 = vsel %vm11776_vm15, %v10296_v46, %v15136_v2  ;;  %5500 = vst.msk [vmem:[#allocation3 + $0x26c] sm:$0xf] %vm224_vm4, %v5468_v60  ;;  %v7641_v46 = vshll.u32 %v7442_v24, 16  ;;  %v10288_v2 = vrot.slane %v6100_v35, 9  ;;  %v6250_v29 = vrot.slane %v14294_v49, 5 }
 0x385   : > { %v5994_v63 = vpop.permute.xlu2 %5993  ;;  %v7244_v37 = vpop.permute.xlu1 %7243  ;;  %v6879_v21 = vrot.slane %v6878_v19, 4  ;;  %v6355_v14 = vld [vmem:[#allocation2 + $0x90] sm:$0xf]  ;;  %v7198_v5 = vrot.slane %v7196_v16, 4  ;;  %v7647_v34 = vshll.u32 %v14306_v1, 16  ;;  %v7602_v24 = vsel %vm11335_vm11, %v14245_v32, %v14198_v39 }
 0x386   : > { %6059 = vst.msk [vmem:[#allocation3 + $0x258] sm:$0xf] %vm1430_vm12, %v5994_v63  ;;  %v6883_v63 = vrot.slane %v6881_v58, 5  ;;  %v8139_v58 = vsel %vm11776_vm15, %v8137_v6, %v8138_v13  ;;  %v6555_v30 = vld [vmem:[#allocation2 + $0x84] sm:$0xf]  ;;  %v14323_v19 = vpop.f32.mrf.mxu1  ;;  %v6251_v35 = vsel %vm11776_vm15, %v10288_v2, %v6250_v29 }
 0x387   : > { %7332 = vst.msk [vmem:[#allocation3 + $0x94] sm:$0xf] %vm1430_vm12, %v7244_v37  ;;  %7249 = vrot.lane.b32.xlu0 %v7155_v53, %s11174_s10  ;;  %v7376_v37 = vld [vmem:[#allocation2 + $0x88] sm:$0xf]  ;;  %v6814_v53 = vshrl.u32 %v6555_v30, 16 }
 0x388   : > { %v6884_v59 = vsel %vm11335_vm11, %v6879_v21, %v6883_v63  ;;  %7007 = vst.msk [vmem:[#allocation3 + $0x170] sm:$0xf] %vm224_vm4, %v6802_v9  ;;  %v6817_v9 = vshll.u32 %v6555_v30, 16  ;;  %v8008_v6 = vld [vmem:[#allocation2 + $0x84] sm:$0xe]  ;;  %v14338_v63 = vrot.slane %v7638_v40, 4 }
 0x389   : > { %7014 = vst.msk [vmem:[#allocation3 + $0x1fc] sm:$0xf] %vm224_vm4, %v6884_v59  ;;  %v8009_v13 = vld [vmem:[#allocation2 + $0x88] sm:$0xf]  ;;  %v6816_v39 = vrot.slane %v6814_v53, 4  ;;  %v10316_v2 = vrot.slane %v8008_v6, 9 }
 0x38a   : > { %6327 = vst.msk [vmem:[#allocation3 + $0x20c] sm:$0xf] %vm224_vm4, %v6251_v35  ;;  %v6819_v32 = vrot.slane %v6817_v9, 5  ;;  %v8010_v60 = vld [vmem:[#allocation2 + $0x8c] sm:$0x1]  ;;  %v8142_v59 = vrot.slane %v8009_v13, 5 }
 0x38b   : > { %7873 = vrot.lane.b32.xlu2 %v7602_v24, %s11174_s10  ;;  %6441 = vrot.lane.b32.xlu1 %v6355_v14, %s11174_s10  ;;  %8238 = vst.msk [vmem:[#allocation3 + $0x164] sm:$0xf] %vm224_vm4, %v8139_v58  ;;  %v15137_v30 = vrot.slane %v14129_v57, 5  ;;  %v7612_v14 = vsel %vm11335_vm11, %v14247_v11, %v14249_v61  ;;  %v7379_v58 = vld [vmem:[#allocation2 + $0x9c] sm:$0xf]  ;;  %v14350_v40 = vrot.slane %v7641_v46, 5 }
 0x38c   : > { %7408 = vst.msk [vmem:[#allocation3 + $0x188] sm:$0xf] %vm224_vm4, %v7376_v37  ;;  %v6820_v53 = vor.u32 %v6819_v32, %v6816_v39  ;;  %v6099_v9 = vld [vmem:[#allocation2 + $0x98] sm:$0x1]  ;;  %v14352_v37 = vrot.slane %v7647_v34, 5  ;;  %v7651_v57 = vshrl.u32 %v14306_v1, 16  ;;  %v8143_v6 = vsel %vm11776_vm15, %v10316_v2, %v8142_v59 }
 0x38d   : > { %v6400_v21 = vpop.permute.xlu2 %6399  ;;  %v6245_v24 = vrot.slane %v15137_v30, 4  ;;  %v6414_v35 = vpop.permute.xlu1 %6413  ;;  %v6346_v13 = vld [vmem:[#allocation2 + $0x58] sm:$0xf]  ;;  %7411 = vst.msk [vmem:[#allocation3 + $0x1c4] sm:$0xf] %vm224_vm4, %v7379_v58  ;;  %v8144_v61 = vrot.slane %v8142_v59, 4 }
 0x38e   : > { %6494 = vst.msk [vmem:[#allocation3 + $0x18] sm:$0xf] %vm1430_vm12, %v6400_v21  ;;  %v6821_v11 = vrot.slane %v6820_v53, 4  ;;  %v8145_v39 = vrot.slane %v8010_v60, 5  ;;  %v6246_v32 = vrot.slane %v6099_v9, 5  ;;  %v7620_v21 = vor.u32 %v14284_v10, %v14276_v12  ;;  %v14379_v9 = vpop.f32.mrf.mxu1 }
 0x38f   : > { %6501 = vst.msk [vmem:[#allocation3 + $0xa4] sm:$0xf] %vm1430_vm12, %v6414_v35  ;;  %7875 = vrot.lane.b32.xlu0 %v7612_v14, %s11174_s10  ;;  %v14360_v30 = vld [vmem:[#allocation2 + $0x60] sm:$0xe]  ;;  %v7378_v46 = vld [vmem:[#allocation2 + $0x94] sm:$0xf] }
 0x390   : > { %8239 = vst.msk [vmem:[#allocation3 + $0x178] sm:$0xf] %vm224_vm4, %v8143_v6  ;;  %v6558_v34 = vld [vmem:[#allocation2 + $0x90] sm:$0xf]  ;;  %v6826_v1 = vsel %vm11335_vm11, %v6821_v11, %v14062_v18  ;;  %v8146_v2 = vsel %vm11776_vm15, %v8144_v61, %v8145_v39  ;;  %v6247_v60 = vsel %vm11776_vm15, %v6245_v24, %v6246_v32  ;;  %v15138_v10 = vrot.slane %v14282_v55, 5 }
 0x391   : > { %7410 = vst.msk [vmem:[#allocation3 + $0x1b0] sm:$0xf] %vm224_vm4, %v7378_v46  ;;  %v6838_v59 = vshrl.u32 %v6558_v34, 16  ;;  %v8011_v12 = vld [vmem:[#allocation2 + $0x90] sm:$0xe]  ;;  %v7630_v18 = vor.u32 %v14289_v48, %v14287_v17  ;;  %v7653_v53 = vrot.slane %v7651_v57, 4 }
 0x392   : > { %v7200_v35 = vsel %vm11776_vm15, %v7198_v5, %v15138_v10  ;;  %v10925_v14 = vld [vmem:[#allocation3 + $0x4] sm:$0xf]  ;;  %v7444_v58 = vld [vmem:[#allocation2 + $0x74] sm:$0x1]  ;;  %7009 = vst.msk [vmem:[#allocation3 + $0x198] sm:$0xf] %vm224_vm4, %v6826_v1 }
 0x393   : > { %6423 = vrot.lane.b32.xlu2 %v6346_v13, %s11174_s10  ;;  %v6841_v24 = vshll.u32 %v6558_v34, 16  ;;  %7275 = vrot.lane.b32.xlu1 %v7200_v35, %s11174_s10  ;;  %8240 = vst.msk [vmem:[#allocation3 + $0x18c] sm:$0xf] %vm224_vm4, %v8146_v2  ;;  %v6840_v55 = vrot.slane %v6838_v59, 4  ;;  %v8012_v6 = vld [vmem:[#allocation2 + $0x94] sm:$0xf] }
 0x394   : > { %v10317_v5 = vrot.slane %v8011_v12, 9  ;;  %v15139_v13 = vrot.slane %v13874_v54, 5  ;;  %v15140_v61 = vrot.slane %v14225_v3, 9  ;;  %6326 = vst.msk [vmem:[#allocation3 + $0x1f8] sm:$0xf] %vm224_vm4, %v6247_v60  ;;  %v8149_v32 = vrot.slane %v8012_v6, 5 }
 0x395   : > { %v7854_v11 = vpop.permute.xlu2 %7853  ;;  %v10327_v57 = vld [vmem:[#allocation3 + $0x14] sm:$0xf0]  ;;  %v6843_v39 = vrot.slane %v6841_v24, 5  ;;  %v7248_v46 = vpop.permute.xlu1 %7247  ;;  %v7621_v1 = vrot.slane %v7620_v21, 4  ;;  %v10298_v2 = vrot.slane %v14360_v30, 9  ;;  %v7644_v54 = vor.u32 %v14350_v40, %v14338_v63 }
 0x396   : > { %v7162_v48 = vsel %vm11776_vm15, %v15140_v61, %v15139_v13  ;;  %7949 = vst.msk [vmem:[#allocation3 + $0xc] sm:$0xf] %vm1430_vm12, %v7854_v11  ;;  %v10330_v34 = vor.u32 %v10925_v14, %v10327_v57  ;;  %v8013_v59 = vld [vmem:[#allocation2 + $0x98] sm:$0x1]  ;;  %v7631_v3 = vrot.slane %v7630_v18, 4  ;;  %v15141_v60 = vshll.u32 %v14269_v51, 16 }
 0x397   : > { %7334 = vst.msk [vmem:[#allocation3 + $0xbc] sm:$0xf] %vm1430_vm12, %v7248_v46  ;;  %7253 = vrot.lane.b32.xlu0 %v7162_v48, %s11174_s10  ;;  %v6844_v10 = vor.u32 %v6843_v39, %v6840_v55  ;;  %v8150_v35 = vsel %vm11776_vm15, %v10317_v5, %v8149_v32  ;;  %v14400_v21 = vld [vmem:[#allocation2 + $0xa0] sm:$0xf]  ;;  %v7654_v14 = vor.u32 %v7653_v53, %v14352_v37  ;;  %v7657_v24 = vshll.u32 %v7444_v58, 16 }
 0x398   : > { %v7635_v12 = vrot.slane %v15141_v60, 5  ;;  %9186 = vmatmul.bf16.vlgmr.msra.gmra.mxu2 %v10330_v34  ;;  %v8151_v63 = vrot.slane %v8149_v32, 4  ;;  %v8152_v40 = vrot.slane %v8013_v59, 5  ;;  %8241 = vst.msk [vmem:[#allocation3 + $0x1a0] sm:$0xf] %vm224_vm4, %v8150_v35  ;;  %v6252_v51 = vrot.slane %v6250_v29, 4 }
 0x399   : > { %v6845_v6 = vrot.slane %v6844_v10, 4  ;;  %v6102_v11 = vld [vmem:[#allocation2 + $0xa4] sm:$0x1]  ;;  %v6357_v18 = vld [vmem:[#allocation2 + $0x9c] sm:$0xf]  ;;  %v7626_v55 = vsel %vm11335_vm11, %v7621_v1, %v14287_v17  ;;  %v14409_v5 = vrot.slane %v7644_v54, 4  ;;  %v14430_v54 = vpop.f32.mrf.mxu1 }
 0x39a   : > { %v8153_v53 = vsel %vm11776_vm15, %v8151_v63, %v8152_v40  ;;  %v6253_v58 = vrot.slane %v6102_v11, 5  ;;  %v6561_v13 = vld [vmem:[#allocation2 + $0x9c] sm:$0xf]  ;;  %v7203_v61 = vrot.slane %v14400_v21, 5  ;;  %v14420_v17 = vrot.slane %v7654_v14, 4 }
 0x39b   : > { %7877 = vrot.lane.b32.xlu2 %v7626_v55, %s11174_s10  ;;  %v6850_v29 = vsel %vm11335_vm11, %v6845_v6, %v14139_v45  ;;  %8242 = vst.msk [vmem:[#allocation3 + $0x1b4] sm:$0xf] %vm224_vm4, %v8153_v53  ;;  %v6862_v49 = vshrl.u32 %v6561_v13, 16  ;;  %v6865_v48 = vshll.u32 %v6561_v13, 16  ;;  %6445 = vrot.lane.b32.xlu1 %v6357_v18, %s11174_s10  ;;  %v14422_v57 = vrot.slane %v7657_v24, 5 }
 0x39c   : > { %v14424_v39 = vld [vmem:[#allocation2 + $0x78] sm:$0xf]  ;;  %7011 = vst.msk [vmem:[#allocation3 + $0x1c0] sm:$0xf] %vm224_vm4, %v6850_v29  ;;  %v6254_v32 = vsel %vm11776_vm15, %v6252_v51, %v6253_v58  ;;  %v7059_v34 = vld [vmem:[#allocation2 + $0xa4] sm:$0x1]  ;;  %v7636_v60 = vsel %vm11335_vm11, %v7631_v3, %v7635_v12 }
 0x39d   : > { %v6404_v46 = vpop.permute.xlu2 %6403  ;;  %6328 = vst.msk [vmem:[#allocation3 + $0x220] sm:$0xf] %vm224_vm4, %v6254_v32  ;;  %v6864_v45 = vrot.slane %v6862_v49, 4  ;;  %v6867_v1 = vrot.slane %v6865_v48, 5  ;;  %v6418_v59 = vpop.permute.xlu1 %6417  ;;  %v6565_v10 = vld [vmem:[#allocation2 + $0xac] sm:$0xf] }
 0x39e   : > { %6496 = vst.msk [vmem:[#allocation3 + $0x40] sm:$0xf] %vm1430_vm12, %v6404_v46  ;;  %v6103_v35 = vld [vmem:[#allocation2 + $0xa8] sm:$0xe]  ;;  %v7205_v14 = vrot.slane %v7203_v61, 4  ;;  %v7662_v24 = vshrl.u32 %v14424_v39, 16 }
 0x39f   : > { %6503 = vst.msk [vmem:[#allocation3 + $0xcc] sm:$0xf] %vm1430_vm12, %v6418_v59  ;;  %7879 = vrot.lane.b32.xlu0 %v7636_v60, %s11174_s10  ;;  %v6566_v63 = vld [vmem:[#allocation2 + $0xb0] sm:$0x1]  ;;  %v6348_v40 = vld [vmem:[#allocation2 + $0x64] sm:$0xf]  ;;  %v6868_v18 = vor.u32 %v6867_v1, %v6864_v45 }
 0x3a0   : > { %v7665_v6 = vshll.u32 %v14424_v39, 16  ;;  %v6895_v11 = vshll.u32 %v6565_v10, 16  ;;  %v6899_v51 = vshrl.u32 %v6565_v10, 16  ;;  %v7206_v55 = vrot.slane %v7059_v34, 5  ;;  %v6104_v12 = vld [vmem:[#allocation2 + $0xac] sm:$0xf] }
 0x3a1   : > { %v5996_v3 = vpop.permute.xlu0 %5995  ;;  %v10289_v53 = vrot.slane %v6103_v35, 9  ;;  %v8015_v58 = vld [vmem:[#allocation2 + $0xa0] sm:$0xf]  ;;  %v6905_v49 = vshll.u32 %v6566_v63, 16  ;;  %v6257_v48 = vrot.slane %v6104_v12, 5  ;;  %v6869_v10 = vrot.slane %v6868_v18, 4 }
 0x3a2   : > { %6060 = vst.msk [vmem:[#allocation3 + $0x26c] sm:$0xf] %vm1430_vm12, %v5996_v3  ;;  %v14442_v13 = vrot.slane %v6895_v11, 5  ;;  %v6901_v29 = vrot.slane %v6899_v51, 4  ;;  %v7207_v32 = vsel %vm11776_vm15, %v7205_v14, %v7206_v55  ;;  %v10930_v46 = vld [vmem:[#allocation3 + $0x2c] sm:$0xf] }
 0x3a3   : > { %6427 = vrot.lane.b32.xlu2 %v6348_v40, %s11174_s10  ;;  %v7381_v59 = vld [vmem:[#allocation2 + $0xa8] sm:$0xf]  ;;  %v7380_v45 = vld [vmem:[#allocation2 + $0xa0] sm:$0xf]  ;;  %v8014_v34 = vld [vmem:[#allocation2 + $0x9c] sm:$0xe]  ;;  %7279 = vrot.lane.b32.xlu1 %v7207_v32, %s11174_s10  ;;  %v6258_v60 = vsel %vm11776_vm15, %v10289_v53, %v6257_v48 }
 0x3a4   : > { %v6902_v1 = vor.u32 %v6901_v29, %v14442_v13  ;;  %7413 = vst.msk [vmem:[#allocation3 + $0x1ec] sm:$0xf] %vm224_vm4, %v7381_v59  ;;  %v8016_v35 = vld [vmem:[#allocation2 + $0xa4] sm:$0x1]  ;;  %v8156_v63 = vrot.slane %v8015_v58, 5  ;;  %v15142_v14 = vrot.slane %v13959_v27, 5  ;;  %v14466_v59 = vpop.f32.mrf.mxu1 }
 0x3a5   : > { %v7858_v11 = vpop.permute.xlu2 %7857  ;;  %v10347_v51 = vld [vmem:[#allocation3 + $0x3c] sm:$0xf0]  ;;  %v14458_v55 = vld [vmem:[#allocation2 + $0x7c] sm:$0xf]  ;;  %6329 = vst.msk [vmem:[#allocation3 + $0x234] sm:$0xf] %vm224_vm4, %v6258_v60  ;;  %v7252_v12 = vpop.permute.xlu1 %7251 }
 0x3a6   : > { %v7169_v40 = vsel %vm11776_vm15, %v10298_v2, %v15142_v14  ;;  %v6564_v3 = vld [vmem:[#allocation2 + $0xa8] sm:$0xf]  ;;  %7951 = vst.msk [vmem:[#allocation3 + $0x34] sm:$0xf] %vm1430_vm12, %v7858_v11  ;;  %v10350_v18 = vor.u32 %v10930_v46, %v10347_v51  ;;  %v14462_v53 = vld [vmem:[#allocation2 + $0xac] sm:$0xf] }
 0x3a7   : > { %v6903_v58 = vrot.slane %v6902_v1, 4  ;;  %v6907_v29 = vrot.slane %v6905_v49, 5  ;;  %v8158_v27 = vrot.slane %v8156_v63, 4  ;;  %7336 = vst.msk [vmem:[#allocation3 + $0xe4] sm:$0xf] %vm1430_vm12, %v7252_v12  ;;  %7257 = vrot.lane.b32.xlu0 %v7169_v40, %s11174_s10  ;;  %v10318_v2 = vrot.slane %v8014_v34, 9 }
 0x3a8   : > { %v10625_v30 = vld [vmem:[#allocation3 + $0x258] sm:$0xf]  ;;  %v6886_v32 = vshrl.u32 %v6564_v3, 16  ;;  %9191 = vmatmul.bf16.gmra.mxu2 %v10350_v18  ;;  %7412 = vst.msk [vmem:[#allocation3 + $0x1d8] sm:$0xf] %vm224_vm4, %v7380_v45  ;;  %v6874_v49 = vsel %vm11335_vm11, %v6869_v10, %v14271_v44  ;;  %v8159_v46 = vrot.slane %v8016_v35, 5  ;;  %v7650_v34 = vsel %vm11335_vm11, %v14409_v5, %v14352_v37 }
 0x3a9   : > { %v6908_v60 = vsel %vm11335_vm11, %v6903_v58, %v6907_v29  ;;  %v6105_v1 = vld [vmem:[#allocation2 + $0xb0] sm:$0x1]  ;;  %v6889_v11 = vshll.u32 %v6564_v3, 16  ;;  %v7230_v14 = vpop.permute.xlu0 %7229  ;;  %v11002_v40 = vld [vmem:[#allocation3 + $0x268] sm:$0xf0]  ;;  %v8157_v51 = vsel %vm11776_vm15, %v10318_v2, %v8156_v63  ;;  %v6259_v45 = vrot.slane %v6257_v48, 4 }
 0x3aa   : > { %7016 = vst.msk [vmem:[#allocation3 + $0x224] sm:$0xf] %vm224_vm4, %v6908_v60  ;;  %v6888_v12 = vrot.slane %v6886_v32, 4  ;;  %v6359_v18 = vld [vmem:[#allocation2 + $0xa8] sm:$0xf]  ;;  %v10626_v44 = vor.u32 %v11002_v40, %v10625_v30  ;;  %v7671_v10 = vshll.u32 %v14458_v55, 16  ;;  %v8160_v35 = vsel %vm11776_vm15, %v8158_v27, %v8159_v46 }
 0x3ab   : > { %7325 = vst.msk [vmem:[#allocation3 + $0x8] sm:$0xf] %vm1430_vm12, %v7230_v14  ;;  %v6891_v3 = vrot.slane %v6889_v11, 5  ;;  %7881 = vrot.lane.b32.xlu2 %v7650_v34, %s11174_s10  ;;  %v7210_v37 = vrot.slane %v14462_v53, 5  ;;  %v6260_v5 = vrot.slane %v6105_v1, 5  ;;  %6449 = vrot.lane.b32.xlu1 %v6359_v18, %s11174_s10  ;;  %v7675_v48 = vshrl.u32 %v14458_v55, 16 }
 0x3ac   : > { %7013 = vst.msk [vmem:[#allocation3 + $0x1e8] sm:$0xf] %vm224_vm4, %v6874_v49  ;;  %v8018_v63 = vld [vmem:[#allocation2 + $0xac] sm:$0xf]  ;;  %9172 = vmatmul.bf16.gmra.mxu1 %v10626_v44  ;;  %v8017_v29 = vld [vmem:[#allocation2 + $0xa8] sm:$0xe]  ;;  %v7660_v55 = vsel %vm11335_vm11, %v14420_v17, %v14422_v57 }
 0x3ad   : > { %8243 = vst.msk [vmem:[#allocation3 + $0x1c8] sm:$0xf] %vm224_vm4, %v8157_v51  ;;  %v6892_v58 = vor.u32 %v6891_v3, %v6888_v12  ;;  %v8163_v30 = vrot.slane %v8018_v63, 5  ;;  %v6408_v27 = vpop.permute.xlu2 %6407  ;;  %v7062_v2 = vld [vmem:[#allocation2 + $0xb0] sm:$0x1]  ;;  %v6261_v32 = vsel %vm11776_vm15, %v6259_v45, %v6260_v5  ;;  %v6422_v49 = vpop.permute.xlu1 %6421  ;;  %v7212_v14 = vrot.slane %v7210_v37, 4 }
 0x3ae   : > { %8244 = vst.msk [vmem:[#allocation3 + $0x1dc] sm:$0xf] %vm224_vm4, %v8160_v35  ;;  %v8019_v60 = vld [vmem:[#allocation2 + $0xb0] sm:$0x1]  ;;  %v7382_v46 = vld [vmem:[#allocation2 + $0xac] sm:$0xf]  ;;  %v14514_v3 = vpop.f32.mrf.mxu1 }
 0x3af   : > { %6498 = vst.msk [vmem:[#allocation3 + $0x68] sm:$0xf] %vm1430_vm12, %v6408_v27  ;;  %v6893_v1 = vrot.slane %v6892_v58, 4  ;;  %v8165_v11 = vrot.slane %v8163_v30, 4  ;;  %7883 = vrot.lane.b32.xlu0 %v7660_v55, %s11174_s10  ;;  %v7045_v34 = vld [vmem:[#allocation2 + $0x6c] sm:$0xe] }
 0x3b0   : > { %6505 = vst.msk [vmem:[#allocation3 + $0xf4] sm:$0xf] %vm1430_vm12, %v6422_v49  ;;  %v7664_v40 = vrot.slane %v7662_v24, 4  ;;  %v10319_v51 = vrot.slane %v8017_v29, 9  ;;  %v7213_v45 = vrot.slane %v7062_v2, 5  ;;  %v7667_v12 = vrot.slane %v7665_v6, 5 }
 0x3b1   : > { %6330 = vst.msk [vmem:[#allocation3 + $0x248] sm:$0xf] %vm224_vm4, %v6261_v32  ;;  %v6898_v17 = vsel %vm11335_vm11, %v6893_v1, %v14442_v13  ;;  %v8166_v57 = vrot.slane %v8019_v60, 5  ;;  %v7856_v18 = vpop.permute.xlu0 %7855  ;;  %v10928_v35 = vld [vmem:[#allocation3 + $0x18] sm:$0xf0]  ;;  %v7673_v5 = vrot.slane %v7671_v10, 5 }
 0x3b2   : > { %v10333_v44 = vld [vmem:[#allocation3 + $0x8] sm:$0xf]  ;;  %7414 = vst.msk [vmem:[#allocation3 + $0x200] sm:$0xf] %vm224_vm4, %v7382_v46  ;;  %v8164_v24 = vsel %vm11776_vm15, %v10319_v51, %v8163_v30  ;;  %v6350_v39 = vld [vmem:[#allocation2 + $0x70] sm:$0xf]  ;;  %v7214_v58 = vsel %vm11776_vm15, %v7212_v14, %v7213_v45  ;;  %v7668_v30 = vor.u32 %v7667_v12, %v7664_v40 }
 0x3b3   : > { %7950 = vst.msk [vmem:[#allocation3 + $0x20] sm:$0xf] %vm1430_vm12, %v7856_v18  ;;  %v10334_v6 = vor.u32 %v10928_v35, %v10333_v44  ;;  %v7677_v63 = vrot.slane %v7675_v48, 4  ;;  %v8167_v13 = vsel %vm11776_vm15, %v8165_v11, %v8166_v57  ;;  %6431 = vrot.lane.b32.xlu2 %v6350_v39, %s11174_s10  ;;  %7283 = vrot.lane.b32.xlu1 %v7214_v58, %s11174_s10  ;;  %v10299_v29 = vrot.slane %v7045_v34, 9  ;;  %v7447_v27 = vld [vmem:[#allocation2 + $0x80] sm:$0x1] }
 0x3b4   : > { %7015 = vst.msk [vmem:[#allocation3 + $0x210] sm:$0xf] %vm224_vm4, %v6898_v17  ;;  %v10935_v48 = vld [vmem:[#allocation3 + $0x54] sm:$0xf]  ;;  %v15143_v60 = vrot.slane %v14042_v52, 5  ;;  %v7669_v1 = vrot.slane %v7668_v30, 4 }
 0x3b5   : > { %9275 = vmatmul.bf16.vlgmr.msra.gmra.mxu3 %v10334_v6  ;;  %8245 = vst.msk [vmem:[#allocation3 + $0x1f0] sm:$0xf] %vm224_vm4, %v8164_v24  ;;  %v7862_v10 = vpop.permute.xlu2 %7861  ;;  %v7256_v32 = vpop.permute.xlu1 %7255  ;;  %v7678_v46 = vor.u32 %v7677_v63, %v7673_v5  ;;  %v10929_v11 = vld [vmem:[#allocation3 + $0x20] sm:$0xf0]  ;;  %v14533_v14 = vld [vmem:[#allocation2 + $0xb8] sm:$0xf] }
 0x3b6   : > { %v10367_v2 = vld [vmem:[#allocation3 + $0x64] sm:$0xf0]  ;;  %8246 = vst.msk [vmem:[#allocation3 + $0x204] sm:$0xf] %vm224_vm4, %v8167_v13  ;;  %v7176_v49 = vsel %vm11776_vm15, %v10299_v29, %v15143_v60  ;;  %v7681_v34 = vshll.u32 %v7447_v27, 16  ;;  %v7674_v52 = vsel %vm11335_vm11, %v7669_v1, %v7673_v5  ;;  %v7217_v24 = vrot.slane %v14533_v14, 5  ;;  %v14540_v6 = vpop.f32.mrf.mxu1 }
 0x3b7   : > { %7953 = vst.msk [vmem:[#allocation3 + $0x5c] sm:$0xf] %vm1430_vm12, %v7862_v10  ;;  %v10370_v55 = vor.u32 %v10935_v48, %v10367_v2  ;;  %7261 = vrot.lane.b32.xlu0 %v7176_v49, %s11174_s10  ;;  %v10926_v51 = vld [vmem:[#allocation3 + $0xc] sm:$0xf]  ;;  %v10341_v57 = vld [vmem:[#allocation3 + $0x10] sm:$0xf] }
 0x3b8   : > { %7338 = vst.msk [vmem:[#allocation3 + $0x10c] sm:$0xf] %vm1430_vm12, %v7256_v32  ;;  %v7448_v12 = vld [vmem:[#allocation2 + $0x84] sm:$0xf]  ;;  %v7679_v18 = vrot.slane %v7678_v46, 4  ;;  %v10342_v35 = vor.u32 %v10929_v11, %v10341_v57  ;;  %v7683_v63 = vrot.slane %v7681_v34, 5 }
 0x3b9   : > { %9196 = vmatmul.bf16.gmra.mxu2 %v10370_v55  ;;  %v7234_v40 = vpop.permute.xlu0 %7233  ;;  %v6361_v44 = vld [vmem:[#allocation2 + $0xb4] sm:$0xf]  ;;  %v7449_v39 = vld [vmem:[#allocation2 + $0x88] sm:$0xf]  ;;  %v7686_v13 = vshrl.u32 %v7448_v12, 16  ;;  %v7689_v58 = vshll.u32 %v7448_v12, 16 }
 0x3ba   : > { %v10335_v45 = vld [vmem:[#allocation3 + $0x1c] sm:$0xf0]  ;;  %7327 = vst.msk [vmem:[#allocation3 + $0x30] sm:$0xf] %vm1430_vm12, %v7234_v40  ;;  %v7065_v30 = vld [vmem:[#allocation2 + $0xbc] sm:$0x1]  ;;  %v7684_v27 = vsel %vm11335_vm11, %v7679_v18, %v7683_v63 }
 0x3bb   : > { %v10338_v17 = vor.u32 %v10926_v51, %v10335_v45  ;;  %7885 = vrot.lane.b32.xlu2 %v7674_v52, %s11174_s10  ;;  %6453 = vrot.lane.b32.xlu1 %v6361_v44, %s11174_s10  ;;  %v7695_v10 = vshll.u32 %v7449_v39, 16  ;;  %v7699_v48 = vshrl.u32 %v7449_v39, 16  ;;  %v7219_v2 = vrot.slane %v7217_v24, 4  ;;  %v7048_v32 = vld [vmem:[#allocation2 + $0x78] sm:$0xe] }
 0x3bc   : > { %10787 = vmatmul.msk.bf16.vlgmr.msra.gmra.mxu1 %vm4447_vm0, %v10342_v35  ;;  %v7688_v60 = vrot.slane %v7686_v13, 4  ;;  %v7691_v49 = vrot.slane %v7689_v58, 5  ;;  %v7220_v55 = vrot.slane %v7065_v30, 5  ;;  %v10933_v11 = vld [vmem:[#allocation3 + $0x40] sm:$0xf0]  ;;  %v10300_v52 = vrot.slane %v7048_v32, 9 }
 0x3bd   : > { %9364 = vmatmul.bf16.vlgmr.msra.gmra.mxu0 %v10338_v17  ;;  %v6412_v5 = vpop.permute.xlu2 %6411  ;;  %v6426_v29 = vpop.permute.xlu1 %6425  ;;  %v6352_v34 = vld [vmem:[#allocation2 + $0x7c] sm:$0xf]  ;;  %v7697_v51 = vrot.slane %v7695_v10, 5  ;;  %v7701_v45 = vrot.slane %v7699_v48, 4  ;;  %v10940_v18 = vld [vmem:[#allocation3 + $0x7c] sm:$0xf] }
 0x3be   : > { %6500 = vst.msk [vmem:[#allocation3 + $0x90] sm:$0xf] %vm1430_vm12, %v6412_v5  ;;  %v7221_v12 = vsel %vm11776_vm15, %v7219_v2, %v7220_v55  ;;  %v7692_v17 = vor.u32 %v7691_v49, %v7688_v60  ;;  %v7450_v35 = vld [vmem:[#allocation2 + $0x8c] sm:$0x1]  ;;  %v14556_v39 = vpop.f32.mrf.mxu1  ;;  %v15144_v13 = vrot.slane %v14135_v42, 5 }
 0x3bf   : > { %6507 = vst.msk [vmem:[#allocation3 + $0x11c] sm:$0xf] %vm1430_vm12, %v6426_v29  ;;  %7887 = vrot.lane.b32.xlu0 %v7684_v27, %s11174_s10  ;;  %v7702_v29 = vor.u32 %v7701_v45, %v7697_v51  ;;  %v10934_v27 = vld [vmem:[#allocation3 + $0x48] sm:$0xf0]  ;;  %v7705_v10 = vshll.u32 %v7450_v35, 16 }
 0x3c0   : > { %v7183_v58 = vsel %vm11776_vm15, %v10300_v52, %v15144_v13  ;;  %v7693_v30 = vrot.slane %v7692_v17, 4  ;;  %v10931_v2 = vld [vmem:[#allocation3 + $0x34] sm:$0xf]  ;;  %v7451_v60 = vld [vmem:[#allocation2 + $0x90] sm:$0xf] }
 0x3c1   : > { %v7860_v46 = vpop.permute.xlu0 %7859  ;;  %v10353_v1 = vld [vmem:[#allocation3 + $0x30] sm:$0xf]  ;;  %v10361_v55 = vld [vmem:[#allocation3 + $0x38] sm:$0xf]  ;;  %v7713_v45 = vshll.u32 %v7451_v60, 16 }
 0x3c2   : > { %7952 = vst.msk [vmem:[#allocation3 + $0x48] sm:$0xf] %vm1430_vm12, %v7860_v46  ;;  %v10354_v40 = vor.u32 %v10933_v11, %v10353_v1  ;;  %v7698_v42 = vsel %vm11335_vm11, %v7693_v30, %v7697_v51  ;;  %v7703_v46 = vrot.slane %v7702_v29, 4  ;;  %v10362_v1 = vor.u32 %v10934_v27, %v10361_v55  ;;  %v7452_v11 = vld [vmem:[#allocation2 + $0x94] sm:$0xf] }
 0x3c3   : > { %6435 = vrot.lane.b32.xlu2 %v6352_v34, %s11174_s10  ;;  %7287 = vrot.lane.b32.xlu1 %v7221_v12, %s11174_s10  ;;  %v7707_v34 = vrot.slane %v7705_v10, 5  ;;  %v7719_v17 = vshll.u32 %v7452_v11, 16  ;;  %v7715_v35 = vrot.slane %v7713_v45, 5  ;;  %v6354_v29 = vld [vmem:[#allocation2 + $0x88] sm:$0xf] }
 0x3c4   : > { %v10955_v0 = vld [vmem:[#allocation3 + $0xf4] sm:$0xf] }
 0x3c5   : > { %9280 = vmatmul.bf16.gmra.mxu3 %v10354_v40  ;;  %v7866_v57 = vpop.permute.xlu2 %7865  ;;  %v10387_v44 = vld [vmem:[#allocation3 + $0x8c] sm:$0xf0]  ;;  %v7260_v63 = vpop.permute.xlu1 %7259  ;;  %v7710_v40 = vshrl.u32 %v7451_v60, 16  ;;  %v7708_v51 = vsel %vm11335_vm11, %v7703_v46, %v7707_v34  ;;  %v7721_v27 = vrot.slane %v7719_v17, 5  ;;  %v15145_v46 = vrot.slane %v14217_v50, 5 }
 0x3c6   : > { %7955 = vst.msk [vmem:[#allocation3 + $0x84] sm:$0xf] %vm1430_vm12, %v7866_v57  ;;  %v10390_v5 = vor.u32 %v10940_v18, %v10387_v44  ;;  %v7723_v57 = vshrl.u32 %v7452_v11, 16  ;;  %v14575_v18 = vpop.f32.mrf.mxu1 }
 0x3c7   : > { %7340 = vst.msk [vmem:[#allocation3 + $0x134] sm:$0xf] %vm1430_vm12, %v7260_v63  ;;  %7265 = vrot.lane.b32.xlu0 %v7183_v58, %s11174_s10  ;;  %v7712_v44 = vrot.slane %v7710_v40, 4  ;;  %v10938_v58 = vld [vmem:[#allocation3 + $0x68] sm:$0xf0] }
 0x3c8   : > { %v7725_v10 = vrot.slane %v7723_v57, 4  ;;  %v10936_v57 = vld [vmem:[#allocation3 + $0x5c] sm:$0xf] }
 0x3c9   : > { %9201 = vmatmul.bf16.gmra.mxu2 %v10390_v5  ;;  %v7238_v48 = vpop.permute.xlu0 %7237  ;;  %v10355_v32 = vld [vmem:[#allocation3 + $0x44] sm:$0xf0]  ;;  %v7051_v5 = vld [vmem:[#allocation2 + $0x84] sm:$0xe] }
 0x3ca   : > { %7329 = vst.msk [vmem:[#allocation3 + $0x58] sm:$0xf] %vm1430_vm12, %v7238_v48  ;;  %v10358_v49 = vor.u32 %v10931_v2, %v10355_v32  ;;  %v10301_v48 = vrot.slane %v7051_v5, 9  ;;  %v7716_v2 = vor.u32 %v7715_v35, %v7712_v44  ;;  %v7453_v32 = vld [vmem:[#allocation2 + $0x98] sm:$0x1]  ;;  %v7726_v34 = vor.u32 %v7725_v10, %v7721_v27 }
 0x3cb   : > { %7889 = vrot.lane.b32.xlu2 %v7698_v42, %s11174_s10  ;;  %v10945_v42 = vld [vmem:[#allocation3 + $0xa4] sm:$0xf]  ;;  %v7729_v40 = vshll.u32 %v7453_v32, 16  ;;  %v4758_v45 = vpop.f32.mrf.mxu2  ;;  %v7455_v35 = vld [vmem:[#allocation2 + $0xa0] sm:$0xf] }
 0x3cc   : > { %10788 = vmatmul.msk.bf16.gmra.mxu1 %vm4447_vm0, %v10362_v1  ;;  %v7190_v1 = vsel %vm11776_vm15, %v10301_v48, %v15145_v46  ;;  %v7727_v5 = vrot.slane %v7726_v34, 4  ;;  %v7743_v32 = vshll.u32 %v7455_v35, 16  ;;  %v15147_v34 = vld [vmem:[#allocation18_spill] sm:$0xff] }
 0x3cd   : > { %9369 = vmatmul.bf16.gmra.mxu0 %v10358_v49  ;;  %v6416_v12 = vpop.permute.xlu2 %6415  ;;  %v6430_v52 = vpop.permute.xlu1 %6429  ;;  %v7731_v10 = vrot.slane %v7729_v40, 5 }
 0x3ce   : > { %6502 = vst.msk [vmem:[#allocation3 + $0xb8] sm:$0xf] %vm1430_vm12, %v6416_v12  ;;  %v7717_v12 = vrot.slane %v7716_v2, 4  ;;  %v14586_v50 = vpop.f32.mrf.mxu1 }
 0x3cf   : > { %6509 = vst.msk [vmem:[#allocation3 + $0x144] sm:$0xf] %vm1430_vm12, %v6430_v52  ;;  %7891 = vrot.lane.b32.xlu0 %v7708_v51, %s11174_s10  ;;  %v10939_v52 = vld [vmem:[#allocation3 + $0x70] sm:$0xf0]  ;;  %v7454_v51 = vld [vmem:[#allocation2 + $0x9c] sm:$0xf] }
 0x3d0   : > { %v7734_v48 = vshrl.u32 %v7454_v51, 16  ;;  %v7737_v2 = vshll.u32 %v7454_v51, 16  ;;  %v7745_v51 = vrot.slane %v7743_v32, 5 }
 0x3d1   : > { %v7864_v63 = vpop.permute.xlu0 %7863  ;;  %v10373_v13 = vld [vmem:[#allocation3 + $0x58] sm:$0xf] }
 0x3d2   : > { %7954 = vst.msk [vmem:[#allocation3 + $0x70] sm:$0xf] %vm1430_vm12, %v7864_v63  ;;  %v10374_v30 = vor.u32 %v10938_v58, %v10373_v13  ;;  %v7722_v63 = vsel %vm11335_vm11, %v7717_v12, %v7721_v27  ;;  %v10381_v58 = vld [vmem:[#allocation3 + $0x60] sm:$0xf] }
 0x3d3   : > { %6439 = vrot.lane.b32.xlu2 %v6354_v29, %s11174_s10  ;;  %v4936_v29 = vpop.f32.mrf.mxu0 }
 0x3d5   : > { %9285 = vmatmul.bf16.gmra.mxu3 %v10374_v30  ;;  %v7870_v60 = vpop.permute.xlu2 %7869  ;;  %v10407_v49 = vld [vmem:[#allocation3 + $0xb4] sm:$0xf0]  ;;  %v7264_v55 = vpop.permute.xlu1 %7263  ;;  %v10382_v30 = vor.u32 %v10939_v52, %v10381_v58  ;;  %v7739_v52 = vrot.slane %v7737_v2, 5 }
 0x3d6   : > { %7957 = vst.msk [vmem:[#allocation3 + $0xac] sm:$0xf] %vm1430_vm12, %v7870_v60  ;;  %v10410_v11 = vor.u32 %v10945_v42, %v10407_v49  ;;  %v7747_v60 = vshrl.u32 %v7455_v35, 16  ;;  %v15146_v42 = vld [vmem:[#allocation17_spill] sm:$0xff]  ;;  %v4760_v58 = vpop.f32.mrf.mxu2 }
 0x3d7   : > { %7342 = vst.msk [vmem:[#allocation3 + $0x15c] sm:$0xf] %vm1430_vm12, %v7264_v55  ;;  %7269 = vrot.lane.b32.xlu0 %v7190_v1, %s11174_s10  ;;  %v4759_v49 = vadd.f32 %v4758_v45, %v15146_v42  ;;  %v7732_v1 = vsel %vm11335_vm11, %v7727_v5, %v7731_v10  ;;  %v7736_v45 = vrot.slane %v7734_v48, 4  ;;  %v6356_v5 = vld [vmem:[#allocation2 + $0x94] sm:$0xf]  ;;  %v15148_v10 = vld [vmem:[#allocation19_spill] sm:$0xff] }
 0x3d9   : > { %9206 = vmatmul.bf16.gmra.mxu2 %v10410_v11  ;;  %v7242_v17 = vpop.permute.xlu0 %7241  ;;  %v10375_v44 = vld [vmem:[#allocation3 + $0x6c] sm:$0xf0]  ;;  %v11107_v11 = vld [vmem:[%s15079_s2] ss:$0 sm:$0xff]  ;;  %v7740_v2 = vor.u32 %v7739_v52, %v7736_v45 }
 0x3da   : > { %7331 = vst.msk [vmem:[#allocation3 + $0x80] sm:$0xf] %vm1430_vm12, %v7242_v17  ;;  %v10378_v13 = vor.u32 %v10936_v57, %v10375_v44  ;;  %v4583_v40 = vadd.f32 %v11107_v11, %v15147_v34  ;;  %v7749_v17 = vrot.slane %v7747_v60, 4  ;;  %v10950_v11 = vld [vmem:[#allocation3 + $0xcc] sm:$0xf] }
 0x3db   : > { %7893 = vrot.lane.b32.xlu2 %v7722_v63, %s11174_s10  ;;  %v10943_v63 = vld [vmem:[#allocation3 + $0x90] sm:$0xf0] }
 0x3dc   : > { %10789 = vmatmul.msk.bf16.gmra.mxu1 %vm4447_vm0, %v10382_v30  ;;  %v4672_v42 = vadd.f32 %v15148_v10, %v4583_v40  ;;  %v7750_v32 = vor.u32 %v7749_v17, %v7745_v51  ;;  %v7457_v17 = vld [vmem:[#allocation2 + $0xa8] sm:$0xf] }
 0x3dd   : > { %9374 = vmatmul.bf16.gmra.mxu0 %v10378_v13  ;;  %v6420_v55 = vpop.permute.xlu2 %6419  ;;  %v4847_v46 = vpop.f32.mrf.mxu3  ;;  %v7054_v13 = vld [vmem:[#allocation2 + $0x90] sm:$0xe] }
 0x3de   : > { %v6434_v27 = vpop.permute.xlu1 %6433  ;;  %6504 = vst.msk [vmem:[#allocation3 + $0xe0] sm:$0xf] %vm1430_vm12, %v6420_v55  ;;  %v4848_v12 = vadd.f32 %v4847_v46, %v4759_v49  ;;  %v14606_v55 = vpop.f32.mrf.mxu1  ;;  %v10302_v48 = vrot.slane %v7054_v13, 9  ;;  %v4761_v60 = vadd.f32 %v4760_v58, %v4672_v42  ;;  %v10401_v13 = vld [vmem:[#allocation3 + $0x88] sm:$0xf] }
 0x3df   : > { %6511 = vst.msk [vmem:[#allocation3 + $0x16c] sm:$0xf] %vm1430_vm12, %v6434_v27  ;;  %7895 = vrot.lane.b32.xlu0 %v7732_v1, %s11174_s10  ;;  %v4938_v27 = vpop.f32.mrf.mxu0  ;;  %v10944_v58 = vld [vmem:[#allocation3 + $0x98] sm:$0xf0] }
 0x3e0   : > { %v4937_v57 = vadd.f32 %v4936_v29, %v4848_v12  ;;  %v7456_v29 = vld [vmem:[#allocation2 + $0xa4] sm:$0x1]  ;;  %v7197_v40 = vsel %vm11776_vm15, %v10302_v48, %v7196_v16  ;;  %v5430_v48 = vld [vmem:[#allocation2 + $0xc0] sm:$0xf] }
 0x3e1   : > { %v7868_v44 = vpop.permute.xlu0 %7867  ;;  %v10393_v35 = vld [vmem:[#allocation3 + $0x80] sm:$0xf]  ;;  %v7753_v52 = vshll.u32 %v7456_v29, 16  ;;  %v7758_v29 = vshrl.u32 %v7457_v17, 16 }
 0x3e2   : > { %7956 = vst.msk [vmem:[#allocation3 + $0x98] sm:$0xf] %vm1430_vm12, %v7868_v44  ;;  %v10394_v30 = vor.u32 %v10943_v63, %v10393_v35  ;;  %v4971_v49 = vmax.f32 %v4937_v57, 0.0  ;;  %v7741_v63 = vrot.slane %v7740_v2, 4 }
 0x3e3   : > { %6443 = vrot.lane.b32.xlu2 %v6356_v5, %s11174_s10  ;;  %v7751_v5 = vrot.slane %v7750_v32, 4  ;;  %v10402_v32 = vor.u32 %v10944_v58, %v10401_v13  ;;  %v7057_v58 = vld [vmem:[#allocation2 + $0x9c] sm:$0xe] }
 0x3e4   : > { %v5003_v46 = vpack.c.bf16 %v4971_v49, %v4971_v49  ;;  %v10941_v49 = vld [vmem:[#allocation3 + $0x84] sm:$0xf] }
 0x3e5   : > { %9290 = vmatmul.bf16.gmra.mxu3 %v10394_v30  ;;  %v7874_v1 = vpop.permute.xlu2 %7873  ;;  %v10427_v34 = vld [vmem:[#allocation3 + $0xdc] sm:$0xf0]  ;;  %v4849_v12 = vpop.f32.mrf.mxu3 }
 0x3e6   : > { %v7268_v44 = vpop.permute.xlu1 %7267  ;;  %7959 = vst.msk [vmem:[#allocation3 + $0xd4] sm:$0xf] %vm1430_vm12, %v7874_v1  ;;  %v10430_v57 = vor.u32 %v10950_v11, %v10427_v34  ;;  %v5261_v35 = vshrl.u32 %v5003_v46, 16  ;;  %v4850_v45 = vadd.f32 %v4849_v12, %v4761_v60  ;;  %v5264_v10 = vshll.u32 %v5003_v46, 16  ;;  %v7458_v46 = vld [vmem:[#allocation2 + $0xac] sm:$0xf]  ;;  %v14624_v13 = vpop.f32.mrf.mxu1 }
 0x3e7   : > { %7344 = vst.msk [vmem:[#allocation3 + $0x184] sm:$0xf] %vm1430_vm12, %v7268_v44  ;;  %7273 = vrot.lane.b32.xlu0 %v7197_v40, %s11174_s10  ;;  %v7746_v60 = vsel %vm11335_vm11, %v7741_v63, %v7745_v51  ;;  %v7761_v11 = vshll.u32 %v7457_v17, 16  ;;  %v7755_v12 = vrot.slane %v7753_v52, 5  ;;  %v7767_v17 = vshll.u32 %v7458_v46, 16 }
 0x3e8   : > { %v5263_v30 = vrot.slane %v5261_v35, 7  ;;  %v4939_v33 = vadd.f32 %v4938_v27, %v4850_v45  ;;  %v7760_v35 = vrot.slane %v7758_v29, 4  ;;  %v7771_v63 = vshrl.u32 %v7458_v46, 16 }
 0x3e9   : > { %9211 = vmatmul.bf16.gmra.mxu2 %v10430_v57  ;;  %v7246_v42 = vpop.permute.xlu0 %7245  ;;  %v10395_v16 = vld [vmem:[#allocation3 + $0x94] sm:$0xf0]  ;;  %v7756_v51 = vsel %vm11335_vm11, %v7751_v5, %v7755_v12  ;;  %v7763_v45 = vrot.slane %v7761_v11, 5  ;;  %v10303_v12 = vrot.slane %v7057_v58, 9 }
 0x3ea   : > { %7333 = vst.msk [vmem:[#allocation3 + $0xa8] sm:$0xf] %vm1430_vm12, %v7246_v42  ;;  %v10398_v1 = vor.u32 %v10941_v49, %v10395_v16  ;;  %v5266_v34 = vor.u32 %v5264_v10, %v5263_v30  ;;  %v4972_v2 = vmax.f32 %v4939_v33, 0.0  ;;  %v10948_v49 = vld [vmem:[#allocation3 + $0xb8] sm:$0xf0]  ;;  %v7773_v29 = vrot.slane %v7771_v63, 4 }
 0x3eb   : > { %7897 = vrot.lane.b32.xlu2 %v7746_v60, %s11174_s10  ;;  %v5434_v16 = vld [vmem:[#allocation2 + $0xc8] sm:$0x1]  ;;  %v7764_v60 = vor.u32 %v7763_v45, %v7760_v35  ;;  %v5267_v11 = vrot.slane %v5263_v30, 4  ;;  %v10949_v45 = vld [vmem:[#allocation3 + $0xc0] sm:$0xf0] }
 0x3ec   : > { %v5431_v27 = vsel %vm11296_vm7, %v5266_v34, %v5430_v48  ;;  %v5004_v44 = vpack.c.bf16 %v4972_v2, %v4972_v2  ;;  %10790 = vmatmul.msk.bf16.gmra.mxu1 %vm4447_vm0, %v10402_v32  ;;  %v7459_v32 = vld [vmem:[#allocation2 + $0xb0] sm:$0x1] }
 0x3ed   : > { %9379 = vmatmul.bf16.gmra.mxu0 %v10398_v1  ;;  %v6424_v40 = vpop.permute.xlu2 %6423  ;;  %5432 = vst [vmem:[#allocation2 + $0xc0] sm:$0xf] %v5431_v27  ;;  %v7769_v1 = vrot.slane %v7767_v17, 5  ;;  %v7765_v35 = vrot.slane %v7764_v60, 4  ;;  %v7777_v17 = vshll.u32 %v7459_v32, 16 }
 0x3ee   : > { %v6438_v57 = vpop.permute.xlu1 %6437  ;;  %v5269_v52 = vshrl.u32 %v5004_v44, 16  ;;  %6506 = vst.msk [vmem:[#allocation3 + $0x108] sm:$0xf] %vm1430_vm12, %v6424_v40  ;;  %v5272_v33 = vshll.u32 %v5004_v44, 16 }
 0x3ef   : > { %6513 = vst.msk [vmem:[#allocation3 + $0x194] sm:$0xf] %vm1430_vm12, %v6438_v57  ;;  %7899 = vrot.lane.b32.xlu0 %v7756_v51, %s11174_s10  ;;  %v7460_v51 = vld [vmem:[#allocation2 + $0xb4] sm:$0xf]  ;;  %v7204_v57 = vsel %vm11776_vm15, %v10303_v12, %v7203_v61  ;;  %v7774_v43 = vor.u32 %v7773_v29, %v7769_v1  ;;  %v10946_v61 = vld [vmem:[#allocation3 + $0xac] sm:$0xf] }
 0x3f0   : > { %v5271_v10 = vrot.slane %v5269_v52, 7  ;;  %v7782_v58 = vshrl.u32 %v7460_v51, 16 }
 0x3f1   : > { %v7872_v5 = vpop.permute.xlu0 %7871  ;;  %v10413_v42 = vld [vmem:[#allocation3 + $0xa8] sm:$0xf] }
 0x3f2   : > { %7958 = vst.msk [vmem:[#allocation3 + $0xc0] sm:$0xf] %vm1430_vm12, %v7872_v5  ;;  %v10414_v48 = vor.u32 %v10948_v49, %v10413_v42  ;;  %v5274_v34 = vor.u32 %v5272_v33, %v5271_v10  ;;  %v5276_v2 = vrot.slane %v5271_v10, 4  ;;  %v7785_v10 = vshll.u32 %v7460_v51, 16  ;;  %v14643_v33 = vpop.f32.mrf.mxu1 }
 0x3f3   : > { %6447 = vrot.lane.b32.xlu2 %v6358_v36, %s11174_s10  ;;  %v7461_v36 = vld [vmem:[#allocation2 + $0xb8] sm:$0xf]  ;;  %v7770_v42 = vsel %vm11335_vm11, %v7765_v35, %v7769_v1 }
 0x3f4   : > { %v5275_v46 = vsel %vm11305_vm10, %v5267_v11, %v5274_v34  ;;  %v5435_v27 = vsel %vm11258_vm2, %v5276_v2, %v5434_v16  ;;  %v6363_v44 = vld [vmem:[#allocation2 + $0xc0] sm:$0xf]  ;;  %v10421_v16 = vld [vmem:[#allocation3 + $0xb0] sm:$0xf]  ;;  %v7791_v29 = vshll.u32 %v7461_v36, 16  ;;  %v7795_v11 = vshrl.u32 %v7461_v36, 16 }
 0x3f5   : > { %9295 = vmatmul.bf16.gmra.mxu3 %v10414_v48  ;;  %v7878_v40 = vpop.permute.xlu2 %7877  ;;  %5433 = vst.msk [vmem:[#allocation2 + $0xc4] sm:$0xf] %vm224_vm4, %v5275_v46  ;;  %6457 = vrot.lane.b32.xlu1 %v6363_v44, %s11174_s10  ;;  %v10447_v63 = vld [vmem:[#allocation3 + $0x104] sm:$0xf0]  ;;  %v7775_v48 = vrot.slane %v7774_v43, 4  ;;  %v10422_v60 = vor.u32 %v10949_v45, %v10421_v16  ;;  %v7779_v34 = vrot.slane %v7777_v17, 5 }
 0x3f6   : > { %v7272_v30 = vpop.permute.xlu1 %7271  ;;  %5436 = vst [vmem:[#allocation2 + $0xc8] sm:$0x1] %v5435_v27  ;;  %v10450_v52 = vor.u32 %v10955_v0, %v10447_v63  ;;  %v7784_v2 = vrot.slane %v7782_v58, 4  ;;  %v7787_v32 = vrot.slane %v7785_v10, 5  ;;  %v7793_v51 = vrot.slane %v7791_v29, 5 }
 0x3f7   : > { %7277 = vrot.lane.b32.xlu0 %v7204_v57, %s11174_s10  ;;  %7346 = vst.msk [vmem:[#allocation3 + $0x1ac] sm:$0xf] %vm1430_vm12, %v7272_v30  ;;  %v7797_v30 = vrot.slane %v7795_v11, 4  ;;  %v7462_v43 = vld [vmem:[#allocation2 + $0xbc] sm:$0x1] }
 0x3f8   : > { %7961 = vst.msk [vmem:[#allocation3 + $0xfc] sm:$0xf] %vm1430_vm12, %v7878_v40  ;;  %v7780_v40 = vsel %vm11335_vm11, %v7775_v48, %v7779_v34  ;;  %v7788_v45 = vor.u32 %v7787_v32, %v7784_v2  ;;  %v10953_v63 = vld [vmem:[#allocation3 + $0xe0] sm:$0xf0]  ;;  %v6360_v58 = vld [vmem:[#allocation2 + $0xac] sm:$0xf] }
 0x3f9   : > { %v7250_v21 = vpop.permute.xlu0 %7249  ;;  %v10415_v5 = vld [vmem:[#allocation3 + $0xbc] sm:$0xf0]  ;;  %9216 = vmatmul.bf16.gmra.mxu2 %v10450_v52  ;;  %v7060_v52 = vld [vmem:[#allocation2 + $0xa8] sm:$0xe]  ;;  %v14668_v48 = vld [vmem:[#allocation2 + $0xc0] sm:$0xf] }
 0x3fa   : > { %7335 = vst.msk [vmem:[#allocation3 + $0xd0] sm:$0xf] %vm1430_vm12, %v7250_v21  ;;  %v10418_v49 = vor.u32 %v10946_v61, %v10415_v5  ;;  %v14664_v21 = vpop.f32.mrf.mxu1  ;;  %v7798_v61 = vor.u32 %v7797_v30, %v7793_v51  ;;  %v7801_v5 = vshll.u32 %v7462_v43, 16  ;;  %v7789_v16 = vrot.slane %v7788_v45, 4  ;;  %v6568_v11 = vld [vmem:[#allocation2 + $0xb8] sm:$0xf] }
 0x3fb   : > { %7901 = vrot.lane.b32.xlu2 %v7770_v42, %s11174_s10  ;;  %v10304_v42 = vrot.slane %v7060_v52, 9  ;;  %v6106_v34 = vld [vmem:[#allocation2 + $0xb4] sm:$0xe]  ;;  %v6923_v30 = vshrl.u32 %v6568_v11, 16  ;;  %v7809_v53 = vshll.u32 %v14668_v48, 16 }
 0x3fc   : > { %v14650_v12 = vld [vmem:[#allocation2 + $0xc4] sm:$0xf]  ;;  %10791 = vmatmul.msk.bf16.gmra.mxu1 %vm4447_vm0, %v10422_v60  ;;  %v7803_v45 = vrot.slane %v7801_v5, 5  ;;  %v6567_v43 = vld [vmem:[#allocation2 + $0xb4] sm:$0xf] }
 0x3fd   : > { %9384 = vmatmul.bf16.gmra.mxu0 %v10418_v49  ;;  %v6428_v46 = vpop.permute.xlu2 %6427  ;;  %v7068_v44 = vld [vmem:[#allocation2 + $0xc8] sm:$0x1]  ;;  %v7224_v1 = vrot.slane %v14650_v12, 5  ;;  %v10960_v49 = vld [vmem:[#allocation3 + $0x11c] sm:$0xf]  ;;  %v7211_v32 = vsel %vm11776_vm15, %v10304_v42, %v7210_v37  ;;  %v6925_v37 = vrot.slane %v6923_v30, 4 }
 0x3fe   : > { %v6442_v27 = vpop.permute.xlu1 %6441  ;;  %6508 = vst.msk [vmem:[#allocation3 + $0x130] sm:$0xf] %vm1430_vm12, %v6428_v46  ;;  %v7227_v35 = vrot.slane %v7068_v44, 5  ;;  %v6569_v44 = vld [vmem:[#allocation2 + $0xbc] sm:$0x1] }
 0x3ff   : > { %6515 = vst.msk [vmem:[#allocation3 + $0x1bc] sm:$0xf] %vm1430_vm12, %v6442_v27  ;;  %7903 = vrot.lane.b32.xlu0 %v7780_v40, %s11174_s10  ;;  %v7226_v57 = vrot.slane %v7224_v1, 4  ;;  %v10954_v27 = vld [vmem:[#allocation3 + $0xe8] sm:$0xf0]  ;;  %v6919_v40 = vshll.u32 %v6568_v11, 16 }
 0x400   : > { %v7383_v52 = vld [vmem:[#allocation2 + $0xb4] sm:$0xf]  ;;  %v6929_v42 = vshll.u32 %v6569_v44, 16  ;;  %v7464_v5 = vld [vmem:[#allocation2 + $0xc4] sm:$0xf]  ;;  %v6910_v11 = vshrl.u32 %v6567_v43, 16 }
 0x401   : > { %v7876_v17 = vpop.permute.xlu0 %7875  ;;  %v10433_v0 = vld [vmem:[#allocation3 + $0xd0] sm:$0xf]  ;;  %v7228_v36 = vsel %vm11776_vm15, %v7226_v57, %v7227_v35  ;;  %v10951_v57 = vld [vmem:[#allocation3 + $0xd4] sm:$0xf]  ;;  %v7799_v35 = vrot.slane %v7798_v61, 4 }
 0x402   : > { %7960 = vst.msk [vmem:[#allocation3 + $0xe8] sm:$0xf] %vm1430_vm12, %v7876_v17  ;;  %v10434_v10 = vor.u32 %v10953_v63, %v10433_v0  ;;  %7291 = vrot.lane.b32.xlu1 %v7228_v36, %s11174_s10  ;;  %v10441_v17 = vld [vmem:[#allocation3 + $0xd8] sm:$0xf]  ;;  %v7806_v0 = vshrl.u32 %v14668_v48, 16  ;;  %v14679_v63 = vrot.slane %v6919_v40, 5  ;;  %v14690_v40 = vpop.f32.mrf.mxu1 }
 0x403   : > { %6451 = vrot.lane.b32.xlu2 %v6360_v58, %s11174_s10  ;;  %v7794_v58 = vsel %vm11335_vm11, %v7789_v16, %v7793_v51  ;;  %7415 = vst.msk [vmem:[#allocation3 + $0x214] sm:$0xf] %vm224_vm4, %v7383_v52  ;;  %v7384_v51 = vld [vmem:[#allocation2 + $0xb8] sm:$0xf]  ;;  %v6931_v44 = vrot.slane %v6929_v42, 5  ;;  %v6912_v42 = vrot.slane %v6910_v11, 4 }
 0x404   : > { %7416 = vst.msk [vmem:[#allocation3 + $0x228] sm:$0xf] %vm224_vm4, %v7384_v51  ;;  %v7063_v52 = vld [vmem:[#allocation2 + $0xb4] sm:$0xe]  ;;  %v8022_v11 = vld [vmem:[#allocation2 + $0xbc] sm:$0x1] }
 0x405   : > { %9300 = vmatmul.bf16.gmra.mxu3 %v10434_v10  ;;  %v7882_v60 = vpop.permute.xlu2 %7881  ;;  %v10467_v29 = vld [vmem:[#allocation3 + $0x12c] sm:$0xf0] }
 0x406   : > { %v7276_v2 = vpop.permute.xlu1 %7275  ;;  %7963 = vst.msk [vmem:[#allocation3 + $0x124] sm:$0xf] %vm1430_vm12, %v7882_v60  ;;  %v10470_v46 = vor.u32 %v10960_v49, %v10467_v29  ;;  %v6107_v49 = vld [vmem:[#allocation2 + $0xb8] sm:$0xf]  ;;  %v10290_v60 = vrot.slane %v6106_v34, 9  ;;  %v6926_v29 = vor.u32 %v6925_v37, %v14679_v63 }
 0x407   : > { %7348 = vst.msk [vmem:[#allocation3 + $0x1d4] sm:$0xf] %vm1430_vm12, %v7276_v2  ;;  %7281 = vrot.lane.b32.xlu0 %v7211_v32, %s11174_s10  ;;  %v6264_v48 = vrot.slane %v6107_v49, 5  ;;  %v10442_v2 = vor.u32 %v10954_v27, %v10441_v17  ;;  %v6108_v32 = vld [vmem:[#allocation2 + $0xbc] sm:$0x1]  ;;  %v7804_v27 = vsel %vm11335_vm11, %v7799_v35, %v7803_v45  ;;  %v6913_v17 = vshll.u32 %v6567_v43, 16 }
 0x408   : > { %v6927_v16 = vrot.slane %v6926_v29, 4  ;;  %v8020_v49 = vld [vmem:[#allocation2 + $0xb4] sm:$0xe]  ;;  %v8021_v35 = vld [vmem:[#allocation2 + $0xb8] sm:$0xf]  ;;  %v7811_v43 = vrot.slane %v7809_v53, 5 }
 0x409   : > { %v7254_v36 = vpop.permute.xlu0 %7253  ;;  %v10435_v10 = vld [vmem:[#allocation3 + $0xe4] sm:$0xf0]  ;;  %9221 = vmatmul.bf16.gmra.mxu2 %v10470_v46  ;;  %v6265_v34 = vsel %vm11776_vm15, %v10290_v60, %v6264_v48  ;;  %v6266_v46 = vrot.slane %v6264_v48, 4  ;;  %v6362_v45 = vld [vmem:[#allocation2 + $0xb8] sm:$0xf] }
 0x40a   : > { %7337 = vst.msk [vmem:[#allocation3 + $0xf8] sm:$0xf] %vm1430_vm12, %v7254_v36  ;;  %v10438_v61 = vor.u32 %v10951_v57, %v10435_v10  ;;  %v7815_v57 = vshll.u32 %v7464_v5, 16  ;;  %v7819_v36 = vshrl.u32 %v7464_v5, 16  ;;  %v6267_v10 = vrot.slane %v6108_v32, 5 }
 0x40b   : > { %7905 = vrot.lane.b32.xlu2 %v7794_v58, %s11174_s10  ;;  %6331 = vst.msk [vmem:[#allocation3 + $0x25c] sm:$0xf] %vm224_vm4, %v6265_v34  ;;  %v6932_v58 = vsel %vm11335_vm11, %v6927_v16, %v6931_v44  ;;  %v10958_v60 = vld [vmem:[#allocation3 + $0x108] sm:$0xf0]  ;;  %v6915_v32 = vrot.slane %v6913_v17, 5  ;;  %v10320_v44 = vrot.slane %v8020_v49, 9 }
 0x40c   : > { %10792 = vmatmul.msk.bf16.gmra.mxu1 %vm4447_vm0, %v10442_v2  ;;  %7018 = vst.msk [vmem:[#allocation3 + $0x24c] sm:$0xf] %vm224_vm4, %v6932_v58  ;;  %v6268_v5 = vsel %vm11776_vm15, %v6266_v46, %v6267_v10  ;;  %v7817_v2 = vrot.slane %v7815_v57, 5  ;;  %v7821_v16 = vrot.slane %v7819_v36, 4  ;;  %v8170_v34 = vrot.slane %v8021_v35, 5 }
 0x40d   : > { %9389 = vmatmul.bf16.gmra.mxu0 %v10438_v61  ;;  %v6432_v30 = vpop.permute.xlu2 %6431  ;;  %v7808_v61 = vrot.slane %v7806_v0, 4  ;;  %v10305_v0 = vrot.slane %v7063_v52, 9  ;;  %6332 = vst.msk [vmem:[#allocation3 + $0x270] sm:$0xf] %vm224_vm4, %v6268_v5  ;;  %v6916_v53 = vor.u32 %v6915_v32, %v6912_v42  ;;  %v10956_v5 = vld [vmem:[#allocation3 + $0xfc] sm:$0xf] }
 0x40e   : > { %v6446_v37 = vpop.permute.xlu1 %6445  ;;  %6510 = vst.msk [vmem:[#allocation3 + $0x158] sm:$0xf] %vm1430_vm12, %v6432_v30  ;;  %v10965_v30 = vld [vmem:[#allocation3 + $0x144] sm:$0xf]  ;;  %v8171_v57 = vsel %vm11776_vm15, %v10320_v44, %v8170_v34  ;;  %v8172_v17 = vrot.slane %v8170_v34, 4  ;;  %v7822_v35 = vor.u32 %v7821_v16, %v7817_v2 }
 0x40f   : > { %6517 = vst.msk [vmem:[#allocation3 + $0x1e4] sm:$0xf] %vm1430_vm12, %v6446_v37  ;;  %7907 = vrot.lane.b32.xlu0 %v7804_v27, %s11174_s10  ;;  %v7812_v46 = vor.u32 %v7811_v43, %v7808_v61  ;;  %v7465_v27 = vld [vmem:[#allocation2 + $0xc8] sm:$0x1]  ;;  %v8173_v37 = vrot.slane %v8022_v11, 5  ;;  %v6917_v36 = vrot.slane %v6916_v53, 4  ;;  %v7218_v52 = vsel %vm11776_vm15, %v10305_v0, %v7217_v24 }
 0x410   : > { %8247 = vst.msk [vmem:[#allocation3 + $0x218] sm:$0xf] %vm224_vm4, %v8171_v57  ;;  %v10959_v61 = vld [vmem:[#allocation3 + $0x110] sm:$0xf0]  ;;  %v7467_v32 = vld [vmem:[#allocation2 + $0xd0] sm:$0xf] }
 0x411   : > { %v7880_v29 = vpop.permute.xlu0 %7879  ;;  %v10453_v48 = vld [vmem:[#allocation3 + $0xf8] sm:$0xf]  ;;  %v6922_v43 = vsel %vm11335_vm11, %v6917_v36, %v14679_v63  ;;  %v7813_v14 = vrot.slane %v7812_v46, 4  ;;  %v10461_v16 = vld [vmem:[#allocation3 + $0x100] sm:$0xf]  ;;  %v7823_v44 = vrot.slane %v7822_v35, 4 }
 0x412   : > { %7962 = vst.msk [vmem:[#allocation3 + $0x110] sm:$0xf] %vm1430_vm12, %v7880_v29  ;;  %v10454_v51 = vor.u32 %v10958_v60, %v10453_v48  ;;  %v14717_v60 = vpop.f32.mrf.mxu1  ;;  %v7825_v29 = vshll.u32 %v7465_v27, 16  ;;  %v10462_v34 = vor.u32 %v10959_v61, %v10461_v16  ;;  %v7839_v53 = vshll.u32 %v7467_v32, 16  ;;  %v10963_v57 = vld [vmem:[#allocation3 + $0x130] sm:$0xf0] }
 0x413   : > { %6455 = vrot.lane.b32.xlu2 %v6362_v45, %s11174_s10  ;;  %v8174_v45 = vsel %vm11776_vm15, %v8172_v17, %v8173_v37  ;;  %7017 = vst.msk [vmem:[#allocation3 + $0x238] sm:$0xf] %vm224_vm4, %v6922_v43  ;;  %v7818_v11 = vsel %vm11335_vm11, %v7813_v14, %v7817_v2 }
 0x414   : > { %8248 = vst.msk [vmem:[#allocation3 + $0x22c] sm:$0xf] %vm224_vm4, %v8174_v45  ;;  %v7827_v0 = vrot.slane %v7825_v29, 5  ;;  %v14738_v17 = vrot.slane %v7839_v53, 5  ;;  %v10970_v29 = vld [vmem:[#allocation3 + $0x16c] sm:$0xf] }
 0x415   : > { %9305 = vmatmul.bf16.gmra.mxu3 %v10454_v51  ;;  %v7886_v58 = vpop.permute.xlu2 %7885  ;;  %v10487_v10 = vld [vmem:[#allocation3 + $0x154] sm:$0xf0]  ;;  %v10961_v53 = vld [vmem:[#allocation3 + $0x124] sm:$0xf] }
 0x416   : > { %v7280_v49 = vpop.permute.xlu1 %7279  ;;  %7965 = vst.msk [vmem:[#allocation3 + $0x14c] sm:$0xf] %vm1430_vm12, %v7886_v58  ;;  %v10490_v42 = vor.u32 %v10965_v30, %v10487_v10  ;;  %v7843_v30 = vshrl.u32 %v7467_v32, 16  ;;  %v7828_v2 = vsel %vm11335_vm11, %v7823_v44, %v7827_v0 }
 0x417   : > { %7350 = vst.msk [vmem:[#allocation3 + $0x1fc] sm:$0xf] %vm1430_vm12, %v7280_v49  ;;  %7285 = vrot.lane.b32.xlu0 %v7218_v52, %s11174_s10  ;;  %v7066_v49 = vld [vmem:[#allocation2 + $0xc0] sm:$0xe]  ;;  %v7468_v52 = vld [vmem:[#allocation2 + $0xd4] sm:$0x1] }
 0x418   : > { %v7845_v37 = vrot.slane %v7843_v30, 4  ;;  %v10306_v61 = vrot.slane %v7066_v49, 9  ;;  %v7849_v14 = vshll.u32 %v7468_v52, 16 }
 0x419   : > { %v7258_v24 = vpop.permute.xlu0 %7257  ;;  %v10455_v48 = vld [vmem:[#allocation3 + $0x10c] sm:$0xf0]  ;;  %9226 = vmatmul.bf16.gmra.mxu2 %v10490_v42  ;;  %v6364_v42 = vld [vmem:[#allocation2 + $0xc4] sm:$0xf] }
 0x41a   : > { %7339 = vst.msk [vmem:[#allocation3 + $0x120] sm:$0xf] %vm1430_vm12, %v7258_v24  ;;  %v10458_v51 = vor.u32 %v10956_v5, %v10455_v48  ;;  %v14740_v58 = vpop.f32.mrf.mxu1  ;;  %v7846_v43 = vor.u32 %v7845_v37, %v14738_v17  ;;  %v7225_v32 = vsel %vm11776_vm15, %v10306_v61, %v7224_v1  ;;  %v7851_v44 = vrot.slane %v7849_v14, 5  ;;  %v14768_v61 = vld [vmem:[%s15081_s4] ss:$0 sm:$0xff] }
 0x41b   : > { %7909 = vrot.lane.b32.xlu2 %v7818_v11, %s11174_s10  ;;  %v14730_v63 = vpop.f32.mrf.mxu2 }
 0x41c   : > { %10793 = vmatmul.msk.bf16.gmra.mxu1 %vm4447_vm0, %v10462_v34  ;;  %v7847_v16 = vrot.slane %v7846_v43, 4 }
 0x41d   : > { %9394 = vmatmul.bf16.gmra.mxu0 %v10458_v51  ;;  %v6436_v46 = vpop.permute.xlu2 %6435  ;;  %v10964_v51 = vld [vmem:[#allocation3 + $0x138] sm:$0xf0] }
 0x41e   : > { %v6450_v27 = vpop.permute.xlu1 %6449  ;;  %6512 = vst.msk [vmem:[#allocation3 + $0x180] sm:$0xf] %vm1430_vm12, %v6436_v46  ;;  %v10481_v46 = vld [vmem:[#allocation3 + $0x128] sm:$0xf] }
 0x41f   : > { %6519 = vst.msk [vmem:[#allocation3 + $0x20c] sm:$0xf] %vm1430_vm12, %v6450_v27  ;;  %7911 = vrot.lane.b32.xlu0 %v7828_v2, %s11174_s10  ;;  %v7466_v27 = vld [vmem:[#allocation2 + $0xcc] sm:$0xf]  ;;  %v10482_v2 = vor.u32 %v10964_v51, %v10481_v46  ;;  %v9099_v51 = vadd.f32 %v14768_v61, %v13696_v26 }
 0x420   : > { %v7833_v37 = vshll.u32 %v7466_v27, 16 }
 0x421   : > { %v7884_v10 = vpop.permute.xlu0 %7883  ;;  %v10473_v36 = vld [vmem:[#allocation3 + $0x120] sm:$0xf] }
 0x422   : > { %7964 = vst.msk [vmem:[#allocation3 + $0x138] sm:$0xf] %vm1430_vm12, %v7884_v10  ;;  %v10474_v35 = vor.u32 %v10963_v57, %v10473_v36  ;;  %v7830_v57 = vshrl.u32 %v7466_v27, 16  ;;  %v7852_v10 = vsel %vm11335_vm11, %v7847_v16, %v7851_v44  ;;  %v7835_v52 = vrot.slane %v7833_v37, 5  ;;  %v10975_v44 = vld [vmem:[#allocation3 + $0x194] sm:$0xf] }
 0x423   : > { %6459 = vrot.lane.b32.xlu2 %v6364_v42, %s11174_s10  ;;  %v14744_v45 = vpop.f32.mrf.mxu2  ;;  %v10969_v27 = vld [vmem:[#allocation3 + $0x160] sm:$0xf0] }
 0x424   : > { %v7832_v49 = vrot.slane %v7830_v57, 4  ;;  %v10966_v57 = vld [vmem:[#allocation3 + $0x14c] sm:$0xf] }
 0x425   : > { %9310 = vmatmul.bf16.gmra.mxu3 %v10474_v35  ;;  %v7890_v5 = vpop.permute.xlu2 %7889  ;;  %v10507_v24 = vld [vmem:[#allocation3 + $0x17c] sm:$0xf0] }
 0x426   : > { %v7284_v48 = vpop.permute.xlu1 %7283  ;;  %7967 = vst.msk [vmem:[#allocation3 + $0x174] sm:$0xf] %vm1430_vm12, %v7890_v5  ;;  %v10510_v11 = vor.u32 %v10970_v29, %v10507_v24  ;;  %v7836_v35 = vor.u32 %v7835_v52, %v7832_v49  ;;  %v10968_v29 = vld [vmem:[#allocation3 + $0x158] sm:$0xf0]  ;;  %v10501_v49 = vld [vmem:[#allocation3 + $0x150] sm:$0xf] }
 0x427   : > { %7352 = vst.msk [vmem:[#allocation3 + $0x224] sm:$0xf] %vm1430_vm12, %v7284_v48  ;;  %7289 = vrot.lane.b32.xlu0 %v7225_v32, %s11174_s10  ;;  %v9534_v52 = vld [vmem:[%s11270_s9] sm:$0xff] }
 0x428   : > { %v7837_v24 = vrot.slane %v7836_v35, 4  ;;  %v10502_v35 = vor.u32 %v10969_v27, %v10501_v49  ;;  %v9104_v27 = vadd.f32 %v14768_v61, %v13752_v25  ;;  %v10521_v25 = vld [vmem:[#allocation3 + $0x178] sm:$0xf] }
 0x429   : > { %v7262_v34 = vpop.permute.xlu0 %7261  ;;  %v14754_v0 = vpop.f32.mrf.mxu1  ;;  %v10475_v30 = vld [vmem:[#allocation3 + $0x134] sm:$0xf0]  ;;  %9231 = vmatmul.bf16.gmra.mxu2 %v10510_v11 }
 0x42a   : > { %7341 = vst.msk [vmem:[#allocation3 + $0x148] sm:$0xf] %vm1430_vm12, %v7262_v34  ;;  %v10478_v12 = vor.u32 %v10961_v53, %v10475_v30  ;;  %v7842_v11 = vsel %vm11335_vm11, %v7837_v24, %v14738_v17  ;;  %v9188_v53 = vadd.f32 %v14730_v63, %v9099_v51 }
 0x42b   : > { %v14757_v1 = vpop.f32.mrf.mxu2  ;;  %7913 = vrot.lane.b32.xlu2 %v7842_v11, %s11174_s10 }
 0x42c   : > { %10794 = vmatmul.msk.bf16.gmra.mxu1 %vm4447_vm0, %v10482_v2 }
 0x42d   : > { %9399 = vmatmul.bf16.gmra.mxu0 %v10478_v12  ;;  %v6440_v36 = vpop.permute.xlu2 %6439 }
 0x42e   : > { %v6454_v42 = vpop.permute.xlu1 %6453  ;;  %6514 = vst.msk [vmem:[#allocation3 + $0x1a8] sm:$0xf] %vm1430_vm12, %v6440_v36 }
 0x42f   : > { %6521 = vst.msk [vmem:[#allocation3 + $0x234] sm:$0xf] %vm1430_vm12, %v6454_v42  ;;  %7915 = vrot.lane.b32.xlu0 %v7852_v10, %s11174_s10  ;;  %s9744_s10 = sshll.u32 %s215_s15, 8 }
 0x430   : > { %s14796_s16 = scalar_lea.vmem [#allocation4], %s9744_s10 }
 0x431   : > { %v7888_v43 = vpop.permute.xlu0 %7887  ;;  %v14770_v14 = vpop.f32.mrf.mxu1  ;;  %v10493_v5 = vld [vmem:[#allocation3 + $0x148] sm:$0xf]  ;;  %s9675_s7 = sshll.u32 %s14796_s16, 4  ;;  %s9676_s7 = int_to_ptr.vmem [resolvable:$true] %s9675_s7 }
 0x432   : > { %7966 = vst.msk [vmem:[#allocation3 + $0x160] sm:$0xf] %vm1430_vm12, %v7888_v43  ;;  %v10494_v48 = vor.u32 %v10968_v29, %v10493_v5  ;;  %v9101_v43 = vadd.f32 %v14768_v61, %v13734_v56  ;;  %v10973_v56 = vld [vmem:[#allocation3 + $0x180] sm:$0xf0] }
 0x433   : > { %v14773_v32 = vpop.f32.mrf.mxu2 }
 0x434   : > { %v9190_v24 = vadd.f32 %v14744_v45, %v9101_v43  ;;  %v9535_v45 = vld [vmem:[%s11270_s9 + $0x8] sm:$0xff]  ;;  %v10974_v43 = vld [vmem:[#allocation3 + $0x188] sm:$0xf0] }
 0x435   : > { %9315 = vmatmul.bf16.gmra.mxu3 %v10494_v48  ;;  %v7894_v16 = vpop.permute.xlu2 %7893  ;;  %v10527_v34 = vld [vmem:[#allocation3 + $0x1a4] sm:$0xf0] }
 0x436   : > { %v7288_v30 = vpop.permute.xlu1 %7287  ;;  %7969 = vst.msk [vmem:[#allocation3 + $0x19c] sm:$0xf] %vm1430_vm12, %v7894_v16  ;;  %v10530_v12 = vor.u32 %v10975_v44, %v10527_v34 }
 0x437   : > { %7354 = vst.msk [vmem:[#allocation3 + $0x24c] sm:$0xf] %vm1430_vm12, %v7288_v30 }
 0x438   : > { %v9276_v17 = vpop.f32.mrf.mxu3 }
 0x439   : > { %v9277_v46 = vadd.f32 %v9276_v17, %v9188_v53  ;;  %v7266_v26 = vpop.permute.xlu0 %7265  ;;  %v10495_v37 = vld [vmem:[#allocation3 + $0x15c] sm:$0xf0]  ;;  %9236 = vmatmul.bf16.gmra.mxu2 %v10530_v12  ;;  %v9454_v10 = vpop.f32.mrf.mxu1 }
 0x43a   : > { %v9365_v2 = vpop.f32.mrf.mxu0  ;;  %7343 = vst.msk [vmem:[#allocation3 + $0x170] sm:$0xf] %vm1430_vm12, %v7266_v26  ;;  %v10498_v36 = vor.u32 %v10966_v57, %v10495_v37  ;;  %v10980_v57 = vld [vmem:[#allocation3 + $0x1bc] sm:$0xf] }
 0x43b   : > { %v9366_v63 = vadd.f32 %v9365_v2, %v9277_v46 }
 0x43c   : > { %v14787_v42 = vpop.f32.mrf.mxu2  ;;  %10795 = vmatmul.msk.bf16.gmra.mxu1 %vm4447_vm0, %v10502_v35 }
 0x43d   : > { %v9455_v5 = vadd.f32 %v9454_v10, %v9366_v63  ;;  %9404 = vmatmul.bf16.gmra.mxu0 %v10498_v36  ;;  %v6444_v29 = vpop.permute.xlu2 %6443  ;;  %v9193_v63 = vadd.f32 %v14757_v1, %v9104_v27  ;;  %v9536_v1 = vld [vmem:[%s11270_s9 + $0x10] sm:$0xff] }
 0x43e   : > { %6516 = vst.msk [vmem:[#allocation3 + $0x1d0] sm:$0xf] %vm1430_vm12, %v6444_v29 }
 0x43f   : > { %v9566_v48 = vadd.f32 %v9534_v52, %v9455_v5 }
 0x440   : > { %v9278_v11 = vpop.f32.mrf.mxu3 }
 0x441   : > { %v9598_v51 = vmax.f32 %v9566_v48, 0.0  ;;  %v9279_v16 = vadd.f32 %v9278_v11, %v9190_v24  ;;  %v7892_v44 = vpop.permute.xlu0 %7891  ;;  %v10513_v53 = vld [vmem:[#allocation3 + $0x170] sm:$0xf]  ;;  %v9456_v12 = vpop.f32.mrf.mxu1  ;;  %v10971_v11 = vld [vmem:[#allocation3 + $0x174] sm:$0xf] }
 0x442   : > { %v9367_v34 = vpop.f32.mrf.mxu0  ;;  %v10514_v17 = vor.u32 %v10973_v56, %v10513_v53  ;;  %7968 = vst.msk [vmem:[#allocation3 + $0x188] sm:$0xf] %vm1430_vm12, %v7892_v44  ;;  %v9106_v53 = vadd.f32 %v14768_v61, %v13781_v20 }
 0x443   : > { %9630 = vst.msk [vmem:[%s14796_s16] sm:$0xff] %vm4447_vm0, %v9598_v51  ;;  %v9368_v30 = vadd.f32 %v9367_v34, %v9279_v16  ;;  %v10522_v34 = vor.u32 %v10974_v43, %v10521_v25  ;;  %v6572_v43 = vld [vmem:[#allocation2 + $0xc8] sm:$0x1] }
 0x444   : > { %v14802_v46 = vpop.f32.mrf.mxu2 }
 0x445   : > { %v9457_v26 = vadd.f32 %v9456_v12, %v9368_v30  ;;  %9320 = vmatmul.bf16.gmra.mxu3 %v10514_v17  ;;  %v7898_v2 = vpop.permute.xlu2 %7897  ;;  %v10547_v37 = vld [vmem:[#allocation3 + $0x1cc] sm:$0xf0]  ;;  %v9195_v12 = vadd.f32 %v14773_v32, %v9106_v53 }
 0x446   : > { %7971 = vst.msk [vmem:[#allocation3 + $0x1c4] sm:$0xf] %vm1430_vm12, %v7898_v2  ;;  %v10550_v36 = vor.u32 %v10980_v57, %v10547_v37 }
 0x447   : > { %v9567_v10 = vadd.f32 %v9535_v45, %v9457_v26 }
 0x448   : > { %v9281_v49 = vpop.f32.mrf.mxu3 }
 0x449   : > { %v9599_v52 = vmax.f32 %v9567_v10, 0.0  ;;  %v9282_v35 = vadd.f32 %v9281_v49, %v9193_v63  ;;  %v7270_v5 = vpop.permute.xlu0 %7269  ;;  %9241 = vmatmul.bf16.gmra.mxu2 %v10550_v36  ;;  %v9459_v48 = vpop.f32.mrf.mxu1  ;;  %v10515_v51 = vld [vmem:[#allocation3 + $0x184] sm:$0xf0]  ;;  %v9537_v63 = vld [vmem:[%s11270_s9 + $0x18] sm:$0xff]  ;;  %v10978_v36 = vld [vmem:[#allocation3 + $0x1a8] sm:$0xf0]  ;;  %v9109_v49 = vadd.f32 %v14768_v61, %v13815_v4 }
 0x44a   : > { %v9370_v29 = vpop.f32.mrf.mxu0  ;;  %7345 = vst.msk [vmem:[#allocation3 + $0x198] sm:$0xf] %vm1430_vm12, %v7270_v5  ;;  %v10518_v44 = vor.u32 %v10971_v11, %v10515_v51  ;;  %v10985_v11 = vld [vmem:[#allocation3 + $0x1e4] sm:$0xf] }
 0x44b   : > { %9631 = vst.msk [vmem:[%s14796_s16 + $0x8] sm:$0xff] %vm4447_vm0, %v9599_v52  ;;  %v9371_v24 = vadd.f32 %v9370_v29, %v9282_v35  ;;  %v6571_v35 = vld [vmem:[#allocation2 + $0xc4] sm:$0xf] }
 0x44c   : > { %v14812_v16 = vpop.f32.mrf.mxu2  ;;  %10796 = vmatmul.msk.bf16.gmra.mxu1 %vm4447_vm0, %v10522_v34  ;;  %v6943_v29 = vshll.u32 %v6571_v35, 16  ;;  %v6947_v25 = vshrl.u32 %v6571_v35, 16 }
 0x44d   : > { %v9460_v56 = vadd.f32 %v9459_v48, %v9371_v24  ;;  %9409 = vmatmul.bf16.gmra.mxu0 %v10518_v44  ;;  %v6448_v30 = vpop.permute.xlu2 %6447  ;;  %v9198_v24 = vadd.f32 %v14787_v42, %v9109_v49 }
 0x44e   : > { %6518 = vst.msk [vmem:[#allocation3 + $0x1f8] sm:$0xf] %vm1430_vm12, %v6448_v30  ;;  %v14829_v34 = vrot.slane %v6943_v29, 5  ;;  %v6949_v53 = vrot.slane %v6947_v25, 4 }
 0x44f   : > { %v9568_v17 = vadd.f32 %v9536_v1, %v9460_v56  ;;  %v6953_v1 = vshll.u32 %v6572_v43, 16  ;;  %v7385_v43 = vld [vmem:[#allocation2 + $0xc0] sm:$0xf] }
 0x450   : > { %v9283_v45 = vpop.f32.mrf.mxu3  ;;  %v6950_v42 = vor.u32 %v6949_v53, %v14829_v34  ;;  %7417 = vst.msk [vmem:[#allocation3 + $0x23c] sm:$0xf] %vm224_vm4, %v7385_v43  ;;  %v10984_v43 = vld [vmem:[#allocation3 + $0x1d8] sm:$0xf0] }
 0x451   : > { %v9600_v27 = vmax.f32 %v9568_v17, 0.0  ;;  %v9284_v26 = vadd.f32 %v9283_v45, %v9195_v12  ;;  %v7896_v2 = vpop.permute.xlu0 %7895  ;;  %v9461_v20 = vpop.f32.mrf.mxu1  ;;  %v10533_v10 = vld [vmem:[#allocation3 + $0x198] sm:$0xf]  ;;  %v10979_v17 = vld [vmem:[#allocation3 + $0x1b0] sm:$0xf0] }
 0x452   : > { %v9372_v57 = vpop.f32.mrf.mxu0  ;;  %7970 = vst.msk [vmem:[#allocation3 + $0x1b0] sm:$0xf] %vm1430_vm12, %v7896_v2  ;;  %v10534_v52 = vor.u32 %v10978_v36, %v10533_v10  ;;  %v10541_v2 = vld [vmem:[#allocation3 + $0x1a0] sm:$0xf]  ;;  %v6955_v10 = vrot.slane %v6953_v1, 5  ;;  %v9538_v36 = vld [vmem:[%s11270_s9 + $0x20] sm:$0xff] }
 0x453   : > { %9632 = vst.msk [vmem:[%s14796_s16 + $0x10] sm:$0xff] %vm4447_vm0, %v9600_v27  ;;  %v9373_v37 = vadd.f32 %v9372_v57, %v9284_v26  ;;  %v10976_v26 = vld [vmem:[#allocation3 + $0x19c] sm:$0xf]  ;;  %v10542_v35 = vor.u32 %v10979_v17, %v10541_v2  ;;  %v9539_v17 = vld [vmem:[%s11270_s9 + $0x28] sm:$0xff]  ;;  %v10990_v2 = vld [vmem:[#allocation3 + $0x20c] sm:$0xf] }
 0x454   : > { %v14825_v32 = vpop.f32.mrf.mxu2 }
 0x455   : > { %v9462_v5 = vadd.f32 %v9461_v20, %v9373_v37  ;;  %9325 = vmatmul.bf16.gmra.mxu3 %v10534_v52  ;;  %v7902_v48 = vpop.permute.xlu2 %7901  ;;  %v10567_v51 = vld [vmem:[#allocation3 + $0x1f4] sm:$0xf0] }
 0x456   : > { %7973 = vst.msk [vmem:[#allocation3 + $0x1ec] sm:$0xf] %vm1430_vm12, %v7902_v48  ;;  %v10570_v4 = vor.u32 %v10985_v11, %v10567_v51 }
 0x457   : > { %v9569_v44 = vadd.f32 %v9537_v63, %v9462_v5  ;;  %v6951_v63 = vrot.slane %v6950_v42, 4  ;;  %v9111_v5 = vadd.f32 %v14768_v61, %v13852_v47 }
 0x458   : > { %v9286_v56 = vpop.f32.mrf.mxu3 }
 0x459   : > { %v9601_v30 = vmax.f32 %v9569_v44, 0.0  ;;  %v9287_v12 = vadd.f32 %v9286_v56, %v9198_v24  ;;  %v7274_v45 = vpop.permute.xlu0 %7273  ;;  %9246 = vmatmul.bf16.gmra.mxu2 %v10570_v4  ;;  %v9464_v37 = vpop.f32.mrf.mxu1  ;;  %v10535_v20 = vld [vmem:[#allocation3 + $0x1ac] sm:$0xf0]  ;;  %v6956_v25 = vsel %vm11335_vm11, %v6951_v63, %v6955_v10  ;;  %v9200_v48 = vadd.f32 %v14802_v46, %v9111_v5 }
 0x45a   : > { %v9375_v27 = vpop.f32.mrf.mxu0  ;;  %7347 = vst.msk [vmem:[#allocation3 + $0x1c0] sm:$0xf] %vm1430_vm12, %v7274_v45  ;;  %v10538_v52 = vor.u32 %v10976_v26, %v10535_v20  ;;  %v9114_v45 = vadd.f32 %v14768_v61, %v13895_v62 }
 0x45b   : > { %9633 = vst.msk [vmem:[%s14796_s16 + $0x18] sm:$0xff] %vm4447_vm0, %v9601_v30  ;;  %v9376_v57 = vadd.f32 %v9375_v27, %v9287_v12  ;;  %v10983_v12 = vld [vmem:[#allocation3 + $0x1d0] sm:$0xf0] }
 0x45c   : > { %v14836_v49 = vpop.f32.mrf.mxu2  ;;  %10797 = vmatmul.msk.bf16.gmra.mxu1 %vm4447_vm0, %v10542_v35  ;;  %7020 = vst.msk [vmem:[#allocation3 + $0x274] sm:$0xf] %vm224_vm4, %v6956_v25 }
 0x45d   : > { %v9465_v29 = vadd.f32 %v9464_v37, %v9376_v57  ;;  %9414 = vmatmul.bf16.gmra.mxu0 %v10538_v52  ;;  %v6452_v24 = vpop.permute.xlu2 %6451  ;;  %v9203_v37 = vadd.f32 %v14812_v16, %v9114_v45 }
 0x45e   : > { %6520 = vst.msk [vmem:[#allocation3 + $0x220] sm:$0xf] %vm1430_vm12, %v6452_v24  ;;  %v10981_v24 = vld [vmem:[#allocation3 + $0x1c4] sm:$0xf] }
 0x45f   : > { %v9570_v11 = vadd.f32 %v9538_v36, %v9465_v29  ;;  %v10561_v29 = vld [vmem:[#allocation3 + $0x1c8] sm:$0xf] }
 0x460   : > { %v9288_v47 = vpop.f32.mrf.mxu3 }
 0x461   : > { %v9602_v51 = vmax.f32 %v9570_v11, 0.0  ;;  %v9289_v1 = vadd.f32 %v9288_v47, %v9200_v48  ;;  %v7900_v44 = vpop.permute.xlu0 %7899  ;;  %v9466_v56 = vpop.f32.mrf.mxu1  ;;  %v10553_v30 = vld [vmem:[#allocation3 + $0x1c0] sm:$0xf]  ;;  %v9540_v11 = vld [vmem:[%s11270_s9 + $0x30] sm:$0xff] }
 0x462   : > { %v9377_v4 = vpop.f32.mrf.mxu0  ;;  %7972 = vst.msk [vmem:[#allocation3 + $0x1d8] sm:$0xf] %vm1430_vm12, %v7900_v44  ;;  %v10554_v46 = vor.u32 %v10983_v12, %v10553_v30  ;;  %v9116_v44 = vadd.f32 %v14768_v61, %v13947_v41 }
 0x463   : > { %9634 = vst.msk [vmem:[%s14796_s16 + $0x20] sm:$0xff] %vm4447_vm0, %v9602_v51  ;;  %v9378_v53 = vadd.f32 %v9377_v4, %v9289_v1  ;;  %v10562_v1 = vor.u32 %v10984_v43, %v10561_v29  ;;  %v10995_v43 = vld [vmem:[#allocation3 + $0x234] sm:$0xf] }
 0x464   : > { %v14851_v42 = vpop.f32.mrf.mxu2 }
 0x465   : > { %v9467_v27 = vadd.f32 %v9466_v56, %v9378_v53  ;;  %9330 = vmatmul.bf16.gmra.mxu3 %v10554_v46  ;;  %v7906_v26 = vpop.permute.xlu2 %7905  ;;  %v10587_v57 = vld [vmem:[#allocation3 + $0x21c] sm:$0xf0]  ;;  %v9205_v56 = vadd.f32 %v14825_v32, %v9116_v44 }
 0x466   : > { %7975 = vst.msk [vmem:[#allocation3 + $0x214] sm:$0xf] %vm1430_vm12, %v7906_v26  ;;  %v10590_v63 = vor.u32 %v10990_v2, %v10587_v57  ;;  %v10988_v57 = vld [vmem:[#allocation3 + $0x1f8] sm:$0xf0] }
 0x467   : > { %v9571_v20 = vadd.f32 %v9539_v17, %v9467_v27  ;;  %v6458_v36 = vpop.permute.xlu1 %6457 }
 0x468   : > { %v9291_v10 = vpop.f32.mrf.mxu3  ;;  %6523 = vst.msk [vmem:[#allocation3 + $0x25c] sm:$0xf] %vm1430_vm12, %v6458_v36 }
 0x469   : > { %v9603_v52 = vmax.f32 %v9571_v20, 0.0  ;;  %v9292_v35 = vadd.f32 %v9291_v10, %v9203_v37  ;;  %v7278_v62 = vpop.permute.xlu0 %7277  ;;  %9251 = vmatmul.bf16.gmra.mxu2 %v10590_v63  ;;  %v9469_v16 = vpop.f32.mrf.mxu1  ;;  %v10555_v48 = vld [vmem:[#allocation3 + $0x1d4] sm:$0xf0]  ;;  %v9541_v37 = vld [vmem:[%s11270_s9 + $0x38] sm:$0xff]  ;;  %v7386_v63 = vld [vmem:[#allocation2 + $0xc4] sm:$0xf]  ;;  %v9119_v10 = vadd.f32 %v14768_v61, %v13998_v22 }
 0x46a   : > { %v9380_v5 = vpop.f32.mrf.mxu0  ;;  %7349 = vst.msk [vmem:[#allocation3 + $0x1e8] sm:$0xf] %vm1430_vm12, %v7278_v62  ;;  %v10558_v51 = vor.u32 %v10981_v24, %v10555_v48  ;;  %v10989_v48 = vld [vmem:[#allocation3 + $0x200] sm:$0xf0] }
 0x46b   : > { %9635 = vst.msk [vmem:[%s14796_s16 + $0x28] sm:$0xff] %vm4447_vm0, %v9603_v52  ;;  %v9381_v25 = vadd.f32 %v9380_v5, %v9292_v35  ;;  %v9208_v5 = vadd.f32 %v14836_v49, %v9119_v10  ;;  %v10986_v49 = vld [vmem:[#allocation3 + $0x1ec] sm:$0xf] }
 0x46c   : > { %v14862_v47 = vpop.f32.mrf.mxu2  ;;  %10798 = vmatmul.msk.bf16.gmra.mxu1 %vm4447_vm0, %v10562_v1  ;;  %7418 = vst.msk [vmem:[#allocation3 + $0x250] sm:$0xf] %vm224_vm4, %v7386_v63  ;;  %v10581_v1 = vld [vmem:[#allocation3 + $0x1f0] sm:$0xf] }
 0x46d   : > { %v9470_v4 = vadd.f32 %v9469_v16, %v9381_v25  ;;  %9419 = vmatmul.bf16.gmra.mxu0 %v10558_v51  ;;  %v6456_v53 = vpop.permute.xlu2 %6455 }
 0x46e   : > { %6522 = vst.msk [vmem:[#allocation3 + $0x248] sm:$0xf] %vm1430_vm12, %v6456_v53 }
 0x46f   : > { %v9572_v30 = vadd.f32 %v9540_v11, %v9470_v4 }
 0x470   : > { %v9293_v12 = vpop.f32.mrf.mxu3 }
 0x471   : > { %v9604_v17 = vmax.f32 %v9572_v30, 0.0  ;;  %v9294_v46 = vadd.f32 %v9293_v12, %v9205_v56  ;;  %v7904_v45 = vpop.permute.xlu0 %7903  ;;  %v9471_v41 = vpop.f32.mrf.mxu1  ;;  %v10573_v2 = vld [vmem:[#allocation3 + $0x1e8] sm:$0xf]  ;;  %v10582_v12 = vor.u32 %v10989_v48, %v10581_v1 }
 0x472   : > { %v9382_v27 = vpop.f32.mrf.mxu0  ;;  %7974 = vst.msk [vmem:[#allocation3 + $0x200] sm:$0xf] %vm1430_vm12, %v7904_v45  ;;  %v10574_v32 = vor.u32 %v10988_v57, %v10573_v2  ;;  %v9542_v56 = vld [vmem:[%s11270_s9 + $0x40] sm:$0xff] }
 0x473   : > { %9636 = vst.msk [vmem:[%s14796_s16 + $0x30] sm:$0xff] %vm4447_vm0, %v9604_v17  ;;  %v9383_v26 = vadd.f32 %v9382_v27, %v9294_v46  ;;  %v6570_v17 = vld [vmem:[#allocation2 + $0xc0] sm:$0xf]  ;;  %v9121_v46 = vadd.f32 %v14768_v61, %v14053_v15 }
 0x474   : > { %v14873_v20 = vpop.f32.mrf.mxu2  ;;  %v7292_v52 = vpop.permute.xlu1 %7291  ;;  %v6934_v27 = vshrl.u32 %v6570_v17, 16  ;;  %v8023_v48 = vld [vmem:[#allocation2 + $0xc0] sm:$0xe] }
 0x475   : > { %v9472_v36 = vadd.f32 %v9471_v41, %v9383_v26  ;;  %9335 = vmatmul.bf16.gmra.mxu3 %v10574_v32  ;;  %v7910_v35 = vpop.permute.xlu2 %7909  ;;  %v10607_v62 = vld [vmem:[#allocation3 + $0x244] sm:$0xf0]  ;;  %7356 = vst.msk [vmem:[#allocation3 + $0x274] sm:$0xf] %vm1430_vm12, %v7292_v52  ;;  %v6937_v26 = vshll.u32 %v6570_v17, 16  ;;  %v9210_v57 = vadd.f32 %v14851_v42, %v9121_v46  ;;  %v9124_v42 = vadd.f32 %v14768_v61, %v14110_v7 }
 0x476   : > { %v10610_v25 = vor.u32 %v10995_v43, %v10607_v62  ;;  %7977 = vst.msk [vmem:[#allocation3 + $0x23c] sm:$0xf] %vm1430_vm12, %v7910_v35  ;;  %v6936_v32 = vrot.slane %v6934_v27, 4  ;;  %v9543_v62 = vld [vmem:[%s11270_s9 + $0x48] sm:$0xff] }
 0x477   : > { %v9573_v29 = vadd.f32 %v9541_v37, %v9472_v36  ;;  %v6939_v63 = vrot.slane %v6937_v26, 5  ;;  %v9213_v7 = vadd.f32 %v14862_v47, %v9124_v42 }
 0x478   : > { %v9296_v16 = vpop.f32.mrf.mxu3 }
 0x479   : > { %v9605_v22 = vmax.f32 %v9573_v29, 0.0  ;;  %v9297_v24 = vadd.f32 %v9296_v16, %v9208_v5  ;;  %v7282_v11 = vpop.permute.xlu0 %7281  ;;  %9256 = vmatmul.bf16.gmra.mxu2 %v10610_v25  ;;  %v9474_v4 = vpop.f32.mrf.mxu1  ;;  %v10575_v53 = vld [vmem:[#allocation3 + $0x1fc] sm:$0xf0]  ;;  %v6940_v52 = vor.u32 %v6939_v63, %v6936_v32  ;;  %v10993_v16 = vld [vmem:[#allocation3 + $0x220] sm:$0xf0] }
 0x47a   : > { %v9385_v51 = vpop.f32.mrf.mxu0  ;;  %7351 = vst.msk [vmem:[#allocation3 + $0x210] sm:$0xf] %vm1430_vm12, %v7282_v11  ;;  %v10578_v30 = vor.u32 %v10986_v49, %v10575_v53  ;;  %v8024_v11 = vld [vmem:[#allocation2 + $0xc4] sm:$0xf]  ;;  %v10601_v32 = vld [vmem:[#allocation3 + $0x218] sm:$0xf] }
 0x47b   : > { %9637 = vst.msk [vmem:[%s14796_s16 + $0x38] sm:$0xff] %vm4447_vm0, %v9605_v22  ;;  %v9386_v44 = vadd.f32 %v9385_v51, %v9297_v24  ;;  %v6941_v22 = vrot.slane %v6940_v52, 4  ;;  %v8177_v49 = vrot.slane %v8024_v11, 5  ;;  %v9544_v52 = vld [vmem:[%s11270_s9 + $0x50] sm:$0xff] }
 0x47c   : > { %v14887_v41 = vpop.f32.mrf.mxu2  ;;  %10799 = vmatmul.msk.bf16.gmra.mxu1 %vm4447_vm0, %v10582_v12 }
 0x47d   : > { %v9475_v45 = vadd.f32 %v9474_v4, %v9386_v44  ;;  %9424 = vmatmul.bf16.gmra.mxu0 %v10578_v30  ;;  %v6460_v2 = vpop.permute.xlu2 %6459  ;;  %v6946_v1 = vsel %vm11335_vm11, %v6941_v22, %v14829_v34  ;;  %v8025_v44 = vld [vmem:[#allocation2 + $0xc8] sm:$0x1]  ;;  %v10321_v4 = vrot.slane %v8023_v48, 9  ;;  %v8179_v34 = vrot.slane %v8177_v49, 4 }
 0x47e   : > { %6524 = vst.msk [vmem:[#allocation3 + $0x270] sm:$0xf] %vm1430_vm12, %v6460_v2  ;;  %v10994_v2 = vld [vmem:[#allocation3 + $0x228] sm:$0xf0] }
 0x47f   : > { %v9574_v37 = vadd.f32 %v9542_v56, %v9475_v45  ;;  %v11000_v56 = vld [vmem:[#allocation3 + $0x25c] sm:$0xf]  ;;  %7019 = vst.msk [vmem:[#allocation3 + $0x260] sm:$0xf] %vm224_vm4, %v6946_v1  ;;  %v8178_v46 = vsel %vm11776_vm15, %v10321_v4, %v8177_v49  ;;  %v8180_v45 = vrot.slane %v8025_v44, 5  ;;  %v9545_v4 = vld [vmem:[%s11270_s9 + $0x58] sm:$0xff]  ;;  %v9129_v49 = vadd.f32 %v14768_v61, %v14205_v8 }
 0x480   : > { %v9298_v10 = vpop.f32.mrf.mxu3  ;;  %8249 = vst.msk [vmem:[#allocation3 + $0x240] sm:$0xf] %vm224_vm4, %v8178_v46  ;;  %v10998_v44 = vld [vmem:[#allocation3 + $0x248] sm:$0xf0] }
 0x481   : > { %v9606_v15 = vmax.f32 %v9574_v37, 0.0  ;;  %v9299_v36 = vadd.f32 %v9298_v10, %v9210_v57  ;;  %v7908_v35 = vpop.permute.xlu0 %7907  ;;  %v9476_v29 = vpop.f32.mrf.mxu1  ;;  %v10593_v25 = vld [vmem:[#allocation3 + $0x210] sm:$0xf]  ;;  %v8181_v47 = vsel %vm11776_vm15, %v8179_v34, %v8180_v45 }
 0x482   : > { %v9387_v43 = vpop.f32.mrf.mxu0  ;;  %7976 = vst.msk [vmem:[#allocation3 + $0x228] sm:$0xf] %vm1430_vm12, %v7908_v35  ;;  %v10594_v24 = vor.u32 %v10993_v16, %v10593_v25 }
 0x483   : > { %9638 = vst.msk [vmem:[%s14796_s16 + $0x40] sm:$0xff] %vm4447_vm0, %v9606_v15  ;;  %v9388_v5 = vadd.f32 %v9387_v43, %v9299_v36  ;;  %v10991_v15 = vld [vmem:[#allocation3 + $0x214] sm:$0xf]  ;;  %v10602_v43 = vor.u32 %v10994_v2, %v10601_v32  ;;  %v9546_v32 = vld [vmem:[%s11270_s9 + $0x60] sm:$0xff] }
 0x484   : > { %v14901_v53 = vpop.f32.mrf.mxu2  ;;  %8250 = vst.msk [vmem:[#allocation3 + $0x254] sm:$0xf] %vm224_vm4, %v8181_v47 }
 0x485   : > { %v9477_v51 = vadd.f32 %v9476_v29, %v9388_v5  ;;  %9340 = vmatmul.bf16.gmra.mxu3 %v10594_v24  ;;  %v10627_v30 = vld [vmem:[#allocation3 + $0x26c] sm:$0xf0]  ;;  %v7914_v16 = vpop.permute.xlu2 %7913 }
 0x486   : > { %v10630_v17 = vor.u32 %v11000_v56, %v10627_v30  ;;  %7979 = vst.msk [vmem:[#allocation3 + $0x264] sm:$0xf] %vm1430_vm12, %v7914_v16 }
 0x487   : > { %v9575_v12 = vadd.f32 %v9543_v62, %v9477_v51  ;;  %v9126_v62 = vadd.f32 %v14768_v61, %v14160_v31 }
 0x488   : > { %v9301_v28 = vpop.f32.mrf.mxu3 }
 0x489   : > { %v9607_v27 = vmax.f32 %v9575_v12, 0.0  ;;  %v9302_v26 = vadd.f32 %v9301_v28, %v9213_v7  ;;  %v7286_v57 = vpop.permute.xlu0 %7285  ;;  %9261 = vmatmul.bf16.gmra.mxu2 %v10630_v17  ;;  %v9479_v10 = vpop.f32.mrf.mxu1  ;;  %v10595_v36 = vld [vmem:[#allocation3 + $0x224] sm:$0xf0]  ;;  %v9215_v29 = vadd.f32 %v14873_v20, %v9126_v62  ;;  %v9218_v7 = vadd.f32 %v14887_v41, %v9129_v49 }
 0x48a   : > { %v9390_v37 = vpop.f32.mrf.mxu0  ;;  %7353 = vst.msk [vmem:[#allocation3 + $0x238] sm:$0xf] %vm1430_vm12, %v7286_v57  ;;  %v10598_v35 = vor.u32 %v10991_v15, %v10595_v36 }
 0x48b   : > { %9639 = vst.msk [vmem:[%s14796_s16 + $0x48] sm:$0xff] %vm4447_vm0, %v9607_v27  ;;  %v9391_v63 = vadd.f32 %v9390_v37, %v9302_v26  ;;  %v10999_v34 = vld [vmem:[#allocation3 + $0x250] sm:$0xf0]  ;;  %v10996_v26 = vld [vmem:[#allocation3 + $0x23c] sm:$0xf] }
 0x48c   : > { %v14917_v23 = vpop.f32.mrf.mxu2  ;;  %10800 = vmatmul.msk.bf16.gmra.mxu1 %vm4447_vm0, %v10602_v43  ;;  %v10621_v37 = vld [vmem:[#allocation3 + $0x240] sm:$0xf] }
 0x48d   : > { %v9480_v5 = vadd.f32 %v9479_v10, %v9391_v63  ;;  %9429 = vmatmul.bf16.gmra.mxu0 %v10598_v35  ;;  %v10622_v41 = vor.u32 %v10999_v34, %v10621_v37  ;;  %v9131_v63 = vadd.f32 %v14768_v61, %v14266_v38  ;;  %v11003_v38 = vld [vmem:[#allocation3 + $0x270] sm:$0xf0] }
 0x48f   : > { %v9576_v25 = vadd.f32 %v9544_v52, %v9480_v5  ;;  %v9220_v36 = vadd.f32 %v14901_v53, %v9131_v63  ;;  %v9134_v53 = vadd.f32 %v14768_v61, %v14323_v19  ;;  %v9549_v63 = vld [vmem:[%s11270_s9 + $0x78] sm:$0xff] }
 0x490   : > { %v9303_v22 = vpop.f32.mrf.mxu3 }
 0x491   : > { %v9608_v42 = vmax.f32 %v9576_v25, 0.0  ;;  %v9304_v24 = vadd.f32 %v9303_v22, %v9215_v29  ;;  %v7912_v48 = vpop.permute.xlu0 %7911  ;;  %v9481_v51 = vpop.f32.mrf.mxu1  ;;  %v10613_v1 = vld [vmem:[#allocation3 + $0x238] sm:$0xf] }
 0x492   : > { %v9392_v31 = vpop.f32.mrf.mxu0  ;;  %7978 = vst.msk [vmem:[#allocation3 + $0x250] sm:$0xf] %vm1430_vm12, %v7912_v48  ;;  %v10614_v20 = vor.u32 %v10998_v44, %v10613_v1  ;;  %v10641_v1 = vld [vmem:[#allocation3 + $0x268] sm:$0xf]  ;;  %v11004_v44 = vld [vmem:[#allocation3 + $0x278] sm:$0xf0] }
 0x493   : > { %9640 = vst.msk [vmem:[%s14796_s16 + $0x50] sm:$0xff] %vm4447_vm0, %v9608_v42  ;;  %v9393_v11 = vadd.f32 %v9392_v31, %v9304_v24  ;;  %v9547_v42 = vld [vmem:[%s11270_s9 + $0x68] sm:$0xff] }
 0x494   : > { %v14928_v30 = vpop.f32.mrf.mxu2 }
 0x495   : > { %v9482_v56 = vadd.f32 %v9481_v51, %v9393_v11  ;;  %9345 = vmatmul.bf16.gmra.mxu3 %v10614_v20  ;;  %v9223_v11 = vadd.f32 %v14917_v23, %v9134_v53  ;;  %v9136_v23 = vadd.f32 %v14768_v61, %v14379_v9  ;;  %v9139_v9 = vadd.f32 %v14768_v61, %v14430_v54 }
 0x497   : > { %v9577_v12 = vadd.f32 %v9545_v4, %v9482_v56  ;;  %v11001_v56 = vld [vmem:[#allocation3 + $0x264] sm:$0xf] }
 0x498   : > { %v9306_v17 = vpop.f32.mrf.mxu3 }
 0x499   : > { %v9609_v46 = vmax.f32 %v9577_v12, 0.0  ;;  %v9307_v28 = vadd.f32 %v9306_v17, %v9218_v7  ;;  %v7290_v45 = vpop.permute.xlu0 %7289  ;;  %v9484_v57 = vpop.f32.mrf.mxu1  ;;  %v10615_v8 = vld [vmem:[#allocation3 + $0x24c] sm:$0xf0]  ;;  %v10642_v12 = vor.u32 %v11004_v44, %v10641_v1 }
 0x49a   : > { %v9395_v27 = vpop.f32.mrf.mxu0  ;;  %7355 = vst.msk [vmem:[#allocation3 + $0x260] sm:$0xf] %vm1430_vm12, %v7290_v45  ;;  %v10618_v47 = vor.u32 %v10996_v26, %v10615_v8  ;;  %v9225_v26 = vadd.f32 %v14928_v30, %v9136_v23  ;;  %v9551_v44 = vld [vmem:[%s11270_s9 + $0x88] sm:$0xff] }
 0x49b   : > { %9641 = vst.msk [vmem:[%s14796_s16 + $0x58] sm:$0xff] %vm4447_vm0, %v9609_v46  ;;  %v9396_v2 = vadd.f32 %v9395_v27, %v9307_v28  ;;  %v9548_v28 = vld [vmem:[%s11270_s9 + $0x70] sm:$0xff] }
 0x49c   : > { %v9227_v15 = vpop.f32.mrf.mxu2  ;;  %10801 = vmatmul.msk.bf16.gmra.mxu1 %vm4447_vm0, %v10622_v41 }
 0x49d   : > { %v9485_v10 = vadd.f32 %v9484_v57, %v9396_v2  ;;  %9434 = vmatmul.bf16.gmra.mxu0 %v10618_v47 }
 0x49f   : > { %v9578_v52 = vadd.f32 %v9546_v32, %v9485_v10 }
 0x4a0   : > { %v9308_v35 = vpop.f32.mrf.mxu3 }
 0x4a1   : > { %v9610_v43 = vmax.f32 %v9578_v52, 0.0  ;;  %v9309_v62 = vadd.f32 %v9308_v35, %v9220_v36  ;;  %v7916_v5 = vpop.permute.xlu0 %7915  ;;  %v9486_v16 = vpop.f32.mrf.mxu1  ;;  %v10633_v22 = vld [vmem:[#allocation3 + $0x260] sm:$0xf]  ;;  %v9228_v52 = vadd.f32 %v9227_v15, %v9139_v9 }
 0x4a2   : > { %v9397_v29 = vpop.f32.mrf.mxu0  ;;  %7980 = vst.msk [vmem:[#allocation3 + $0x278] sm:$0xf] %vm1430_vm12, %v7916_v5  ;;  %v10634_v24 = vor.u32 %v11003_v38, %v10633_v22  ;;  %v9141_v22 = vadd.f32 %v14768_v61, %v14466_v59 }
 0x4a3   : > { %9642 = vst.msk [vmem:[%s14796_s16 + $0x60] sm:$0xff] %vm4447_vm0, %v9610_v43  ;;  %v9398_v25 = vadd.f32 %v9397_v29, %v9309_v62 }
 0x4a4   : > { %v9229_v31 = vpop.f32.mrf.mxu2 }
 0x4a5   : > { %v9487_v48 = vadd.f32 %v9486_v16, %v9398_v25  ;;  %9350 = vmatmul.bf16.gmra.mxu3 %v10634_v24  ;;  %v9550_v16 = vld [vmem:[%s11270_s9 + $0x80] sm:$0xff] }
 0x4a7   : > { %v9579_v51 = vadd.f32 %v9547_v42, %v9487_v48  ;;  %v9230_v42 = vadd.f32 %v9229_v31, %v9141_v22 }
 0x4a8   : > { %v9311_v4 = vpop.f32.mrf.mxu3 }
 0x4a9   : > { %v9611_v20 = vmax.f32 %v9579_v51, 0.0  ;;  %v9312_v49 = vadd.f32 %v9311_v4, %v9223_v11  ;;  %v9489_v19 = vpop.f32.mrf.mxu1  ;;  %v10635_v46 = vld [vmem:[#allocation3 + $0x274] sm:$0xf0]  ;;  %v9144_v4 = vadd.f32 %v14768_v61, %v14514_v3 }
 0x4aa   : > { %v9400_v7 = vpop.f32.mrf.mxu0  ;;  %v10638_v34 = vor.u32 %v11001_v56, %v10635_v46 }
 0x4ab   : > { %9643 = vst.msk [vmem:[%s14796_s16 + $0x68] sm:$0xff] %vm4447_vm0, %v9611_v20  ;;  %v9401_v17 = vadd.f32 %v9400_v7, %v9312_v49 }
 0x4ac   : > { %v9232_v27 = vpop.f32.mrf.mxu2  ;;  %10802 = vmatmul.msk.bf16.gmra.mxu1 %vm4447_vm0, %v10642_v12 }
 0x4ad   : > { %v9490_v45 = vadd.f32 %v9489_v19, %v9401_v17  ;;  %9439 = vmatmul.bf16.gmra.mxu0 %v10638_v34  ;;  %v9233_v59 = vadd.f32 %v9232_v27, %v9144_v4  ;;  %v9552_v34 = vld [vmem:[%s11270_s9 + $0x90] sm:$0xff] }
 0x4af   : > { %v9580_v2 = vadd.f32 %v9548_v28, %v9490_v45  ;;  %v9146_v28 = vadd.f32 %v14768_v61, %v14540_v6 }
 0x4b0   : > { %v9313_v57 = vpop.f32.mrf.mxu3 }
 0x4b1   : > { %v9612_v8 = vmax.f32 %v9580_v2, 0.0  ;;  %v9314_v37 = vadd.f32 %v9313_v57, %v9225_v26  ;;  %v9491_v41 = vpop.f32.mrf.mxu1 }
 0x4b2   : > { %v9402_v32 = vpop.f32.mrf.mxu0 }
 0x4b3   : > { %9644 = vst.msk [vmem:[%s14796_s16 + $0x70] sm:$0xff] %vm4447_vm0, %v9612_v8  ;;  %v9403_v47 = vadd.f32 %v9402_v32, %v9314_v37 }
 0x4b4   : > { %v9234_v36 = vpop.f32.mrf.mxu2 }
 0x4b5   : > { %v9492_v10 = vadd.f32 %v9491_v41, %v9403_v47  ;;  %v9235_v3 = vadd.f32 %v9234_v36, %v9146_v28  ;;  %v9553_v47 = vld [vmem:[%s11270_s9 + $0x98] sm:$0xff]  ;;  %v9149_v41 = vadd.f32 %v14768_v61, %v14556_v39 }
 0x4b7   : > { %v9581_v35 = vadd.f32 %v9549_v63, %v9492_v10 }
 0x4b8   : > { %v9316_v30 = vpop.f32.mrf.mxu3 }
 0x4b9   : > { %v9613_v43 = vmax.f32 %v9581_v35, 0.0  ;;  %v9317_v62 = vadd.f32 %v9316_v30, %v9228_v52  ;;  %v9494_v25 = vpop.f32.mrf.mxu1 }
 0x4ba   : > { %v9405_v5 = vpop.f32.mrf.mxu0 }
 0x4bb   : > { %9645 = vst.msk [vmem:[%s14796_s16 + $0x78] sm:$0xff] %vm4447_vm0, %v9613_v43  ;;  %v9406_v29 = vadd.f32 %v9405_v5, %v9317_v62  ;;  %v9554_v5 = vld [vmem:[%s11270_s9 + $0xa0] sm:$0xff] }
 0x4bc   : > { %v9237_v54 = vpop.f32.mrf.mxu2 }
 0x4bd   : > { %v9495_v38 = vadd.f32 %v9494_v25, %v9406_v29  ;;  %v9238_v63 = vadd.f32 %v9237_v54, %v9149_v41  ;;  %v9151_v29 = vadd.f32 %v14768_v61, %v14575_v18 }
 0x4bf   : > { %v9582_v24 = vadd.f32 %v9550_v16, %v9495_v38 }
 0x4c0   : > { %v9318_v15 = vpop.f32.mrf.mxu3 }
 0x4c1   : > { %v9614_v53 = vmax.f32 %v9582_v24, 0.0  ;;  %v9319_v48 = vadd.f32 %v9318_v15, %v9230_v42  ;;  %v9496_v1 = vpop.f32.mrf.mxu1 }
 0x4c2   : > { %v9407_v11 = vpop.f32.mrf.mxu0 }
 0x4c3   : > { %9646 = vst.msk [vmem:[%s14796_s16 + $0x80] sm:$0xff] %vm4447_vm0, %v9614_v53  ;;  %v9408_v51 = vadd.f32 %v9407_v11, %v9319_v48  ;;  %v9555_v53 = vld [vmem:[%s11270_s9 + $0xa8] sm:$0xff]  ;;  %v9154_v48 = vadd.f32 %v14768_v61, %v14586_v50 }
 0x4c4   : > { %v9239_v56 = vpop.f32.mrf.mxu2 }
 0x4c5   : > { %v9497_v20 = vadd.f32 %v9496_v1, %v9408_v51  ;;  %v9240_v39 = vadd.f32 %v9239_v56, %v9151_v29 }
 0x4c7   : > { %v9583_v49 = vadd.f32 %v9551_v44, %v9497_v20 }
 0x4c8   : > { %v9321_v31 = vpop.f32.mrf.mxu3 }
 0x4c9   : > { %v9615_v7 = vmax.f32 %v9583_v49, 0.0  ;;  %v9322_v12 = vadd.f32 %v9321_v31, %v9233_v59  ;;  %v9499_v19 = vpop.f32.mrf.mxu1  ;;  %v9556_v31 = vld [vmem:[%s11270_s9 + $0xb0] sm:$0xff] }
 0x4ca   : > { %v9410_v17 = vpop.f32.mrf.mxu0 }
 0x4cb   : > { %9647 = vst.msk [vmem:[%s14796_s16 + $0x88] sm:$0xff] %vm4447_vm0, %v9615_v7  ;;  %v9411_v46 = vadd.f32 %v9410_v17, %v9322_v12  ;;  %v14994_v7 = vld [vmem:[%s15081_s4] ss:$0 sm:$0xff] }
 0x4cc   : > { %v9242_v57 = vpop.f32.mrf.mxu2  ;;  %v9156_v50 = vadd.f32 %v14994_v7, %v14606_v55 }
 0x4cd   : > { %v9500_v23 = vadd.f32 %v9499_v19, %v9411_v46  ;;  %v9243_v18 = vadd.f32 %v9242_v57, %v9154_v48 }
 0x4cf   : > { %v9584_v45 = vadd.f32 %v9552_v34, %v9500_v23 }
 0x4d0   : > { %v9323_v27 = vpop.f32.mrf.mxu3 }
 0x4d1   : > { %v9324_v26 = vadd.f32 %v9323_v27, %v9235_v3  ;;  %v9616_v2 = vmax.f32 %v9584_v45, 0.0  ;;  %v9501_v37 = vpop.f32.mrf.mxu1  ;;  %v9557_v27 = vld [vmem:[%s11270_s9 + $0xb8] sm:$0xff] }
 0x4d2   : > { %v9412_v8 = vpop.f32.mrf.mxu0 }
 0x4d3   : > { %9648 = vst.msk [vmem:[%s14796_s16 + $0x90] sm:$0xff] %vm4447_vm0, %v9616_v2  ;;  %v9413_v32 = vadd.f32 %v9412_v8, %v9324_v26  ;;  %v9159_v26 = vadd.f32 %v14994_v7, %v14624_v13 }
 0x4d4   : > { %v9244_v43 = vpop.f32.mrf.mxu2 }
 0x4d5   : > { %v9502_v6 = vadd.f32 %v9501_v37, %v9413_v32  ;;  %v9245_v12 = vadd.f32 %v9244_v43, %v9156_v50  ;;  %v9561_v50 = vld [vmem:[%s11270_s9 + $0xd8] sm:$0xff] }
 0x4d7   : > { %v9585_v9 = vadd.f32 %v9553_v47, %v9502_v6 }
 0x4d8   : > { %v9326_v10 = vpop.f32.mrf.mxu3 }
 0x4d9   : > { %v9617_v36 = vmax.f32 %v9585_v9, 0.0  ;;  %v9327_v52 = vadd.f32 %v9326_v10, %v9238_v63  ;;  %v9504_v30 = vpop.f32.mrf.mxu1  ;;  %v9558_v9 = vld [vmem:[%s11270_s9 + $0xc0] sm:$0xff]  ;;  %v9161_v10 = vadd.f32 %v14994_v7, %v14643_v33 }
 0x4da   : > { %v9415_v35 = vpop.f32.mrf.mxu0 }
 0x4db   : > { %9649 = vst.msk [vmem:[%s14796_s16 + $0x98] sm:$0xff] %vm4447_vm0, %v9617_v36  ;;  %v9416_v62 = vadd.f32 %v9415_v35, %v9327_v52 }
 0x4dc   : > { %v9247_v11 = vpop.f32.mrf.mxu2 }
 0x4dd   : > { %v9505_v25 = vadd.f32 %v9504_v30, %v9416_v62  ;;  %v9248_v55 = vadd.f32 %v9247_v11, %v9159_v26  ;;  %v9560_v11 = vld [vmem:[%s11270_s9 + $0xd0] sm:$0xff]  ;;  %v9171_v26 = vadd.f32 %v14994_v7, %v14740_v58 }
 0x4df   : > { %v9586_v16 = vadd.f32 %v9554_v5, %v9505_v25 }
 0x4e0   : > { %v9328_v22 = vpop.f32.mrf.mxu3 }
 0x4e1   : > { %v9618_v38 = vmax.f32 %v9586_v16, 0.0  ;;  %v9329_v54 = vadd.f32 %v9328_v22, %v9240_v39  ;;  %v9506_v24 = vpop.f32.mrf.mxu1  ;;  %v9559_v39 = vld [vmem:[%s11270_s9 + $0xc8] sm:$0xff]  ;;  %v9164_v16 = vadd.f32 %v14994_v7, %v14664_v21 }
 0x4e2   : > { %v9417_v42 = vpop.f32.mrf.mxu0 }
 0x4e3   : > { %9650 = vst.msk [vmem:[%s14796_s16 + $0xa0] sm:$0xff] %vm4447_vm0, %v9618_v38  ;;  %v9418_v15 = vadd.f32 %v9417_v42, %v9329_v54 }
 0x4e4   : > { %v9249_v17 = vpop.f32.mrf.mxu2 }
 0x4e5   : > { %v9507_v51 = vadd.f32 %v9506_v24, %v9418_v15  ;;  %v9250_v13 = vadd.f32 %v9249_v17, %v9161_v10 }
 0x4e7   : > { %v9587_v1 = vadd.f32 %v9555_v53, %v9507_v51  ;;  %v9166_v51 = vadd.f32 %v14994_v7, %v14690_v40 }
 0x4e8   : > { %v9331_v44 = vpop.f32.mrf.mxu3 }
 0x4e9   : > { %v9619_v4 = vmax.f32 %v9587_v1, 0.0  ;;  %v9332_v20 = vadd.f32 %v9331_v44, %v9243_v18  ;;  %v9509_v49 = vpop.f32.mrf.mxu1 }
 0x4ea   : > { %v9420_v59 = vpop.f32.mrf.mxu0 }
 0x4eb   : > { %9651 = vst.msk [vmem:[%s14796_s16 + $0xa8] sm:$0xff] %vm4447_vm0, %v9619_v4  ;;  %v9421_v56 = vadd.f32 %v9420_v59, %v9332_v20 }
 0x4ec   : > { %v9252_v37 = vpop.f32.mrf.mxu2 }
 0x4ed   : > { %v9510_v61 = vadd.f32 %v9509_v49, %v9421_v56  ;;  %v9253_v33 = vadd.f32 %v9252_v37, %v9164_v16 }
 0x4ef   : > { %v9588_v19 = vadd.f32 %v9556_v31, %v9510_v61  ;;  %v9169_v61 = vadd.f32 %v14994_v7, %v14717_v60 }
 0x4f0   : > { %v9333_v46 = vpop.f32.mrf.mxu3 }
 0x4f1   : > { %v9620_v28 = vmax.f32 %v9588_v19, 0.0  ;;  %v9334_v34 = vadd.f32 %v9333_v46, %v9245_v12  ;;  %v9511_v3 = vpop.f32.mrf.mxu1 }
 0x4f2   : > { %v9422_v23 = vpop.f32.mrf.mxu0 }
 0x4f3   : > { %9652 = vst.msk [vmem:[%s14796_s16 + $0xb0] sm:$0xff] %vm4447_vm0, %v9620_v28  ;;  %v9423_v45 = vadd.f32 %v9422_v23, %v9334_v34 }
 0x4f4   : > { %v9254_v29 = vpop.f32.mrf.mxu2 }
 0x4f5   : > { %v9512_v2 = vadd.f32 %v9511_v3, %v9423_v45  ;;  %v9255_v21 = vadd.f32 %v9254_v29, %v9166_v51  ;;  %v9564_v29 = vld [vmem:[%s11270_s9 + $0xf0] sm:$0xff] }
 0x4f7   : > { %v9589_v57 = vadd.f32 %v9557_v27, %v9512_v2  ;;  %v9562_v27 = vld [vmem:[%s11270_s9 + $0xe0] sm:$0xff] }
 0x4f8   : > { %v9336_v8 = vpop.f32.mrf.mxu3 }
 0x4f9   : > { %v9621_v32 = vmax.f32 %v9589_v57, 0.0  ;;  %v9337_v47 = vadd.f32 %v9336_v8, %v9248_v55  ;;  %v9514_v6 = vpop.f32.mrf.mxu1 }
 0x4fa   : > { %v9425_v41 = vpop.f32.mrf.mxu0 }
 0x4fb   : > { %9653 = vst.msk [vmem:[%s14796_s16 + $0xb8] sm:$0xff] %vm4447_vm0, %v9621_v32  ;;  %v9426_v63 = vadd.f32 %v9425_v41, %v9337_v47 }
 0x4fc   : > { %v9257_v18 = vpop.f32.mrf.mxu2 }
 0x4fd   : > { %v9515_v36 = vadd.f32 %v9514_v6, %v9426_v63  ;;  %v9258_v40 = vadd.f32 %v9257_v18, %v9169_v61  ;;  %v9563_v63 = vld [vmem:[%s11270_s9 + $0xe8] sm:$0xff] }
 0x4ff   : > { %v9590_v52 = vadd.f32 %v9558_v9, %v9515_v36  ;;  %v9174_v9 = vadd.f32 %v14994_v7, %v14754_v0  ;;  %v9176_v0 = vadd.f32 %v14994_v7, %v14770_v14  ;;  %v9565_v14 = vld [vmem:[%s11270_s9 + $0xf8] sm:$0xff] }
 0x500   : > { %v9338_v35 = vpop.f32.mrf.mxu3 }
 0x501   : > { %v9622_v30 = vmax.f32 %v9590_v52, 0.0  ;;  %v9339_v43 = vadd.f32 %v9338_v35, %v9250_v13  ;;  %v9516_v5 = vpop.f32.mrf.mxu1 }
 0x502   : > { %v9427_v62 = vpop.f32.mrf.mxu0 }
 0x503   : > { %9654 = vst.msk [vmem:[%s14796_s16 + $0xc0] sm:$0xff] %vm4447_vm0, %v9622_v30  ;;  %v9428_v25 = vadd.f32 %v9427_v62, %v9339_v43 }
 0x504   : > { %v9259_v17 = vpop.f32.mrf.mxu2 }
 0x505   : > { %v9517_v22 = vadd.f32 %v9516_v5, %v9428_v25  ;;  %v9260_v60 = vadd.f32 %v9259_v17, %v9171_v26 }
 0x507   : > { %v9591_v38 = vadd.f32 %v9559_v39, %v9517_v22 }
 0x508   : > { %v9341_v54 = vpop.f32.mrf.mxu3 }
 0x509   : > { %v9623_v42 = vmax.f32 %v9591_v38, 0.0  ;;  %v9342_v24 = vadd.f32 %v9341_v54, %v9253_v33  ;;  %v9519_v53 = vpop.f32.mrf.mxu1 }
 0x50a   : > { %v9430_v15 = vpop.f32.mrf.mxu0 }
 0x50b   : > { %9655 = vst.msk [vmem:[%s14796_s16 + $0xc8] sm:$0xff] %vm4447_vm0, %v9623_v42  ;;  %v9431_v48 = vadd.f32 %v9430_v15, %v9342_v24 }
 0x50c   : > { %v9262_v8 = vpop.f32.mrf.mxu2 }
 0x50d   : > { %v9520_v1 = vadd.f32 %v9519_v53, %v9431_v48  ;;  %v9263_v58 = vadd.f32 %v9262_v8, %v9174_v9 }
 0x50f   : > { %v9592_v44 = vadd.f32 %v9560_v11, %v9520_v1 }
 0x510   : > { %v9343_v4 = vpop.f32.mrf.mxu3 }
 0x511   : > { %v9624_v20 = vmax.f32 %v9592_v44, 0.0  ;;  %v9344_v59 = vadd.f32 %v9343_v4, %v9255_v21  ;;  %v9521_v56 = vpop.f32.mrf.mxu1 }
 0x512   : > { %v9432_v49 = vpop.f32.mrf.mxu0 }
 0x513   : > { %9656 = vst.msk [vmem:[%s14796_s16 + $0xd0] sm:$0xff] %vm4447_vm0, %v9624_v20  ;;  %v9433_v31 = vadd.f32 %v9432_v49, %v9344_v59 }
 0x514   : > { %v9264_v5 = vpop.f32.mrf.mxu2 }
 0x515   : > { %v9522_v12 = vadd.f32 %v9521_v56, %v9433_v31  ;;  %v9265_v39 = vadd.f32 %v9264_v5, %v9176_v0 }
 0x517   : > { %v9593_v19 = vadd.f32 %v9561_v50, %v9522_v12 }
 0x518   : > { %v9346_v46 = vpop.f32.mrf.mxu3 }
 0x519   : > { %v9625_v28 = vmax.f32 %v9593_v19, 0.0  ;;  %v9347_v34 = vadd.f32 %v9346_v46, %v9258_v40  ;;  %v9524_v3 = vpop.f32.mrf.mxu1 }
 0x51a   : > { %v9435_v23 = vpop.f32.mrf.mxu0 }
 0x51b   : > { %9657 = vst.msk [vmem:[%s14796_s16 + $0xd8] sm:$0xff] %vm4447_vm0, %v9625_v28  ;;  %v9436_v45 = vadd.f32 %v9435_v23, %v9347_v34 }
 0x51d   : > { %v9525_v2 = vadd.f32 %v9524_v3, %v9436_v45 }
 0x51f   : > { %v9594_v55 = vadd.f32 %v9562_v27, %v9525_v2 }
 0x520   : > { %v9348_v57 = vpop.f32.mrf.mxu3 }
 0x521   : > { %v9626_v37 = vmax.f32 %v9594_v55, 0.0  ;;  %v9349_v32 = vadd.f32 %v9348_v57, %v9260_v60  ;;  %v9526_v41 = vpop.f32.mrf.mxu1 }
 0x522   : > { %v9437_v47 = vpop.f32.mrf.mxu0 }
 0x523   : > { %9658 = vst.msk [vmem:[%s14796_s16 + $0xe0] sm:$0xff] %vm4447_vm0, %v9626_v37  ;;  %v9438_v6 = vadd.f32 %v9437_v47, %v9349_v32 }
 0x525   : > { %v9527_v10 = vadd.f32 %v9526_v41, %v9438_v6 }
 0x527   : > { %v9595_v36 = vadd.f32 %v9563_v63, %v9527_v10 }
 0x528   : > { %v9351_v13 = vpop.f32.mrf.mxu3 }
 0x529   : > { %v9627_v52 = vmax.f32 %v9595_v36, 0.0  ;;  %v9352_v35 = vadd.f32 %v9351_v13, %v9263_v58  ;;  %v9529_v43 = vpop.f32.mrf.mxu1 }
 0x52a   : > { %v9440_v30 = vpop.f32.mrf.mxu0 }
 0x52b   : > { %9659 = vst.msk [vmem:[%s14796_s16 + $0xe8] sm:$0xff] %vm4447_vm0, %v9627_v52  ;;  %v9441_v62 = vadd.f32 %v9440_v30, %v9352_v35 }
 0x52d   : > { %v9530_v25 = vadd.f32 %v9529_v43, %v9441_v62 }
 0x52f   : > { %v9596_v16 = vadd.f32 %v9564_v29, %v9530_v25 }
 0x530   : > { %v9353_v22 = vpop.f32.mrf.mxu3 }
 0x531   : > { %v9628_v33 = vmax.f32 %v9596_v16, 0.0  ;;  %v9354_v38 = vadd.f32 %v9353_v22, %v9265_v39  ;;  %v9531_v24 = vpop.f32.mrf.mxu1 }
 0x532   : > { %v9442_v54 = vpop.f32.mrf.mxu0 }
 0x533   : > { %9660 = vst.msk [vmem:[%s14796_s16 + $0xf0] sm:$0xff] %vm4447_vm0, %v9628_v33  ;;  %v9443_v42 = vadd.f32 %v9442_v54, %v9354_v38 }
 0x535   : > { %v9532_v7 = vadd.f32 %v9531_v24, %v9443_v42 }
 0x537   : > { %v9597_v15 = vadd.f32 %v9565_v14, %v9532_v7 }
 0x539   : > { %v9629_v53 = vmax.f32 %v9597_v15, 0.0 }
 0x53b   : > { %9661 = vst.msk [vmem:[%s14796_s16 + $0xf8] sm:$0xff] %vm4447_vm0, %v9629_v53 }
 0x53c   : > { %11136 = shalt.err (!%p11133_p3)
}
 0x53d   : > { %s11175_s15 = smov 128   ;;  %s11176_s16 = smov 8  }
 0x53e   : > { %11058 = dma.vmem_to_hbm [thread:$0]  (%p11245_p5), %s9676_s7, 4096, %s9678_s8, %s9663_s22, %s11175_s15, %s11175_s15, %s11176_s16  }
 0x53f PF: > { %p11064_p4 = scmp.ge.s32.totalorder %s11171_s21, 2  ;;  %s9692_s23 = sand.u32 1, %s11159_s18  }
 0x540   : > { %s9693_s25 = scalar_lea.sflag [#allocation5], %s9692_s23 }
 0x541   : > { %p11061_p7 = pnand %p11064_p4, %p11249_p6 }
 0x543   : > { %p11062_p8 = pneg %p11061_p7 }
 0x545   : > { %11154 = dma.done.wait (%p11062_p8), %s9693_s25, 4096  }
 0x546   : > { %11156 = vsyncadd (%p11062_p8), %s9693_s25, 4294963200  ;;  %p15_p9 = scmp.ge.s32.totalorder %s11232_s24, 4   ;;  %s15149_s18 = smov %s11163_s19 }
 0x547   : > { %s15150_s19 = smov %s11167_s20  ;;  %s15151_s20 = smov %s11243_s27 }
 0x548   : > { %s15152_s21 = smov %s11232_s24  ;;  %17 = sbr.rel (!%p15_p9) target bundleno = 3 (0x3), region = 78 }
 0x54d   :  { %9699 = vsyncpa [#allocation5], 1 }
 0x54e   :  { %9701 = vsyncpa [#allocation5 + $0x1], 1 }

</bundles_post_ra>
